<compile_context>
chip_gen: v6e
topology: v6e:2x2x1
jax: 0.10.0
libtpu: 0.0.40
codegen_flags: <defaults>
</compile_context>

<pallas_src>
import math
import functools

import jax
import jax.numpy as jnp
from jax.experimental import pallas as pl
from jax.experimental.pallas import tpu as pltpu

LN_EPS = 1e-5  # nn.LayerNorm default


# ----------------------------- in-kernel helpers -----------------------------

def _layer_norm(x, gamma, beta):
    mu = jnp.mean(x, axis=-1, keepdims=True)
    var = jnp.mean((x - mu) ** 2, axis=-1, keepdims=True)
    return (x - mu) * jax.lax.rsqrt(var + LN_EPS) * gamma + beta


def _erf(x):
    # Abramowitz & Stegun 7.1.26 (|err| ~ 1.5e-7 ~= f32 eps): exact-GELU
    # semantics using only exp/mul/add/where (VPU + EUP).
    a1, a2, a3, a4, a5 = 0.254829592, -0.284496736, 1.421413741, -1.453152027, 1.061405429
    pp = 0.3275911
    ax = jnp.abs(x)
    t = 1.0 / (1.0 + pp * ax)
    poly = ((((a5 * t + a4) * t + a3) * t + a2) * t + a1) * t
    y = 1.0 - poly * jnp.exp(-ax * ax)
    return jnp.where(x >= 0, y, -y)


def _gelu_exact(x):
    return 0.5 * x * (1.0 + _erf(x * 0.7071067811865476))


# ------------------------------ the fused kernel ------------------------------

def _prior_kernel(*refs, hd, hpc, chq, has_bias):
    """grid = (num_layers, chq + chf).  Phases p < chq: one head-group of the
    attention (qkv chunk + per-head SDPA + w_o row-block accumulate).  Phases
    p >= chq: one ff column chunk.  Weight chunks are selected by BlockSpec
    index maps; the kernel body only sees the current chunk."""
    f32, bf16 = jnp.float32, jnp.bfloat16

    (tproj_ref, pemb_ref, hsin_ref, enc_ref,
     tw1_ref, tb1_ref, tw2_ref, tb2_ref,
     wemb_ref, bemb_ref, win_ref, bin_ref, wenc_ref, benc_ref,
     prd_ref, pos_ref) = refs[:16]
    i = 16
    if has_bias:
        bias_ref = refs[i]
        i += 1
    else:
        bias_ref = None
    (ln1g_ref, ln1b_ref, wqkv_ref, bqkv_ref, wo_ref, bo_ref,
     ln3g_ref, ln3b_ref, wff1_ref, bff1_ref, wff2_ref, bff2_ref) = refs[i:i + 12]
    i += 12
    nog_ref, nob_ref, wclip_ref, bclip_ref = refs[i:i + 4]
    pred_ref = refs[i + 4]
    tok, hbuf, acc = refs[i + 5:i + 8]

    l = pl.program_id(0)
    p = pl.program_id(1)
    n_l = pl.num_programs(0)
    n_p = pl.num_programs(1)

    B, S, D = tok.shape
    BS = B * S
    scale = 1.0 / math.sqrt(hd)

    # ---- (layer 0, phase 0): input projections + token assembly (fused embed)
    @pl.when(jnp.logical_and(l == 0, p == 0))
    def _embed():
        _, NE, E = enc_ref.shape
        # TimestepEmbedding: linear_1 -> SiLU -> linear_2
        th = jnp.dot(tproj_ref[...].astype(bf16), tw1_ref[...],
                     preferred_element_type=f32) + tb1_ref[...]
        th = th * jax.nn.sigmoid(th)
        time_emb = jnp.dot(th.astype(bf16), tw2_ref[...],
                           preferred_element_type=f32) + tb2_ref[...]
        # embedding_proj / proj_in (no pre-norm: embedding_proj_norm_type=None)
        proj_emb = jnp.dot(pemb_ref[...].astype(bf16), wemb_ref[...],
                           preferred_element_type=f32) + bemb_ref[...]
        hsp = jnp.dot(hsin_ref[...].astype(bf16), win_ref[...],
                      preferred_element_type=f32) + bin_ref[...]
        # encoder projection flattened to one (B*NE, E) x (E, D) matmul
        enc = jnp.dot(enc_ref[...].reshape(B * NE, E).astype(bf16), wenc_ref[...],
                      preferred_element_type=f32) + benc_ref[...]
        enc = enc.reshape(B, NE, D)
        prd = jnp.broadcast_to(prd_ref[...], (B, 1, D))
        pos = pos_ref[...]                                   # (1, S, D)
        # token order: [encoder(NE), proj, time, hidden, prd]  (+ positional)
        tok[:, 0:NE, :] = enc + pos[:, 0:NE, :]
        tok[:, NE:NE + 1, :] = proj_emb[:, None, :] + pos[:, NE:NE + 1, :]
        tok[:, NE + 1:NE + 2, :] = time_emb[:, None, :] + pos[:, NE + 1:NE + 2, :]
        tok[:, NE + 2:NE + 3, :] = hsp[:, None, :] + pos[:, NE + 2:NE + 3, :]
        tok[:, NE + 3:NE + 4, :] = prd + pos[:, NE + 3:NE + 4, :]

    # ---- phase 0: LayerNorm1 into hbuf, reset the out-projection accumulator
    @pl.when(p == 0)
    def _ln1():
        x = tok[...].reshape(BS, D)
        hbuf[...] = _layer_norm(x, ln1g_ref[0], ln1b_ref[0])
        acc[...] = jnp.zeros_like(acc)

    # ---- qkv phases p in [0, chq): one head-group per phase -------------------
    @pl.when(p < chq)
    def _attn_chunk():
        h = hbuf[...]
        # qkv chunk columns are per-head interleaved: head j -> [q_j | k_j | v_j]
        qkv = jnp.dot(h.astype(bf16), wqkv_ref[0],
                      preferred_element_type=f32) + bqkv_ref[0]
        if has_bias:
            bias = bias_ref[...]                 # (B, S, S), same for every head
        for j in range(hpc):                     # static unroll over the group
            base = j * 3 * hd
            q = qkv[:, base:base + hd].reshape(B, S, hd).astype(bf16)
            k = qkv[:, base + hd:base + 2 * hd].reshape(B, S, hd).astype(bf16)
            v = qkv[:, base + 2 * hd:base + 3 * hd].reshape(B, S, hd).astype(bf16)
            s = jnp.einsum('bqd,bkd->bqk', q, k, preferred_element_type=f32) * scale
            if has_bias:
                s = s + bias
            m = jnp.max(s, axis=-1, keepdims=True)
            pr = jnp.exp(s - m)
            pr = pr / jnp.sum(pr, axis=-1, keepdims=True)    # exact softmax
            o = jnp.einsum('bqk,bkd->bqd', pr.astype(bf16), v,
                           preferred_element_type=f32)
            # out-projection as a sum over heads -> no head concat, no relayout
            acc[...] += jnp.dot(o.reshape(BS, hd).astype(bf16),
                                wo_ref[0, j * hd:(j + 1) * hd, :],
                                preferred_element_type=f32)

    # ---- first ff phase: finish attention (bias + residual) and LN3 ----------
    @pl.when(p == chq)
    def _attn_done():
        x = tok[...].reshape(BS, D) + acc[...] + bo_ref[0]
        tok[...] = x.reshape(B, S, D)
        hbuf[...] = _layer_norm(x, ln3g_ref[0], ln3b_ref[0])
        acc[...] = jnp.zeros_like(acc)

    # ---- ff phases p in [chq, n_p): one ff column chunk per phase ------------
    @pl.when(p >= chq)
    def _ff_chunk():
        h = hbuf[...]
        ff = jnp.dot(h.astype(bf16), wff1_ref[0],
                     preferred_element_type=f32) + bff1_ref[0]
        ff = _gelu_exact(ff)
        acc[...] += jnp.dot(ff.astype(bf16), wff2_ref[0],
                            preferred_element_type=f32)

    # ---- last phase: ff residual into the resident token stream --------------
    @pl.when(p == n_p - 1)
    def _layer_done():
        x = tok[...].reshape(BS, D) + acc[...] + bff2_ref[0]
        tok[...] = x.reshape(B, S, D)

    # ---- fused head on the very last grid step --------------------------------
    # (LayerNorm is per-token so norm_out commutes with the prd-token slice.)
    @pl.when(jnp.logical_and(l == n_l - 1, p == n_p - 1))
    def _head():
        last = tok[...][:, S - 1, :]                         # (B, D) prd token
        y = _layer_norm(last, nog_ref[...], nob_ref[...])
        pred_ref[...] = jnp.dot(y.astype(bf16), wclip_ref[...],
                                preferred_element_type=f32) + bclip_ref[...]


# ------------------------------ chunking heuristic -----------------------------

def _derive_chunking(cfg, chunk_budget_bytes=12 << 20):
    """Pick head-group / ff-column chunk sizes so each streamed bf16 weight
    block stays under ~budget (=> double-buffered it fits 64 MiB v7x VMEM)."""
    H = cfg["num_attention_heads"]
    hd = cfg["attention_head_dim"]
    D = H * hd
    F = 4 * D
    divisors = [d for d in range(1, H + 1) if H % d == 0]
    valid = [d for d in divisors if (3 * d * hd) % 128 == 0] or [H]
    fitting = [d for d in valid if D * 3 * d * hd * 2 <= chunk_budget_bytes]
    hpc = max(fitting) if fitting else min(valid)            # heads per chunk
    chq = H // hpc                                           # qkv phases
    fc = F                                                   # ff chunk width
    while fc > 128 and 2 * D * fc * 2 > chunk_budget_bytes:
        nxt = fc // 2
        if F % nxt == 0 and nxt % 128 == 0:
            fc = nxt
        else:
            break
    chf = F // fc                                            # ff phases
    return chq, hpc, chf, fc


# ------------------------------- full forward ---------------------------------

def prior_transformer_forward(params, cfg, hidden_states, timestep, proj_embedding,
                              encoder_hidden_states, attention_mask=None,
                              return_dict=True):
    # The optimum-rbln _PriorTransformer wrapper always forwards with
    # return_dict=False, so we always return the raw 1-tuple.
    del return_dict
    H = cfg["num_attention_heads"]
    hd = cfg["attention_head_dim"]
    D = H * hd
    F = 4 * D
    add_emb = cfg["additional_embeddings"]
    NE = cfg["num_embeddings"]
    S = NE + add_emb
    B = hidden_states.shape[0]
    L = cfg["num_layers"]
    C = params["clip_w"].shape[1]
    E = hidden_states.shape[1]
    T = params["time_w1"].shape[1]

    # --- timestep -> sinusoidal projection (flip_sin_to_cos=True, shift=0) [glue]
    timesteps = jnp.asarray(timestep)
    if timesteps.ndim == 0:
        timesteps = timesteps[None]
    timesteps = timesteps * jnp.ones((B,), dtype=timesteps.dtype)
    half = D // 2
    freqs = jnp.exp(-math.log(10000.0) * jnp.arange(half, dtype=jnp.float32) / half)
    ang = timesteps.astype(jnp.float32)[:, None] * freqs[None, :]
    t_proj = jnp.concatenate([jnp.sin(ang), jnp.cos(ang)], axis=-1)
    t_proj = jnp.concatenate([t_proj[:, half:], t_proj[:, :half]], axis=-1)

    # --- attention bias: only materialized when a mask is given (matches diffusers)
    if attention_mask is not None:
        causal = jnp.triu(jnp.full((S, S), -10000.0, dtype=jnp.float32), k=1)
        am = (1.0 - attention_mask.astype(jnp.float32)) * -10000.0
        am = jnp.pad(am, ((0, 0), (0, add_emb)))
        bias = am[:, None, :] + causal[None]      # identical for every head
    else:
        bias = None
    has_bias = bias is not None

    chq, hpc, chf, fc = _derive_chunking(cfg, cfg.get("weight_chunk_bytes", 12 << 20))
    gw = hpc * hd            # w_o row-chunk height / head-group width
    gw3 = 3 * gw             # qkv column-chunk width
    n_phase = chq + chf
    lp = params["layers"]

    # (array, block_shape, index_map) triples -> specs + VMEM estimate stay in sync.
    def _const(arr):
        nd = arr.ndim
        return (arr, arr.shape, lambda l, p, _n=nd: (0,) * _n)

    def _per_layer(arr):
        return (arr, (1,) + arr.shape[1:], lambda l, p: (l, 0, 0))

    qkv_map = lambda l, p: (l, 0, jnp.minimum(p, chq - 1))
    wo_map = lambda l, p: (l, jnp.minimum(p, chq - 1), 0)
    ff_col_map = lambda l, p: (l, 0, jnp.maximum(p - chq, 0))
    ff_row_map = lambda l, p: (l, jnp.maximum(p - chq, 0), 0)

    triples = [
        _const(t_proj), _const(proj_embedding), _const(hidden_states),
        _const(encoder_hidden_states),
        _const(params["time_w1"]), _const(params["time_b1"]),
        _const(params["time_w2"]), _const(params["time_b2"]),
        _const(params["emb_proj_w"]), _const(params["emb_proj_b"]),
        _const(params["proj_in_w"]), _const(params["proj_in_b"]),
        _const(params["enc_proj_w"]), _const(params["enc_proj_b"]),
        _const(params["prd_emb"]), _const(params["pos_emb"]),
    ]
    if has_bias:
        triples.append(_const(bias))
    triples += [
        _per_layer(lp["ln1_g"]), _per_layer(lp["ln1_b"]),
        (lp["w_qkv"], (1, D, gw3), qkv_map),        # head-group column chunks
        (lp["b_qkv"], (1, 1, gw3), qkv_map),
        (lp["w_o"], (1, gw, D), wo_map),            # matching row chunks
        _per_layer(lp["b_o"]),
        _per_layer(lp["ln3_g"]), _per_layer(lp["ln3_b"]),
        (lp["w_ff1"], (1, D, fc), ff_col_map),      # ff column chunks
        (lp["b_ff1"], (1, 1, fc), ff_col_map),
        (lp["w_ff2"], (1, fc, D), ff_row_map),      # matching row chunks
        _per_layer(lp["b_ff2"]),
        _const(params["norm_out_g"]), _const(params["norm_out_b"]),
        _const(params["clip_w"]), _const(params["clip_b"]),
    ]
    inputs = [t[0] for t in triples]
    in_specs = [pl.BlockSpec(t[1], t[2]) for t in triples]

    # VMEM budget: double-buffered input blocks + f32 scratches + output + margin,
    # re-derived per config and capped at v7x's 64 MiB.
    blk_bytes = sum(math.prod(t[1]) * t[0].dtype.itemsize for t in triples)
    scratch_bytes = 3 * B * S * D * 4
    vmem_limit = 2 * blk_bytes + scratch_bytes + B * C * 4 + (8 << 20)
    vmem_limit = int(max(32 << 20, min(64 << 20, vmem_limit)))

    # advisory cost estimate so XLA schedules the glue ops around the long call
    BS = B * S
    flops_layer = (2 * BS * D * 3 * D + 4 * B * H * S * S * hd
                   + 2 * BS * D * D + 4 * BS * D * F)
    flops_embed = 4 * B * D * T + 4 * B * E * D + 2 * B * NE * E * D
    cost = pl.CostEstimate(
        flops=int(L * flops_layer + flops_embed + 2 * B * D * C),
        transcendentals=int(L * (B * H * S * S + BS * F) + B * T),
        bytes_accessed=int(sum(int(a.size) * a.dtype.itemsize for a in inputs)
                           + B * C * 4),
    )

    kernel = functools.partial(_prior_kernel, hd=hd, hpc=hpc, chq=chq,
                               has_bias=has_bias)
    pred = pl.pallas_call(
        kernel,
        out_shape=jax.ShapeDtypeStruct((B, C), jnp.float32),
        grid=(L, n_phase),
        in_specs=in_specs,
        out_specs=pl.BlockSpec((B, C), lambda l, p: (0, 0)),
        scratch_shapes=[pltpu.VMEM((B, S, D), jnp.float32),      # residual stream
                        pltpu.VMEM((B * S, D), jnp.float32),     # LN1 / LN3 activations
                        pltpu.VMEM((B * S, D), jnp.float32)],    # attn / ff accumulator
        compiler_params=pltpu.CompilerParams(
            dimension_semantics=("arbitrary", "arbitrary"),
            vmem_limit_bytes=vmem_limit),
        cost_estimate=cost,
    )(*inputs)
    return (pred,)


# ------------------------------- parameters -----------------------------------

def init_params(key, cfg):
    D = cfg["num_attention_heads"] * cfg["attention_head_dim"]
    E = cfg["embedding_dim"]
    S = cfg["num_embeddings"] + cfg["additional_embeddings"]
    C = cfg.get("clip_embed_dim", E)
    T = cfg.get("time_embed_dim", D)
    F = 4 * D
    L = cfg["num_layers"]
    std = 0.02
    bf16 = jnp.bfloat16
    keys = iter(jax.random.split(key, 64))

    def nrm(shape, scale=std, dtype=jnp.float32):
        return (scale * jax.random.normal(next(keys), shape, jnp.float32)).astype(dtype)

    params = {
        # matmul weights stored bf16 (MXU operands); biases / LN params f32.
        "time_w1": nrm((D, T), dtype=bf16), "time_b1": nrm((1, T), 0.01),
        "time_w2": nrm((T, D), dtype=bf16), "time_b2": nrm((1, D), 0.01),
        "proj_in_w": nrm((E, D), dtype=bf16), "proj_in_b": nrm((1, D), 0.01),
        "emb_proj_w": nrm((E, D), dtype=bf16), "emb_proj_b": nrm((1, D), 0.01),
        "enc_proj_w": nrm((E, D), dtype=bf16), "enc_proj_b": nrm((1, D), 0.01),
        "pos_emb": nrm((1, S, D)),
        "prd_emb": nrm((1, 1, D)),
        "norm_out_g": 1.0 + nrm((1, D)), "norm_out_b": nrm((1, D), 0.01),
        "clip_w": nrm((D, C), dtype=bf16), "clip_b": nrm((1, C), 0.01),
        "clip_mean": nrm((1, C)),          # present in __init__; unused in forward
        "clip_std": 1.0 + nrm((1, C)),     # present in __init__; unused in forward
    }
    # Per-layer weights stacked on a leading L axis for in-kernel streaming.
    # Column layout convention for w_qkv / b_qkv: per-head interleaved,
    # head h owns columns [3*hd*h, 3*hd*(h+1)) = [Wq_h | Wk_h | Wv_h]; w_o rows
    # are ordered by head.  (Random init here; a checkpoint loader must repack.)
    params["layers"] = {
        "ln1_g": 1.0 + nrm((L, 1, D)), "ln1_b": nrm((L, 1, D), 0.01),
        "w_qkv": nrm((L, D, 3 * D), dtype=bf16), "b_qkv": nrm((L, 1, 3 * D), 0.01),
        "w_o": nrm((L, D, D), dtype=bf16), "b_o": nrm((L, 1, D), 0.01),
        "ln3_g": 1.0 + nrm((L, 1, D)), "ln3_b": nrm((L, 1, D), 0.01),
        "w_ff1": nrm((L, D, F), dtype=bf16), "b_ff1": nrm((L, 1, F), 0.01),
        "w_ff2": nrm((L, F, D), dtype=bf16), "b_ff2": nrm((L, 1, D), 0.01),
    }
    return params


# ----------------------------------- main --------------------------------------

if __name__ == "__main__":
    cfg = dict(
        num_attention_heads=2,
        attention_head_dim=128,   # inner_dim D = 256: lane-dense, 128-aligned heads
        num_layers=2,
        embedding_dim=32,
        num_embeddings=12,
        additional_embeddings=4,  # seq len S = 16 (sublane-dense)
    )
    B = 2
    E = cfg["embedding_dim"]

    root = jax.random.PRNGKey(0)
    pkey, k1, k2, k3 = jax.random.split(root, 4)
    params = init_params(pkey, cfg)

    hidden_states = jax.random.normal(k1, (B, E), dtype=jnp.float32)
    proj_embedding = jax.random.normal(k2, (B, E), dtype=jnp.float32)
    encoder_hidden_states = jax.random.normal(
        k3, (B, cfg["num_embeddings"], E), dtype=jnp.float32)
    timestep = jnp.array(7, dtype=jnp.int32)
    attention_mask = jnp.array([[1] * 12, [1] * 9 + [0] * 3], dtype=jnp.bool_)

    out = prior_transformer_forward(
        params, cfg, hidden_states, timestep, proj_embedding,
        encoder_hidden_states, attention_mask, return_dict=True)
    pred = out[0]
    jax.block_until_ready(pred)
    assert pred.shape == (B, E) and pred.dtype == jnp.float32
    assert bool(jnp.all(jnp.isfinite(pred)))
    print("KERNEL_OK")
</pallas_src>

<mosaic_0001>
module attributes {stable_mosaic.version = 11 : i64} {
  func.func @_prior_kernel(%arg0: i32, %arg1: i32, %arg2: memref<2x256xf32, #tpu.memory_space<vmem>>, %arg3: memref<2x32xf32, #tpu.memory_space<vmem>>, %arg4: memref<2x32xf32, #tpu.memory_space<vmem>>, %arg5: memref<2x12x32xf32, #tpu.memory_space<vmem>>, %arg6: memref<256x256xbf16, #tpu.memory_space<vmem>>, %arg7: memref<1x256xf32, #tpu.memory_space<vmem>>, %arg8: memref<256x256xbf16, #tpu.memory_space<vmem>>, %arg9: memref<1x256xf32, #tpu.memory_space<vmem>>, %arg10: memref<32x256xbf16, #tpu.memory_space<vmem>>, %arg11: memref<1x256xf32, #tpu.memory_space<vmem>>, %arg12: memref<32x256xbf16, #tpu.memory_space<vmem>>, %arg13: memref<1x256xf32, #tpu.memory_space<vmem>>, %arg14: memref<32x256xbf16, #tpu.memory_space<vmem>>, %arg15: memref<1x256xf32, #tpu.memory_space<vmem>>, %arg16: memref<1x1x256xf32, #tpu.memory_space<vmem>>, %arg17: memref<1x16x256xf32, #tpu.memory_space<vmem>>, %arg18: memref<2x16x16xf32, #tpu.memory_space<vmem>>, %arg19: memref<1x1x256xf32, #tpu.memory_space<vmem>>, %arg20: memref<1x1x256xf32, #tpu.memory_space<vmem>>, %arg21: memref<1x256x768xbf16, #tpu.memory_space<vmem>>, %arg22: memref<1x1x768xf32, #tpu.memory_space<vmem>>, %arg23: memref<1x256x256xbf16, #tpu.memory_space<vmem>>, %arg24: memref<1x1x256xf32, #tpu.memory_space<vmem>>, %arg25: memref<1x1x256xf32, #tpu.memory_space<vmem>>, %arg26: memref<1x1x256xf32, #tpu.memory_space<vmem>>, %arg27: memref<1x256x1024xbf16, #tpu.memory_space<vmem>>, %arg28: memref<1x1x1024xf32, #tpu.memory_space<vmem>>, %arg29: memref<1x1024x256xbf16, #tpu.memory_space<vmem>>, %arg30: memref<1x1x256xf32, #tpu.memory_space<vmem>>, %arg31: memref<1x256xf32, #tpu.memory_space<vmem>>, %arg32: memref<1x256xf32, #tpu.memory_space<vmem>>, %arg33: memref<256x32xbf16, #tpu.memory_space<vmem>>, %arg34: memref<1x32xf32, #tpu.memory_space<vmem>>, %arg35: memref<2x32xf32, #tpu.memory_space<vmem>>, %arg36: memref<2x16x256xf32, #tpu.memory_space<vmem>>, %arg37: memref<32x256xf32, #tpu.memory_space<vmem>>, %arg38: memref<32x256xf32, #tpu.memory_space<vmem>>) attributes {dimension_semantics = [#tpu.dimension_semantics<arbitrary>, #tpu.dimension_semantics<arbitrary>], iteration_bounds = array<i64: 2, 2>, scalar_prefetch = 0 : i64, scratch_operands = 3 : i64, tpu.core_type = #tpu.core_type<tc>, window_params = [{pipeline_mode = #tpu.pipeline_mode<synchronous>, transform_indices = @transform_0, window_bounds = array<i64: 2, 256>}, {pipeline_mode = #tpu.pipeline_mode<synchronous>, transform_indices = @transform_1, window_bounds = array<i64: 2, 32>}, {pipeline_mode = #tpu.pipeline_mode<synchronous>, transform_indices = @transform_2, window_bounds = array<i64: 2, 32>}, {pipeline_mode = #tpu.pipeline_mode<synchronous>, transform_indices = @transform_3, window_bounds = array<i64: 2, 12, 32>}, {pipeline_mode = #tpu.pipeline_mode<synchronous>, transform_indices = @transform_4, window_bounds = array<i64: 256, 256>}, {pipeline_mode = #tpu.pipeline_mode<synchronous>, transform_indices = @transform_5, window_bounds = array<i64: 1, 256>}, {pipeline_mode = #tpu.pipeline_mode<synchronous>, transform_indices = @transform_6, window_bounds = array<i64: 256, 256>}, {pipeline_mode = #tpu.pipeline_mode<synchronous>, transform_indices = @transform_7, window_bounds = array<i64: 1, 256>}, {pipeline_mode = #tpu.pipeline_mode<synchronous>, transform_indices = @transform_8, window_bounds = array<i64: 32, 256>}, {pipeline_mode = #tpu.pipeline_mode<synchronous>, transform_indices = @transform_9, window_bounds = array<i64: 1, 256>}, {pipeline_mode = #tpu.pipeline_mode<synchronous>, transform_indices = @transform_10, window_bounds = array<i64: 32, 256>}, {pipeline_mode = #tpu.pipeline_mode<synchronous>, transform_indices = @transform_11, window_bounds = array<i64: 1, 256>}, {pipeline_mode = #tpu.pipeline_mode<synchronous>, transform_indices = @transform_12, window_bounds = array<i64: 32, 256>}, {pipeline_mode = #tpu.pipeline_mode<synchronous>, transform_indices = @transform_13, window_bounds = array<i64: 1, 256>}, {pipeline_mode = #tpu.pipeline_mode<synchronous>, transform_indices = @transform_14, window_bounds = array<i64: 1, 1, 256>}, {pipeline_mode = #tpu.pipeline_mode<synchronous>, transform_indices = @transform_15, window_bounds = array<i64: 1, 16, 256>}, {pipeline_mode = #tpu.pipeline_mode<synchronous>, transform_indices = @transform_16, window_bounds = array<i64: 2, 16, 16>}, {transform_indices = @transform_17, window_bounds = array<i64: 1, 1, 256>}, {transform_indices = @transform_18, window_bounds = array<i64: 1, 1, 256>}, {transform_indices = @transform_19, window_bounds = array<i64: 1, 256, 768>}, {transform_indices = @transform_20, window_bounds = array<i64: 1, 1, 768>}, {transform_indices = @transform_21, window_bounds = array<i64: 1, 256, 256>}, {transform_indices = @transform_22, window_bounds = array<i64: 1, 1, 256>}, {transform_indices = @transform_23, window_bounds = array<i64: 1, 1, 256>}, {transform_indices = @transform_24, window_bounds = array<i64: 1, 1, 256>}, {transform_indices = @transform_25, window_bounds = array<i64: 1, 256, 1024>}, {transform_indices = @transform_26, window_bounds = array<i64: 1, 1, 1024>}, {transform_indices = @transform_27, window_bounds = array<i64: 1, 1024, 256>}, {transform_indices = @transform_28, window_bounds = array<i64: 1, 1, 256>}, {pipeline_mode = #tpu.pipeline_mode<synchronous>, transform_indices = @transform_29, window_bounds = array<i64: 1, 256>}, {pipeline_mode = #tpu.pipeline_mode<synchronous>, transform_indices = @transform_30, window_bounds = array<i64: 1, 256>}, {pipeline_mode = #tpu.pipeline_mode<synchronous>, transform_indices = @transform_31, window_bounds = array<i64: 256, 32>}, {pipeline_mode = #tpu.pipeline_mode<synchronous>, transform_indices = @transform_32, window_bounds = array<i64: 1, 32>}, {pipeline_mode = #tpu.pipeline_mode<synchronous>, transform_indices = @transform_33, window_bounds = array<i64: 2, 32>}]} {
    %c0_i32 = arith.constant 0 : i32
    %0 = arith.cmpi eq, %arg0, %c0_i32 : i32
    %c0_i32_0 = arith.constant 0 : i32
    %1 = arith.cmpi eq, %arg1, %c0_i32_0 : i32
    %2 = arith.andi %0, %1 : i1
    %3 = arith.extui %2 : i1 to i32
    %c0_i32_1 = arith.constant 0 : i32
    %4 = arith.cmpi ne, %3, %c0_i32_1 : i32
    scf.if %4 {
      %c0 = arith.constant 0 : index
      %c0_14 = arith.constant 0 : index
      %25 = vector.load %arg2[%c0, %c0_14] : memref<2x256xf32, #tpu.memory_space<vmem>>, vector<2x256xf32>
      %26 = arith.truncf %25 : vector<2x256xf32> to vector<2x256xbf16>
      %c0_15 = arith.constant 0 : index
      %c0_16 = arith.constant 0 : index
      %27 = vector.load %arg6[%c0_15, %c0_16] : memref<256x256xbf16, #tpu.memory_space<vmem>>, vector<256x256xbf16>
      %cst = arith.constant dense<0.000000e+00> : vector<2x256xf32>
      %28 = tpu.matmul %26, %27, %cst {dimension_numbers = #tpu.dot_dimension_numbers<[1], [0], [0], [1], [0, 0, 1, 1], [], []>} : vector<2x256xbf16>, vector<256x256xbf16>, vector<2x256xf32> -> vector<2x256xf32>
      %c0_17 = arith.constant 0 : index
      %c0_18 = arith.constant 0 : index
      %29 = vector.load %arg7[%c0_17, %c0_18] : memref<1x256xf32, #tpu.memory_space<vmem>>, vector<1x256xf32>
      %30 = vector.broadcast %29 : vector<1x256xf32> to vector<2x256xf32>
      %31 = arith.addf %28, %30 : vector<2x256xf32>
      %32 = arith.negf %31 : vector<2x256xf32>
      %33 = math.exp %32 : vector<2x256xf32>
      %cst_19 = arith.constant 1.000000e+00 : f32
      %34 = vector.broadcast %cst_19 : f32 to vector<2x256xf32>
      %35 = arith.addf %34, %33 : vector<2x256xf32>
      %36 = arith.divf %34, %35 : vector<2x256xf32>
      %37 = arith.mulf %31, %36 : vector<2x256xf32>
      %38 = arith.truncf %37 : vector<2x256xf32> to vector<2x256xbf16>
      %c0_20 = arith.constant 0 : index
      %c0_21 = arith.constant 0 : index
      %39 = vector.load %arg8[%c0_20, %c0_21] : memref<256x256xbf16, #tpu.memory_space<vmem>>, vector<256x256xbf16>
      %cst_22 = arith.constant dense<0.000000e+00> : vector<2x256xf32>
      %40 = tpu.matmul %38, %39, %cst_22 {dimension_numbers = #tpu.dot_dimension_numbers<[1], [0], [0], [1], [0, 0, 1, 1], [], []>} : vector<2x256xbf16>, vector<256x256xbf16>, vector<2x256xf32> -> vector<2x256xf32>
      %c0_23 = arith.constant 0 : index
      %c0_24 = arith.constant 0 : index
      %41 = vector.load %arg9[%c0_23, %c0_24] : memref<1x256xf32, #tpu.memory_space<vmem>>, vector<1x256xf32>
      %42 = vector.broadcast %41 : vector<1x256xf32> to vector<2x256xf32>
      %43 = arith.addf %40, %42 : vector<2x256xf32>
      %c0_25 = arith.constant 0 : index
      %c0_26 = arith.constant 0 : index
      %44 = vector.load %arg3[%c0_25, %c0_26] : memref<2x32xf32, #tpu.memory_space<vmem>>, vector<2x32xf32>
      %45 = arith.truncf %44 : vector<2x32xf32> to vector<2x32xbf16>
      %c0_27 = arith.constant 0 : index
      %c0_28 = arith.constant 0 : index
      %46 = vector.load %arg10[%c0_27, %c0_28] : memref<32x256xbf16, #tpu.memory_space<vmem>>, vector<32x256xbf16>
      %cst_29 = arith.constant dense<0.000000e+00> : vector<2x256xf32>
      %47 = tpu.matmul %45, %46, %cst_29 {dimension_numbers = #tpu.dot_dimension_numbers<[1], [0], [0], [1], [0, 0, 1, 1], [], []>} : vector<2x32xbf16>, vector<32x256xbf16>, vector<2x256xf32> -> vector<2x256xf32>
      %c0_30 = arith.constant 0 : index
      %c0_31 = arith.constant 0 : index
      %48 = vector.load %arg11[%c0_30, %c0_31] : memref<1x256xf32, #tpu.memory_space<vmem>>, vector<1x256xf32>
      %49 = vector.broadcast %48 : vector<1x256xf32> to vector<2x256xf32>
      %50 = arith.addf %47, %49 : vector<2x256xf32>
      %c0_32 = arith.constant 0 : index
      %c0_33 = arith.constant 0 : index
      %51 = vector.load %arg4[%c0_32, %c0_33] : memref<2x32xf32, #tpu.memory_space<vmem>>, vector<2x32xf32>
      %52 = arith.truncf %51 : vector<2x32xf32> to vector<2x32xbf16>
      %c0_34 = arith.constant 0 : index
      %c0_35 = arith.constant 0 : index
      %53 = vector.load %arg12[%c0_34, %c0_35] : memref<32x256xbf16, #tpu.memory_space<vmem>>, vector<32x256xbf16>
      %cst_36 = arith.constant dense<0.000000e+00> : vector<2x256xf32>
      %54 = tpu.matmul %52, %53, %cst_36 {dimension_numbers = #tpu.dot_dimension_numbers<[1], [0], [0], [1], [0, 0, 1, 1], [], []>} : vector<2x32xbf16>, vector<32x256xbf16>, vector<2x256xf32> -> vector<2x256xf32>
      %c0_37 = arith.constant 0 : index
      %c0_38 = arith.constant 0 : index
      %55 = vector.load %arg13[%c0_37, %c0_38] : memref<1x256xf32, #tpu.memory_space<vmem>>, vector<1x256xf32>
      %56 = vector.broadcast %55 : vector<1x256xf32> to vector<2x256xf32>
      %57 = arith.addf %54, %56 : vector<2x256xf32>
      %c0_39 = arith.constant 0 : index
      %c0_40 = arith.constant 0 : index
      %c0_41 = arith.constant 0 : index
      %58 = vector.load %arg5[%c0_39, %c0_40, %c0_41] : memref<2x12x32xf32, #tpu.memory_space<vmem>>, vector<2x12x32xf32>
      %59 = vector.shape_cast %58 : vector<2x12x32xf32> to vector<24x32xf32>
      %60 = arith.truncf %59 : vector<24x32xf32> to vector<24x32xbf16>
      %c0_42 = arith.constant 0 : index
      %c0_43 = arith.constant 0 : index
      %61 = vector.load %arg14[%c0_42, %c0_43] : memref<32x256xbf16, #tpu.memory_space<vmem>>, vector<32x256xbf16>
      %cst_44 = arith.constant dense<0.000000e+00> : vector<24x256xf32>
      %62 = tpu.matmul %60, %61, %cst_44 {dimension_numbers = #tpu.dot_dimension_numbers<[1], [0], [0], [1], [0, 0, 1, 1], [], []>} : vector<24x32xbf16>, vector<32x256xbf16>, vector<24x256xf32> -> vector<24x256xf32>
      %c0_45 = arith.constant 0 : index
      %c0_46 = arith.constant 0 : index
      %63 = vector.load %arg15[%c0_45, %c0_46] : memref<1x256xf32, #tpu.memory_space<vmem>>, vector<1x256xf32>
      %64 = vector.broadcast %63 : vector<1x256xf32> to vector<24x256xf32>
      %65 = arith.addf %62, %64 : vector<24x256xf32>
      %66 = vector.shape_cast %65 : vector<24x256xf32> to vector<2x12x256xf32>
      %c0_47 = arith.constant 0 : index
      %c0_48 = arith.constant 0 : index
      %c0_49 = arith.constant 0 : index
      %67 = vector.load %arg16[%c0_47, %c0_48, %c0_49] : memref<1x1x256xf32, #tpu.memory_space<vmem>>, vector<1x1x256xf32>
      %68 = vector.shape_cast %67 : vector<1x1x256xf32> to vector<1x1x256xf32>
      %69 = vector.broadcast %68 : vector<1x1x256xf32> to vector<2x1x256xf32>
      %c0_50 = arith.constant 0 : index
      %c0_51 = arith.constant 0 : index
      %c0_52 = arith.constant 0 : index
      %70 = vector.load %arg17[%c0_50, %c0_51, %c0_52] : memref<1x16x256xf32, #tpu.memory_space<vmem>>, vector<1x16x256xf32>
      %71 = vector.extract_strided_slice %70 {offsets = [0, 0, 0], sizes = [1, 12, 256], strides = [1, 1, 1]} : vector<1x16x256xf32> to vector<1x12x256xf32>
      %72 = vector.broadcast %71 : vector<1x12x256xf32> to vector<2x12x256xf32>
      %73 = arith.addf %66, %72 : vector<2x12x256xf32>
      %c0_53 = arith.constant 0 : index
      %c0_54 = arith.constant 0 : index
      %c0_55 = arith.constant 0 : index
      %74 = vector.load %arg36[%c0_53, %c0_54, %c0_55] : memref<2x16x256xf32, #tpu.memory_space<vmem>>, vector<2x12x256xf32>
      tpu.vector_store %arg36[%c0_53, %c0_54, %c0_55], %73 {strides = array<i32>} : memref<2x16x256xf32, #tpu.memory_space<vmem>>, vector<2x12x256xf32>,
      %75 = vector.shape_cast %50 : vector<2x256xf32> to vector<2x1x256xf32>
      %76 = vector.extract_strided_slice %70 {offsets = [0, 12, 0], sizes = [1, 1, 256], strides = [1, 1, 1]} : vector<1x16x256xf32> to vector<1x1x256xf32>
      %77 = vector.broadcast %76 : vector<1x1x256xf32> to vector<2x1x256xf32>
      %78 = arith.addf %75, %77 : vector<2x1x256xf32>
      %c0_56 = arith.constant 0 : index
      %c12 = arith.constant 12 : index
      %c0_57 = arith.constant 0 : index
      %79 = vector.load %arg36[%c0_56, %c12, %c0_57] : memref<2x16x256xf32, #tpu.memory_space<vmem>>, vector<2x1x256xf32>
      tpu.vector_store %arg36[%c0_56, %c12, %c0_57], %78 {strides = array<i32>} : memref<2x16x256xf32, #tpu.memory_space<vmem>>, vector<2x1x256xf32>,
      %80 = vector.shape_cast %43 : vector<2x256xf32> to vector<2x1x256xf32>
      %81 = vector.extract_strided_slice %70 {offsets = [0, 13, 0], sizes = [1, 1, 256], strides = [1, 1, 1]} : vector<1x16x256xf32> to vector<1x1x256xf32>
      %82 = vector.broadcast %81 : vector<1x1x256xf32> to vector<2x1x256xf32>
      %83 = arith.addf %80, %82 : vector<2x1x256xf32>
      %c0_58 = arith.constant 0 : index
      %c13 = arith.constant 13 : index
      %c0_59 = arith.constant 0 : index
      %84 = vector.load %arg36[%c0_58, %c13, %c0_59] : memref<2x16x256xf32, #tpu.memory_space<vmem>>, vector<2x1x256xf32>
      tpu.vector_store %arg36[%c0_58, %c13, %c0_59], %83 {strides = array<i32>} : memref<2x16x256xf32, #tpu.memory_space<vmem>>, vector<2x1x256xf32>,
      %85 = vector.shape_cast %57 : vector<2x256xf32> to vector<2x1x256xf32>
      %86 = vector.extract_strided_slice %70 {offsets = [0, 14, 0], sizes = [1, 1, 256], strides = [1, 1, 1]} : vector<1x16x256xf32> to vector<1x1x256xf32>
      %87 = vector.broadcast %86 : vector<1x1x256xf32> to vector<2x1x256xf32>
      %88 = arith.addf %85, %87 : vector<2x1x256xf32>
      %c0_60 = arith.constant 0 : index
      %c14 = arith.constant 14 : index
      %c0_61 = arith.constant 0 : index
      %89 = vector.load %arg36[%c0_60, %c14, %c0_61] : memref<2x16x256xf32, #tpu.memory_space<vmem>>, vector<2x1x256xf32>
      tpu.vector_store %arg36[%c0_60, %c14, %c0_61], %88 {strides = array<i32>} : memref<2x16x256xf32, #tpu.memory_space<vmem>>, vector<2x1x256xf32>,
      %90 = vector.extract_strided_slice %70 {offsets = [0, 15, 0], sizes = [1, 1, 256], strides = [1, 1, 1]} : vector<1x16x256xf32> to vector<1x1x256xf32>
      %91 = vector.broadcast %90 : vector<1x1x256xf32> to vector<2x1x256xf32>
      %92 = arith.addf %69, %91 : vector<2x1x256xf32>
      %c0_62 = arith.constant 0 : index
      %c15 = arith.constant 15 : index
      %c0_63 = arith.constant 0 : index
      %93 = vector.load %arg36[%c0_62, %c15, %c0_63] : memref<2x16x256xf32, #tpu.memory_space<vmem>>, vector<2x1x256xf32>
      tpu.vector_store %arg36[%c0_62, %c15, %c0_63], %92 {strides = array<i32>} : memref<2x16x256xf32, #tpu.memory_space<vmem>>, vector<2x1x256xf32>,
    } else {
    }
    %c0_i32_2 = arith.constant 0 : i32
    %5 = arith.cmpi eq, %arg1, %c0_i32_2 : i32
    %6 = arith.extui %5 : i1 to i32
    %c0_i32_3 = arith.constant 0 : i32
    %7 = arith.cmpi ne, %6, %c0_i32_3 : i32
    scf.if %7 {
      %c0 = arith.constant 0 : index
      %c0_14 = arith.constant 0 : index
      %c0_15 = arith.constant 0 : index
      %25 = vector.load %arg36[%c0, %c0_14, %c0_15] : memref<2x16x256xf32, #tpu.memory_space<vmem>>, vector<2x16x256xf32>
      %26 = vector.shape_cast %25 : vector<2x16x256xf32> to vector<32x256xf32>
      %c0_16 = arith.constant 0 : index
      %c0_17 = arith.constant 0 : index
      %c0_18 = arith.constant 0 : index
      %27 = vector.load %arg19[%c0_16, %c0_17, %c0_18] : memref<1x1x256xf32, #tpu.memory_space<vmem>>, vector<1x1x256xf32>
      %28 = vector.shape_cast %27 : vector<1x1x256xf32> to vector<1x256xf32>
      %c0_19 = arith.constant 0 : index
      %c0_20 = arith.constant 0 : index
      %c0_21 = arith.constant 0 : index
      %29 = vector.load %arg20[%c0_19, %c0_20, %c0_21] : memref<1x1x256xf32, #tpu.memory_space<vmem>>, vector<1x1x256xf32>
      %30 = vector.shape_cast %29 : vector<1x1x256xf32> to vector<1x256xf32>
      %cst = arith.constant dense<0.000000e+00> : vector<32xf32>
      %31 = vector.multi_reduction <add>, %26, %cst [1] : vector<32x256xf32> to vector<32xf32>
      %32 = vector.shape_cast %31 : vector<32xf32> to vector<32x1xf32>
      %cst_22 = arith.constant 2.560000e+02 : f32
      %33 = vector.broadcast %cst_22 : f32 to vector<32x1xf32>
      %34 = arith.divf %32, %33 : vector<32x1xf32>
      %35 = vector.broadcast %34 : vector<32x1xf32> to vector<32x256xf32>
      %36 = arith.subf %26, %35 : vector<32x256xf32>
      %37 = arith.mulf %36, %36 : vector<32x256xf32>
      %cst_23 = arith.constant dense<0.000000e+00> : vector<32xf32>
      %38 = vector.multi_reduction <add>, %37, %cst_23 [1] : vector<32x256xf32> to vector<32xf32>
      %39 = vector.shape_cast %38 : vector<32xf32> to vector<32x1xf32>
      %cst_24 = arith.constant 2.560000e+02 : f32
      %40 = vector.broadcast %cst_24 : f32 to vector<32x1xf32>
      %41 = arith.divf %39, %40 : vector<32x1xf32>
      %42 = vector.broadcast %34 : vector<32x1xf32> to vector<32x256xf32>
      %43 = arith.subf %26, %42 : vector<32x256xf32>
      %cst_25 = arith.constant 9.99999974E-6 : f32
      %44 = vector.broadcast %cst_25 : f32 to vector<32x1xf32>
      %45 = arith.addf %41, %44 : vector<32x1xf32>
      %46 = math.rsqrt %45 : vector<32x1xf32>
      %47 = vector.broadcast %46 : vector<32x1xf32> to vector<32x256xf32>
      %48 = arith.mulf %43, %47 : vector<32x256xf32>
      %49 = vector.broadcast %28 : vector<1x256xf32> to vector<32x256xf32>
      %50 = arith.mulf %48, %49 : vector<32x256xf32>
      %51 = vector.broadcast %30 : vector<1x256xf32> to vector<32x256xf32>
      %52 = arith.addf %50, %51 : vector<32x256xf32>
      %c0_26 = arith.constant 0 : index
      %c0_27 = arith.constant 0 : index
      %53 = vector.load %arg37[%c0_26, %c0_27] : memref<32x256xf32, #tpu.memory_space<vmem>>, vector<32x256xf32>
      tpu.vector_store %arg37[%c0_26, %c0_27], %52 {strides = array<i32>} : memref<32x256xf32, #tpu.memory_space<vmem>>, vector<32x256xf32>,
      %cst_28 = arith.constant 0.000000e+00 : f32
      %54 = vector.broadcast %cst_28 : f32 to vector<32x256xf32>
      %c0_29 = arith.constant 0 : index
      %c0_30 = arith.constant 0 : index
      %55 = vector.load %arg38[%c0_29, %c0_30] : memref<32x256xf32, #tpu.memory_space<vmem>>, vector<32x256xf32>
      tpu.vector_store %arg38[%c0_29, %c0_30], %54 {strides = array<i32>} : memref<32x256xf32, #tpu.memory_space<vmem>>, vector<32x256xf32>,
    } else {
    }
    %c1_i32 = arith.constant 1 : i32
    %8 = arith.cmpi slt, %arg1, %c1_i32 : i32
    %9 = arith.extui %8 : i1 to i32
    %c0_i32_4 = arith.constant 0 : i32
    %10 = arith.cmpi ne, %9, %c0_i32_4 : i32
    scf.if %10 {
      %c0 = arith.constant 0 : index
      %c0_14 = arith.constant 0 : index
      %25 = vector.load %arg37[%c0, %c0_14] : memref<32x256xf32, #tpu.memory_space<vmem>>, vector<32x256xf32>
      %26 = arith.truncf %25 : vector<32x256xf32> to vector<32x256xbf16>
      %c0_15 = arith.constant 0 : index
      %c0_16 = arith.constant 0 : index
      %c0_17 = arith.constant 0 : index
      %27 = vector.load %arg21[%c0_15, %c0_16, %c0_17] : memref<1x256x768xbf16, #tpu.memory_space<vmem>>, vector<1x256x768xbf16>
      %28 = vector.shape_cast %27 : vector<1x256x768xbf16> to vector<256x768xbf16>
      %cst = arith.constant dense<0.000000e+00> : vector<32x768xf32>
      %29 = tpu.matmul %26, %28, %cst {dimension_numbers = #tpu.dot_dimension_numbers<[1], [0], [0], [1], [0, 0, 1, 1], [], []>} : vector<32x256xbf16>, vector<256x768xbf16>, vector<32x768xf32> -> vector<32x768xf32>
      %c0_18 = arith.constant 0 : index
      %c0_19 = arith.constant 0 : index
      %c0_20 = arith.constant 0 : index
      %30 = vector.load %arg22[%c0_18, %c0_19, %c0_20] : memref<1x1x768xf32, #tpu.memory_space<vmem>>, vector<1x1x768xf32>
      %31 = vector.shape_cast %30 : vector<1x1x768xf32> to vector<1x768xf32>
      %32 = vector.broadcast %31 : vector<1x768xf32> to vector<32x768xf32>
      %33 = arith.addf %29, %32 : vector<32x768xf32>
      %c0_21 = arith.constant 0 : index
      %c0_22 = arith.constant 0 : index
      %c0_23 = arith.constant 0 : index
      %34 = vector.load %arg18[%c0_21, %c0_22, %c0_23] : memref<2x16x16xf32, #tpu.memory_space<vmem>>, vector<2x16x16xf32>
      %35 = vector.extract_strided_slice %33 {offsets = [0, 0], sizes = [32, 128], strides = [1, 1]} : vector<32x768xf32> to vector<32x128xf32>
      %36 = vector.shape_cast %35 : vector<32x128xf32> to vector<2x16x128xf32>
      %37 = arith.truncf %36 : vector<2x16x128xf32> to vector<2x16x128xbf16>
      %38 = vector.extract_strided_slice %33 {offsets = [0, 128], sizes = [32, 128], strides = [1, 1]} : vector<32x768xf32> to vector<32x128xf32>
      %39 = vector.shape_cast %38 : vector<32x128xf32> to vector<2x16x128xf32>
      %40 = arith.truncf %39 : vector<2x16x128xf32> to vector<2x16x128xbf16>
      %41 = vector.extract_strided_slice %33 {offsets = [0, 256], sizes = [32, 128], strides = [1, 1]} : vector<32x768xf32> to vector<32x128xf32>
      %42 = vector.shape_cast %41 : vector<32x128xf32> to vector<2x16x128xf32>
      %43 = arith.truncf %42 : vector<2x16x128xf32> to vector<2x16x128xbf16>
      "tpu.trace_start"() <{level = 10 : i32, message = "bqd,bkd->bqk"}> : () -> ()
      %cst_24 = arith.constant dense<0.000000e+00> : vector<2x16x16xf32>
      %44 = tpu.matmul %37, %40, %cst_24 {dimension_numbers = #tpu.dot_dimension_numbers<[2], [2], [1], [1], [0, 0, 0, 1, 1, 1], [0], [0]>} : vector<2x16x128xbf16>, vector<2x16x128xbf16>, vector<2x16x16xf32> -> vector<2x16x16xf32>
      "tpu.trace_stop"() : () -> ()
      %cst_25 = arith.constant 0.0883883461 : f32
      %45 = vector.broadcast %cst_25 : f32 to vector<2x16x16xf32>
      %46 = arith.mulf %44, %45 : vector<2x16x16xf32>
      %47 = arith.addf %46, %34 : vector<2x16x16xf32>
      %cst_26 = arith.constant dense<0xFF800000> : vector<2x16xf32>
      %48 = vector.multi_reduction <maximumf>, %47, %cst_26 [2] : vector<2x16x16xf32> to vector<2x16xf32>
      %49 = vector.shape_cast %48 : vector<2x16xf32> to vector<2x16x1xf32>
      %50 = vector.broadcast %49 : vector<2x16x1xf32> to vector<2x16x16xf32>
      %51 = arith.subf %47, %50 : vector<2x16x16xf32>
      %52 = math.exp %51 : vector<2x16x16xf32>
      %cst_27 = arith.constant dense<0.000000e+00> : vector<2x16xf32>
      %53 = vector.multi_reduction <add>, %52, %cst_27 [2] : vector<2x16x16xf32> to vector<2x16xf32>
      %54 = vector.shape_cast %53 : vector<2x16xf32> to vector<2x16x1xf32>
      %55 = vector.broadcast %54 : vector<2x16x1xf32> to vector<2x16x16xf32>
      %56 = arith.divf %52, %55 : vector<2x16x16xf32>
      %57 = arith.truncf %56 : vector<2x16x16xf32> to vector<2x16x16xbf16>
      "tpu.trace_start"() <{level = 10 : i32, message = "bqk,bkd->bqd"}> : () -> ()
      %cst_28 = arith.constant dense<0.000000e+00> : vector<2x16x128xf32>
      %58 = tpu.matmul %57, %43, %cst_28 {dimension_numbers = #tpu.dot_dimension_numbers<[2], [1], [1], [2], [0, 0, 0, 1, 1, 2], [0], [0]>} : vector<2x16x16xbf16>, vector<2x16x128xbf16>, vector<2x16x128xf32> -> vector<2x16x128xf32>
      "tpu.trace_stop"() : () -> ()
      %c0_29 = arith.constant 0 : index
      %c0_30 = arith.constant 0 : index
      %59 = vector.load %arg38[%c0_29, %c0_30] : memref<32x256xf32, #tpu.memory_space<vmem>>, vector<32x256xf32>
      %60 = vector.shape_cast %58 : vector<2x16x128xf32> to vector<32x128xf32>
      %61 = arith.truncf %60 : vector<32x128xf32> to vector<32x128xbf16>
      %c0_31 = arith.constant 0 : index
      %c0_32 = arith.constant 0 : index
      %c0_33 = arith.constant 0 : index
      %62 = vector.load %arg23[%c0_31, %c0_32, %c0_33] : memref<1x256x256xbf16, #tpu.memory_space<vmem>>, vector<1x128x256xbf16>
      %63 = vector.shape_cast %62 : vector<1x128x256xbf16> to vector<128x256xbf16>
      %cst_34 = arith.constant dense<0.000000e+00> : vector<32x256xf32>
      %64 = tpu.matmul %61, %63, %cst_34 {dimension_numbers = #tpu.dot_dimension_numbers<[1], [0], [0], [1], [0, 0, 1, 1], [], []>} : vector<32x128xbf16>, vector<128x256xbf16>, vector<32x256xf32> -> vector<32x256xf32>
      %65 = arith.addf %59, %64 : vector<32x256xf32>
      %c0_35 = arith.constant 0 : index
      %c0_36 = arith.constant 0 : index
      %66 = vector.load %arg38[%c0_35, %c0_36] : memref<32x256xf32, #tpu.memory_space<vmem>>, vector<32x256xf32>
      tpu.vector_store %arg38[%c0_35, %c0_36], %65 {strides = array<i32>} : memref<32x256xf32, #tpu.memory_space<vmem>>, vector<32x256xf32>,
      %67 = vector.extract_strided_slice %33 {offsets = [0, 384], sizes = [32, 128], strides = [1, 1]} : vector<32x768xf32> to vector<32x128xf32>
      %68 = vector.shape_cast %67 : vector<32x128xf32> to vector<2x16x128xf32>
      %69 = arith.truncf %68 : vector<2x16x128xf32> to vector<2x16x128xbf16>
      %70 = vector.extract_strided_slice %33 {offsets = [0, 512], sizes = [32, 128], strides = [1, 1]} : vector<32x768xf32> to vector<32x128xf32>
      %71 = vector.shape_cast %70 : vector<32x128xf32> to vector<2x16x128xf32>
      %72 = arith.truncf %71 : vector<2x16x128xf32> to vector<2x16x128xbf16>
      %73 = vector.extract_strided_slice %33 {offsets = [0, 640], sizes = [32, 128], strides = [1, 1]} : vector<32x768xf32> to vector<32x128xf32>
      %74 = vector.shape_cast %73 : vector<32x128xf32> to vector<2x16x128xf32>
      %75 = arith.truncf %74 : vector<2x16x128xf32> to vector<2x16x128xbf16>
      "tpu.trace_start"() <{level = 10 : i32, message = "bqd,bkd->bqk"}> : () -> ()
      %cst_37 = arith.constant dense<0.000000e+00> : vector<2x16x16xf32>
      %76 = tpu.matmul %69, %72, %cst_37 {dimension_numbers = #tpu.dot_dimension_numbers<[2], [2], [1], [1], [0, 0, 0, 1, 1, 1], [0], [0]>} : vector<2x16x128xbf16>, vector<2x16x128xbf16>, vector<2x16x16xf32> -> vector<2x16x16xf32>
      "tpu.trace_stop"() : () -> ()
      %cst_38 = arith.constant 0.0883883461 : f32
      %77 = vector.broadcast %cst_38 : f32 to vector<2x16x16xf32>
      %78 = arith.mulf %76, %77 : vector<2x16x16xf32>
      %79 = arith.addf %78, %34 : vector<2x16x16xf32>
      %cst_39 = arith.constant dense<0xFF800000> : vector<2x16xf32>
      %80 = vector.multi_reduction <maximumf>, %79, %cst_39 [2] : vector<2x16x16xf32> to vector<2x16xf32>
      %81 = vector.shape_cast %80 : vector<2x16xf32> to vector<2x16x1xf32>
      %82 = vector.broadcast %81 : vector<2x16x1xf32> to vector<2x16x16xf32>
      %83 = arith.subf %79, %82 : vector<2x16x16xf32>
      %84 = math.exp %83 : vector<2x16x16xf32>
      %cst_40 = arith.constant dense<0.000000e+00> : vector<2x16xf32>
      %85 = vector.multi_reduction <add>, %84, %cst_40 [2] : vector<2x16x16xf32> to vector<2x16xf32>
      %86 = vector.shape_cast %85 : vector<2x16xf32> to vector<2x16x1xf32>
      %87 = vector.broadcast %86 : vector<2x16x1xf32> to vector<2x16x16xf32>
      %88 = arith.divf %84, %87 : vector<2x16x16xf32>
      %89 = arith.truncf %88 : vector<2x16x16xf32> to vector<2x16x16xbf16>
      "tpu.trace_start"() <{level = 10 : i32, message = "bqk,bkd->bqd"}> : () -> ()
      %cst_41 = arith.constant dense<0.000000e+00> : vector<2x16x128xf32>
      %90 = tpu.matmul %89, %75, %cst_41 {dimension_numbers = #tpu.dot_dimension_numbers<[2], [1], [1], [2], [0, 0, 0, 1, 1, 2], [0], [0]>} : vector<2x16x16xbf16>, vector<2x16x128xbf16>, vector<2x16x128xf32> -> vector<2x16x128xf32>
      "tpu.trace_stop"() : () -> ()
      %c0_42 = arith.constant 0 : index
      %c0_43 = arith.constant 0 : index
      %91 = vector.load %arg38[%c0_42, %c0_43] : memref<32x256xf32, #tpu.memory_space<vmem>>, vector<32x256xf32>
      %92 = vector.shape_cast %90 : vector<2x16x128xf32> to vector<32x128xf32>
      %93 = arith.truncf %92 : vector<32x128xf32> to vector<32x128xbf16>
      %c0_44 = arith.constant 0 : index
      %c128 = arith.constant 128 : index
      %c0_45 = arith.constant 0 : index
      %94 = vector.load %arg23[%c0_44, %c128, %c0_45] : memref<1x256x256xbf16, #tpu.memory_space<vmem>>, vector<1x128x256xbf16>
      %95 = vector.shape_cast %94 : vector<1x128x256xbf16> to vector<128x256xbf16>
      %cst_46 = arith.constant dense<0.000000e+00> : vector<32x256xf32>
      %96 = tpu.matmul %93, %95, %cst_46 {dimension_numbers = #tpu.dot_dimension_numbers<[1], [0], [0], [1], [0, 0, 1, 1], [], []>} : vector<32x128xbf16>, vector<128x256xbf16>, vector<32x256xf32> -> vector<32x256xf32>
      %97 = arith.addf %91, %96 : vector<32x256xf32>
      %c0_47 = arith.constant 0 : index
      %c0_48 = arith.constant 0 : index
      %98 = vector.load %arg38[%c0_47, %c0_48] : memref<32x256xf32, #tpu.memory_space<vmem>>, vector<32x256xf32>
      tpu.vector_store %arg38[%c0_47, %c0_48], %97 {strides = array<i32>} : memref<32x256xf32, #tpu.memory_space<vmem>>, vector<32x256xf32>,
    } else {
    }
    %c1_i32_5 = arith.constant 1 : i32
    %11 = arith.cmpi eq, %arg1, %c1_i32_5 : i32
    %12 = arith.extui %11 : i1 to i32
    %c0_i32_6 = arith.constant 0 : i32
    %13 = arith.cmpi ne, %12, %c0_i32_6 : i32
    scf.if %13 {
      %c0 = arith.constant 0 : index
      %c0_14 = arith.constant 0 : index
      %c0_15 = arith.constant 0 : index
      %25 = vector.load %arg36[%c0, %c0_14, %c0_15] : memref<2x16x256xf32, #tpu.memory_space<vmem>>, vector<2x16x256xf32>
      %26 = vector.shape_cast %25 : vector<2x16x256xf32> to vector<32x256xf32>
      %c0_16 = arith.constant 0 : index
      %c0_17 = arith.constant 0 : index
      %27 = vector.load %arg38[%c0_16, %c0_17] : memref<32x256xf32, #tpu.memory_space<vmem>>, vector<32x256xf32>
      %28 = arith.addf %26, %27 : vector<32x256xf32>
      %c0_18 = arith.constant 0 : index
      %c0_19 = arith.constant 0 : index
      %c0_20 = arith.constant 0 : index
      %29 = vector.load %arg24[%c0_18, %c0_19, %c0_20] : memref<1x1x256xf32, #tpu.memory_space<vmem>>, vector<1x1x256xf32>
      %30 = vector.shape_cast %29 : vector<1x1x256xf32> to vector<1x256xf32>
      %31 = vector.broadcast %30 : vector<1x256xf32> to vector<32x256xf32>
      %32 = arith.addf %28, %31 : vector<32x256xf32>
      %33 = vector.shape_cast %32 : vector<32x256xf32> to vector<2x16x256xf32>
      %c0_21 = arith.constant 0 : index
      %c0_22 = arith.constant 0 : index
      %c0_23 = arith.constant 0 : index
      %34 = vector.load %arg36[%c0_21, %c0_22, %c0_23] : memref<2x16x256xf32, #tpu.memory_space<vmem>>, vector<2x16x256xf32>
      tpu.vector_store %arg36[%c0_21, %c0_22, %c0_23], %33 {strides = array<i32>} : memref<2x16x256xf32, #tpu.memory_space<vmem>>, vector<2x16x256xf32>,
      %c0_24 = arith.constant 0 : index
      %c0_25 = arith.constant 0 : index
      %c0_26 = arith.constant 0 : index
      %35 = vector.load %arg25[%c0_24, %c0_25, %c0_26] : memref<1x1x256xf32, #tpu.memory_space<vmem>>, vector<1x1x256xf32>
      %36 = vector.shape_cast %35 : vector<1x1x256xf32> to vector<1x256xf32>
      %c0_27 = arith.constant 0 : index
      %c0_28 = arith.constant 0 : index
      %c0_29 = arith.constant 0 : index
      %37 = vector.load %arg26[%c0_27, %c0_28, %c0_29] : memref<1x1x256xf32, #tpu.memory_space<vmem>>, vector<1x1x256xf32>
      %38 = vector.shape_cast %37 : vector<1x1x256xf32> to vector<1x256xf32>
      %cst = arith.constant dense<0.000000e+00> : vector<32xf32>
      %39 = vector.multi_reduction <add>, %32, %cst [1] : vector<32x256xf32> to vector<32xf32>
      %40 = vector.shape_cast %39 : vector<32xf32> to vector<32x1xf32>
      %cst_30 = arith.constant 2.560000e+02 : f32
      %41 = vector.broadcast %cst_30 : f32 to vector<32x1xf32>
      %42 = arith.divf %40, %41 : vector<32x1xf32>
      %43 = vector.broadcast %42 : vector<32x1xf32> to vector<32x256xf32>
      %44 = arith.subf %32, %43 : vector<32x256xf32>
      %45 = arith.mulf %44, %44 : vector<32x256xf32>
      %cst_31 = arith.constant dense<0.000000e+00> : vector<32xf32>
      %46 = vector.multi_reduction <add>, %45, %cst_31 [1] : vector<32x256xf32> to vector<32xf32>
      %47 = vector.shape_cast %46 : vector<32xf32> to vector<32x1xf32>
      %cst_32 = arith.constant 2.560000e+02 : f32
      %48 = vector.broadcast %cst_32 : f32 to vector<32x1xf32>
      %49 = arith.divf %47, %48 : vector<32x1xf32>
      %50 = vector.broadcast %42 : vector<32x1xf32> to vector<32x256xf32>
      %51 = arith.subf %32, %50 : vector<32x256xf32>
      %cst_33 = arith.constant 9.99999974E-6 : f32
      %52 = vector.broadcast %cst_33 : f32 to vector<32x1xf32>
      %53 = arith.addf %49, %52 : vector<32x1xf32>
      %54 = math.rsqrt %53 : vector<32x1xf32>
      %55 = vector.broadcast %54 : vector<32x1xf32> to vector<32x256xf32>
      %56 = arith.mulf %51, %55 : vector<32x256xf32>
      %57 = vector.broadcast %36 : vector<1x256xf32> to vector<32x256xf32>
      %58 = arith.mulf %56, %57 : vector<32x256xf32>
      %59 = vector.broadcast %38 : vector<1x256xf32> to vector<32x256xf32>
      %60 = arith.addf %58, %59 : vector<32x256xf32>
      %c0_34 = arith.constant 0 : index
      %c0_35 = arith.constant 0 : index
      %61 = vector.load %arg37[%c0_34, %c0_35] : memref<32x256xf32, #tpu.memory_space<vmem>>, vector<32x256xf32>
      tpu.vector_store %arg37[%c0_34, %c0_35], %60 {strides = array<i32>} : memref<32x256xf32, #tpu.memory_space<vmem>>, vector<32x256xf32>,
      %cst_36 = arith.constant 0.000000e+00 : f32
      %62 = vector.broadcast %cst_36 : f32 to vector<32x256xf32>
      %c0_37 = arith.constant 0 : index
      %c0_38 = arith.constant 0 : index
      %63 = vector.load %arg38[%c0_37, %c0_38] : memref<32x256xf32, #tpu.memory_space<vmem>>, vector<32x256xf32>
      tpu.vector_store %arg38[%c0_37, %c0_38], %62 {strides = array<i32>} : memref<32x256xf32, #tpu.memory_space<vmem>>, vector<32x256xf32>,
    } else {
    }
    %c1_i32_7 = arith.constant 1 : i32
    %14 = arith.cmpi sge, %arg1, %c1_i32_7 : i32
    %15 = arith.extui %14 : i1 to i32
    %c0_i32_8 = arith.constant 0 : i32
    %16 = arith.cmpi ne, %15, %c0_i32_8 : i32
    scf.if %16 {
      %c0 = arith.constant 0 : index
      %c0_14 = arith.constant 0 : index
      %25 = vector.load %arg37[%c0, %c0_14] : memref<32x256xf32, #tpu.memory_space<vmem>>, vector<32x256xf32>
      %26 = arith.truncf %25 : vector<32x256xf32> to vector<32x256xbf16>
      %c0_15 = arith.constant 0 : index
      %c0_16 = arith.constant 0 : index
      %c0_17 = arith.constant 0 : index
      %27 = vector.load %arg27[%c0_15, %c0_16, %c0_17] : memref<1x256x1024xbf16, #tpu.memory_space<vmem>>, vector<1x256x1024xbf16>
      %28 = vector.shape_cast %27 : vector<1x256x1024xbf16> to vector<256x1024xbf16>
      %cst = arith.constant dense<0.000000e+00> : vector<32x1024xf32>
      %29 = tpu.matmul %26, %28, %cst {dimension_numbers = #tpu.dot_dimension_numbers<[1], [0], [0], [1], [0, 0, 1, 1], [], []>} : vector<32x256xbf16>, vector<256x1024xbf16>, vector<32x1024xf32> -> vector<32x1024xf32>
      %c0_18 = arith.constant 0 : index
      %c0_19 = arith.constant 0 : index
      %c0_20 = arith.constant 0 : index
      %30 = vector.load %arg28[%c0_18, %c0_19, %c0_20] : memref<1x1x1024xf32, #tpu.memory_space<vmem>>, vector<1x1x1024xf32>
      %31 = vector.shape_cast %30 : vector<1x1x1024xf32> to vector<1x1024xf32>
      %32 = vector.broadcast %31 : vector<1x1024xf32> to vector<32x1024xf32>
      %33 = arith.addf %29, %32 : vector<32x1024xf32>
      %cst_21 = arith.constant 5.000000e-01 : f32
      %34 = vector.broadcast %cst_21 : f32 to vector<32x1024xf32>
      %35 = arith.mulf %34, %33 : vector<32x1024xf32>
      %cst_22 = arith.constant 0.707106769 : f32
      %36 = vector.broadcast %cst_22 : f32 to vector<32x1024xf32>
      %37 = arith.mulf %33, %36 : vector<32x1024xf32>
      %38 = math.absf %37 : vector<32x1024xf32>
      %cst_23 = arith.constant 0.327591091 : f32
      %39 = vector.broadcast %cst_23 : f32 to vector<32x1024xf32>
      %40 = arith.mulf %39, %38 : vector<32x1024xf32>
      %cst_24 = arith.constant 1.000000e+00 : f32
      %41 = vector.broadcast %cst_24 : f32 to vector<32x1024xf32>
      %42 = arith.addf %41, %40 : vector<32x1024xf32>
      %cst_25 = arith.constant 1.000000e+00 : f32
      %43 = vector.broadcast %cst_25 : f32 to vector<32x1024xf32>
      %44 = arith.divf %43, %42 : vector<32x1024xf32>
      %cst_26 = arith.constant 1.06140542 : f32
      %45 = vector.broadcast %cst_26 : f32 to vector<32x1024xf32>
      %46 = arith.mulf %45, %44 : vector<32x1024xf32>
      %cst_27 = arith.constant -1.45315206 : f32
      %47 = vector.broadcast %cst_27 : f32 to vector<32x1024xf32>
      %48 = arith.addf %46, %47 : vector<32x1024xf32>
      %49 = arith.mulf %48, %44 : vector<32x1024xf32>
      %cst_28 = arith.constant 1.42141378 : f32
      %50 = vector.broadcast %cst_28 : f32 to vector<32x1024xf32>
      %51 = arith.addf %49, %50 : vector<32x1024xf32>
      %52 = arith.mulf %51, %44 : vector<32x1024xf32>
      %cst_29 = arith.constant -0.284496725 : f32
      %53 = vector.broadcast %cst_29 : f32 to vector<32x1024xf32>
      %54 = arith.addf %52, %53 : vector<32x1024xf32>
      %55 = arith.mulf %54, %44 : vector<32x1024xf32>
      %cst_30 = arith.constant 0.254829586 : f32
      %56 = vector.broadcast %cst_30 : f32 to vector<32x1024xf32>
      %57 = arith.addf %55, %56 : vector<32x1024xf32>
      %58 = arith.mulf %57, %44 : vector<32x1024xf32>
      %cst_31 = arith.constant 0.000000e+00 : f32
      %59 = vector.broadcast %cst_31 : f32 to vector<32x1024xf32>
      %60 = arith.subf %59, %38 : vector<32x1024xf32>
      %61 = arith.mulf %60, %38 : vector<32x1024xf32>
      %62 = math.exp %61 : vector<32x1024xf32>
      %63 = arith.mulf %58, %62 : vector<32x1024xf32>
      %cst_32 = arith.constant 1.000000e+00 : f32
      %64 = vector.broadcast %cst_32 : f32 to vector<32x1024xf32>
      %65 = arith.subf %64, %63 : vector<32x1024xf32>
      %cst_33 = arith.constant 0.000000e+00 : f32
      %66 = vector.broadcast %cst_33 : f32 to vector<32x1024xf32>
      %67 = arith.cmpf oge, %37, %66 : vector<32x1024xf32>
      %cst_34 = arith.constant 0.000000e+00 : f32
      %68 = vector.broadcast %cst_34 : f32 to vector<32x1024xf32>
      %69 = arith.subf %68, %65 : vector<32x1024xf32>
      %70 = arith.select %67, %65, %69 : vector<32x1024xi1>, vector<32x1024xf32>
      %cst_35 = arith.constant 1.000000e+00 : f32
      %71 = vector.broadcast %cst_35 : f32 to vector<32x1024xf32>
      %72 = arith.addf %71, %70 : vector<32x1024xf32>
      %73 = arith.mulf %35, %72 : vector<32x1024xf32>
      %c0_36 = arith.constant 0 : index
      %c0_37 = arith.constant 0 : index
      %74 = vector.load %arg38[%c0_36, %c0_37] : memref<32x256xf32, #tpu.memory_space<vmem>>, vector<32x256xf32>
      %75 = arith.truncf %73 : vector<32x1024xf32> to vector<32x1024xbf16>
      %c0_38 = arith.constant 0 : index
      %c0_39 = arith.constant 0 : index
      %c0_40 = arith.constant 0 : index
      %76 = vector.load %arg29[%c0_38, %c0_39, %c0_40] : memref<1x1024x256xbf16, #tpu.memory_space<vmem>>, vector<1x1024x256xbf16>
      %77 = vector.shape_cast %76 : vector<1x1024x256xbf16> to vector<1024x256xbf16>
      %cst_41 = arith.constant dense<0.000000e+00> : vector<32x256xf32>
      %78 = tpu.matmul %75, %77, %cst_41 {dimension_numbers = #tpu.dot_dimension_numbers<[1], [0], [0], [1], [0, 0, 1, 1], [], []>} : vector<32x1024xbf16>, vector<1024x256xbf16>, vector<32x256xf32> -> vector<32x256xf32>
      %79 = arith.addf %74, %78 : vector<32x256xf32>
      %c0_42 = arith.constant 0 : index
      %c0_43 = arith.constant 0 : index
      %80 = vector.load %arg38[%c0_42, %c0_43] : memref<32x256xf32, #tpu.memory_space<vmem>>, vector<32x256xf32>
      tpu.vector_store %arg38[%c0_42, %c0_43], %79 {strides = array<i32>} : memref<32x256xf32, #tpu.memory_space<vmem>>, vector<32x256xf32>,
    } else {
    }
    %c1_i32_9 = arith.constant 1 : i32
    %17 = arith.cmpi eq, %arg1, %c1_i32_9 : i32
    %18 = arith.extui %17 : i1 to i32
    %c0_i32_10 = arith.constant 0 : i32
    %19 = arith.cmpi ne, %18, %c0_i32_10 : i32
    scf.if %19 {
      %c0 = arith.constant 0 : index
      %c0_14 = arith.constant 0 : index
      %c0_15 = arith.constant 0 : index
      %25 = vector.load %arg36[%c0, %c0_14, %c0_15] : memref<2x16x256xf32, #tpu.memory_space<vmem>>, vector<2x16x256xf32>
      %26 = vector.shape_cast %25 : vector<2x16x256xf32> to vector<32x256xf32>
      %c0_16 = arith.constant 0 : index
      %c0_17 = arith.constant 0 : index
      %27 = vector.load %arg38[%c0_16, %c0_17] : memref<32x256xf32, #tpu.memory_space<vmem>>, vector<32x256xf32>
      %28 = arith.addf %26, %27 : vector<32x256xf32>
      %c0_18 = arith.constant 0 : index
      %c0_19 = arith.constant 0 : index
      %c0_20 = arith.constant 0 : index
      %29 = vector.load %arg30[%c0_18, %c0_19, %c0_20] : memref<1x1x256xf32, #tpu.memory_space<vmem>>, vector<1x1x256xf32>
      %30 = vector.shape_cast %29 : vector<1x1x256xf32> to vector<1x256xf32>
      %31 = vector.broadcast %30 : vector<1x256xf32> to vector<32x256xf32>
      %32 = arith.addf %28, %31 : vector<32x256xf32>
      %33 = vector.shape_cast %32 : vector<32x256xf32> to vector<2x16x256xf32>
      %c0_21 = arith.constant 0 : index
      %c0_22 = arith.constant 0 : index
      %c0_23 = arith.constant 0 : index
      %34 = vector.load %arg36[%c0_21, %c0_22, %c0_23] : memref<2x16x256xf32, #tpu.memory_space<vmem>>, vector<2x16x256xf32>
      tpu.vector_store %arg36[%c0_21, %c0_22, %c0_23], %33 {strides = array<i32>} : memref<2x16x256xf32, #tpu.memory_space<vmem>>, vector<2x16x256xf32>,
    } else {
    }
    %c1_i32_11 = arith.constant 1 : i32
    %20 = arith.cmpi eq, %arg0, %c1_i32_11 : i32
    %c1_i32_12 = arith.constant 1 : i32
    %21 = arith.cmpi eq, %arg1, %c1_i32_12 : i32
    %22 = arith.andi %20, %21 : i1
    %23 = arith.extui %22 : i1 to i32
    %c0_i32_13 = arith.constant 0 : i32
    %24 = arith.cmpi ne, %23, %c0_i32_13 : i32
    scf.if %24 {
      %c0 = arith.constant 0 : index
      %c0_14 = arith.constant 0 : index
      %c0_15 = arith.constant 0 : index
      %25 = vector.load %arg36[%c0, %c0_14, %c0_15] : memref<2x16x256xf32, #tpu.memory_space<vmem>>, vector<2x16x256xf32>
      %26 = vector.extract_strided_slice %25 {offsets = [0, 15, 0], sizes = [2, 1, 256], strides = [1, 1, 1]} : vector<2x16x256xf32> to vector<2x1x256xf32>
      %27 = vector.shape_cast %26 : vector<2x1x256xf32> to vector<2x256xf32>
      %c0_16 = arith.constant 0 : index
      %c0_17 = arith.constant 0 : index
      %28 = vector.load %arg31[%c0_16, %c0_17] : memref<1x256xf32, #tpu.memory_space<vmem>>, vector<1x256xf32>
      %c0_18 = arith.constant 0 : index
      %c0_19 = arith.constant 0 : index
      %29 = vector.load %arg32[%c0_18, %c0_19] : memref<1x256xf32, #tpu.memory_space<vmem>>, vector<1x256xf32>
      %cst = arith.constant dense<0.000000e+00> : vector<2xf32>
      %30 = vector.multi_reduction <add>, %27, %cst [1] : vector<2x256xf32> to vector<2xf32>
      %31 = vector.shape_cast %30 : vector<2xf32> to vector<2x1xf32>
      %cst_20 = arith.constant 2.560000e+02 : f32
      %32 = vector.broadcast %cst_20 : f32 to vector<2x1xf32>
      %33 = arith.divf %31, %32 : vector<2x1xf32>
      %34 = vector.broadcast %33 : vector<2x1xf32> to vector<2x256xf32>
      %35 = arith.subf %27, %34 : vector<2x256xf32>
      %36 = arith.mulf %35, %35 : vector<2x256xf32>
      %cst_21 = arith.constant dense<0.000000e+00> : vector<2xf32>
      %37 = vector.multi_reduction <add>, %36, %cst_21 [1] : vector<2x256xf32> to vector<2xf32>
      %38 = vector.shape_cast %37 : vector<2xf32> to vector<2x1xf32>
      %cst_22 = arith.constant 2.560000e+02 : f32
      %39 = vector.broadcast %cst_22 : f32 to vector<2x1xf32>
      %40 = arith.divf %38, %39 : vector<2x1xf32>
      %41 = vector.broadcast %33 : vector<2x1xf32> to vector<2x256xf32>
      %42 = arith.subf %27, %41 : vector<2x256xf32>
      %cst_23 = arith.constant 9.99999974E-6 : f32
      %43 = vector.broadcast %cst_23 : f32 to vector<2x1xf32>
      %44 = arith.addf %40, %43 : vector<2x1xf32>
      %45 = math.rsqrt %44 : vector<2x1xf32>
      %46 = vector.broadcast %45 : vector<2x1xf32> to vector<2x256xf32>
      %47 = arith.mulf %42, %46 : vector<2x256xf32>
      %48 = vector.broadcast %28 : vector<1x256xf32> to vector<2x256xf32>
      %49 = arith.mulf %47, %48 : vector<2x256xf32>
      %50 = vector.broadcast %29 : vector<1x256xf32> to vector<2x256xf32>
      %51 = arith.addf %49, %50 : vector<2x256xf32>
      %52 = arith.truncf %51 : vector<2x256xf32> to vector<2x256xbf16>
      %c0_24 = arith.constant 0 : index
      %c0_25 = arith.constant 0 : index
      %53 = vector.load %arg33[%c0_24, %c0_25] : memref<256x32xbf16, #tpu.memory_space<vmem>>, vector<256x32xbf16>
      %cst_26 = arith.constant dense<0.000000e+00> : vector<2x32xf32>
      %54 = tpu.matmul %52, %53, %cst_26 {dimension_numbers = #tpu.dot_dimension_numbers<[1], [0], [0], [1], [0, 0, 1, 1], [], []>} : vector<2x256xbf16>, vector<256x32xbf16>, vector<2x32xf32> -> vector<2x32xf32>
      %c0_27 = arith.constant 0 : index
      %c0_28 = arith.constant 0 : index
      %55 = vector.load %arg34[%c0_27, %c0_28] : memref<1x32xf32, #tpu.memory_space<vmem>>, vector<1x32xf32>
      %56 = vector.broadcast %55 : vector<1x32xf32> to vector<2x32xf32>
      %57 = arith.addf %54, %56 : vector<2x32xf32>
      %c0_29 = arith.constant 0 : index
      %c0_30 = arith.constant 0 : index
      %58 = vector.load %arg35[%c0_29, %c0_30] : memref<2x32xf32, #tpu.memory_space<vmem>>, vector<2x32xf32>
      tpu.vector_store %arg35[%c0_29, %c0_30], %57 {strides = array<i32>} : memref<2x32xf32, #tpu.memory_space<vmem>>, vector<2x32xf32>,
    } else {
    }
    return
  }
  func.func @transform_0(%arg0: i32, %arg1: i32) -> (i32, i32) {
    %c0_i32 = arith.constant 0 : i32
    %c0_i32_0 = arith.constant 0 : i32
    %c0_i32_1 = arith.constant 0 : i32
    return %c0_i32, %c0_i32_0 : i32, i32
  }
  func.func @transform_1(%arg0: i32, %arg1: i32) -> (i32, i32) {
    %c0_i32 = arith.constant 0 : i32
    %c0_i32_0 = arith.constant 0 : i32
    %c0_i32_1 = arith.constant 0 : i32
    return %c0_i32, %c0_i32_0 : i32, i32
  }
  func.func @transform_2(%arg0: i32, %arg1: i32) -> (i32, i32) {
    %c0_i32 = arith.constant 0 : i32
    %c0_i32_0 = arith.constant 0 : i32
    %c0_i32_1 = arith.constant 0 : i32
    return %c0_i32, %c0_i32_0 : i32, i32
  }
  func.func @transform_3(%arg0: i32, %arg1: i32) -> (i32, i32, i32) {
    %c0_i32 = arith.constant 0 : i32
    %c0_i32_0 = arith.constant 0 : i32
    %c0_i32_1 = arith.constant 0 : i32
    %c0_i32_2 = arith.constant 0 : i32
    return %c0_i32, %c0_i32_0, %c0_i32_1 : i32, i32, i32
  }
  func.func @transform_4(%arg0: i32, %arg1: i32) -> (i32, i32) {
    %c0_i32 = arith.constant 0 : i32
    %c0_i32_0 = arith.constant 0 : i32
    %c0_i32_1 = arith.constant 0 : i32
    return %c0_i32, %c0_i32_0 : i32, i32
  }
  func.func @transform_5(%arg0: i32, %arg1: i32) -> (i32, i32) {
    %c0_i32 = arith.constant 0 : i32
    %c0_i32_0 = arith.constant 0 : i32
    %c0_i32_1 = arith.constant 0 : i32
    return %c0_i32, %c0_i32_0 : i32, i32
  }
  func.func @transform_6(%arg0: i32, %arg1: i32) -> (i32, i32) {
    %c0_i32 = arith.constant 0 : i32
    %c0_i32_0 = arith.constant 0 : i32
    %c0_i32_1 = arith.constant 0 : i32
    return %c0_i32, %c0_i32_0 : i32, i32
  }
  func.func @transform_7(%arg0: i32, %arg1: i32) -> (i32, i32) {
    %c0_i32 = arith.constant 0 : i32
    %c0_i32_0 = arith.constant 0 : i32
    %c0_i32_1 = arith.constant 0 : i32
    return %c0_i32, %c0_i32_0 : i32, i32
  }
  func.func @transform_8(%arg0: i32, %arg1: i32) -> (i32, i32) {
    %c0_i32 = arith.constant 0 : i32
    %c0_i32_0 = arith.constant 0 : i32
    %c0_i32_1 = arith.constant 0 : i32
    return %c0_i32, %c0_i32_0 : i32, i32
  }
  func.func @transform_9(%arg0: i32, %arg1: i32) -> (i32, i32) {
    %c0_i32 = arith.constant 0 : i32
    %c0_i32_0 = arith.constant 0 : i32
    %c0_i32_1 = arith.constant 0 : i32
    return %c0_i32, %c0_i32_0 : i32, i32
  }
  func.func @transform_10(%arg0: i32, %arg1: i32) -> (i32, i32) {
    %c0_i32 = arith.constant 0 : i32
    %c0_i32_0 = arith.constant 0 : i32
    %c0_i32_1 = arith.constant 0 : i32
    return %c0_i32, %c0_i32_0 : i32, i32
  }
  func.func @transform_11(%arg0: i32, %arg1: i32) -> (i32, i32) {
    %c0_i32 = arith.constant 0 : i32
    %c0_i32_0 = arith.constant 0 : i32
    %c0_i32_1 = arith.constant 0 : i32
    return %c0_i32, %c0_i32_0 : i32, i32
  }
  func.func @transform_12(%arg0: i32, %arg1: i32) -> (i32, i32) {
    %c0_i32 = arith.constant 0 : i32
    %c0_i32_0 = arith.constant 0 : i32
    %c0_i32_1 = arith.constant 0 : i32
    return %c0_i32, %c0_i32_0 : i32, i32
  }
  func.func @transform_13(%arg0: i32, %arg1: i32) -> (i32, i32) {
    %c0_i32 = arith.constant 0 : i32
    %c0_i32_0 = arith.constant 0 : i32
    %c0_i32_1 = arith.constant 0 : i32
    return %c0_i32, %c0_i32_0 : i32, i32
  }
  func.func @transform_14(%arg0: i32, %arg1: i32) -> (i32, i32, i32) {
    %c0_i32 = arith.constant 0 : i32
    %c0_i32_0 = arith.constant 0 : i32
    %c0_i32_1 = arith.constant 0 : i32
    %c0_i32_2 = arith.constant 0 : i32
    return %c0_i32, %c0_i32_0, %c0_i32_1 : i32, i32, i32
  }
  func.func @transform_15(%arg0: i32, %arg1: i32) -> (i32, i32, i32) {
    %c0_i32 = arith.constant 0 : i32
    %c0_i32_0 = arith.constant 0 : i32
    %c0_i32_1 = arith.constant 0 : i32
    %c0_i32_2 = arith.constant 0 : i32
    return %c0_i32, %c0_i32_0, %c0_i32_1 : i32, i32, i32
  }
  func.func @transform_16(%arg0: i32, %arg1: i32) -> (i32, i32, i32) {
    %c0_i32 = arith.constant 0 : i32
    %c0_i32_0 = arith.constant 0 : i32
    %c0_i32_1 = arith.constant 0 : i32
    %c0_i32_2 = arith.constant 0 : i32
    return %c0_i32, %c0_i32_0, %c0_i32_1 : i32, i32, i32
  }
  func.func @transform_17(%arg0: i32, %arg1: i32) -> (i32, i32, i32) {
    %c0_i32 = arith.constant 0 : i32
    %c0_i32_0 = arith.constant 0 : i32
    %c0_i32_1 = arith.constant 0 : i32
    return %arg0, %c0_i32, %c0_i32_0 : i32, i32, i32
  }
  func.func @transform_18(%arg0: i32, %arg1: i32) -> (i32, i32, i32) {
    %c0_i32 = arith.constant 0 : i32
    %c0_i32_0 = arith.constant 0 : i32
    %c0_i32_1 = arith.constant 0 : i32
    return %arg0, %c0_i32, %c0_i32_0 : i32, i32, i32
  }
  func.func @transform_19(%arg0: i32, %arg1: i32) -> (i32, i32, i32) {
    %c0_i32 = arith.constant 0 : i32
    %0 = arith.minsi %arg1, %c0_i32 : i32
    %c0_i32_0 = arith.constant 0 : i32
    %c0_i32_1 = arith.constant 0 : i32
    return %arg0, %c0_i32_0, %0 : i32, i32, i32
  }
  func.func @transform_20(%arg0: i32, %arg1: i32) -> (i32, i32, i32) {
    %c0_i32 = arith.constant 0 : i32
    %0 = arith.minsi %arg1, %c0_i32 : i32
    %c0_i32_0 = arith.constant 0 : i32
    %c0_i32_1 = arith.constant 0 : i32
    return %arg0, %c0_i32_0, %0 : i32, i32, i32
  }
  func.func @transform_21(%arg0: i32, %arg1: i32) -> (i32, i32, i32) {
    %c0_i32 = arith.constant 0 : i32
    %0 = arith.minsi %arg1, %c0_i32 : i32
    %c0_i32_0 = arith.constant 0 : i32
    %c0_i32_1 = arith.constant 0 : i32
    return %arg0, %0, %c0_i32_0 : i32, i32, i32
  }
  func.func @transform_22(%arg0: i32, %arg1: i32) -> (i32, i32, i32) {
    %c0_i32 = arith.constant 0 : i32
    %c0_i32_0 = arith.constant 0 : i32
    %c0_i32_1 = arith.constant 0 : i32
    return %arg0, %c0_i32, %c0_i32_0 : i32, i32, i32
  }
  func.func @transform_23(%arg0: i32, %arg1: i32) -> (i32, i32, i32) {
    %c0_i32 = arith.constant 0 : i32
    %c0_i32_0 = arith.constant 0 : i32
    %c0_i32_1 = arith.constant 0 : i32
    return %arg0, %c0_i32, %c0_i32_0 : i32, i32, i32
  }
  func.func @transform_24(%arg0: i32, %arg1: i32) -> (i32, i32, i32) {
    %c0_i32 = arith.constant 0 : i32
    %c0_i32_0 = arith.constant 0 : i32
    %c0_i32_1 = arith.constant 0 : i32
    return %arg0, %c0_i32, %c0_i32_0 : i32, i32, i32
  }
  func.func @transform_25(%arg0: i32, %arg1: i32) -> (i32, i32, i32) {
    %c1_i32 = arith.constant 1 : i32
    %0 = arith.subi %arg1, %c1_i32 : i32
    %c0_i32 = arith.constant 0 : i32
    %1 = arith.maxsi %0, %c0_i32 : i32
    %c0_i32_0 = arith.constant 0 : i32
    %c0_i32_1 = arith.constant 0 : i32
    return %arg0, %c0_i32_0, %1 : i32, i32, i32
  }
  func.func @transform_26(%arg0: i32, %arg1: i32) -> (i32, i32, i32) {
    %c1_i32 = arith.constant 1 : i32
    %0 = arith.subi %arg1, %c1_i32 : i32
    %c0_i32 = arith.constant 0 : i32
    %1 = arith.maxsi %0, %c0_i32 : i32
    %c0_i32_0 = arith.constant 0 : i32
    %c0_i32_1 = arith.constant 0 : i32
    return %arg0, %c0_i32_0, %1 : i32, i32, i32
  }
  func.func @transform_27(%arg0: i32, %arg1: i32) -> (i32, i32, i32) {
    %c1_i32 = arith.constant 1 : i32
    %0 = arith.subi %arg1, %c1_i32 : i32
    %c0_i32 = arith.constant 0 : i32
    %1 = arith.maxsi %0, %c0_i32 : i32
    %c0_i32_0 = arith.constant 0 : i32
    %c0_i32_1 = arith.constant 0 : i32
    return %arg0, %1, %c0_i32_0 : i32, i32, i32
  }
  func.func @transform_28(%arg0: i32, %arg1: i32) -> (i32, i32, i32) {
    %c0_i32 = arith.constant 0 : i32
    %c0_i32_0 = arith.constant 0 : i32
    %c0_i32_1 = arith.constant 0 : i32
    return %arg0, %c0_i32, %c0_i32_0 : i32, i32, i32
  }
  func.func @transform_29(%arg0: i32, %arg1: i32) -> (i32, i32) {
    %c0_i32 = arith.constant 0 : i32
    %c0_i32_0 = arith.constant 0 : i32
    %c0_i32_1 = arith.constant 0 : i32
    return %c0_i32, %c0_i32_0 : i32, i32
  }
  func.func @transform_30(%arg0: i32, %arg1: i32) -> (i32, i32) {
    %c0_i32 = arith.constant 0 : i32
    %c0_i32_0 = arith.constant 0 : i32
    %c0_i32_1 = arith.constant 0 : i32
    return %c0_i32, %c0_i32_0 : i32, i32
  }
  func.func @transform_31(%arg0: i32, %arg1: i32) -> (i32, i32) {
    %c0_i32 = arith.constant 0 : i32
    %c0_i32_0 = arith.constant 0 : i32
    %c0_i32_1 = arith.constant 0 : i32
    return %c0_i32, %c0_i32_0 : i32, i32
  }
  func.func @transform_32(%arg0: i32, %arg1: i32) -> (i32, i32) {
    %c0_i32 = arith.constant 0 : i32
    %c0_i32_0 = arith.constant 0 : i32
    %c0_i32_1 = arith.constant 0 : i32
    return %c0_i32, %c0_i32_0 : i32, i32
  }
  func.func @transform_33(%arg0: i32, %arg1: i32) -> (i32, i32) {
    %c0_i32 = arith.constant 0 : i32
    %c0_i32_0 = arith.constant 0 : i32
    %c0_i32_1 = arith.constant 0 : i32
    return %c0_i32, %c0_i32_0 : i32, i32
  }
}

</mosaic_0001>

<bundles_post_ra>
// kernel: tpu_custom_call.1
= control target key start
LH: loop header
LB: loop body
LE: loop exit
PB: predicated region body
PF: predicated region fallthrough
CT: control target
= control target key end

     0   :  { %s10337_s6 = smov 1   ;;  %s10338_s10 = smov 2   ;;  %s12588_s0 = inlined_call_operand.smem [shape: u32[34], index: -1, kind: input, shape index: {}] }
   0x1   :  { %s10407_s5 = sld [smem:[%s12588_s0]]   ;;  %s10339_s14 = smov 3  }
   0x2   :  { %s10412_s9 = sld [smem:[%s12588_s0 + %s10337_s6]]   ;;  %s10340_s18 = smov 4  }
   0x3   :  { %s10417_s13 = sld [smem:[%s12588_s0 + %s10338_s10]]   ;;  %s10341_s22 = smov 5  }
   0x4   :  { %s10422_s17 = sld [smem:[%s12588_s0 + %s10339_s14]]   ;;  %s10342_s26 = smov 6  }
   0x5   :  { %s10427_s21 = sld [smem:[%s12588_s0 + %s10340_s18]]   ;;  %s10343_s30 = smov 7  }
   0x6   :  { %s10432_s25 = sld [smem:[%s12588_s0 + %s10341_s22]]   ;;  %s10344_s4 = smov 8  }
   0x7   :  { %12641 = sst [smem:[#allocation39_spill]] %s10407_s5  ;;  %s10345_s10 = smov 9  }
   0x8   :  { %12642 = sst [smem:[#allocation40_spill]] %s10412_s9  ;;  %s10346_s15 = smov 10  }
   0x9   :  { %12643 = sst [smem:[#allocation41_spill]] %s10417_s13  ;;  %s10347_s20 = smov 11  }
   0xa   :  { %12644 = sst [smem:[#allocation42_spill]] %s10422_s17  ;;  %s10349_s1 = smov 13  }
   0xb   :  { %12645 = sst [smem:[#allocation43_spill]] %s10427_s21  ;;  %s10350_s7 = smov 14  }
   0xc   :  { %12646 = sst [smem:[#allocation44_spill]] %s10432_s25  ;;  %s10352_s22 = smov 16  }
   0xd   :  { %s10437_s29 = sld [smem:[%s12588_s0 + %s10342_s26]]   ;;  %s10348_s26 = smov 12  }
   0xe   :  { %s10442_s3 = sld [smem:[%s12588_s0 + %s10343_s30]]   ;;  %s10353_s28 = smov 17  }
   0xf   :  { %s10447_s8 = sld [smem:[%s12588_s0 + %s10344_s4]]  }
  0x10   :  { %s10452_s14 = sld [smem:[%s12588_s0 + %s10345_s10]]  }
  0x11   :  { %s10457_s19 = sld [smem:[%s12588_s0 + %s10346_s15]]   ;;  %s10351_s15 = smov 15  }
  0x12   :  { %s10462_s24 = sld [smem:[%s12588_s0 + %s10347_s20]]  }
  0x13   :  { %12647 = sst [smem:[#allocation45_spill]] %s10437_s29 }
  0x14   :  { %12648 = sst [smem:[#allocation46_spill]] %s10442_s3 }
  0x15   :  { %12649 = sst [smem:[#allocation47_spill]] %s10447_s8 }
  0x16   :  { %12650 = sst [smem:[#allocation48_spill]] %s10452_s14 }
  0x17   :  { %12651 = sst [smem:[#allocation49_spill]] %s10457_s19 }
  0x18   :  { %12652 = sst [smem:[#allocation50_spill]] %s10462_s24 }
  0x19   :  { %s10467_s30 = sld [smem:[%s12588_s0 + %s10348_s26]]  }
  0x1a   :  { %s10472_s6 = sld [smem:[%s12588_s0 + %s10349_s1]]  }
  0x1b   :  { %s10477_s12 = sld [smem:[%s12588_s0 + %s10350_s7]]   ;;  %s10354_s7 = smov 18  }
  0x1c   :  { %s10482_s20 = sld [smem:[%s12588_s0 + %s10351_s15]]   ;;  %s10355_s15 = smov 19  }
  0x1d   :  { %s10487_s27 = sld [smem:[%s12588_s0 + %s10352_s22]]   ;;  %s10356_s22 = smov 20  }
  0x1e   :  { %s10492_s4 = sld [smem:[%s12588_s0 + %s10353_s28]]   ;;  %s10357_s28 = smov 21  }
  0x1f   :  { %12653 = sst [smem:[#allocation51_spill]] %s10467_s30 }
  0x20   :  { %12654 = sst [smem:[#allocation52_spill]] %s10472_s6 }
  0x21   :  { %12655 = sst [smem:[#allocation53_spill]] %s10477_s12 }
  0x22   :  { %12656 = sst [smem:[#allocation54_spill]] %s10482_s20 }
  0x23   :  { %12657 = sst [smem:[#allocation55_spill]] %s10487_s27 }
  0x24   :  { %12658 = sst [smem:[#allocation56_spill]] %s10492_s4 }
  0x25   :  { %s10497_s19 = sld [smem:[%s12588_s0 + %s10354_s7]]   ;;  %s10358_s7 = smov 22  }
  0x26   :  { %s10502_s20 = sld [smem:[%s12588_s0 + %s10355_s15]]   ;;  %s10359_s15 = smov 23  }
  0x27   :  { %s10507_s27 = sld [smem:[%s12588_s0 + %s10356_s22]]   ;;  %s10360_s22 = smov 24  }
  0x28   :  { %s10512_s8 = sld [smem:[%s12588_s0 + %s10357_s28]]   ;;  %s10361_s28 = smov 25  }
  0x29   :  { %s10517_s17 = sld [smem:[%s12588_s0 + %s10358_s7]]   ;;  %s10362_s7 = smov 26  }
  0x2a   :  { %s10522_s30 = sld [smem:[%s12588_s0 + %s10359_s15]]   ;;  %s10363_s15 = smov 27  }
  0x2b   :  { %12659 = sst [smem:[#allocation57_spill]] %s10497_s19 }
  0x2c   :  { %12660 = sst [smem:[#allocation58_spill]] %s10502_s20 }
  0x2d   :  { %12661 = sst [smem:[#allocation59_spill]] %s10507_s27 }
  0x2e   :  { %12662 = sst [smem:[#allocation60_spill]] %s10512_s8 }
  0x2f   :  { %12663 = sst [smem:[#allocation61_spill]] %s10517_s17 }
  0x30   :  { %12664 = sst [smem:[#allocation62_spill]] %s10522_s30 }
  0x31   :  { %s10527_s27 = sld [smem:[%s12588_s0 + %s10360_s22]]   ;;  %s10364_s22 = smov 28  }
  0x32   :  { %s10532_s19 = sld [smem:[%s12588_s0 + %s10361_s28]]   ;;  %s10365_s28 = smov 29  }
  0x33   :  { %s10537_s17 = sld [smem:[%s12588_s0 + %s10362_s7]]   ;;  %s10366_s7 = smov 30  }
  0x34   :  { %s10542_s30 = sld [smem:[%s12588_s0 + %s10363_s15]]   ;;  %s10367_s15 = smov 31  }
  0x35   :  { %s10552_s4 = sld [smem:[%s12588_s0 + %s10365_s28]]   ;;  %s10369_s28 = smov 33  }
  0x36   :  { %s10562_s8 = sld [smem:[%s12588_s0 + %s10367_s15]]  }
  0x37   :  { %12665 = sst [smem:[#allocation63_spill]] %s10527_s27 }
  0x38   :  { %12666 = sst [smem:[#allocation64_spill]] %s10532_s19 }
  0x39   :  { %12667 = sst [smem:[#allocation65_spill]] %s10537_s17 }
  0x3a   :  { %12668 = sst [smem:[#allocation66_spill]] %s10542_s30 }
  0x3b   :  { %s10547_s27 = sld [smem:[%s12588_s0 + %s10364_s22]]   ;;  %s10368_s22 = smov 32  }
  0x3c   :  { %12670 = sst [smem:[#allocation68_spill]] %s10552_s4 }
  0x3d   :  { %s10557_s17 = sld [smem:[%s12588_s0 + %s10366_s7]]  }
  0x3e   :  { %12672 = sst [smem:[#allocation70_spill]] %s10562_s8 }
  0x3f   :  { %s10572_s4 = sld [smem:[%s12588_s0 + %s10369_s28]]  }
  0x41   :  { %12669 = sst [smem:[#allocation67_spill]] %s10547_s27 }
  0x42   :  { %s10567_s27 = sld [smem:[%s12588_s0 + %s10368_s22]]  }
  0x43   :  { %12671 = sst [smem:[#allocation69_spill]] %s10557_s17 }
  0x45   :  { %12674 = sst [smem:[#allocation72_spill]] %s10572_s4 }
  0x48   :  { %12673 = sst [smem:[#allocation71_spill]] %s10567_s27 }
  0x49   :  { %72 = vsyncpa [#allocation6], 0 }
  0x4a   :  { %73 = vsyncpa [#allocation9], 0 }
  0x4b   :  { %74 = vsyncpa [#allocation12], 0 }
  0x4c   :  { %75 = vsyncpa [#allocation15], 0 }
  0x4d   :  { %76 = vsyncpa [#allocation18], 0 }
  0x4e   :  { %77 = vsyncpa [#allocation21], 0 }
  0x4f   :  { %78 = vsyncpa [#allocation24], 0 }
  0x50   :  { %80 = vsyncpa [#allocation24 + $0x1], 0 }
  0x51   :  { %81 = vsyncpa [#allocation27], 0 }
  0x52   :  { %83 = vsyncpa [#allocation27 + $0x1], 0 }
  0x53   :  { %84 = vsyncpa [#allocation7], 0  ;;  %s10574_s7 = smov 0   ;;  %s10576_s10 = smov 0  }
  0x54   :  { %s10578_s11 = smov 0   ;;  %s10580_s15 = smov 0  }
  0x55   :  { %s10582_s0 = smov 0   ;;  %s10584_s16 = smov 0  }
  0x56   :  { %s10586_s18 = smov 0   ;;  %s10588_s22 = smov 0  }
  0x57   :  { %s10590_s23 = smov 0   ;;  %s10592_s26 = smov 0  }
  0x58   :  { %s10594_s28 = smov 0  }
  0x59 LB: > { %s12675_s30 = sld [smem:[#allocation66_spill]]  ;;  %s10370_s1 = smov [#allocation8]   ;;  %s10303_s11 = sphi %s10578_s11, %s12798_s11   ;;  %s10299_s10 = sphi %s10576_s10, %s12807_s10   ;;  %s10295_s7 = sphi %s10574_s7, %s12806_s7   ;;  %s10335_s28 = sphi %s10594_s28, %s90_s28   ;;  %s10331_s26 = sphi %s10592_s26, %s12805_s26   ;;  %s10327_s23 = sphi %s10590_s23, %s12804_s23   ;;  %s10323_s22 = sphi %s10588_s22, %s12803_s22   ;;  %s10319_s18 = sphi %s10586_s18, %s12802_s18   ;;  %s10315_s16 = sphi %s10584_s16, %s12801_s16   ;;  %s10311_s0 = sphi %s10582_s0, %s12800_s0   ;;  %s10307_s15 = sphi %s10580_s15, %s12799_s15  }
  0x5a   : > { %s12676_s19 = sld [smem:[#allocation64_spill]]  ;;  %s947_s2 = sshll.u32 %s10370_s1, 4  ;;  %s948_s2 = int_to_ptr.vmem [resolvable:$true] %s947_s2 }
  0x5b   : > { %s12677_s20 = sld [smem:[#allocation58_spill]]  ;;  %s10630_s4 = sadd.s32 4294967295, %s10335_s28  }
  0x5c   : > { %12678 = sst [smem:[#allocation73_spill]] %s10303_s11  ;;  %p8158_p0 = scmp.ge.s32.totalorder %s10335_s28, 1 }
  0x5d   : > { %12679 = sst [smem:[#allocation74_spill]] %s10311_s0  ;;  %p12601_p1 = scmp.eq.s32.totalorder %s10630_s4, 0 }
  0x5e   : > { %12680 = sst [smem:[#allocation75_spill]] %s10315_s16  ;;  %p923_p2 = scmp.lt.s32.totalorder %s10335_s28, 5 }
  0x5f   : > { %12681 = sst [smem:[#allocation76_spill]] %s10319_s18  ;;  %s10371_s17 = smov [#allocation11]  }
  0x60   : > { %12682 = sst [smem:[#allocation77_spill]] %s10323_s22  ;;  %p10635_p3 = pnand %p8158_p0, %p923_p2 }
  0x61   : > { %12683 = sst [smem:[#allocation78_spill]] %s10327_s23  ;;  %s971_s8 = sshll.u32 %s10371_s17, 4  ;;  %s10641_s8 = int_to_ptr.vmem [resolvable:$true] %s971_s8 }
  0x62   : > { %12684 = sst [smem:[#allocation79_spill]] %s10331_s26  ;;  %p8857_p4 = pneg %p10635_p3 }
  0x63   : > { %12685 = sst [smem:[#allocation80_spill]] %s10335_s28  ;;  %s10372_s18 = smov [#allocation14]  }
  0x64   : > { %s12686_s27 = scalar_select %p10635_p3, 1, 0 }
  0x65   : > { %p10645_p5 = pnand %p8857_p4, %p12601_p1  ;;  %s995_s22 = sshll.u32 %s10372_s18, 4  ;;  %s10649_s22 = int_to_ptr.vmem [resolvable:$true] %s995_s22 }
  0x66   : > { %12687 = sst [smem:[#allocation81_spill]] %s12686_s27  ;;  %s9798_s27 = scalar_lea.vmem %s948_s2, 32 }
  0x67   : > { %s12688_s1 = scalar_select %p10645_p5, 1, 0 }
  0x68   : > { %p10653_p6 = pneg %p10645_p5  ;;  %p9799_p7 = scmp.ne.s32.totalorder %s948_s2, %s9798_s27 }
  0x69   : > { %p9806_p10 = scmp.lt.s32.totalorder %s948_s2, %s948_s2  ;;  %p9807_p11 = scmp.lt.s32.totalorder %s9798_s27, %s9798_s27 }
  0x6a   : > { %s12689_s12 = scalar_select %p10653_p6, 1, 0 }
  0x6b   : > { %p9801_p8 = pnand %p9799_p7, %p10653_p6  ;;  %p9808_p12 = por %p9807_p11, %p9806_p10 }
  0x6d   : > { %p9802_p9 = pneg %p9801_p8 }
  0x6f   : > { %p9809_p13 = pnand %p9808_p12, %p9802_p9 }
  0x71   : > { %9812 = shalt.err (!%p9809_p13)
}
  0x72   : > { %s12690_s9 = sld [smem:[#allocation40_spill]]  ;;  %s9824_s17 = scalar_lea.vmem %s10641_s8, 4096 }
  0x73   : > { %p9825_p0 = scmp.ne.s32.totalorder %s10641_s8, %s9824_s17  ;;  %p9832_p7 = scmp.lt.s32.totalorder %s10641_s8, %s10641_s8 }
  0x74   : > { %p9833_p8 = scmp.lt.s32.totalorder %s9824_s17, %s9824_s17 }
  0x75   : > { %p9827_p2 = pnand %p9825_p0, %p10653_p6 }
  0x76   : > { %p9834_p1 = por %p9833_p8, %p9832_p7 }
  0x77   : > { %p9828_p4 = pneg %p9827_p2 }
  0x78   : > { %8863 = dma.hbm_to_vmem [thread:$0]  (!%p10645_p5), %s12690_s9, 32, %s948_s2, [#allocation9]  }
  0x79   : > { %p9835_p10 = pnand %p9834_p1, %p9828_p4 }
  0x7b   : > { %9838 = shalt.err (!%p9835_p10)
}
  0x7c   : > { %s12603_s27 = smov 128   ;;  %s12691_s21 = sld [smem:[#allocation43_spill]] }
  0x7d   : > { %s12605_s18 = smov 8   ;;  %s9850_s2 = scalar_lea.vmem %s10649_s22, 4096 }
  0x7e   : > { %p9851_p9 = scmp.ne.s32.totalorder %s10649_s22, %s9850_s2  ;;  %p9858_p12 = scmp.lt.s32.totalorder %s10649_s22, %s10649_s22 }
  0x7f   : > { %p9859_p13 = scmp.lt.s32.totalorder %s9850_s2, %s9850_s2 }
  0x80   : > { %p9853_p11 = pnand %p9851_p9, %p10653_p6 }
  0x81   : > { %p9860_p0 = por %p9859_p13, %p9858_p12 }
  0x82   : > { %8869 = dma.hbm_to_vmem [thread:$0]  (!%p10645_p5), %s12691_s21, 4096, %s10641_s8, [#allocation12], %s12603_s27, %s12603_s27, %s12605_s18  }
  0x83   : > { %p9854_p1 = pneg %p9853_p11 }
  0x85   : > { %p9861_p2 = pnand %p9860_p0, %p9854_p1 }
  0x87   : > { %9864 = shalt.err (!%p9861_p2)
}
  0x88   : > { %s12692_s29 = sld [smem:[#allocation45_spill]]  ;;  %s10375_s8 = smov [#allocation17]  }
  0x89   : > { %s1023_s17 = sshll.u32 %s10375_s8, 4  ;;  %s10376_s9 = smov [#allocation20]   ;;  %s1024_s17 = int_to_ptr.vmem [resolvable:$true] %s1023_s17 }
  0x8a   : > { %s1051_s21 = sshll.u32 %s10376_s9, 4  ;;  %s9876_s24 = scalar_lea.vmem %s1024_s17, 32  ;;  %s1052_s21 = int_to_ptr.vmem [resolvable:$true] %s1051_s21 }
  0x8b   : > { %p9877_p4 = scmp.ne.s32.totalorder %s1024_s17, %s9876_s24  ;;  %p9884_p10 = scmp.lt.s32.totalorder %s1024_s17, %s1024_s17 }
  0x8c   : > { %p9885_p9 = scmp.lt.s32.totalorder %s9876_s24, %s9876_s24 }
  0x8d   : > { %p9879_p7 = pnand %p9877_p4, %p10653_p6 }
  0x8e   : > { %8875 = dma.hbm_to_vmem [thread:$0]  (!%p10645_p5), %s12692_s29, 4096, %s10649_s22, [#allocation15], %s12603_s27, %s12603_s27, %s12605_s18  }
  0x8f   : > { %p9880_p8 = pneg %p9879_p7  ;;  %p9886_p11 = por %p9885_p9, %p9884_p10 }
  0x91   : > { %p9887_p1 = pnand %p9886_p11, %p9880_p8 }
  0x93   : > { %9890 = shalt.err (!%p9887_p1)
}
  0x94   : > { %s12693_s14 = sld [smem:[#allocation48_spill]]  ;;  %s9902_s22 = scalar_lea.vmem %s1052_s21, 32 }
  0x95   : > { %p9903_p12 = scmp.ne.s32.totalorder %s1052_s21, %s9902_s22  ;;  %p9910_p2 = scmp.lt.s32.totalorder %s1052_s21, %s1052_s21 }
  0x96   : > { %p9911_p3 = scmp.lt.s32.totalorder %s9902_s22, %s9902_s22 }
  0x97   : > { %p9905_p13 = pnand %p9903_p12, %p10653_p6 }
  0x98   : > { %p9912_p4 = por %p9911_p3, %p9910_p2 }
  0x99   : > { %p9906_p0 = pneg %p9905_p13 }
  0x9a   : > { %8881 = dma.hbm_to_vmem [thread:$0]  (!%p10645_p5), %s12693_s14, 32, %s1024_s17, [#allocation18]  }
  0x9b   : > { %p9913_p7 = pnand %p9912_p4, %p9906_p0 }
  0x9d   : > { %9916 = shalt.err (!%p9913_p7)
}
  0x9e   : > { %s12694_s6 = sld [smem:[#allocation52_spill]]  ;;  %s99_s9 = sadd.s32 1, %s10327_s23 }
  0x9f   : > { %p100_p3 = scmp.ge.s32.totalorder %s99_s9, 2  ;;  %s102_s24 = sadd.s32 1, %s10331_s26 }
  0xa0   : > { %s524_s2 = sadd.s32 1, %s10315_s16  ;;  %p531_p10 = scmp.ne.s32.totalorder %s10315_s16, %s10311_s0 }
  0xa1   : > { %s12809_s9 = smov (%p100_p3, %s99_s9), 0  ;;  %s12811_s24 = smov (!%p100_p3, %s102_s24), %s10331_s26 }
  0xa2   : > { %12695 = sst [smem:[#allocation82_spill]] %s12809_s9  ;;  %p104_p8 = scmp.ge.s32.totalorder %s12811_s24, 2 }
  0xa3   : > { %p12610_p9 = scmp.eq.s32.totalorder %s10335_s28, 0  ;;  %p537_p1 = scmp.ne.s32.totalorder %s10311_s0, %s10307_s15 }
  0xa4   : > { %8887 = dma.hbm_to_vmem [thread:$0]  (!%p10645_p5), %s12694_s6, 32, %s1052_s21, [#allocation21]  }
  0xa5   : > { %s12813_s24 = smov (%p104_p8, %s12811_s24), 0  ;;  %p533_p11 = por %p12610_p9, %p531_p10 }
  0xa6   : > { %12696 = sst [smem:[#allocation83_spill]] %s12813_s24  ;;  %s519_s21 = ssub.s32 %s10331_s26, %s12813_s24 }
  0xa7   : > { %p12609_p12 = scmp.lt.s32.totalorder %s10335_s28, 4  ;;  %p10716_p13 = scmp.eq.s32.totalorder %s519_s21, 0 }
  0xa8   : > { %p12698_p0 = scmp.eq.s32.totalorder %s10630_s4, 0  ;;  %s12608_s27 = sand.u32 1, %s10315_s16  }
  0xa9   : > { %s10731_s18 = scalar_select %p10716_p13, %s10315_s16, %s524_s2  }
  0xaa   : > { %p10722_p2 = por %p12698_p0, %p537_p1  ;;  %s8797_s15 = smul.u32 768, %s12608_s27 }
  0xab   : > { %12700 = sst [smem:[#allocation84_spill]] %s10731_s18  ;;  %p10737_p4 = pnand %p12609_p12, %p533_p11 }
  0xac   : > { %s12699_s17 = scalar_select %p10722_p2, 1, 0 }
  0xad   : > { %s12701_s21 = scalar_select %p10737_p4, 1, 0 }
  0xae   : > { %s1109_s6 = scalar_lea.vmem [#allocation23], %s8797_s15  ;;  %s10289_s22 = smul.u32 12288, %s10331_s26 }
  0xaf   : > { %s1120_s14 = sshll.u32 %s1109_s6, 4  ;;  %s12702_s24 = sand.u32 1, %s10335_s28   ;;  %s10741_s14 = int_to_ptr.vmem [resolvable:$true] %s1120_s14 }
  0xb0   : > { %s10745_s29 = scalar_lea.hbm %s12677_s20, %s10289_s22  ;;  %s10749_s2 = scalar_lea.sflag [#allocation24], %s12702_s24 }
  0xb1   : > { %s9917_s27 = scalar_lea.hbm %s10745_s29, 12288  ;;  %p12618_p3 = pneg %p10737_p4 }
  0xb2   : > { %p9918_p7 = scmp.ne.s32.totalorder %s10745_s29, %s9917_s27  ;;  %s9922_s6 = scalar_lea.hbm %s12677_s20, 24576 }
  0xb3   : > { %p9923_p11 = scmp.lt.s32.totalorder %s10745_s29, %s12677_s20  ;;  %p9924_p1 = scmp.lt.s32.totalorder %s9922_s6, %s9917_s27 }
  0xb4   : > { %p9920_p8 = pnand %p12618_p3, %p9918_p7 }
  0xb5   : > { %p9925_p0 = por %p9924_p1, %p9923_p11 }
  0xb6   : > { %p9921_p10 = pneg %p9920_p8 }
  0xb8   : > { %p9926_p12 = pnand %p9925_p0, %p9921_p10 }
  0xba   : > { %9929 = shalt.err (!%p9926_p12)
}
  0xbb   : > { %s9930_s24 = scalar_lea.vmem %s10741_s14, 12288  ;;  %s10377_s22 = smov [#allocation23]  }
  0xbc   : > { %p9931_p9 = scmp.ne.s32.totalorder %s10741_s14, %s9930_s24  ;;  %s9935_s15 = sshll.u32 %s10377_s22, 4  ;;  %s9936_s15 = int_to_ptr.vmem [resolvable:$false] %s9935_s15 }
  0xbd   : > { %s9937_s9 = scalar_lea.vmem %s9936_s15, 24576  ;;  %p9938_p7 = scmp.lt.s32.totalorder %s10741_s14, %s9936_s15 }
  0xbe   : > { %p9933_p2 = pnand %p9931_p9, %p12618_p3  ;;  %p9939_p8 = scmp.lt.s32.totalorder %s9937_s9, %s9930_s24 }
  0xc0   : > { %p9934_p5 = pneg %p9933_p2  ;;  %p9940_p6 = por %p9939_p8, %p9938_p7 }
  0xc2   : > { %p9941_p11 = pnand %p9940_p6, %p9934_p5 }
  0xc4   : > { %9944 = shalt.err (!%p9941_p11)
}
  0xc5   : > { %s10378_s27 = smov 384   ;;  %s10379_s9 = smov 24  }
  0xc6   : > { %8894 = dma.hbm_to_vmem [thread:$0]  (!%p10737_p4), %s10745_s29, 12288, %s10741_s14, %s10749_s2, %s10378_s27, %s10378_s27, %s10379_s9  }
  0xc7   : > { %s12703_s6 = sand.u32 1, %s10315_s16   ;;  %s700_s22 = sadd.s32 1, %s10303_s11 }
  0xc8   : > { %s10774_s24 = sshll.u32 %s12703_s6, 8  ;;  %p707_p5 = scmp.ne.s32.totalorder %s10303_s11, %s10299_s10 }
  0xc9   : > { %p12704_p6 = scmp.eq.s32.totalorder %s10335_s28, 0  ;;  %p713_p12 = scmp.ne.s32.totalorder %s10299_s10, %s10295_s7 }
  0xca   : > { %p12705_p2 = scmp.eq.s32.totalorder %s10630_s4, 0  ;;  %s1195_s20 = sand.u32 1, %s10303_s11  }
  0xcb   : > { %p709_p9 = por %p707_p5, %p12704_p6  ;;  %s10790_s23 = sshll.u32 %s1195_s20, 10 }
  0xcc   : > { %p10785_p10 = por %p713_p12, %p12705_p2  ;;  %s1197_s14 = scalar_lea.vmem [#allocation26], %s10790_s23 }
  0xcd   : > { %s10795_s29 = scalar_select %p10716_p13, %s10303_s11, %s700_s22  }
  0xce   : > { %s12706_s15 = scalar_select %p10785_p10, 1, 0 }
  0xcf   : > { %12708 = sst [smem:[#allocation86_spill]] %s10795_s29  ;;  %s1209_s27 = sshll.u32 %s1197_s14, 4  ;;  %s10799_s27 = int_to_ptr.vmem [resolvable:$true] %s1209_s27 }
  0xd0   : > { %12707 = sst [smem:[#allocation85_spill]] %s12706_s15  ;;  %s12619_s9 = sshll.u32 %s10331_s26, 14 }
  0xd1   : > { %s10804_s7 = scalar_lea.hbm %s12676_s19, %s12619_s9  ;;  %p12709_p1 = scmp.lt.s32.totalorder %s10335_s28, 4 }
  0xd2   : > { %s12711_s20 = sand.u32 1, %s10335_s28   ;;  %s9945_s22 = scalar_lea.hbm %s10804_s7, 16384 }
  0xd3   : > { %p10808_p0 = pnand %p12709_p1, %p709_p9  ;;  %s10814_s8 = scalar_lea.sflag [#allocation27], %s12711_s20 }
  0xd4   : > { %p9946_p13 = scmp.ne.s32.totalorder %s10804_s7, %s9945_s22  ;;  %s9950_s14 = scalar_lea.hbm %s12676_s19, 32768 }
  0xd5   : > { %s12710_s6 = scalar_select %p10808_p0, 1, 0 }
  0xd6   : > { %p12627_p7 = pneg %p10808_p0  ;;  %p9951_p5 = scmp.lt.s32.totalorder %s10804_s7, %s12676_s19 }
  0xd7   : > { %p9952_p6 = scmp.lt.s32.totalorder %s9950_s14, %s9945_s22 }
  0xd8   : > { %p9948_p8 = pnand %p12627_p7, %p9946_p13 }
  0xd9   : > { %p9953_p9 = por %p9952_p6, %p9951_p5 }
  0xda   : > { %p9949_p11 = pneg %p9948_p8 }
  0xdc   : > { %p9954_p12 = pnand %p9953_p9, %p9949_p11 }
  0xde   : > { %9957 = shalt.err (!%p9954_p12)
}
  0xdf   : > { %s9958_s20 = scalar_lea.vmem %s10799_s27, 16384  ;;  %s10380_s9 = smov [#allocation26]  }
  0xe0   : > { %p9959_p2 = scmp.ne.s32.totalorder %s10799_s27, %s9958_s20  ;;  %s9963_s18 = sshll.u32 %s10380_s9, 4  ;;  %s9964_s18 = int_to_ptr.vmem [resolvable:$false] %s9963_s18 }
  0xe1   : > { %s9965_s16 = scalar_lea.vmem %s9964_s18, 32768  ;;  %p9966_p13 = scmp.lt.s32.totalorder %s10799_s27, %s9964_s18 }
  0xe2   : > { %p9961_p1 = pnand %p9959_p2, %p12627_p7  ;;  %p9967_p8 = scmp.lt.s32.totalorder %s9965_s16, %s9958_s20 }
  0xe4   : > { %p9962_p3 = pneg %p9961_p1  ;;  %p9968_p10 = por %p9967_p8, %p9966_p13 }
  0xe6   : > { %p9969_p5 = pnand %p9968_p10, %p9962_p3 }
  0xe8   : > { %9972 = shalt.err (!%p9969_p5)
}
  0xe9   : > { %s10381_s22 = smov 512   ;;  %s10382_s14 = smov 32  }
  0xea   : > { %8900 = dma.hbm_to_vmem [thread:$0]  (!%p10808_p0), %s10804_s7, 16384, %s10799_s27, %s10814_s8, %s10381_s22, %s10381_s22, %s10382_s14  }
  0xeb   : > { %s1241_s9 = scalar_lea.vmem [#allocation28], %s10790_s23  ;;  %s12712_s16 = sshll.u32 %s10331_s26, 14 }
  0xec   : > { %s1254_s19 = sshll.u32 %s1241_s9, 4  ;;  %s10843_s18 = scalar_lea.hbm %s12675_s30, %s12712_s16  ;;  %s10838_s19 = int_to_ptr.vmem [resolvable:$true] %s1254_s19 }
  0xed   : > { %s10383_s20 = smov [#allocation5]   ;;  %s10384_s11 = smov [#allocation10]  }
  0xee   : > { %s936_s29 = sshll.u32 %s10383_s20, 4  ;;  %s958_s28 = sshll.u32 %s10384_s11, 4  ;;  %s937_s29 = int_to_ptr.vmem [resolvable:$true] %s936_s29  ;;  %s959_s28 = int_to_ptr.vmem [resolvable:$true] %s958_s28 }
  0xef   : > { %s9984_s15 = scalar_lea.vmem %s937_s29, 64  ;;  %p12713_p10 = scmp.ne.s32.totalorder %s12689_s12, 0 }
  0xf0   : > { %p9985_p3 = scmp.ne.s32.totalorder %s937_s29, %s9984_s15  ;;  %p9992_p9 = scmp.lt.s32.totalorder %s937_s29, %s937_s29 }
  0xf1   : > { %p9993_p12 = scmp.lt.s32.totalorder %s9984_s15, %s9984_s15 }
  0xf2   : > { %p9987_p11 = pnand %p9985_p3, %p12713_p10 }
  0xf3   : > { %p9994_p2 = por %p9993_p12, %p9992_p9 }
  0xf4   : > { %p9988_p6 = pneg %p9987_p11 }
  0xf6   : > { %p9995_p1 = pnand %p9994_p2, %p9988_p6 }
  0xf8   : > { %9998 = shalt.err (!%p9995_p1)
}
  0xf9   : > { %p12714_p13 = scmp.ne.s32.totalorder %s12688_s1, 0  ;;  %s12715_s5 = sld [smem:[#allocation39_spill]] }
  0xfa   : > { %s10010_s23 = scalar_lea.vmem %s959_s28, 32  ;;  %p10018_p0 = scmp.lt.s32.totalorder %s959_s28, %s959_s28 }
  0xfb   : > { %p10011_p8 = scmp.ne.s32.totalorder %s959_s28, %s10010_s23  ;;  %p10019_p4 = scmp.lt.s32.totalorder %s10010_s23, %s10010_s23 }
  0xfd   : > { %p10013_p5 = pnand %p10011_p8, %p12713_p10  ;;  %p10020_p3 = por %p10019_p4, %p10018_p0 }
  0xff   : > { %8860 = dma.hbm_to_vmem [thread:$0]  (!%p12714_p13), %s12715_s5, 64, %s937_s29, [#allocation6]  }
 0x100   : > { %p10014_p7 = pneg %p10013_p5 }
 0x102   : > { %p10021_p11 = pnand %p10020_p3, %p10014_p7 }
 0x104   : > { %10024 = shalt.err (!%p10021_p11)
}
 0x105   : > { %s12716_s13 = sld [smem:[#allocation41_spill]]  ;;  %s10385_s11 = smov [#allocation13]  }
 0x106   : > { %s985_s15 = sshll.u32 %s10385_s11, 4  ;;  %s10386_s27 = smov [#allocation16]   ;;  %s986_s15 = int_to_ptr.vmem [resolvable:$true] %s985_s15 }
 0x107   : > { %s1009_s7 = sshll.u32 %s10386_s27, 4  ;;  %s10036_s29 = scalar_lea.vmem %s986_s15, 32  ;;  %s1010_s7 = int_to_ptr.vmem [resolvable:$true] %s1009_s7 }
 0x108   : > { %p10037_p6 = scmp.ne.s32.totalorder %s986_s15, %s10036_s29  ;;  %p10044_p2 = scmp.lt.s32.totalorder %s986_s15, %s986_s15 }
 0x109   : > { %p10045_p4 = scmp.lt.s32.totalorder %s10036_s29, %s10036_s29 }
 0x10a   : > { %p10039_p9 = pnand %p10037_p6, %p12713_p10 }
 0x10b   : > { %8866 = dma.hbm_to_vmem [thread:$0]  (!%p12714_p13), %s12716_s13, 32, %s959_s28, [#allocation9]  }
 0x10c   : > { %p10040_p12 = pneg %p10039_p9  ;;  %p10046_p0 = por %p10045_p4, %p10044_p2 }
 0x10e   : > { %p10047_p7 = pnand %p10046_p0, %p10040_p12 }
 0x110   : > { %10050 = shalt.err (!%p10047_p7)
}
 0x111   : > { %s12717_s25 = sld [smem:[#allocation44_spill]]  ;;  %s10062_s28 = scalar_lea.vmem %s1010_s7, 32 }
 0x112   : > { %p10063_p1 = scmp.ne.s32.totalorder %s1010_s7, %s10062_s28  ;;  %p10070_p3 = scmp.lt.s32.totalorder %s1010_s7, %s1010_s7 }
 0x113   : > { %p10071_p11 = scmp.lt.s32.totalorder %s10062_s28, %s10062_s28 }
 0x114   : > { %p10065_p8 = pnand %p10063_p1, %p12713_p10 }
 0x115   : > { %p10072_p6 = por %p10071_p11, %p10070_p3 }
 0x116   : > { %p10066_p5 = pneg %p10065_p8 }
 0x117   : > { %8872 = dma.hbm_to_vmem [thread:$0]  (!%p12714_p13), %s12717_s25, 32, %s986_s15, [#allocation12]  }
 0x118   : > { %p10073_p9 = pnand %p10072_p6, %p10066_p5 }
 0x11a   : > { %10076 = shalt.err (!%p10073_p9)
}
 0x11b   : > { %s12718_s3 = sld [smem:[#allocation46_spill]]  ;;  %s10387_s22 = smov [#allocation19]  }
 0x11c   : > { %s1037_s14 = sshll.u32 %s10387_s22, 4  ;;  %s10388_s9 = smov [#allocation22]   ;;  %s1038_s14 = int_to_ptr.vmem [resolvable:$true] %s1037_s14 }
 0x11d   : > { %s1062_s16 = sshll.u32 %s10388_s9, 4  ;;  %s10088_s20 = scalar_lea.vmem %s1038_s14, 32  ;;  %s1063_s16 = int_to_ptr.vmem [resolvable:$true] %s1062_s16 }
 0x11e   : > { %p10089_p12 = scmp.ne.s32.totalorder %s1038_s14, %s10088_s20  ;;  %p10096_p0 = scmp.lt.s32.totalorder %s1038_s14, %s1038_s14 }
 0x11f   : > { %p10097_p7 = scmp.lt.s32.totalorder %s10088_s20, %s10088_s20 }
 0x120   : > { %p10091_p2 = pnand %p10089_p12, %p12713_p10 }
 0x121   : > { %8878 = dma.hbm_to_vmem [thread:$0]  (!%p12714_p13), %s12718_s3, 32, %s1010_s7, [#allocation15]  }
 0x122   : > { %p10092_p4 = pneg %p10091_p2  ;;  %p10098_p1 = por %p10097_p7, %p10096_p0 }
 0x124   : > { %p10099_p8 = pnand %p10098_p1, %p10092_p4 }
 0x126   : > { %10102 = shalt.err (!%p10099_p8)
}
 0x127   : > { %s12719_s23 = sld [smem:[#allocation50_spill]]  ;;  %s10114_s11 = scalar_lea.vmem %s1063_s16, 32 }
 0x128   : > { %p10115_p5 = scmp.ne.s32.totalorder %s1063_s16, %s10114_s11  ;;  %p10122_p6 = scmp.lt.s32.totalorder %s1063_s16, %s1063_s16 }
 0x129   : > { %p10123_p9 = scmp.lt.s32.totalorder %s10114_s11, %s10114_s11 }
 0x12a   : > { %p10117_p3 = pnand %p10115_p5, %p12713_p10 }
 0x12b   : > { %p10124_p12 = por %p10123_p9, %p10122_p6 }
 0x12c   : > { %p10118_p11 = pneg %p10117_p3 }
 0x12d   : > { %8884 = dma.hbm_to_vmem [thread:$0]  (!%p12714_p13), %s12719_s23, 32, %s1038_s14, [#allocation18]  }
 0x12e   : > { %p10125_p2 = pnand %p10124_p12, %p10118_p11 }
 0x130   : > { %10128 = shalt.err (!%p10125_p2)
}
 0x131   : > { %s12720_s15 = sld [smem:[#allocation53_spill]]  ;;  %s1150_s7 = scalar_lea.vmem [#allocation25], %s10774_s24 }
 0x132   : > { %s12721_s27 = sld [smem:[#allocation60_spill]]  ;;  %s1162_s29 = sshll.u32 %s1150_s7, 4  ;;  %s10877_s29 = int_to_ptr.vmem [resolvable:$true] %s1162_s29 }
 0x133   : > { %s10292_s12 = sshll.u32 %s10331_s26, 12  ;;  %p12722_p4 = scmp.ne.s32.totalorder %s12701_s21, 0 }
 0x135   : > { %p12723_p0 = pneg %p12722_p4 }
 0x137   : > { %8890 = dma.hbm_to_vmem [thread:$0]  (!%p12714_p13), %s12720_s15, 32, %s1063_s16, [#allocation21]  }
 0x138   : > { %s1161_s28 = scalar_lea.hbm %s12721_s27, %s10292_s12  ;;  %s10134_s1 = scalar_lea.hbm %s12721_s27, 8192 }
 0x139   : > { %s10129_s22 = scalar_lea.hbm %s1161_s28, 4096  ;;  %p10135_p8 = scmp.lt.s32.totalorder %s1161_s28, %s12721_s27 }
 0x13a   : > { %p10130_p10 = scmp.ne.s32.totalorder %s1161_s28, %s10129_s22  ;;  %p10136_p5 = scmp.lt.s32.totalorder %s10134_s1, %s10129_s22 }
 0x13c   : > { %p10132_p7 = pnand %p10130_p10, %p12723_p0  ;;  %p10137_p3 = por %p10136_p5, %p10135_p8 }
 0x13e   : > { %p10133_p1 = pneg %p10132_p7 }
 0x140   : > { %p10138_p11 = pnand %p10137_p3, %p10133_p1 }
 0x142   : > { %10141 = shalt.err (!%p10138_p11)
}
 0x143   : > { %s10142_s24 = scalar_lea.vmem %s10877_s29, 4096  ;;  %p12724_p6 = pmov %p12723_p0 }
 0x144   : > { %p10143_p13 = scmp.ne.s32.totalorder %s10877_s29, %s10142_s24  ;;  %s10389_s14 = smov [#allocation25]  }
 0x145   : > { %s10147_s9 = sshll.u32 %s10389_s14, 4  ;;  %s10148_s9 = int_to_ptr.vmem [resolvable:$false] %s10147_s9 }
 0x146   : > { %p10145_p9 = pnand %p10143_p13, %p12724_p6  ;;  %s10149_s16 = scalar_lea.vmem %s10148_s9, 8192 }
 0x147   : > { %p10150_p2 = scmp.lt.s32.totalorder %s10877_s29, %s10148_s9  ;;  %p10151_p10 = scmp.lt.s32.totalorder %s10149_s16, %s10142_s24 }
 0x148   : > { %p10146_p12 = pneg %p10145_p9 }
 0x149   : > { %p10152_p0 = por %p10151_p10, %p10150_p2 }
 0x14b   : > { %p10153_p7 = pnand %p10152_p0, %p10146_p12 }
 0x14d   : > { %10156 = shalt.err (!%p10153_p7)
}
 0x14e   : > { %s12725_s20 = smov 8   ;;  %s12726_s23 = smov 128  }
 0x14f   : > { %8897 = dma.hbm_to_vmem [thread:$0]  (!%p12722_p4), %s1161_s28, 4096, %s10877_s29, %s10749_s2, %s12726_s23, %s12726_s23, %s12725_s20  }
 0x150   : > { %s10157_s11 = scalar_lea.hbm %s10843_s18, 16384  ;;  %p12727_p8 = scmp.ne.s32.totalorder %s12710_s6, 0 }
 0x151   : > { %p10158_p1 = scmp.ne.s32.totalorder %s10843_s18, %s10157_s11  ;;  %s10162_s15 = scalar_lea.hbm %s12675_s30, 32768 }
 0x152   : > { %p12728_p5 = pneg %p12727_p8  ;;  %p10163_p13 = scmp.lt.s32.totalorder %s10843_s18, %s12675_s30 }
 0x153   : > { %p10164_p6 = scmp.lt.s32.totalorder %s10162_s15, %s10157_s11 }
 0x154   : > { %p10160_p3 = pnand %p10158_p1, %p12728_p5 }
 0x155   : > { %p10165_p9 = por %p10164_p6, %p10163_p13 }
 0x156   : > { %p10161_p11 = pneg %p10160_p3 }
 0x158   : > { %p10166_p12 = pnand %p10165_p9, %p10161_p11 }
 0x15a   : > { %10169 = shalt.err (!%p10166_p12)
}
 0x15b   : > { %s10170_s21 = scalar_lea.vmem %s10838_s19, 16384  ;;  %p12729_p4 = pmov %p12728_p5 }
 0x15c   : > { %p10171_p2 = scmp.ne.s32.totalorder %s10838_s19, %s10170_s21  ;;  %s10390_s2 = smov [#allocation28]  }
 0x15d   : > { %s10175_s7 = sshll.u32 %s10390_s2, 4  ;;  %s10176_s7 = int_to_ptr.vmem [resolvable:$false] %s10175_s7 }
 0x15e   : > { %p10173_p10 = pnand %p10171_p2, %p12729_p4  ;;  %s10177_s29 = scalar_lea.vmem %s10176_s7, 32768 }
 0x15f   : > { %p10178_p7 = scmp.lt.s32.totalorder %s10838_s19, %s10176_s7  ;;  %p10179_p1 = scmp.lt.s32.totalorder %s10177_s29, %s10170_s21 }
 0x160   : > { %p10174_p0 = pneg %p10173_p10 }
 0x161   : > { %p10180_p5 = por %p10179_p1, %p10178_p7 }
 0x163   : > { %p10181_p3 = pnand %p10180_p5, %p10174_p0 }
 0x165   : > { %10184 = shalt.err (!%p10181_p3)
}
 0x166   : > { %8903 = dma.hbm_to_vmem [thread:$0]  (!%p12727_p8), %s10843_s18, 16384, %s10838_s19, %s10814_s8, %s12726_s23, %s12726_s23, %s12725_s20  }
 0x167   : > { %s12730_s12 = sld [smem:[#allocation81_spill]] }
 0x16d   : > { %p12731_p11 = scmp.ne.s32.totalorder %s12730_s12, 0 }
 0x16e   : > { %p12732_p13 = scmp.eq.s32.totalorder (!%p12731_p11), %s10630_s4, 0 }
 0x16f   : > { %1273 = sbr.rel (%p12731_p11) target bundleno = 4211 (0x1073), region = 152 }
 0x174   : > { %10254 = dma.done.wait (%p12732_p13), [#allocation6], 64   ;;  %p12733_p6 = pmov %p12732_p13 }
 0x176   : > { %10256 = vsyncadd (%p12733_p6), [#allocation6], 4294967232  ;;  %p12734_p9 = pmov %p12733_p6 }
 0x177   : > { %p12735_p12 = pmov %p12733_p6 }
 0x178   : > { %10258 = dma.done.wait (%p12734_p9), [#allocation9], 64  }
 0x179   : > { %10260 = vsyncadd (%p12735_p12), [#allocation9], 4294967232  ;;  %p12736_p2 = pmov %p12733_p6 }
 0x17b   : > { %10262 = dma.done.wait (%p12736_p2), [#allocation12], 4128   ;;  %p12737_p8 = pmov %p12736_p2 }
 0x17c   : > { %p12738_p4 = pmov %p12736_p2 }
 0x17d   : > { %10264 = vsyncadd (%p12737_p8), [#allocation12], 4294963168 }
 0x17e   : > { %10266 = dma.done.wait (%p12738_p4), [#allocation15], 4128   ;;  %p12739_p10 = pmov %p12736_p2 }
 0x17f   : > { %p12740_p0 = pmov %p12736_p2 }
 0x180   : > { %10268 = vsyncadd (%p12739_p10), [#allocation15], 4294963168 }
 0x181   : > { %10270 = dma.done.wait (%p12740_p0), [#allocation18], 64   ;;  %p12741_p7 = pmov %p12740_p0 }
 0x182   : > { %p12742_p1 = pmov %p12740_p0 }
 0x183   : > { %10272 = vsyncadd (%p12741_p7), [#allocation18], 4294967232 }
 0x184   : > { %10274 = dma.done.wait (%p12742_p1), [#allocation21], 64   ;;  %p12743_p5 = pmov %p12740_p0 }
 0x185   : > { %s1319_s19 = sand.u32 1, %s10630_s4   ;;  %s1321_s6 = sand.u32 1, %s10311_s0  }
 0x186   : > { %10276 = vsyncadd (%p12743_p5), [#allocation21], 4294967232  ;;  %s8799_s8 = smul.u32 768, %s1321_s6  ;;  %s1320_s18 = scalar_lea.sflag [#allocation24], %s1319_s19 }
 0x187   : > { %p12744_p3 = scmp.ne.s32.totalorder %s12699_s17, 0 }
 0x188   : > { %s10948_s28 = scalar_lea.vmem [#allocation23], %s8799_s8 }
 0x189   : > { %10278 = dma.done.wait (%p12744_p3), %s1320_s18, 16384  }
 0x18a   : > { %10280 = vsyncadd (%p12744_p3), %s1320_s18, 4294950912  ;;  %s12745_s22 = sld [smem:[#allocation85_spill]]  ;;  %s8200_s1 = sshll.u32 %s1321_s6, 8 }
 0x18b   : > { %s1339_s24 = sand.u32 1, %s10299_s10   ;;  %s10957_s9 = scalar_lea.vmem [#allocation25], %s8200_s1 }
 0x18c   : > { %s10955_s14 = sshll.u32 %s1339_s24, 10  ;;  %s1338_s16 = scalar_lea.sflag [#allocation27], %s1319_s19 }
 0x18d   : > { %s10960_s20 = scalar_lea.vmem [#allocation26], %s10955_s14 }
 0x190   : > { %p12746_p11 = scmp.ne.s32.totalorder %s12745_s22, 0 }
 0x192   : > { %10282 = dma.done.wait (%p12746_p11), %s1338_s16, 32768  }
 0x193   : > { %10284 = vsyncadd (%p12746_p11), %s1338_s16, 4294934528  ;;  %s12747_s23 = sld [smem:[#allocation77_spill]] }
 0x194   : > { %s12748_s17 = sld [smem:[#allocation76_spill]] }
 0x195   : > { %s12749_s11 = sld [smem:[#allocation56_spill]] }
 0x196   : > { %s12750_s15 = sld [smem:[#allocation57_spill]] }
 0x197   : > { %s12751_s21 = sld [smem:[#allocation61_spill]] }
 0x198   : > { %s12752_s2 = sld [smem:[#allocation62_spill]] }
 0x199   : > { %s12753_s7 = sld [smem:[#allocation63_spill]]  ;;  %p1488_p13 = scmp.lt.s32.totalorder %s12747_s23, 1 }
 0x19a   : > { %s12754_s29 = sld [smem:[#allocation67_spill]]  ;;  %p1499_p6 = scmp.lt.s32.totalorder %s12748_s17, 0 }
 0x19b   : > { %s8208_s12 = sadd.s32 4294967295, %s12748_s17  ;;  %s12755_s8 = sld [smem:[#allocation59_spill]] }
 0x19c   : > { %s1489_s19 = scalar_select %p1488_p13, %s12747_s23, 1 }
 0x19d   : > { %s1500_s6 = scalar_select %p1499_p6, %s12748_s17, 0 }
 0x19e   : > { %s10971_s18 = sshll.u32 %s1489_s19, 1  ;;  %s8800_s22 = smul.u32 6, %s1489_s19 }
 0x19f   : > { %s1491_s1 = scalar_lea.vmem %s12749_s11, %s10971_s18  ;;  %s1495_s24 = scalar_lea.vmem %s12750_s15, %s10971_s18 }
 0x1a0   : > { %s1501_s16 = smul.u32 6, %s1500_s6  ;;  %s1518_s3 = scalar_lea.vmem %s12751_s21, %s10971_s18 }
 0x1a1   : > { %s1522_s5 = scalar_lea.vmem %s12752_s2, %s10971_s18  ;;  %s1526_s13 = scalar_lea.vmem %s12753_s7, %s10971_s18 }
 0x1a2   : > { %s12756_s25 = sld [smem:[#allocation65_spill]]  ;;  %p1504_p9 = scmp.lt.s32.totalorder %s1501_s16, 5 }
 0x1a3   : > { %p1532_p12 = scmp.gt.s32.totalorder %s8208_s12, 0  ;;  %s1553_s27 = scalar_lea.vmem %s12754_s29, %s10971_s18 }
 0x1a4   : > { %s12815_s16 = smov (!%p1504_p9, %s1501_s16), 5  ;;  %p1555_p2 = scmp.eq.s32.totalorder %s12747_s23, 0 }
 0x1a5   : > { %s12817_s12 = smov (!%p1532_p12, %s8208_s12), 0  ;;  %s10985_s30 = sadd.s32 %s8800_s22, %s12815_s16 }
 0x1a6   : > { %s1508_s26 = scalar_lea.vmem %s12755_s8, %s10985_s30  ;;  %s8209_s0 = sshll.u32 %s12817_s12, 3 }
 0x1a7   : > { %p1537_p8 = scmp.lt.s32.totalorder %s8209_s0, 7  ;;  %p1556_p4 = scmp.eq.s32.totalorder %s12748_s17, 0 }
 0x1a8   : > { %s8210_s11 = sshll.u32 %s1489_s19, 3  ;;  %s10995_s2 = scalar_lea.vmem [#allocation28], %s10955_s14 }
 0x1a9   : > { %s12819_s0 = smov (!%p1537_p8, %s8209_s0), 7  ;;  %p1557_p10 = pnand %p1556_p4, %p1555_p2 }
 0x1aa   : > { %s1540_s15 = sadd.s32 %s8210_s11, %s12819_s0  ;;  %s12758_s0 = sld [smem:[#allocation42_spill]] (!%p1557_p10) }
 0x1ab   : > { %s10992_s21 = scalar_lea.vmem %s12756_s25, %s1540_s15  ;;  %1560 = sbr.rel (%p1557_p10) target bundleno = 955 (0x3bb), region = 216 }
 0x1ac   : > { %s12757_s25 = sld [smem:[#allocation51_spill]] (!%p1557_p10) }
 0x1ad   : > { %s12760_s23 = sld [smem:[#allocation47_spill]] (!%p1557_p10) }
 0x1ae   : > { %s12762_s7 = sld [smem:[#allocation49_spill]] (!%p1557_p10) }
 0x1af   : > { %s12764_s12 = sld [smem:[#allocation54_spill]] (!%p1557_p10) }
 0x1b0   : > { %v9075_v0 = vld [vmem:[#allocation11 + $0x74] ss:$8 sps:$4 sm:$0xff]   ;;  %v9077_v1 = vld [vmem:[#allocation11 + $0x70] ss:$8 sps:$4 sm:$0xff]   ;;  %v9078_v2 = vld [vmem:[#allocation11 + $0x64] ss:$8 sps:$4 sm:$0xff]   ;;  %s12759_s14 = smov %s12758_s0 }
 0x1b1   : > { %1779 = vmatprep.subr.bf16.mxu0 %v9075_v0  ;;  %v9080_v3 = vld [vmem:[#allocation11 + $0x60] ss:$8 sps:$4 sm:$0xff]   ;;  %v9081_v4 = vld [vmem:[#allocation11 + $0x54] ss:$8 sps:$4 sm:$0xff]   ;;  %v9083_v5 = vld [vmem:[#allocation11 + $0x50] ss:$8 sps:$4 sm:$0xff]  }
 0x1b2   : > { %1780 = vmatpush1.bf16.msra.mxu0 %v9077_v1  ;;  %v9084_v6 = vld [vmem:[#allocation11 + $0x44] ss:$8 sps:$4 sm:$0xff]   ;;  %v9086_v7 = vld [vmem:[#allocation11 + $0x40] ss:$8 sps:$4 sm:$0xff]   ;;  %v9087_v8 = vld [vmem:[#allocation11 + $0x34] ss:$8 sps:$4 sm:$0xff]  }
 0x1b3   : > { %1781 = vmatprep.subr.bf16.mxu0 %v9078_v2  ;;  %v9089_v9 = vld [vmem:[#allocation11 + $0x30] ss:$8 sps:$4 sm:$0xff]   ;;  %v9090_v10 = vld [vmem:[#allocation11 + $0x24] ss:$8 sps:$4 sm:$0xff]   ;;  %v9092_v11 = vld [vmem:[#allocation11 + $0x20] ss:$8 sps:$4 sm:$0xff]   ;;  %s12761_s17 = smov %s12760_s23 }
 0x1b4   : > { %v9093_v12 = vld [vmem:[#allocation11 + $0x14] ss:$8 sps:$4 sm:$0xff]   ;;  %v9095_v13 = vld [vmem:[#allocation11 + $0x10] ss:$8 sps:$4 sm:$0xff]   ;;  %v9096_v18 = vld [vmem:[#allocation11 + $0x4] ss:$8 sps:$4 sm:$0xff]   ;;  %s12763_s29 = smov %s12762_s7 }
 0x1b5   : > { %v10997_v14 = vld.sshfl [vmem:[#allocation5] sm:$0x33 pattern:$0x76325410]  ;;  %v9126_v20 = vld [vmem:[#allocation14 + $0x64] ss:$8 sps:$4 sm:$0xff]  }
 0x1b6   : > { %1782 = vmatpush1.bf16.msra.mxu0 %v9080_v3  ;;  %v1570_v15 = vcombine.high %v10997_v14, %v10997_v14  ;;  %v9123_v16 = vld [vmem:[#allocation14 + $0x74] ss:$8 sps:$4 sm:$0xff]   ;;  %v9125_v17 = vld [vmem:[#allocation14 + $0x70] ss:$8 sps:$4 sm:$0xff]   ;;  %v9128_v21 = vld [vmem:[#allocation14 + $0x60] ss:$8 sps:$4 sm:$0xff]   ;;  %v1573_v47 = vpack.c.bf16 %v10997_v14, %v10997_v14 }
 0x1b7   : > { %1783 = vmatprep.subr.bf16.mxu0 %v9081_v4  ;;  %2040 = vmatprep.subr.bf16.mxu1 %v9123_v16  ;;  %v9129_v22 = vld [vmem:[#allocation14 + $0x54] ss:$8 sps:$4 sm:$0xff]   ;;  %v9131_v26 = vld [vmem:[#allocation14 + $0x50] ss:$8 sps:$4 sm:$0xff]   ;;  %v9102_v27 = vld [vmem:[#allocation11 + $0xe4] ss:$8 sps:$4 sm:$0xff]  }
 0x1b8   : > { %v1574_v19 = vpack.c.bf16 %v1570_v15, %v1570_v15  ;;  %2041 = vmatpush1.bf16.msra.mxu1 %v9125_v17  ;;  %v9098_v23 = vld [vmem:[#allocation11] ss:$8 sps:$4 sm:$0xff]   ;;  %v9099_v24 = vld [vmem:[#allocation11 + $0xf4] ss:$8 sps:$4 sm:$0xff]   ;;  %v9101_v25 = vld [vmem:[#allocation11 + $0xf0] ss:$8 sps:$4 sm:$0xff]  }
 0x1b9   : > { %2042 = vmatprep.subr.bf16.mxu1 %v9126_v20  ;;  %v9132_v28 = vld [vmem:[#allocation14 + $0x44] ss:$8 sps:$4 sm:$0xff]   ;;  %v9134_v29 = vld [vmem:[#allocation14 + $0x40] ss:$8 sps:$4 sm:$0xff]   ;;  %v9135_v30 = vld [vmem:[#allocation14 + $0x34] ss:$8 sps:$4 sm:$0xff]  }
 0x1ba   : > { %1784 = vmatpush1.bf16.msra.mxu0 %v9083_v5  ;;  %1811 = vmatprep.mubr.bf16.mxu0 %v1574_v19  ;;  %v9104_v31 = vld [vmem:[#allocation11 + $0xe0] ss:$8 sps:$4 sm:$0xff]   ;;  %v9105_v32 = vld [vmem:[#allocation11 + $0xd4] ss:$8 sps:$4 sm:$0xff]   ;;  %v9107_v35 = vld [vmem:[#allocation11 + $0xd0] ss:$8 sps:$4 sm:$0xff]  }
 0x1bb   : > { %1785 = vmatprep.subr.bf16.mxu0 %v9084_v6  ;;  %v9137_v33 = vld [vmem:[#allocation14 + $0x30] ss:$8 sps:$4 sm:$0xff]   ;;  %v9138_v34 = vld [vmem:[#allocation14 + $0x24] ss:$8 sps:$4 sm:$0xff]   ;;  %v9140_v37 = vld [vmem:[#allocation14 + $0x20] ss:$8 sps:$4 sm:$0xff]  }
 0x1bc   : > { %2043 = vmatpush1.bf16.msra.mxu1 %v9128_v21  ;;  %v9108_v36 = vld [vmem:[#allocation11 + $0xc4] ss:$8 sps:$4 sm:$0xff]   ;;  %v9110_v38 = vld [vmem:[#allocation11 + $0xc0] ss:$8 sps:$4 sm:$0xff]   ;;  %v9111_v39 = vld [vmem:[#allocation11 + $0xb4] ss:$8 sps:$4 sm:$0xff]   ;;  %v1609_v21 = vlaneseq }
 0x1bd   : > { %2044 = vmatprep.subr.bf16.mxu1 %v9129_v22  ;;  %v9113_v40 = vld [vmem:[#allocation11 + $0xb0] ss:$8 sps:$4 sm:$0xff]   ;;  %v9114_v41 = vld [vmem:[#allocation11 + $0xa4] ss:$8 sps:$4 sm:$0xff]   ;;  %v9116_v42 = vld [vmem:[#allocation11 + $0xa0] ss:$8 sps:$4 sm:$0xff]  }
 0x1be   : > { %1786 = vmatpush1.bf16.msra.mxu0 %v9086_v7  ;;  %v9117_v43 = vld [vmem:[#allocation11 + $0x94] ss:$8 sps:$4 sm:$0xff]   ;;  %v9119_v44 = vld [vmem:[#allocation11 + $0x90] ss:$8 sps:$4 sm:$0xff]   ;;  %v9120_v45 = vld [vmem:[#allocation11 + $0x84] ss:$8 sps:$4 sm:$0xff]  }
 0x1bf   : > { %1787 = vmatprep.subr.bf16.mxu0 %v9087_v8  ;;  %v9122_v46 = vld [vmem:[#allocation11 + $0x80] ss:$8 sps:$4 sm:$0xff]   ;;  %v9143_v49 = vld [vmem:[#allocation14 + $0x10] ss:$8 sps:$4 sm:$0xff]   ;;  %v10391_v16 = vmov 0   ;;  %vm2119_vm0 = vcmask 261120  }
 0x1c0   : > { %2045 = vmatpush1.bf16.msra.mxu1 %v9131_v26  ;;  %v9141_v48 = vld [vmem:[#allocation14 + $0x14] ss:$8 sps:$4 sm:$0xff]   ;;  %v9144_v50 = vld [vmem:[#allocation14 + $0x4] ss:$8 sps:$4 sm:$0xff]   ;;  %v9146_v51 = vld [vmem:[#allocation14] ss:$8 sps:$4 sm:$0xff]  }
 0x1c1   : > { %2046 = vmatprep.subr.bf16.mxu1 %v9132_v28  ;;  %v9147_v52 = vld [vmem:[#allocation14 + $0xf4] ss:$8 sps:$4 sm:$0xff]   ;;  %v9149_v53 = vld [vmem:[#allocation14 + $0xf0] ss:$8 sps:$4 sm:$0xff]   ;;  %v9150_v54 = vld [vmem:[#allocation14 + $0xe4] ss:$8 sps:$4 sm:$0xff]  }
 0x1c2   : > { %1788 = vmatpush1.bf16.msra.mxu0 %v9089_v9  ;;  %v9152_v55 = vld [vmem:[#allocation14 + $0xe0] ss:$8 sps:$4 sm:$0xff]   ;;  %v9153_v56 = vld [vmem:[#allocation14 + $0xd4] ss:$8 sps:$4 sm:$0xff]   ;;  %v9155_v57 = vld [vmem:[#allocation14 + $0xd0] ss:$8 sps:$4 sm:$0xff]  }
 0x1c3   : > { %1789 = vmatprep.subr.bf16.mxu0 %v9090_v10  ;;  %v9156_v58 = vld [vmem:[#allocation14 + $0xc4] ss:$8 sps:$4 sm:$0xff]   ;;  %v9158_v59 = vld [vmem:[#allocation14 + $0xc0] ss:$8 sps:$4 sm:$0xff]   ;;  %v9159_v60 = vld [vmem:[#allocation14 + $0xb4] ss:$8 sps:$4 sm:$0xff]  }
 0x1c4   : > { %2047 = vmatpush1.bf16.msra.mxu1 %v9134_v29  ;;  %v9161_v61 = vld [vmem:[#allocation14 + $0xb0] ss:$8 sps:$4 sm:$0xff]   ;;  %v9162_v62 = vld [vmem:[#allocation14 + $0xa4] ss:$8 sps:$4 sm:$0xff]   ;;  %v9164_v63 = vld [vmem:[#allocation14 + $0xa0] ss:$8 sps:$4 sm:$0xff]  }
 0x1c5   : > { %2048 = vmatprep.subr.bf16.mxu1 %v9135_v30  ;;  %v9165_v0 = vld [vmem:[#allocation14 + $0x94] ss:$8 sps:$4 sm:$0xff]   ;;  %v9167_v1 = vld [vmem:[#allocation14 + $0x90] ss:$8 sps:$4 sm:$0xff]   ;;  %v9171_v4 = vld [vmem:[#allocation14 + $0x84] ss:$8 sps:$4 sm:$0xff]  }
 0x1c6   : > { %1790 = vmatpush1.bf16.msra.mxu0 %v9092_v11  ;;  %v9170_v2 = vld [vmem:[%s12757_s25 + $0x14] ss:$8 sps:$4 sm:$0xff]   ;;  %v9168_v3 = vld [vmem:[%s12757_s25 + $0x10] ss:$8 sps:$4 sm:$0xff]   ;;  %v2246_v6 = vld [vmem:[%s12758_s0] sm:$0xff]  ;;  %v1610_v22 = vshrl.u32 %v1609_v21, 7 }
 0x1c7   : > { %1791 = vmatprep.subr.bf16.mxu0 %v9093_v12  ;;  %v9173_v5 = vld [vmem:[#allocation14 + $0x80] ss:$8 sps:$4 sm:$0xff]   ;;  %v2254_v9 = vcombine.high %v2246_v6, %v2246_v6  ;;  %vm11045_vm1 = vcmp.lt.s32.totalorder %v1609_v21, 256 }
 0x1c8   : > { %2049 = vmatpush1.bf16.msra.mxu1 %v9137_v33  ;;  %v9174_v7 = vld [vmem:[%s12757_s25] ss:$8 sps:$4 sm:$0xff]   ;;  %v9176_v8 = vld [vmem:[%s12757_s25 + $0x4] ss:$8 sps:$4 sm:$0xff]   ;;  %v2248_v11 = vld [vmem:[%s12759_s14 + $0x10] sm:$0xff] }
 0x1c9   : > { %2050 = vmatprep.subr.bf16.mxu1 %v9138_v34  ;;  %v2247_v10 = vld [vmem:[%s12759_s14 + $0x8] sm:$0xf]  ;;  %v9179_v12 = vld [vmem:[%s12760_s23 + $0x14] ss:$8 sps:$4 sm:$0xff]   ;;  %v2255_v17 = vcombine.high %v2248_v11, %v2248_v11 }
 0x1ca   : > { %1792 = vmatpush1.bf16.msra.mxu0 %v9095_v13  ;;  %v2256_v13 = vcombine.low %v2246_v6, %v2254_v9  ;;  %v2257_v14 = vcombine.low %v2247_v10, %v2248_v11  ;;  %v9192_v10 = vld [vmem:[%s12764_s12] ss:$8 sps:$4 sm:$0xff]   ;;  %v9194_v11 = vld [vmem:[%s12764_s12 + $0x4] ss:$8 sps:$4 sm:$0xff]  }
 0x1cb   : > { %1793 = vmatprep.subr.bf16.mxu0 %v9096_v18  ;;  %v2249_v18 = vld [vmem:[%s12759_s14 + $0x18] sm:$0xf] }
 0x1cc   : > { %2051 = vmatpush1.bf16.msra.mxu1 %v9140_v37  ;;  %v2262_v15 = vpack.c.bf16 %v2257_v14, %v2256_v13  ;;  %v2258_v19 = vcombine.low %v2255_v17, %v2249_v18  ;;  %v9195_v14 = vld [vmem:[%s12764_s12 + $0x10] ss:$8 sps:$4 sm:$0xff]  }
 0x1cd   : > { %2052 = vmatprep.subr.bf16.mxu1 %v9141_v48  ;;  %v9182_v48 = vld [vmem:[%s12761_s17] ss:$8 sps:$4 sm:$0xff]  }
 0x1ce   : > { %1794 = vmatpush1.bf16.msra.mxu0 %v9098_v23  ;;  %v2263_v20 = vpack.c.bf16 %v2258_v19, %v2258_v19  ;;  %v11015_v23 = vsub.s32 0, %v1610_v22 }
 0x1cf   : > { %1795 = vmatprep.subr.bf16.mxu0 %v9099_v24  ;;  %v1607_v24 = vld [vmem:[#allocation13] sm:$0x3] }
 0x1d0   : > { %2053 = vmatpush1.bf16.msra.mxu1 %v9143_v49  ;;  %v1612_v26 = vrot.slane %v1607_v24, %v11015_v23  ;;  %v2081_v49 = vld [vmem:[#allocation8] sm:$0x3] }
 0x1d1   : > { %2054 = vmatprep.subr.bf16.mxu1 %v9144_v50  ;;  %v9187_v50 = vld [vmem:[%s12762_s7 + $0x14] ss:$8 sps:$4 sm:$0xff]  }
 0x1d2   : > { %1796 = vmatpush2.bf16.msra.mxu0 %v9101_v25  ;;  %v11017_v25 = vsub.s32 1, %v1610_v22 }
 0x1d3   : > { %1797 = vmatprep.subr.bf16.mxu0 %v9102_v27 }
 0x1d4   : > { %2055 = vmatpush1.bf16.msra.mxu1 %v9146_v51  ;;  %v1616_v27 = vrot.slane %v1607_v24, %v11017_v25  ;;  %v2082_v51 = vpack.c.bf16 %v2081_v49, %v2081_v49 }
 0x1d5   : > { %2056 = vmatprep.subr.bf16.mxu1 %v9147_v52  ;;  %v9185_v52 = vld [vmem:[%s12763_s29 + $0x10] ss:$8 sps:$4 sm:$0xff]  }
 0x1d6   : > { %1798 = vmatpush2.bf16.msra.mxu0 %v9104_v31 }
 0x1d7   : > { %1799 = vmatprep.subr.bf16.mxu0 %v9105_v32 }
 0x1d8   : > { %2057 = vmatpush2.bf16.msra.mxu1 %v9149_v53  ;;  %v9191_v53 = vld [vmem:[%s12763_s29 + $0x4] ss:$8 sps:$4 sm:$0xff]  }
 0x1d9   : > { %2058 = vmatprep.subr.bf16.mxu1 %v9150_v54  ;;  %v9189_v54 = vld [vmem:[%s12763_s29] ss:$8 sps:$4 sm:$0xff]  }
 0x1da   : > { %1800 = vmatpush2.bf16.msra.mxu0 %v9107_v35 }
 0x1db   : > { %1801 = vmatprep.subr.bf16.mxu0 %v9108_v36 }
 0x1dc   : > { %2059 = vmatpush2.bf16.msra.mxu1 %v9152_v55  ;;  %v2164_v55 = vld [vmem:[#allocation10] sm:$0x3] }
 0x1dd   : > { %2060 = vmatprep.subr.bf16.mxu1 %v9153_v56  ;;  %v2165_v56 = vpack.c.bf16 %v2164_v55, %v2164_v55 }
 0x1de   : > { %1802 = vmatpush2.bf16.msra.mxu0 %v9110_v38 }
 0x1df   : > { %1803 = vmatprep.subr.bf16.mxu0 %v9111_v39 }
 0x1e0   : > { %2061 = vmatpush2.bf16.msra.mxu1 %v9155_v57  ;;  %v10392_v57 = vmov 1966171168  }
 0x1e1   : > { %2062 = vmatprep.subr.bf16.mxu1 %v9156_v58  ;;  %v2426_v58 = vunpack.c.l.s4 %v10392_v57 }
 0x1e2   : > { %1804 = vmatpush2.bf16.msra.mxu0 %v9113_v40 }
 0x1e3   : > { %1805 = vmatprep.subr.bf16.mxu0 %v9114_v41 }
 0x1e4   : > { %2063 = vmatpush2.bf16.msra.mxu1 %v9158_v59  ;;  %v2427_v59 = vunpack.c.0.s8 %v2426_v58 }
 0x1e5   : > { %2064 = vmatprep.subr.bf16.mxu1 %v9159_v60 }
 0x1e6   : > { %1806 = vmatpush2.bf16.msra.mxu0 %v9116_v42  ;;  %v11030_v60 = vsub.s32 %v2427_v59, %v1610_v22 }
 0x1e7   : > { %1807 = vmatprep.subr.bf16.mxu0 %v9117_v43 }
 0x1e8   : > { %2065 = vmatpush2.bf16.msra.mxu1 %v9161_v61 }
 0x1e9   : > { %2066 = vmatprep.subr.bf16.mxu1 %v9162_v62  ;;  %v9197_v62 = vld [vmem:[%s12764_s12 + $0x14] ss:$8 sps:$4 sm:$0xff]  }
 0x1ea   : > { %1808 = vmatpush2.bf16.msra.mxu0 %v9119_v44 }
 0x1eb   : > { %1809 = vmatprep.subr.bf16.mxu0 %v9120_v45  ;;  %v9177_v45 = vld [vmem:[%s12761_s17 + $0x10] ss:$8 sps:$4 sm:$0xff]  }
 0x1ec   : > { %2067 = vmatpush2.bf16.msra.mxu1 %v9164_v63 }
 0x1ed   : > { %2068 = vmatprep.subr.bf16.mxu1 %v9165_v0 }
 0x1ee   : > { %1810 = vmatpush2.bf16.msra.mxu0 %v9122_v46 }
 0x1ef   : > { %2318 = vmatprep.subr.bf16.mxu0 %v9170_v2 }
 0x1f0   : > { %2069 = vmatpush2.bf16.msra.mxu1 %v9167_v1  ;;  %v11034_v1 = vrot.slane %v9197_v62, %v11030_v60 }
 0x1f1   : > { %1812 = vmatmul.mubr.bf16.vlgmr.msra.gmra.mxu0 %v1573_v47  ;;  %2070 = vmatprep.subr.bf16.mxu1 %v9171_v4  ;;  %v9184_v47 = vld [vmem:[%s12761_s17 + $0x4] ss:$8 sps:$4 sm:$0xff]  }
 0x1f2   : > { %2319 = vmatpush1.bf16.msra.mxu0 %v9168_v3  ;;  %2338 = vmatprep.mubr.bf16.mxu0 %v10391_v16  ;;  %v2268_v3 = vld [vmem:[#allocation20] sm:$0x3]  ;;  %v2504_v4 = vcombine.high %v11034_v1, %v11034_v1 }
 0x1f3   : > { %2320 = vmatprep.subr.bf16.mxu0 %v9176_v8  ;;  %v2277_v6 = vrot.slane %v2268_v3, %v11017_v25 }
 0x1f4   : > { %2071 = vmatpush2.bf16.msra.mxu1 %v9173_v5  ;;  %v2273_v5 = vrot.slane %v2268_v3, %v11015_v23 }
 0x1f5   : > { %2135 = vmatprep.subr.bf16.mxu1 %v9179_v12 }
 0x1f6   : > { %2321 = vmatpush1.bf16.msra.mxu0 %v9174_v7 }
 0x1f9   : > { %8293 = vmatmul.mubr.msk.bf16.vlgmr.msra.gmra.mxu0 %vm2119_vm0, %v2262_v15 }
 0x1fa   : > { %2348 = vmatprep.mubr.bf16.mxu0 %v10391_v16 }
 0x201   : > { %8294 = vmatmul.mubr.msk.bf16.gmra.mxu0 %vm2119_vm0, %v2263_v20 }
 0x2b1   : > { %v1813_v28 = vpop.f32.mrf.mxu0 }
 0x2b2   : > { %v1814_v29 = vadd.f32 %v1813_v28, %v1612_v26  ;;  %v2375_v26 = vld [vmem:[#allocation22] sm:$0x3] }
 0x2b3   : > { %v1815_v30 = vpop.f32.mrf.mxu0 }
 0x2b4   : > { %v8245_v31 = vmul.f32 -1.442695, %v1814_v29  ;;  %v1816_v32 = vadd.f32 %v1815_v30, %v1616_v27 }
 0x2b5   : > { %v1817_v33 = vpop.f32.mrf.mxu0 }
 0x2b6   : > { %9198 = vpow2.f32 %v8245_v31  ;;  %v8246_v34 = vmul.f32 -1.442695, %v1816_v32 }
 0x2b7   : > { %v1818_v35 = vpop.f32.mrf.mxu0 }
 0x2b8   : > { %9200 = vpow2.f32 %v8246_v34 }
 0x2b9   : > { %v2340_v61 = vpop.f32.mrf.mxu0 }
 0x2ba   : > { %v2341_v8 = vadd.f32 %v2340_v61, %v2273_v5 }
 0x2bb   : > { %v2342_v63 = vpop.f32.mrf.mxu0 }
 0x2bc   : > { %v2343_v9 = vadd.f32 %v2342_v63, %v2277_v6 }
 0x2bd   : > { %v2344_v0 = vpop.f32.mrf.mxu0 }
 0x2be   : > { %v2345_v12 = vadd.f32 %v2344_v0, %v2273_v5  ;;  %v2363_v19 = vcombine.low %v2341_v8, %v2343_v9  ;;  %v2364_v20 = vcombine.high %v2341_v8, %v2343_v9 }
 0x2bf   : > { %v2346_v2 = vpop.f32.mrf.mxu0 }
 0x2c0   : > { %v2347_v13 = vadd.f32 %v2346_v2, %v2277_v6  ;;  %v2390_v30 = vadd.f32 %v9192_v10, %v2363_v19  ;;  %v2391_v31 = vadd.f32 %v9194_v11, %v2364_v20 }
 0x2c1   : > { %v2350_v7 = vpop.f32.mrf.mxu0 }
 0x2c2   : > { %v2351_v17 = vadd.f32 %v2350_v7, %v2273_v5  ;;  %v2365_v22 = vcombine.low %v2345_v12, %v2347_v13  ;;  %v2366_v24 = vcombine.high %v2345_v12, %v2347_v13 }
 0x2c3   : > { %v9199_v36 = vpop.eup %9198  ;;  %v2352_v15 = vpop.f32.mrf.mxu0 }
 0x2c4   : > { %v1826_v37 = vadd.f32 1.0, %v9199_v36  ;;  %v2353_v18 = vadd.f32 %v2352_v15, %v2277_v6  ;;  %v2393_v33 = vadd.f32 %v9192_v10, %v2366_v24  ;;  %v2170_v6 = vld [vmem:[#allocation19] sm:$0x3]  ;;  %v2463_v10 = vrot.slane %v11034_v1, %v11030_v60 }
 0x2c5   : > { %v9201_v38 = vpop.eup %9200  ;;  %v2354_v27 = vpop.f32.mrf.mxu0  ;;  %v2175_v12 = vrot.slane %v2170_v6, %v11015_v23  ;;  %v2179_v13 = vrot.slane %v2170_v6, %v11017_v25 }
 0x2c6   : > { %9202 = vrcp.f32 %v1826_v37  ;;  %v1827_v39 = vadd.f32 1.0, %v9201_v38  ;;  %v2402_v38 = vcombine.low %v2390_v30, %v2391_v31  ;;  %v2368_v21 = vcombine.high %v2351_v17, %v2353_v18 }
 0x2c7   : > { %v2355_v34 = vpop.f32.mrf.mxu0 }
 0x2c8   : > { %9204 = vrcp.f32 %v1827_v39  ;;  %v2403_v39 = vcombine.high %v2390_v30, %v2391_v31  ;;  %2414 = vst [vmem:[#allocation2] sm:$0xff] %v2402_v38 }
 0x2ca   : > { %2415 = vst [vmem:[#allocation2 + $0x8] sm:$0xff] %v2403_v39 }
 0x2d3   : > { %v9203_v40 = vpop.eup %9202 }
 0x2d4   : > { %v1832_v42 = vmul.f32 %v9203_v40, %v1814_v29  ;;  %v2367_v29 = vcombine.low %v2351_v17, %v2353_v18 }
 0x2d5   : > { %v9205_v41 = vpop.eup %9204 }
 0x2d6   : > { %v1833_v43 = vmul.f32 %v9205_v41, %v1816_v32  ;;  %v1834_v46 = vpack.c.bf16 %v1832_v42, %v1832_v42  ;;  %v2392_v32 = vadd.f32 %v9195_v14, %v2365_v22  ;;  %v2394_v36 = vadd.f32 %v9194_v11, %v2367_v29 }
 0x2d8   : > { %v1835_v44 = vpack.c.bf16 %v1833_v43, %v1833_v43  ;;  %v2404_v40 = vcombine.high %v2392_v32, %v2392_v32  ;;  %2416 = vst [vmem:[#allocation2 + $0x10] sm:$0xf] %v2392_v32  ;;  %v2405_v41 = vcombine.low %v2393_v33, %v2394_v36  ;;  %v2406_v42 = vcombine.high %v2393_v33, %v2394_v36 }
 0x2d9   : > { %v2395_v43 = vadd.f32 %v9195_v14, %v2368_v21 }
 0x2da   : > { %2072 = vmatprep.mubr.bf16.mxu1 %v1835_v44  ;;  %2417 = vst [vmem:[#allocation2 + $0x18] sm:$0xf] %v2404_v40  ;;  %2418 = vst [vmem:[#allocation2 + $0x20] sm:$0xff] %v2405_v41 }
 0x2db   : > { %2073 = vmatmul.mubr.bf16.vlgmr.msra.gmra.mxu1 %v1834_v46  ;;  %2419 = vst [vmem:[#allocation2 + $0x28] sm:$0xff] %v2406_v42  ;;  %v2407_v44 = vcombine.high %v2395_v43, %v2395_v43  ;;  %2420 = vst [vmem:[#allocation2 + $0x30] sm:$0xf] %v2395_v43 }
 0x2dc   : > { %2136 = vmatpush1.bf16.msra.mxu1 %v9177_v45  ;;  %2155 = vmatprep.mubr.bf16.mxu1 %v10391_v16  ;;  %v1868_v45 = vld [vmem:[#allocation16] sm:$0x3] }
 0x2dd   : > { %2137 = vmatprep.subr.bf16.mxu1 %v9184_v47  ;;  %2421 = vst [vmem:[#allocation2 + $0x38] sm:$0xf] %v2407_v44  ;;  %v1873_v46 = vrot.slane %v1868_v45, %v11015_v23  ;;  %v1877_v47 = vrot.slane %v1868_v45, %v11017_v25 }
 0x2e0   : > { %2138 = vmatpush1.bf16.msra.mxu1 %v9182_v48 }
 0x2e1   : > { %2217 = vmatprep.subr.bf16.mxu1 %v9187_v50 }
 0x2e3   : > { %8283 = vmatmul.mubr.msk.bf16.vlgmr.msra.gmra.mxu1 %vm2119_vm0, %v2082_v51 }
 0x2e4   : > { %2218 = vmatpush1.bf16.msra.mxu1 %v9185_v52  ;;  %2237 = vmatprep.mubr.bf16.mxu1 %v10391_v16  ;;  %v2511_v16 = vrot.slane %v2504_v4, %v11030_v60 }
 0x2e5   : > { %2219 = vmatprep.subr.bf16.mxu1 %v9191_v53  ;;  %v2087_v53 = vld [vmem:[#allocation17] sm:$0x3] }
 0x2e6   : > { %v2558_v28 = vcombine.high %v2511_v16, %v2511_v16  ;;  %v2092_v57 = vrot.slane %v2087_v53, %v11015_v23  ;;  %v2096_v58 = vrot.slane %v2087_v53, %v11017_v25  ;;  %v2548_v25 = vcombine.high %v2463_v10, %v2463_v10 }
 0x2e8   : > { %2220 = vmatpush1.bf16.msra.mxu1 %v9189_v54  ;;  %v2560_v35 = vadd.f32 %v2558_v28, %v2375_v26 }
 0x2ea   : > { %2562 = vst.msk [vmem:[#allocation2 + $0x17] ss:$8 sm:$0x3] %vm11045_vm1, %v2560_v35  ;;  %2565 = vst.msk [vmem:[#allocation2 + $0x37] ss:$8 sm:$0x3] %vm11045_vm1, %v2560_v35 }
 0x2eb   : > { %8288 = vmatmul.mubr.msk.bf16.vlgmr.msra.gmra.mxu1 %vm2119_vm0, %v2165_v56 }
 0x39b   : > { %v2074_v48 = vpop.f32.mrf.mxu1 }
 0x39c   : > { %v2075_v50 = vadd.f32 %v2074_v48, %v1873_v46 }
 0x39d   : > { %v2076_v49 = vpop.f32.mrf.mxu1 }
 0x39e   : > { %v2077_v51 = vadd.f32 %v2076_v49, %v1877_v47 }
 0x39f   : > { %v2078_v52 = vpop.f32.mrf.mxu1 }
 0x3a0   : > { %v2479_v54 = vcombine.low %v2075_v50, %v2077_v51 }
 0x3a1   : > { %v2079_v55 = vpop.f32.mrf.mxu1 }
 0x3a2   : > { %v2486_v56 = vrot.slane %v2479_v54, %v11030_v60 }
 0x3a3   : > { %v2157_v59 = vpop.f32.mrf.mxu1 }
 0x3a4   : > { %v2487_v61 = vcombine.high %v2486_v56, %v2486_v56  ;;  %v2494_v62 = vrot.slane %v2486_v56, %v11030_v60  ;;  %v2158_v2 = vadd.f32 %v2157_v59, %v2092_v57 }
 0x3a5   : > { %v2159_v63 = vpop.f32.mrf.mxu1 }
 0x3a6   : > { %v2501_v0 = vrot.slane %v2487_v61, %v11030_v60  ;;  %v2513_v3 = vadd.f32 %v2511_v16, %v2494_v62  ;;  %v2160_v4 = vadd.f32 %v2159_v63, %v2096_v58 }
 0x3a7   : > { %v2161_v5 = vpop.f32.mrf.mxu1 }
 0x3a8   : > { %v2514_v7 = vadd.f32 %v2511_v16, %v2501_v0  ;;  %2516 = vst.msk [vmem:[#allocation2 + $0x15] ss:$8 sm:$0x3] %vm11045_vm1, %v2513_v3  ;;  %v2424_v8 = vcombine.low %v2158_v2, %v2160_v4 }
 0x3a9   : > { %v2162_v9 = vpop.f32.mrf.mxu1 }
 0x3aa   : > { %2519 = vst.msk [vmem:[#allocation2 + $0x35] ss:$8 sm:$0x3] %vm11045_vm1, %v2514_v7  ;;  %v2431_v11 = vrot.slane %v2424_v8, %v11030_v60 }
 0x3ab   : > { %v2239_v14 = vpop.f32.mrf.mxu1 }
 0x3ac   : > { %v2432_v15 = vcombine.high %v2431_v11, %v2431_v11  ;;  %v2439_v16 = vrot.slane %v2431_v11, %v11030_v60  ;;  %v2240_v20 = vadd.f32 %v2239_v14, %v2175_v12 }
 0x3ad   : > { %v2241_v17 = vpop.f32.mrf.mxu1 }
 0x3ae   : > { %v2446_v18 = vrot.slane %v2432_v15, %v11030_v60  ;;  %v2465_v19 = vadd.f32 %v2463_v10, %v2439_v16  ;;  %v2242_v22 = vadd.f32 %v2241_v17, %v2179_v13 }
 0x3af   : > { %v2243_v1 = vpop.f32.mrf.mxu1 }
 0x3b0   : > { %v2466_v24 = vadd.f32 %v2463_v10, %v2446_v18  ;;  %2472 = vst.msk [vmem:[#allocation2 + $0x14] ss:$8 sm:$0x3] %vm11045_vm1, %v2465_v19  ;;  %v2523_v26 = vcombine.low %v2240_v20, %v2242_v22 }
 0x3b1   : > { %v2244_v27 = vpop.f32.mrf.mxu1 }
 0x3b2   : > { %2475 = vst.msk [vmem:[#allocation2 + $0x34] ss:$8 sm:$0x3] %vm11045_vm1, %v2466_v24  ;;  %v2530_v23 = vrot.slane %v2523_v26, %v11030_v60 }
 0x3b4   : > { %v2531_v28 = vcombine.high %v2530_v23, %v2530_v23  ;;  %v2538_v29 = vrot.slane %v2530_v23, %v11030_v60 }
 0x3b6   : > { %v2545_v30 = vrot.slane %v2531_v28, %v11030_v60  ;;  %v2550_v31 = vadd.f32 %v2548_v25, %v2538_v29 }
 0x3b8   : > { %v2551_v32 = vadd.f32 %v2548_v25, %v2545_v30  ;;  %2553 = vst.msk [vmem:[#allocation2 + $0x16] ss:$8 sm:$0x3] %vm11045_vm1, %v2550_v31 }
 0x3ba   : > { %2556 = vst.msk [vmem:[#allocation2 + $0x36] ss:$8 sm:$0x3] %vm11045_vm1, %v2551_v32 }
 0x3bb PF: > { %s12767_s19 = sld [smem:[#allocation76_spill]] }
 0x3c1   : > { %p8295_p0 = scmp.ne.s32.totalorder %s12767_s19, 0 }
 0x3c3   : > { %2569 = sbr.rel (%p8295_p0) target bundleno = 1288 (0x508), region = 220 }
 0x3c8   : > { %v2570_v33 = vld [vmem:[#allocation2] sm:$0xff]  ;;  %v2571_v34 = vld [vmem:[#allocation2 + $0x8] sm:$0xff]  ;;  %v2572_v39 = vld [vmem:[#allocation2 + $0x10] sm:$0xff]  ;;  %v10393_v9 = vmov 0.0   ;;  %v2646_v15 = vlaneseq }
 0x3c9   : > { %v2574_v35 = vld [vmem:[#allocation2 + $0x20] sm:$0xff]  ;;  %v2580_v36 = vadd.f32 %v2571_v34, %v2570_v33  ;;  %v2575_v38 = vld [vmem:[#allocation2 + $0x28] sm:$0xff]  ;;  %v2573_v40 = vld [vmem:[#allocation2 + $0x18] sm:$0xff]  ;;  %2691 = vst [vmem:[#allocation4] sm:$0xff] %v10393_v9 }
 0x3ca   : > { %v2586_v60 = vadd.f32 %v2575_v38, %v2574_v35  ;;  %v2576_v41 = vld [vmem:[#allocation2 + $0x30] sm:$0xff]  ;;  %v2577_v42 = vld [vmem:[#allocation2 + $0x38] sm:$0xff]  ;;  %v2583_v21 = vadd.f32 %v2573_v40, %v2572_v39  ;;  %2692 = vst [vmem:[#allocation4 + $0x18] sm:$0xff] %v10393_v9  ;;  %2693 = vst [vmem:[#allocation4 + $0x10] sm:$0xff] %v10393_v9  ;;  %v2647_v22 = vshrl.u32 %v2646_v15, 7 }
 0x3cb   : > { %2581 = vadd.xlane.f32.xlu0 %v2580_v36  ;;  %v2589_v43 = vadd.f32 %v2577_v42, %v2576_v41  ;;  %2694 = vst [vmem:[#allocation4 + $0x20] sm:$0xff] %v10393_v9  ;;  %2695 = vst [vmem:[#allocation4 + $0x28] sm:$0xff] %v10393_v9  ;;  %v2578_v23 = vld [vmem:[%s1491_s1] sm:$0x3] }
 0x3cc   : > { %2587 = vadd.xlane.f32.xlu1 %v2586_v60  ;;  %2696 = vst [vmem:[#allocation4 + $0x8] sm:$0xff] %v10393_v9  ;;  %2697 = vst [vmem:[#allocation4 + $0x30] sm:$0xff] %v10393_v9  ;;  %v2648_v26 = vsub.s32 0, %v2647_v22  ;;  %v2652_v27 = vsub.s32 1, %v2647_v22  ;;  %v2579_v25 = vld [vmem:[%s1495_s24] sm:$0x3] }
 0x3cd   : > { %2698 = vst [vmem:[#allocation4 + $0x38] sm:$0xff] %v10393_v9 }
 0x3ce   : > { %v2649_v28 = vrot.slane %v2578_v23, %v2648_v26  ;;  %v2653_v29 = vrot.slane %v2578_v23, %v2652_v27  ;;  %v2668_v31 = vrot.slane %v2579_v25, %v2648_v26  ;;  %v2672_v32 = vrot.slane %v2579_v25, %v2652_v27 }
 0x3cf   : > { %2584 = vadd.xlane.f32.xlu0 %v2583_v21 }
 0x3d0   : > { %2590 = vadd.xlane.f32.xlu1 %v2589_v43 }
 0x454   : > { %v2582_v37 = vpop.xlane.xlu0 %2581 }
 0x455   : > { %v2593_v44 = vmul.f32 0.00390625, %v2582_v37  ;;  %v2588_v45 = vpop.xlane.xlu1 %2587 }
 0x456   : > { %v2595_v46 = vmul.f32 0.00390625, %v2588_v45 }
 0x457   : > { %v11083_v47 = vsub.f32 %v2570_v33, %v2593_v44  ;;  %v11085_v48 = vsub.f32 %v2571_v34, %v2593_v44 }
 0x458   : > { %v11087_v49 = vsub.f32 %v2574_v35, %v2595_v46  ;;  %v11089_v50 = vsub.f32 %v2575_v38, %v2595_v46  ;;  %v2585_v51 = vpop.xlane.xlu0 %2584 }
 0x459   : > { %v2594_v52 = vmul.f32 0.00390625, %v2585_v51  ;;  %v2591_v53 = vpop.xlane.xlu1 %2590  ;;  %v2605_v54 = vmul.f32 %v11083_v47, %v11083_v47  ;;  %v2606_v55 = vmul.f32 %v11085_v48, %v11085_v48 }
 0x45a   : > { %v2596_v56 = vmul.f32 0.00390625, %v2591_v53  ;;  %v2609_v57 = vmul.f32 %v11087_v49, %v11087_v49  ;;  %v2610_v58 = vmul.f32 %v11089_v50, %v11089_v50 }
 0x45b   : > { %v2599_v59 = vsub.f32 %v2572_v39, %v2594_v52  ;;  %v2600_v61 = vsub.f32 %v2573_v40, %v2594_v52  ;;  %v2613_v62 = vadd.f32 %v2606_v55, %v2605_v54 }
 0x45c   : > { %v11099_v63 = vsub.f32 %v2576_v41, %v2596_v56  ;;  %v11101_v0 = vsub.f32 %v2577_v42, %v2596_v56  ;;  %v2619_v2 = vadd.f32 %v2610_v58, %v2609_v57 }
 0x45d   : > { %2614 = vadd.xlane.f32.xlu0 %v2613_v62  ;;  %v2607_v3 = vmul.f32 %v2599_v59, %v2599_v59  ;;  %v2608_v4 = vmul.f32 %v2600_v61, %v2600_v61 }
 0x45e   : > { %v2611_v5 = vmul.f32 %v11099_v63, %v11099_v63  ;;  %v2612_v6 = vmul.f32 %v11101_v0, %v11101_v0 }
 0x45f   : > { %v2616_v7 = vadd.f32 %v2608_v4, %v2607_v3 }
 0x460   : > { %v2622_v8 = vadd.f32 %v2612_v6, %v2611_v5 }
 0x461   : > { %2620 = vadd.xlane.f32.xlu0 %v2619_v2  ;;  %2617 = vadd.xlane.f32.xlu1 %v2616_v7 }
 0x465   : > { %2623 = vadd.xlane.f32.xlu1 %v2622_v8 }
 0x4e6   : > { %v2615_v10 = vpop.xlane.xlu0 %2614 }
 0x4e7   : > { %v2625_v11 = vmul.f32 0.00390625, %v2615_v10 }
 0x4e9   : > { %v2629_v12 = vadd.f32 1e-05, %v2625_v11 }
 0x4ea   : > { %v2618_v13 = vpop.xlane.xlu1 %2617  ;;  %v2621_v14 = vpop.xlane.xlu0 %2620 }
 0x4eb   : > { %9206 = vrsqrt.f32 %v2629_v12  ;;  %v2626_v16 = vmul.f32 0.00390625, %v2618_v13  ;;  %v2627_v17 = vmul.f32 0.00390625, %v2621_v14 }
 0x4ed   : > { %v2630_v18 = vadd.f32 1e-05, %v2626_v16  ;;  %v2631_v19 = vadd.f32 1e-05, %v2627_v17 }
 0x4ee   : > { %v2624_v20 = vpop.xlane.xlu1 %2623 }
 0x4ef   : > { %9208 = vrsqrt.f32 %v2630_v18  ;;  %v2628_v1 = vmul.f32 0.00390625, %v2624_v20 }
 0x4f0   : > { %9210 = vrsqrt.f32 %v2631_v19 }
 0x4f1   : > { %v2632_v24 = vadd.f32 1e-05, %v2628_v1 }
 0x4f3   : > { %9212 = vrsqrt.f32 %v2632_v24 }
 0x4f8   : > { %v9207_v30 = vpop.eup %9206 }
 0x4f9   : > { %v2637_v33 = vmul.f32 %v9207_v30, %v11083_v47  ;;  %v2638_v34 = vmul.f32 %v9207_v30, %v11085_v48 }
 0x4fb   : > { %v2656_v35 = vmul.f32 %v2649_v28, %v2637_v33  ;;  %v2657_v36 = vmul.f32 %v2653_v29, %v2638_v34 }
 0x4fc   : > { %v9209_v38 = vpop.eup %9208 }
 0x4fd   : > { %v9211_v39 = vpop.eup %9210  ;;  %v2675_v40 = vadd.f32 %v2668_v31, %v2656_v35  ;;  %v2676_v60 = vadd.f32 %v2672_v32, %v2657_v36  ;;  %v2639_v41 = vmul.f32 %v9209_v38, %v2599_v59  ;;  %v2640_v42 = vmul.f32 %v9209_v38, %v2600_v61 }
 0x4fe   : > { %v2641_v21 = vmul.f32 %v9211_v39, %v11087_v49  ;;  %v2642_v43 = vmul.f32 %v9211_v39, %v11089_v50 }
 0x4ff   : > { %2683 = vst [vmem:[#allocation3 + $0x30] sm:$0xff] %v2675_v40  ;;  %2684 = vst [vmem:[#allocation3] sm:$0xff] %v2676_v60  ;;  %v2658_v37 = vmul.f32 %v2649_v28, %v2639_v41  ;;  %v2659_v44 = vmul.f32 %v2653_v29, %v2640_v42 }
 0x500   : > { %v9213_v45 = vpop.eup %9212  ;;  %v2660_v46 = vmul.f32 %v2649_v28, %v2641_v21  ;;  %v2661_v47 = vmul.f32 %v2653_v29, %v2642_v43 }
 0x501   : > { %v2677_v48 = vadd.f32 %v2668_v31, %v2658_v37  ;;  %v2678_v51 = vadd.f32 %v2672_v32, %v2659_v44  ;;  %v2643_v52 = vmul.f32 %v9213_v45, %v11099_v63  ;;  %v2644_v53 = vmul.f32 %v9213_v45, %v11101_v0 }
 0x502   : > { %v2679_v54 = vadd.f32 %v2668_v31, %v2660_v46  ;;  %v2680_v55 = vadd.f32 %v2672_v32, %v2661_v47 }
 0x503   : > { %2685 = vst [vmem:[#allocation3 + $0x18] sm:$0xff] %v2677_v48  ;;  %2686 = vst [vmem:[#allocation3 + $0x10] sm:$0xff] %v2678_v51  ;;  %v2662_v49 = vmul.f32 %v2649_v28, %v2643_v52  ;;  %v2663_v56 = vmul.f32 %v2653_v29, %v2644_v53 }
 0x504   : > { %2687 = vst [vmem:[#allocation3 + $0x8] sm:$0xff] %v2679_v54  ;;  %2688 = vst [vmem:[#allocation3 + $0x20] sm:$0xff] %v2680_v55 }
 0x505   : > { %v2681_v50 = vadd.f32 %v2668_v31, %v2662_v49  ;;  %v2682_v57 = vadd.f32 %v2672_v32, %v2663_v56 }
 0x507   : > { %2689 = vst [vmem:[#allocation3 + $0x28] sm:$0xff] %v2681_v50  ;;  %2690 = vst [vmem:[#allocation3 + $0x38] sm:$0xff] %v2682_v57 }
 0x508 PF: > { %s12770_s22 = sld [smem:[#allocation76_spill]] }
 0x50e   : > { %p8296_p7 = scmp.ge.s32.totalorder %s12770_s22, 1 }
 0x50f   : > { %s12772_s30 = sld [smem:[#allocation55_spill]] (!%p8296_p7) }
 0x510   : > { %2702 = sbr.rel (%p8296_p7) target bundleno = 2562 (0xa02), region = 224 }
 0x515   : > { %v9214_v58 = vld [vmem:[%s10948_s28 + $0x154] ss:$24 sps:$4 sm:$0xff]   ;;  %v9216_v59 = vld [vmem:[%s10948_s28 + $0x150] ss:$24 sps:$4 sm:$0xff]   ;;  %v9217_v61 = vld [vmem:[%s10948_s28 + $0x124] ss:$24 sps:$4 sm:$0xff]  }
 0x516   : > { %3323 = vmatprep.subr.bf16.mxu0 %v9214_v58  ;;  %v9219_v62 = vld [vmem:[%s10948_s28 + $0x120] ss:$24 sps:$4 sm:$0xff]   ;;  %v9220_v63 = vld [vmem:[%s10948_s28 + $0xf4] ss:$24 sps:$4 sm:$0xff]   ;;  %v9222_v0 = vld [vmem:[%s10948_s28 + $0xf0] ss:$24 sps:$4 sm:$0xff]  }
 0x517   : > { %3324 = vmatpush1.bf16.msra.mxu0 %v9216_v59  ;;  %v9223_v2 = vld [vmem:[%s10948_s28 + $0xc4] ss:$24 sps:$4 sm:$0xff]   ;;  %v9225_v3 = vld [vmem:[%s10948_s28 + $0xc0] ss:$24 sps:$4 sm:$0xff]   ;;  %v9226_v4 = vld [vmem:[%s10948_s28 + $0x94] ss:$24 sps:$4 sm:$0xff]  }
 0x518   : > { %3325 = vmatprep.subr.bf16.mxu0 %v9217_v61  ;;  %v9228_v5 = vld [vmem:[%s10948_s28 + $0x90] ss:$24 sps:$4 sm:$0xff]   ;;  %v9229_v6 = vld [vmem:[%s10948_s28 + $0x64] ss:$24 sps:$4 sm:$0xff]   ;;  %v9231_v7 = vld [vmem:[%s10948_s28 + $0x60] ss:$24 sps:$4 sm:$0xff]  }
 0x519   : > { %v9232_v8 = vld [vmem:[%s10948_s28 + $0x34] ss:$24 sps:$4 sm:$0xff]   ;;  %v2706_v10 = vld [vmem:[#allocation3 + $0x10] sm:$0xff]  ;;  %v9234_v12 = vld [vmem:[%s10948_s28 + $0x30] ss:$24 sps:$4 sm:$0xff]   ;;  %vm10395_vm2 = vmmov 0  }
 0x51a   : > { %v2704_v9 = vld [vmem:[#allocation3] sm:$0xff]  ;;  %v9235_v13 = vld [vmem:[%s10948_s28 + $0x4] ss:$24 sps:$4 sm:$0xff]   ;;  %v9237_v16 = vld [vmem:[%s10948_s28] ss:$24 sps:$4 sm:$0xff]   ;;  %vm3582_vm3 = vcmask 130048  }
 0x51b   : > { %3326 = vmatpush1.bf16.msra.mxu0 %v9219_v62  ;;  %v11133_v11 = vpack.c.bf16 %v2706_v10, %v2704_v9  ;;  %v9268_v14 = vld [vmem:[%s10948_s28 + $0x15c] ss:$24 sps:$4 sm:$0xff]   ;;  %v9270_v15 = vld [vmem:[%s10948_s28 + $0x158] ss:$24 sps:$4 sm:$0xff]   ;;  %v9274_v18 = vld [vmem:[%s10948_s28 + $0x12c] ss:$24 sps:$4 sm:$0xff]  }
 0x51c   : > { %3327 = vmatprep.subr.bf16.mxu0 %v9220_v63  ;;  %v9238_v17 = vld [vmem:[%s10948_s28 + $0x2d4] ss:$24 sps:$4 sm:$0xff]   ;;  %3376 = vmatprep.subr.bf16.mxu1 %v9268_v14  ;;  %v9276_v19 = vld [vmem:[%s10948_s28 + $0x128] ss:$24 sps:$4 sm:$0xff]   ;;  %v9241_v22 = vld [vmem:[%s10948_s28 + $0x2a4] ss:$24 sps:$4 sm:$0xff]  }
 0x51d   : > { %3355 = vmatprep.mubr.bf16.mxu0 %v11133_v11  ;;  %3408 = vmatprep.mubr.bf16.mxu1 %v11133_v11  ;;  %v9240_v20 = vld [vmem:[%s10948_s28 + $0x2d0] ss:$24 sps:$4 sm:$0xff]   ;;  %v9280_v1 = vld [vmem:[%s10948_s28 + $0xfc] ss:$24 sps:$4 sm:$0xff]   ;;  %v9243_v26 = vld [vmem:[%s10948_s28 + $0x2a0] ss:$24 sps:$4 sm:$0xff]  }
 0x51e   : > { %3377 = vmatpush1.bf16.msra.mxu1 %v9270_v15  ;;  %v9282_v24 = vld [vmem:[%s10948_s28 + $0xf8] ss:$24 sps:$4 sm:$0xff]   ;;  %v9286_v27 = vld [vmem:[%s10948_s28 + $0xcc] ss:$24 sps:$4 sm:$0xff]   ;;  %v9288_v25 = vld [vmem:[%s10948_s28 + $0xc8] ss:$24 sps:$4 sm:$0xff]  }
 0x51f   : > { %3328 = vmatpush1.bf16.msra.mxu0 %v9222_v0  ;;  %3378 = vmatprep.subr.bf16.mxu1 %v9274_v18  ;;  %v9244_v23 = vld [vmem:[%s10948_s28 + $0x274] ss:$24 sps:$4 sm:$0xff]   ;;  %v9246_v29 = vld [vmem:[%s10948_s28 + $0x270] ss:$24 sps:$4 sm:$0xff]   ;;  %v9247_v30 = vld [vmem:[%s10948_s28 + $0x244] ss:$24 sps:$4 sm:$0xff]  }
 0x520   : > { %3329 = vmatprep.subr.bf16.mxu0 %v9223_v2  ;;  %v9292_v28 = vld [vmem:[%s10948_s28 + $0x9c] ss:$24 sps:$4 sm:$0xff]   ;;  %v9294_v31 = vld [vmem:[%s10948_s28 + $0x98] ss:$24 sps:$4 sm:$0xff]   ;;  %v9298_v32 = vld [vmem:[%s10948_s28 + $0x6c] ss:$24 sps:$4 sm:$0xff]  }
 0x521   : > { %v9249_v33 = vld [vmem:[%s10948_s28 + $0x240] ss:$24 sps:$4 sm:$0xff]   ;;  %v9250_v34 = vld [vmem:[%s10948_s28 + $0x214] ss:$24 sps:$4 sm:$0xff]   ;;  %v9252_v38 = vld [vmem:[%s10948_s28 + $0x210] ss:$24 sps:$4 sm:$0xff]  }
 0x522   : > { %3379 = vmatpush1.bf16.msra.mxu1 %v9276_v19  ;;  %v9300_v35 = vld [vmem:[%s10948_s28 + $0x68] ss:$24 sps:$4 sm:$0xff]   ;;  %v9304_v36 = vld [vmem:[%s10948_s28 + $0x3c] ss:$24 sps:$4 sm:$0xff]   ;;  %v9306_v40 = vld [vmem:[%s10948_s28 + $0x38] ss:$24 sps:$4 sm:$0xff]  }
 0x523   : > { %3330 = vmatpush1.bf16.msra.mxu0 %v9225_v3  ;;  %3380 = vmatprep.subr.bf16.mxu1 %v9280_v1  ;;  %v9253_v39 = vld [vmem:[%s10948_s28 + $0x1e4] ss:$24 sps:$4 sm:$0xff]   ;;  %v9255_v41 = vld [vmem:[%s10948_s28 + $0x1e0] ss:$24 sps:$4 sm:$0xff]   ;;  %v9256_v42 = vld [vmem:[%s10948_s28 + $0x1b4] ss:$24 sps:$4 sm:$0xff]  }
 0x524   : > { %3331 = vmatprep.subr.bf16.mxu0 %v9226_v4  ;;  %v9310_v60 = vld [vmem:[%s10948_s28 + $0xc] ss:$24 sps:$4 sm:$0xff]   ;;  %v9312_v21 = vld [vmem:[%s10948_s28 + $0x8] ss:$24 sps:$4 sm:$0xff]   ;;  %v9316_v43 = vld [vmem:[%s10948_s28 + $0x2dc] ss:$24 sps:$4 sm:$0xff]  }
 0x525   : > { %v9258_v37 = vld [vmem:[%s10948_s28 + $0x1b0] ss:$24 sps:$4 sm:$0xff]   ;;  %v9259_v44 = vld [vmem:[%s10948_s28 + $0x184] ss:$24 sps:$4 sm:$0xff]   ;;  %v9261_v45 = vld [vmem:[%s10948_s28 + $0x180] ss:$24 sps:$4 sm:$0xff]  }
 0x526   : > { %3381 = vmatpush1.bf16.msra.mxu1 %v9282_v24  ;;  %v2703_v46 = vld [vmem:[#allocation3 + $0x30] sm:$0xff]  ;;  %v9318_v47 = vld [vmem:[%s10948_s28 + $0x2d8] ss:$24 sps:$4 sm:$0xff]   ;;  %v2705_v48 = vld [vmem:[#allocation3 + $0x18] sm:$0xff] }
 0x527   : > { %3332 = vmatpush1.bf16.msra.mxu0 %v9228_v5  ;;  %3382 = vmatprep.subr.bf16.mxu1 %v9286_v27  ;;  %v9322_v51 = vld [vmem:[%s10948_s28 + $0x2ac] ss:$24 sps:$4 sm:$0xff]   ;;  %v9324_v55 = vld [vmem:[%s10948_s28 + $0x2a8] ss:$24 sps:$4 sm:$0xff]   ;;  %v11177_v49 = vpack.c.bf16 %v2705_v48, %v2703_v46  ;;  %v9328_v56 = vld [vmem:[%s10948_s28 + $0x27c] ss:$24 sps:$4 sm:$0xff]  }
 0x528   : > { %3333 = vmatprep.subr.bf16.mxu0 %v9229_v6  ;;  %v9264_v52 = vld [vmem:[%s10948_s28 + $0x164] ss:$24 sps:$4 sm:$0xff]   ;;  %v2708_v53 = vld [vmem:[#allocation3 + $0x20] sm:$0xff]  ;;  %v9262_v50 = vld [vmem:[%s10948_s28 + $0x160] ss:$24 sps:$4 sm:$0xff]  }
 0x529   : > { %v2710_v54 = vld [vmem:[#allocation3 + $0x38] sm:$0xff]  ;;  %v9267_v58 = vld [vmem:[%s10948_s28 + $0x134] ss:$24 sps:$4 sm:$0xff]   ;;  %v9330_v62 = vld [vmem:[%s10948_s28 + $0x278] ss:$24 sps:$4 sm:$0xff]  }
 0x52a   : > { %3383 = vmatpush1.bf16.msra.mxu1 %v9288_v25  ;;  %v11181_v57 = vpack.c.bf16 %v2710_v54, %v2708_v53  ;;  %v9265_v59 = vld [vmem:[%s10948_s28 + $0x130] ss:$24 sps:$4 sm:$0xff]   ;;  %v2707_v61 = vld [vmem:[#allocation3 + $0x8] sm:$0xff]  ;;  %v9273_v0 = vld [vmem:[%s10948_s28 + $0x104] ss:$24 sps:$4 sm:$0xff]  }
 0x52b   : > { %3334 = vmatpush1.bf16.msra.mxu0 %v9231_v7  ;;  %3384 = vmatprep.subr.bf16.mxu1 %v9292_v28  ;;  %v2709_v63 = vld [vmem:[#allocation3 + $0x28] sm:$0xff]  ;;  %v9334_v2 = vld [vmem:[%s10948_s28 + $0x24c] ss:$24 sps:$4 sm:$0xff]   ;;  %v9336_v3 = vld [vmem:[%s10948_s28 + $0x248] ss:$24 sps:$4 sm:$0xff]  }
 0x52c   : > { %3335 = vmatprep.subr.bf16.mxu0 %v9232_v8  ;;  %v9340_v4 = vld [vmem:[%s10948_s28 + $0x21c] ss:$24 sps:$4 sm:$0xff]   ;;  %v9271_v5 = vld [vmem:[%s10948_s28 + $0x100] ss:$24 sps:$4 sm:$0xff]   ;;  %v11193_v6 = vpack.c.bf16 %v2709_v63, %v2707_v61  ;;  %v9346_v9 = vld [vmem:[%s10948_s28 + $0x1ec] ss:$24 sps:$4 sm:$0xff]  }
 0x52d   : > { %v9279_v7 = vld [vmem:[%s10948_s28 + $0xd4] ss:$24 sps:$4 sm:$0xff]   ;;  %v9342_v8 = vld [vmem:[%s10948_s28 + $0x218] ss:$24 sps:$4 sm:$0xff]   ;;  %v9297_v19 = vld [vmem:[%s10948_s28 + $0x44] ss:$24 sps:$4 sm:$0xff]  }
 0x52e   : > { %3385 = vmatpush1.bf16.msra.mxu1 %v9294_v31  ;;  %v9277_v10 = vld [vmem:[%s10948_s28 + $0xd0] ss:$24 sps:$4 sm:$0xff]   ;;  %v9352_v14 = vld [vmem:[%s10948_s28 + $0x1bc] ss:$24 sps:$4 sm:$0xff]   ;;  %v9283_v15 = vld [vmem:[%s10948_s28 + $0xa0] ss:$24 sps:$4 sm:$0xff]  }
 0x52f   : > { %3336 = vmatpush1.bf16.msra.mxu0 %v9234_v12  ;;  %3386 = vmatprep.subr.bf16.mxu1 %v9298_v32  ;;  %v9285_v12 = vld [vmem:[%s10948_s28 + $0xa4] ss:$24 sps:$4 sm:$0xff]   ;;  %v9303_v1 = vld [vmem:[%s10948_s28 + $0x14] ss:$24 sps:$4 sm:$0xff]   ;;  %v9301_v24 = vld [vmem:[%s10948_s28 + $0x10] ss:$24 sps:$4 sm:$0xff]  }
 0x530   : > { %3337 = vmatprep.subr.bf16.mxu0 %v9235_v13  ;;  %v9348_v13 = vld [vmem:[%s10948_s28 + $0x1e8] ss:$24 sps:$4 sm:$0xff]   ;;  %v9355_v18 = vld [vmem:[%s10948_s28 + $0x18c] ss:$24 sps:$4 sm:$0xff]  }
 0x531   : > { %v9307_v27 = vld [vmem:[%s10948_s28 + $0x2e0] ss:$24 sps:$4 sm:$0xff]   ;;  %v9313_v25 = vld [vmem:[%s10948_s28 + $0x2b0] ss:$24 sps:$4 sm:$0xff]   ;;  %v9321_v28 = vld [vmem:[%s10948_s28 + $0x284] ss:$24 sps:$4 sm:$0xff]  }
 0x532   : > { %3387 = vmatpush1.bf16.msra.mxu1 %v9300_v35  ;;  %v9325_v31 = vld [vmem:[%s10948_s28 + $0x250] ss:$24 sps:$4 sm:$0xff]   ;;  %v9333_v32 = vld [vmem:[%s10948_s28 + $0x224] ss:$24 sps:$4 sm:$0xff]  }
 0x533   : > { %3338 = vmatpush1.bf16.msra.mxu0 %v9237_v16  ;;  %3388 = vmatprep.subr.bf16.mxu1 %v9304_v36  ;;  %v9291_v16 = vld [vmem:[%s10948_s28 + $0x74] ss:$24 sps:$4 sm:$0xff]   ;;  %v9337_v35 = vld [vmem:[%s10948_s28 + $0x1f0] ss:$24 sps:$4 sm:$0xff]   ;;  %v9345_v36 = vld [vmem:[%s10948_s28 + $0x1c4] ss:$24 sps:$4 sm:$0xff]  }
 0x534   : > { %3339 = vmatprep.subr.bf16.mxu0 %v9238_v17  ;;  %v9354_v17 = vld [vmem:[%s10948_s28 + $0x1b8] ss:$24 sps:$4 sm:$0xff]  }
 0x536   : > { %3389 = vmatpush1.bf16.msra.mxu1 %v9306_v40  ;;  %v9349_v40 = vld [vmem:[%s10948_s28 + $0x190] ss:$24 sps:$4 sm:$0xff]  }
 0x537   : > { %3340 = vmatpush2.bf16.msra.mxu0 %v9240_v20  ;;  %3390 = vmatprep.subr.bf16.mxu1 %v9310_v60  ;;  %v9357_v20 = vld [vmem:[%s10948_s28 + $0x188] ss:$24 sps:$4 sm:$0xff]   ;;  %v10394_v60 = vmov 0.0  }
 0x538   : > { %3341 = vmatprep.subr.bf16.mxu0 %v9241_v22  ;;  %v9295_v22 = vld [vmem:[%s10948_s28 + $0x40] ss:$24 sps:$4 sm:$0xff]  }
 0x53a   : > { %3391 = vmatpush1.bf16.msra.mxu1 %v9312_v21 }
 0x53b   : > { %3342 = vmatpush2.bf16.msra.mxu0 %v9243_v26  ;;  %3392 = vmatprep.subr.bf16.mxu1 %v9316_v43  ;;  %v9309_v26 = vld [vmem:[%s10948_s28 + $0x2e4] ss:$24 sps:$4 sm:$0xff]   ;;  %v2811_v43 = vld [vmem:[%s1508_s26] sm:$0x3f] }
 0x53c   : > { %3343 = vmatprep.subr.bf16.mxu0 %v9244_v23  ;;  %v9315_v23 = vld [vmem:[%s10948_s28 + $0x2b4] ss:$24 sps:$4 sm:$0xff]  }
 0x53e   : > { %3393 = vmatpush2.bf16.msra.mxu1 %v9318_v47 }
 0x53f   : > { %3344 = vmatpush2.bf16.msra.mxu0 %v9246_v29  ;;  %3394 = vmatprep.subr.bf16.mxu1 %v9322_v51  ;;  %v9319_v29 = vld [vmem:[%s10948_s28 + $0x280] ss:$24 sps:$4 sm:$0xff]  }
 0x540   : > { %3345 = vmatprep.subr.bf16.mxu0 %v9247_v30  ;;  %v9327_v30 = vld [vmem:[%s10948_s28 + $0x254] ss:$24 sps:$4 sm:$0xff]  }
 0x542   : > { %3395 = vmatpush2.bf16.msra.mxu1 %v9324_v55 }
 0x543   : > { %3346 = vmatpush2.bf16.msra.mxu0 %v9249_v33  ;;  %3396 = vmatprep.subr.bf16.mxu1 %v9328_v56  ;;  %v9331_v33 = vld [vmem:[%s10948_s28 + $0x220] ss:$24 sps:$4 sm:$0xff]  }
 0x544   : > { %3347 = vmatprep.subr.bf16.mxu0 %v9250_v34  ;;  %v9339_v34 = vld [vmem:[%s10948_s28 + $0x1f4] ss:$24 sps:$4 sm:$0xff]  }
 0x546   : > { %3397 = vmatpush2.bf16.msra.mxu1 %v9330_v62 }
 0x547   : > { %3348 = vmatpush2.bf16.msra.mxu0 %v9252_v38  ;;  %3398 = vmatprep.subr.bf16.mxu1 %v9334_v2  ;;  %v9343_v38 = vld [vmem:[%s10948_s28 + $0x1c0] ss:$24 sps:$4 sm:$0xff]  }
 0x548   : > { %3349 = vmatprep.subr.bf16.mxu0 %v9253_v39  ;;  %v9351_v39 = vld [vmem:[%s10948_s28 + $0x194] ss:$24 sps:$4 sm:$0xff]  }
 0x54a   : > { %3399 = vmatpush2.bf16.msra.mxu1 %v9336_v3 }
 0x54b   : > { %3350 = vmatpush2.bf16.msra.mxu0 %v9255_v41  ;;  %3400 = vmatprep.subr.bf16.mxu1 %v9340_v4  ;;  %v2813_v41 = vlaneseq }
 0x54c   : > { %3351 = vmatprep.subr.bf16.mxu0 %v9256_v42 }
 0x54d   : > { %v11242_v42 = vshrl.u32 %v2813_v41, 7 }
 0x54e   : > { %3401 = vmatpush2.bf16.msra.mxu1 %v9342_v8 }
 0x54f   : > { %3352 = vmatpush2.bf16.msra.mxu0 %v9258_v37  ;;  %3402 = vmatprep.subr.bf16.mxu1 %v9346_v9  ;;  %v2819_v21 = vsub.s32 1, %v11242_v42  ;;  %v2815_v47 = vsub.s32 0, %v11242_v42  ;;  %v2823_v3 = vsub.s32 2, %v11242_v42 }
 0x550   : > { %3353 = vmatprep.subr.bf16.mxu0 %v9259_v44 }
 0x551   : > { %v2816_v55 = vrot.slane %v2811_v43, %v2815_v47 }
 0x552   : > { %3403 = vmatpush2.bf16.msra.mxu1 %v9348_v13 }
 0x553   : > { %3354 = vmatpush2.bf16.msra.mxu0 %v9261_v45  ;;  %3404 = vmatprep.subr.bf16.mxu1 %v9352_v14  ;;  %v2820_v45 = vrot.slane %v2811_v43, %v2819_v21 }
 0x554   : > { %3429 = vmatprep.subr.bf16.mxu0 %v9264_v52 }
 0x556   : > { %3356 = vmatmul.mubr.bf16.vlgmr.msra.gmra.mxu0 %v11177_v49  ;;  %3405 = vmatpush2.bf16.msra.mxu1 %v9354_v17 }
 0x557   : > { %3430 = vmatpush1.bf16.msra.mxu0 %v9262_v50  ;;  %3365 = vmatprep.mubr.bf16.mxu0 %v11181_v57 }
 0x558   : > { %3431 = vmatprep.subr.bf16.mxu0 %v9267_v58  ;;  %3406 = vmatprep.subr.bf16.mxu1 %v9355_v18 }
 0x55a   : > { %3407 = vmatpush2.bf16.msra.mxu1 %v9357_v20 }
 0x55b   : > { %3432 = vmatpush1.bf16.msra.mxu0 %v9265_v59  ;;  %8749 = vmatprep.subr.bf16.mxu1 %v10394_v60 }
 0x55c   : > { %3433 = vmatprep.subr.bf16.mxu0 %v9273_v0 }
 0x55d   : > { %3409 = vmatmul.mubr.bf16.vlgmr.msra.gmra.mxu1 %v11177_v49 }
 0x55e   : > { %3366 = vmatmul.mubr.bf16.gmra.mxu0 %v11193_v6  ;;  %3418 = vmatprep.mubr.bf16.mxu1 %v11181_v57 }
 0x55f   : > { %3434 = vmatpush1.bf16.msra.mxu0 %v9271_v5  ;;  %3461 = vmatprep.mubr.bf16.mxu0 %v11133_v11  ;;  %v9289_v11 = vld [vmem:[%s10948_s28 + $0x70] ss:$24 sps:$4 sm:$0xff]   ;;  %v2824_v5 = vrot.slane %v2811_v43, %v2823_v3 }
 0x560   : > { %3435 = vmatprep.subr.bf16.mxu0 %v9279_v7 }
 0x563   : > { %3436 = vmatpush1.bf16.msra.mxu0 %v9277_v10 }
 0x564   : > { %3437 = vmatprep.subr.bf16.mxu0 %v9285_v12 }
 0x565   : > { %3419 = vmatmul.mubr.bf16.gmra.mxu1 %v11193_v6 }
 0x566   : > { %8751 = vmatprep.mubr.msk.bf16.mxu1 %vm10395_vm2, %v10394_v60 }
 0x567   : > { %3438 = vmatpush1.bf16.msra.mxu0 %v9283_v15 }
 0x568   : > { %3439 = vmatprep.subr.bf16.mxu0 %v9291_v16 }
 0x56b   : > { %3440 = vmatpush1.bf16.msra.mxu0 %v9289_v11 }
 0x56c   : > { %3441 = vmatprep.subr.bf16.mxu0 %v9297_v19  ;;  %v2831_v19 = vsub.s32 4, %v11242_v42 }
 0x56f   : > { %3442 = vmatpush1.bf16.msra.mxu0 %v9295_v22  ;;  %v2832_v22 = vrot.slane %v2811_v43, %v2831_v19 }
 0x570   : > { %3443 = vmatprep.subr.bf16.mxu0 %v9303_v1 }
 0x573   : > { %3444 = vmatpush1.bf16.msra.mxu0 %v9301_v24  ;;  %v2827_v24 = vsub.s32 3, %v11242_v42 }
 0x574   : > { %3445 = vmatprep.subr.bf16.mxu0 %v9309_v26 }
 0x577   : > { %3446 = vmatpush2.bf16.msra.mxu0 %v9307_v27 }
 0x578   : > { %3447 = vmatprep.subr.bf16.mxu0 %v9315_v23  ;;  %v2835_v23 = vsub.s32 5, %v11242_v42 }
 0x57b   : > { %3448 = vmatpush2.bf16.msra.mxu0 %v9313_v25 }
 0x57c   : > { %3449 = vmatprep.subr.bf16.mxu0 %v9321_v28 }
 0x57f   : > { %3450 = vmatpush2.bf16.msra.mxu0 %v9319_v29  ;;  %v2828_v29 = vrot.slane %v2811_v43, %v2827_v24 }
 0x580   : > { %3451 = vmatprep.subr.bf16.mxu0 %v9327_v30 }
 0x583   : > { %3452 = vmatpush2.bf16.msra.mxu0 %v9325_v31 }
 0x584   : > { %3453 = vmatprep.subr.bf16.mxu0 %v9333_v32  ;;  %v2836_v32 = vrot.slane %v2811_v43, %v2835_v23 }
 0x587   : > { %3454 = vmatpush2.bf16.msra.mxu0 %v9331_v33 }
 0x588   : > { %3455 = vmatprep.subr.bf16.mxu0 %v9339_v34 }
 0x58b   : > { %3456 = vmatpush2.bf16.msra.mxu0 %v9337_v35 }
 0x58c   : > { %3457 = vmatprep.subr.bf16.mxu0 %v9345_v36 }
 0x58f   : > { %3458 = vmatpush2.bf16.msra.mxu0 %v9343_v38 }
 0x590   : > { %3459 = vmatprep.subr.bf16.mxu0 %v9351_v39 }
 0x593   : > { %3460 = vmatpush2.bf16.msra.mxu0 %v9349_v40 }
 0x594   : > { %8773 = vmatprep.subr.bf16.mxu0 %v10394_v60 }
 0x596   : > { %3462 = vmatmul.mubr.bf16.vlgmr.msra.gmra.mxu0 %v11177_v49 }
 0x597   : > { %3471 = vmatprep.mubr.bf16.mxu0 %v11181_v57 }
 0x59e   : > { %3472 = vmatmul.mubr.bf16.gmra.mxu0 %v11193_v6 }
 0x59f   : > { %8775 = vmatprep.mubr.msk.bf16.mxu0 %vm10395_vm2, %v10394_v60 }
 0x616   : > { %v3357_v37 = vpop.f32.mrf.mxu0 }
 0x617   : > { %v3358_v58 = vadd.f32 %v3357_v37, %v2816_v55 }
 0x618   : > { %v3359_v44 = vpop.f32.mrf.mxu0 }
 0x619   : > { %v3360_v51 = vadd.f32 %v3359_v44, %v2820_v45 }
 0x61a   : > { %v3361_v46 = vpop.f32.mrf.mxu0 }
 0x61b   : > { %v3362_v56 = vadd.f32 %v3361_v46, %v2816_v55 }
 0x61c   : > { %v3363_v48 = vpop.f32.mrf.mxu0 }
 0x61d   : > { %v3364_v52 = vadd.f32 %v3363_v48, %v2820_v45  ;;  %v3486_v62 = vpack.c.bf16 %v3362_v56, %v3358_v58  ;;  %v3410_v6 = vpop.f32.mrf.mxu1 }
 0x61e   : > { %v3367_v53 = vpop.f32.mrf.mxu0  ;;  %v3411_v8 = vadd.f32 %v3410_v6, %v2824_v5 }
 0x61f   : > { %v3488_v54 = vpack.c.bf16 %v3364_v52, %v3360_v51  ;;  %v3368_v0 = vadd.f32 %v3367_v53, %v2816_v55  ;;  %v3412_v7 = vpop.f32.mrf.mxu1 }
 0x620   : > { %v3369_v49 = vpop.f32.mrf.mxu0  ;;  %v3413_v33 = vadd.f32 %v3412_v7, %v2828_v29  ;;  %v3485_v7 = vld [vmem:[%s12772_s30 + $0x18] sm:$0xff] }
 0x621   : > { %8750 = vmatpush3.bf16.xpose.msra.mxu1 %v3488_v54  ;;  %v3370_v57 = vadd.f32 %v3369_v49, %v2820_v45  ;;  %v3414_v9 = vpop.f32.mrf.mxu1  ;;  %v3482_v54 = vld [vmem:[%s12772_s30] sm:$0xff] }
 0x622   : > { %v3371_v50 = vpop.f32.mrf.mxu0  ;;  %8755 = vmatprep.subr.bf16.mxu1 %v10394_v60  ;;  %v3415_v10 = vadd.f32 %v3414_v9, %v2824_v5 }
 0x623   : > { %v3372_v2 = vadd.f32 %v3371_v50, %v2816_v55  ;;  %v3416_v12 = vpop.f32.mrf.mxu1 }
 0x624   : > { %v3373_v59 = vpop.f32.mrf.mxu0  ;;  %v3490_v13 = vpack.c.bf16 %v3415_v10, %v3411_v8  ;;  %v3417_v35 = vadd.f32 %v3416_v12, %v2828_v29 }
 0x625   : > { %v3374_v61 = vadd.f32 %v3373_v59, %v2820_v45  ;;  %v3487_v4 = vpack.c.bf16 %v3372_v2, %v3368_v0  ;;  %v3420_v14 = vpop.f32.mrf.mxu1  ;;  %v3484_v0 = vld [vmem:[%s12772_s30 + $0x10] sm:$0xff] }
 0x626   : > { %v11256_v15 = vadd.f32 %v3420_v14, %v2824_v5  ;;  %v3892_v41 = vpack.c.bf16 %v3417_v35, %v3413_v33 }
 0x627   : > { %v3489_v63 = vpack.c.bf16 %v3374_v61, %v3370_v57  ;;  %v3422_v16 = vpop.f32.mrf.mxu1  ;;  %v3483_v57 = vld [vmem:[%s12772_s30 + $0x8] sm:$0xff] }
 0x628   : > { %8752 = vmatmul.mubr.bf16.vlgmr.msra.gmra.mxu1 %v3486_v62  ;;  %v3423_v45 = vadd.f32 %v3422_v16, %v2828_v29 }
 0x629   : > { %8756 = vmatpush3.bf16.xpose.msra.mxu1 %v3489_v63  ;;  %8757 = vmatprep.mubr.msk.bf16.mxu1 %vm10395_vm2, %v10394_v60  ;;  %v3424_v17 = vpop.f32.mrf.mxu1 }
 0x62a   : > { %8761 = vmatprep.subr.bf16.mxu1 %v10394_v60  ;;  %v11259_v18 = vadd.f32 %v3424_v17, %v2824_v5 }
 0x62b   : > { %v3426_v44 = vpop.f32.mrf.mxu1 }
 0x62c   : > { %v3491_v11 = vpack.c.bf16 %v11259_v18, %v11256_v15  ;;  %v3427_v46 = vadd.f32 %v3426_v44, %v2828_v29  ;;  %v9361_v15 = vld [vmem:[%s10957_s9 + $0x60] ss:$8 sps:$4 sm:$0xff]   ;;  %v9366_v18 = vld [vmem:[%s10957_s9 + $0x54] ss:$8 sps:$4 sm:$0xff]  }
 0x62e   : > { %v3893_v51 = vpack.c.bf16 %v3427_v46, %v3423_v45 }
 0x630   : > { %8758 = vmatmul.mubr.bf16.vlgmr.msra.gmra.mxu1 %v3487_v4 }
 0x631   : > { %8763 = vmatprep.mubr.msk.bf16.mxu1 %vm10395_vm2, %v10394_v60  ;;  %8762 = vmatpush3.bf16.msra.mxu1 %v3490_v13 }
 0x632   : > { %8767 = vmatprep.subr.bf16.mxu1 %v10394_v60 }
 0x656   : > { %v3463_v20 = vpop.f32.mrf.mxu0 }
 0x657   : > { %v3464_v27 = vadd.f32 %v3463_v20, %v2832_v22 }
 0x658   : > { %v3465_v1 = vpop.f32.mrf.mxu0 }
 0x659   : > { %v3466_v48 = vadd.f32 %v3465_v1, %v2836_v32 }
 0x65a   : > { %v3467_v26 = vpop.f32.mrf.mxu0 }
 0x65b   : > { %v3468_v25 = vadd.f32 %v3467_v26, %v2832_v22 }
 0x65c   : > { %v3469_v28 = vpop.f32.mrf.mxu0 }
 0x65d   : > { %v3894_v30 = vpack.c.bf16 %v3468_v25, %v3464_v27  ;;  %v3470_v47 = vadd.f32 %v3469_v28, %v2836_v32 }
 0x65e   : > { %v3473_v31 = vpop.f32.mrf.mxu0 }
 0x65f   : > { %8774 = vmatpush3.bf16.xpose.msra.mxu0 %v3894_v30  ;;  %v3474_v39 = vadd.f32 %v3473_v31, %v2832_v22  ;;  %v3896_v52 = vpack.c.bf16 %v3470_v47, %v3466_v48 }
 0x660   : > { %v3475_v34 = vpop.f32.mrf.mxu0  ;;  %8779 = vmatprep.subr.bf16.mxu0 %v10394_v60 }
 0x661   : > { %v11267_v36 = vadd.f32 %v3475_v34, %v2836_v32 }
 0x662   : > { %v3477_v38 = vpop.f32.mrf.mxu0 }
 0x663   : > { %v3478_v40 = vadd.f32 %v3477_v38, %v2832_v22 }
 0x664   : > { %v3479_v21 = vpop.f32.mrf.mxu0 }
 0x665   : > { %v3895_v42 = vpack.c.bf16 %v3478_v40, %v3474_v39  ;;  %v11269_v37 = vadd.f32 %v3479_v21, %v2836_v32 }
 0x666   : > { %8776 = vmatmul.mubr.bf16.vlgmr.msra.gmra.mxu0 %v3892_v41 }
 0x667   : > { %v3897_v43 = vpack.c.bf16 %v11269_v37, %v11267_v36  ;;  %8780 = vmatpush3.bf16.xpose.msra.mxu0 %v3895_v42  ;;  %8781 = vmatprep.mubr.msk.bf16.mxu0 %vm10395_vm2, %v10394_v60  ;;  %v10396_v36 = vmov 0   ;;  %v9384_v37 = vld [vmem:[%s10957_s9 + $0xf4] ss:$8 sps:$4 sm:$0xff]  }
 0x668   : > { %8785 = vmatprep.subr.bf16.mxu0 %v10394_v60 }
 0x66e   : > { %8782 = vmatmul.mubr.bf16.vlgmr.msra.gmra.mxu0 %v3893_v51 }
 0x66f   : > { %8786 = vmatpush3.bf16.msra.mxu0 %v3896_v52  ;;  %8787 = vmatprep.mubr.msk.bf16.mxu0 %vm10395_vm2, %v10394_v60 }
 0x670   : > { %8791 = vmatprep.subr.bf16.mxu0 %v10394_v60 }
 0x6e8   : > { %v3526_v53 = vpop.f32.mrf.mxu1 }
 0x6e9   : > { %v3574_v55 = vmul.f32 0.088388346, %v3526_v53 }
 0x6ea   : > { %v8753_v49 = vpop.f32.mrf.mxu1 }
 0x6eb   : > { %v3578_v56 = vadd.f32 %v3574_v55, %v3482_v54 }
 0x6ec   : > { %v3529_v50 = vpop.f32.mrf.mxu1 }
 0x6ed   : > { %v3575_v58 = vmul.f32 0.088388346, %v3529_v50  ;;  %v3583_v59 = vsel %vm3582_vm3, %v3578_v56, -inf }
 0x6ee   : > { %3584 = vmax.xlane.f32.xlu0 %v3583_v59  ;;  %v8754_v61 = vpop.f32.mrf.mxu1 }
 0x6ef   : > { %v3579_v62 = vadd.f32 %v3575_v58, %v3483_v57 }
 0x6f0   : > { %v3567_v63 = vpop.f32.mrf.mxu1 }
 0x6f1   : > { %v3576_v2 = vmul.f32 0.088388346, %v3567_v63  ;;  %v3586_v3 = vsel %vm3582_vm3, %v3579_v62, -inf }
 0x6f2   : > { %3587 = vmax.xlane.f32.xlu0 %v3586_v3  ;;  %v8759_v4 = vpop.f32.mrf.mxu1 }
 0x6f3   : > { %v3580_v5 = vadd.f32 %v3576_v2, %v3484_v0 }
 0x6f4   : > { %v3570_v6 = vpop.f32.mrf.mxu1 }
 0x6f5   : > { %v3577_v8 = vmul.f32 0.088388346, %v3570_v6  ;;  %v3589_v9 = vsel %vm3582_vm3, %v3580_v5, -inf }
 0x6f6   : > { %3590 = vmax.xlane.f32.xlu1 %v3589_v9  ;;  %v8760_v10 = vpop.f32.mrf.mxu1 }
 0x6f7   : > { %v3581_v12 = vadd.f32 %v3577_v8, %v3485_v7 }
 0x6f9   : > { %v3592_v13 = vsel %vm3582_vm3, %v3581_v12, -inf }
 0x6fa   : > { %3593 = vmax.xlane.f32.xlu1 %v3592_v13 }
 0x726   : > { %v3932_v14 = vpop.f32.mrf.mxu0 }
 0x727   : > { %v3980_v16 = vmul.f32 0.088388346, %v3932_v14 }
 0x728   : > { %v8777_v17 = vpop.f32.mrf.mxu0 }
 0x729   : > { %v3984_v19 = vadd.f32 %v3980_v16, %v3482_v54 }
 0x72a   : > { %v3935_v20 = vpop.f32.mrf.mxu0 }
 0x72b   : > { %v3981_v22 = vmul.f32 0.088388346, %v3935_v20  ;;  %v3988_v1 = vsel %vm3582_vm3, %v3984_v19, -inf }
 0x72c   : > { %v8778_v24 = vpop.f32.mrf.mxu0  ;;  %3989 = vmax.xlane.f32.xlu0 %v3988_v1 }
 0x72d   : > { %v3985_v26 = vadd.f32 %v3981_v22, %v3483_v57 }
 0x72e   : > { %v3973_v27 = vpop.f32.mrf.mxu0 }
 0x72f   : > { %v3982_v23 = vmul.f32 0.088388346, %v3973_v27  ;;  %v3991_v25 = vsel %vm3582_vm3, %v3985_v26, -inf }
 0x730   : > { %v8783_v28 = vpop.f32.mrf.mxu0  ;;  %3992 = vmax.xlane.f32.xlu1 %v3991_v25 }
 0x731   : > { %v3986_v29 = vadd.f32 %v3982_v23, %v3484_v0  ;;  %v9360_v28 = vld [vmem:[%s10957_s9 + $0x74] ss:$8 sps:$4 sm:$0xff]  }
 0x732   : > { %v3976_v30 = vpop.f32.mrf.mxu0 }
 0x733   : > { %v3983_v31 = vmul.f32 0.088388346, %v3976_v30  ;;  %v3994_v32 = vsel %vm3582_vm3, %v3986_v29, -inf }
 0x734   : > { %v8784_v33 = vpop.f32.mrf.mxu0  ;;  %3995 = vmax.xlane.f32.xlu0 %v3994_v32 }
 0x735   : > { %v3987_v34 = vadd.f32 %v3983_v31, %v3485_v7  ;;  %v9358_v33 = vld [vmem:[%s10957_s9 + $0x70] ss:$8 sps:$4 sm:$0xff]  }
 0x737   : > { %v3997_v35 = vsel %vm3582_vm3, %v3987_v34, -inf }
 0x738   : > { %3998 = vmax.xlane.f32.xlu1 %v3997_v35  ;;  %v9363_v35 = vld [vmem:[%s10957_s9 + $0x64] ss:$8 sps:$4 sm:$0xff]  }
 0x777   : > { %v3585_v38 = vpop.xlane.xlu0 %3584 }
 0x778   : > { %v3595_v39 = vsub.f32 %v3578_v56, %v3585_v38  ;;  %v9369_v38 = vld [vmem:[%s10957_s9 + $0x44] ss:$8 sps:$4 sm:$0xff]  }
 0x77a   : > { %v3599_v40 = vmul.f32 1.442695, %v3595_v39  ;;  %v9367_v39 = vld [vmem:[%s10957_s9 + $0x40] ss:$8 sps:$4 sm:$0xff]  }
 0x77b   : > { %v3588_v41 = vpop.xlane.xlu0 %3587 }
 0x77c   : > { %9406 = vpow2.f32 %v3599_v40  ;;  %v3596_v21 = vsub.f32 %v3579_v62, %v3588_v41  ;;  %v9372_v40 = vld [vmem:[%s10957_s9 + $0x34] ss:$8 sps:$4 sm:$0xff]   ;;  %v9370_v41 = vld [vmem:[%s10957_s9 + $0x30] ss:$8 sps:$4 sm:$0xff]  }
 0x77e   : > { %v3601_v42 = vmul.f32 1.442695, %v3596_v21  ;;  %v9375_v21 = vld [vmem:[%s10957_s9 + $0x24] ss:$8 sps:$4 sm:$0xff]  }
 0x77f   : > { %v3591_v44 = vpop.xlane.xlu1 %3590 }
 0x780   : > { %9408 = vpow2.f32 %v3601_v42  ;;  %v3597_v45 = vsub.f32 %v3580_v5, %v3591_v44  ;;  %v9373_v42 = vld [vmem:[%s10957_s9 + $0x20] ss:$8 sps:$4 sm:$0xff]   ;;  %v9378_v44 = vld [vmem:[%s10957_s9 + $0x14] ss:$8 sps:$4 sm:$0xff]  }
 0x782   : > { %v3603_v46 = vmul.f32 1.442695, %v3597_v45  ;;  %v9376_v45 = vld [vmem:[%s10957_s9 + $0x10] ss:$8 sps:$4 sm:$0xff]  }
 0x783   : > { %v3594_v47 = vpop.xlane.xlu1 %3593 }
 0x784   : > { %9410 = vpow2.f32 %v3603_v46  ;;  %v3598_v48 = vsub.f32 %v3581_v12, %v3594_v47 }
 0x786   : > { %v3605_v51 = vmul.f32 1.442695, %v3598_v48 }
 0x788   : > { %9412 = vpow2.f32 %v3605_v51 }
 0x789   : > { %v9407_v52 = vpop.eup %9406 }
 0x78a   : > { %v3607_v53 = vsel %vm3582_vm3, %v9407_v52, 0.0 }
 0x78b   : > { %3608 = vadd.xlane.f32.xlu0 %v3607_v53 }
 0x78d   : > { %v9409_v54 = vpop.eup %9408 }
 0x78e   : > { %v3610_v55 = vsel %vm3582_vm3, %v9409_v54, 0.0 }
 0x78f   : > { %3611 = vadd.xlane.f32.xlu1 %v3610_v55 }
 0x791   : > { %v9411_v49 = vpop.eup %9410 }
 0x792   : > { %v3613_v56 = vsel %vm3582_vm3, %v9411_v49, 0.0 }
 0x793   : > { %3614 = vadd.xlane.f32.xlu0 %v3613_v56 }
 0x795   : > { %v9413_v50 = vpop.eup %9412 }
 0x796   : > { %v3616_v57 = vsel %vm3582_vm3, %v9413_v50, 0.0 }
 0x797   : > { %3617 = vadd.xlane.f32.xlu1 %v3616_v57 }
 0x7b5   : > { %v3990_v58 = vpop.xlane.xlu0 %3989 }
 0x7b6   : > { %v4000_v59 = vsub.f32 %v3984_v19, %v3990_v58 }
 0x7b8   : > { %v4004_v61 = vmul.f32 1.442695, %v4000_v59  ;;  %v9379_v59 = vld [vmem:[%s10957_s9] ss:$8 sps:$4 sm:$0xff]  }
 0x7b9   : > { %v3993_v62 = vpop.xlane.xlu1 %3992 }
 0x7ba   : > { %9414 = vpow2.f32 %v4004_v61  ;;  %v4001_v63 = vsub.f32 %v3985_v26, %v3993_v62  ;;  %v9381_v61 = vld [vmem:[%s10957_s9 + $0x4] ss:$8 sps:$4 sm:$0xff]  }
 0x7bc   : > { %v4006_v0 = vmul.f32 1.442695, %v4001_v63 }
 0x7bd   : > { %v3996_v2 = vpop.xlane.xlu0 %3995 }
 0x7be   : > { %9416 = vpow2.f32 %v4006_v0  ;;  %v4002_v3 = vsub.f32 %v3986_v29, %v3996_v2  ;;  %v9382_v0 = vld [vmem:[%s10957_s9 + $0xf0] ss:$8 sps:$4 sm:$0xff]  }
 0x7c0   : > { %v4008_v4 = vmul.f32 1.442695, %v4002_v3  ;;  %v9387_v3 = vld [vmem:[%s10957_s9 + $0xe4] ss:$8 sps:$4 sm:$0xff]  }
 0x7c1   : > { %v3999_v5 = vpop.xlane.xlu1 %3998 }
 0x7c2   : > { %9418 = vpow2.f32 %v4008_v4  ;;  %v4003_v6 = vsub.f32 %v3987_v34, %v3999_v5 }
 0x7c4   : > { %v4010_v7 = vmul.f32 1.442695, %v4003_v6  ;;  %v9385_v6 = vld [vmem:[%s10957_s9 + $0xe0] ss:$8 sps:$4 sm:$0xff]  }
 0x7c6   : > { %9420 = vpow2.f32 %v4010_v7  ;;  %v9390_v7 = vld [vmem:[%s10957_s9 + $0xd4] ss:$8 sps:$4 sm:$0xff]  }
 0x7c7   : > { %v11295_v8 = vpop.eup %9414 }
 0x7c8   : > { %v4012_v9 = vsel %vm3582_vm3, %v11295_v8, 0.0 }
 0x7c9   : > { %4013 = vadd.xlane.f32.xlu0 %v4012_v9 }
 0x7cb   : > { %v11299_v10 = vpop.eup %9416 }
 0x7cc   : > { %v4015_v12 = vsel %vm3582_vm3, %v11299_v10, 0.0 }
 0x7cd   : > { %4016 = vadd.xlane.f32.xlu1 %v4015_v12 }
 0x7cf   : > { %v11303_v13 = vpop.eup %9418 }
 0x7d0   : > { %v4018_v14 = vsel %vm3582_vm3, %v11303_v13, 0.0 }
 0x7d1   : > { %4019 = vadd.xlane.f32.xlu0 %v4018_v14 }
 0x7d3   : > { %v11307_v16 = vpop.eup %9420 }
 0x7d4   : > { %v4021_v17 = vsel %vm3582_vm3, %v11307_v16, 0.0 }
 0x7d5   : > { %4022 = vadd.xlane.f32.xlu1 %v4021_v17  ;;  %v9396_v17 = vld [vmem:[%s10957_s9 + $0xb4] ss:$8 sps:$4 sm:$0xff]  }
 0x814   : > { %v3609_v19 = vpop.xlane.xlu0 %3608 }
 0x815   : > { %9422 = vrcp.f32 %v3609_v19  ;;  %v9394_v19 = vld [vmem:[%s10957_s9 + $0xb0] ss:$8 sps:$4 sm:$0xff]  }
 0x818   : > { %v3612_v20 = vpop.xlane.xlu1 %3611 }
 0x819   : > { %9424 = vrcp.f32 %v3612_v20  ;;  %v9399_v20 = vld [vmem:[%s10957_s9 + $0xa4] ss:$8 sps:$4 sm:$0xff]  }
 0x81c   : > { %v3615_v22 = vpop.xlane.xlu0 %3614 }
 0x81d   : > { %9426 = vrcp.f32 %v3615_v22  ;;  %v9397_v22 = vld [vmem:[%s10957_s9 + $0xa0] ss:$8 sps:$4 sm:$0xff]  }
 0x820   : > { %v3618_v1 = vpop.xlane.xlu1 %3617 }
 0x821   : > { %9428 = vrcp.f32 %v3618_v1  ;;  %v9402_v1 = vld [vmem:[%s10957_s9 + $0x94] ss:$8 sps:$4 sm:$0xff]  }
 0x822   : > { %v9423_v24 = vpop.eup %9422 }
 0x823   : > { %v3620_v27 = vmul.f32 %v9423_v24, %v9407_v52  ;;  %v9400_v24 = vld [vmem:[%s10957_s9 + $0x90] ss:$8 sps:$4 sm:$0xff]  }
 0x826   : > { %v9425_v26 = vpop.eup %9424 }
 0x827   : > { %v3622_v23 = vmul.f32 %v9425_v26, %v9409_v54  ;;  %v9405_v26 = vld [vmem:[%s10957_s9 + $0x84] ss:$8 sps:$4 sm:$0xff]  }
 0x829   : > { %v3627_v25 = vpack.c.bf16 %v3622_v23, %v3620_v27  ;;  %v9403_v27 = vld [vmem:[%s10957_s9 + $0x80] ss:$8 sps:$4 sm:$0xff]  }
 0x82a   : > { %v9427_v29 = vpop.eup %9426 }
 0x82b   : > { %8764 = vmatmul.mubr.msk.bf16.vlgmr.msra.gmra.mxu1 %vm3582_vm3, %v3627_v25  ;;  %v3624_v31 = vmul.f32 %v9427_v29, %v9411_v49 }
 0x82c   : > { %8768 = vmatpush3.bf16.msra.mxu1 %v3491_v11  ;;  %8769 = vmatprep.mubr.msk.bf16.mxu1 %vm10395_vm2, %v10394_v60  ;;  %v9364_v11 = vld [vmem:[%s10957_s9 + $0x50] ss:$8 sps:$4 sm:$0xff]  }
 0x82d   : > { %3823 = vmatprep.subr.bf16.mxu1 %v9360_v28 }
 0x82e   : > { %v9429_v30 = vpop.eup %9428 }
 0x82f   : > { %v3626_v32 = vmul.f32 %v9429_v30, %v9413_v50 }
 0x831   : > { %v3628_v34 = vpack.c.bf16 %v3626_v32, %v3624_v31 }
 0x833   : > { %8770 = vmatmul.mubr.msk.bf16.vlgmr.msra.gmra.mxu1 %vm3582_vm3, %v3628_v34 }
 0x834   : > { %3824 = vmatpush1.bf16.msra.mxu1 %v9358_v33  ;;  %3855 = vmatprep.mubr.bf16.mxu1 %v10396_v36 }
 0x835   : > { %3825 = vmatprep.subr.bf16.mxu1 %v9363_v35 }
 0x838   : > { %3826 = vmatpush1.bf16.msra.mxu1 %v9361_v15 }
 0x839   : > { %3827 = vmatprep.subr.bf16.mxu1 %v9366_v18 }
 0x83c   : > { %3828 = vmatpush1.bf16.msra.mxu1 %v9364_v11 }
 0x83d   : > { %3829 = vmatprep.subr.bf16.mxu1 %v9369_v38 }
 0x840   : > { %3830 = vmatpush1.bf16.msra.mxu1 %v9367_v39 }
 0x841   : > { %3831 = vmatprep.subr.bf16.mxu1 %v9372_v40 }
 0x844   : > { %3832 = vmatpush1.bf16.msra.mxu1 %v9370_v41 }
 0x845   : > { %3833 = vmatprep.subr.bf16.mxu1 %v9375_v21  ;;  %v3717_v21 = vld [vmem:[#allocation4] sm:$0xff] }
 0x848   : > { %3834 = vmatpush1.bf16.msra.mxu1 %v9373_v42  ;;  %v3718_v42 = vld [vmem:[#allocation4 + $0x18] sm:$0xff] }
 0x849   : > { %3835 = vmatprep.subr.bf16.mxu1 %v9378_v44 }
 0x84c   : > { %3836 = vmatpush1.bf16.msra.mxu1 %v9376_v45 }
 0x84d   : > { %3837 = vmatprep.subr.bf16.mxu1 %v9381_v61 }
 0x850   : > { %3838 = vmatpush1.bf16.msra.mxu1 %v9379_v59 }
 0x851   : > { %4228 = vmatprep.subr.bf16.mxu1 %v9384_v37 }
 0x852   : > { %v4014_v46 = vpop.xlane.xlu0 %4013 }
 0x853   : > { %9430 = vrcp.f32 %v4014_v46  ;;  %v3719_v46 = vld [vmem:[#allocation4 + $0x10] sm:$0xff] }
 0x856   : > { %v4017_v47 = vpop.xlane.xlu1 %4016 }
 0x857   : > { %9432 = vrcp.f32 %v4017_v47 }
 0x85a   : > { %v4020_v48 = vpop.xlane.xlu0 %4019 }
 0x85b   : > { %9434 = vrcp.f32 %v4020_v48 }
 0x85e   : > { %v4023_v51 = vpop.xlane.xlu1 %4022 }
 0x85f   : > { %9436 = vrcp.f32 %v4023_v51 }
 0x860   : > { %v9431_v52 = vpop.eup %9430 }
 0x861   : > { %v4025_v54 = vmul.f32 %v9431_v52, %v11295_v8  ;;  %v3720_v52 = vld [vmem:[#allocation4 + $0x20] sm:$0xff] }
 0x864   : > { %v9433_v53 = vpop.eup %9432 }
 0x865   : > { %v4027_v55 = vmul.f32 %v9433_v53, %v11299_v10  ;;  %v9388_v10 = vld [vmem:[%s10957_s9 + $0xd0] ss:$8 sps:$4 sm:$0xff]  }
 0x867   : > { %v4032_v49 = vpack.c.bf16 %v4027_v55, %v4025_v54 }
 0x868   : > { %v9435_v56 = vpop.eup %9434 }
 0x869   : > { %8788 = vmatmul.mubr.msk.bf16.vlgmr.msra.gmra.mxu0 %vm3582_vm3, %v4032_v49  ;;  %v4029_v57 = vmul.f32 %v9435_v56, %v11303_v13  ;;  %v9393_v13 = vld [vmem:[%s10957_s9 + $0xc4] ss:$8 sps:$4 sm:$0xff]   ;;  %v3721_v49 = vld [vmem:[#allocation4 + $0x28] sm:$0xff] }
 0x86a   : > { %8792 = vmatpush3.bf16.msra.mxu0 %v3897_v43  ;;  %8793 = vmatprep.mubr.msk.bf16.mxu0 %vm10395_vm2, %v10394_v60 }
 0x86c   : > { %v9437_v50 = vpop.eup %9436 }
 0x86d   : > { %v4031_v58 = vmul.f32 %v9437_v50, %v11307_v16  ;;  %v9391_v16 = vld [vmem:[%s10957_s9 + $0xc0] ss:$8 sps:$4 sm:$0xff]  }
 0x86f   : > { %v4033_v62 = vpack.c.bf16 %v4031_v58, %v4029_v57  ;;  %v3722_v58 = vld [vmem:[#allocation4 + $0x8] sm:$0xff] }
 0x871   : > { %8794 = vmatmul.mubr.msk.bf16.vlgmr.msra.gmra.mxu0 %vm3582_vm3, %v4033_v62 }
 0x8eb   : > { %v3666_v60 = vpop.f32.mrf.mxu1 }
 0x8ed   : > { %v8765_v43 = vpop.f32.mrf.mxu1 }
 0x8ef   : > { %v3669_v63 = vpop.f32.mrf.mxu1 }
 0x8f0   : > { %v3725_v2 = vpack.c.bf16 %v3669_v63, %v3666_v60  ;;  %v3724_v63 = vld [vmem:[#allocation4 + $0x38] sm:$0xff] }
 0x8f1   : > { %v8766_v4 = vpop.f32.mrf.mxu1 }
 0x8f2   : > { %3856 = vmatmul.mubr.bf16.vlgmr.msra.gmra.mxu1 %v3725_v2 }
 0x8f3   : > { %v3710_v5 = vpop.f32.mrf.mxu1  ;;  %3865 = vmatprep.mubr.bf16.mxu1 %v10396_v36  ;;  %4229 = vmatpush1.bf16.msra.mxu1 %v9382_v0 }
 0x8f4   : > { %4230 = vmatprep.subr.bf16.mxu1 %v9387_v3 }
 0x8f5   : > { %v8771_v8 = vpop.f32.mrf.mxu1 }
 0x8f7   : > { %v3713_v9 = vpop.f32.mrf.mxu1  ;;  %4231 = vmatpush1.bf16.msra.mxu1 %v9385_v6 }
 0x8f8   : > { %v3726_v12 = vpack.c.bf16 %v3713_v9, %v3710_v5  ;;  %4232 = vmatprep.subr.bf16.mxu1 %v9390_v7 }
 0x8f9   : > { %v8772_v14 = vpop.f32.mrf.mxu1 }
 0x8fa   : > { %3866 = vmatmul.mubr.bf16.gmra.mxu1 %v3726_v12 }
 0x8fb   : > { %4233 = vmatpush1.bf16.msra.mxu1 %v9388_v10  ;;  %4260 = vmatprep.mubr.bf16.mxu1 %v10396_v36 }
 0x8fc   : > { %4234 = vmatprep.subr.bf16.mxu1 %v9393_v13 }
 0x8ff   : > { %4235 = vmatpush1.bf16.msra.mxu1 %v9391_v16 }
 0x900   : > { %4236 = vmatprep.subr.bf16.mxu1 %v9396_v17 }
 0x903   : > { %4237 = vmatpush1.bf16.msra.mxu1 %v9394_v19 }
 0x904   : > { %4238 = vmatprep.subr.bf16.mxu1 %v9399_v20 }
 0x907   : > { %4239 = vmatpush1.bf16.msra.mxu1 %v9397_v22 }
 0x908   : > { %4240 = vmatprep.subr.bf16.mxu1 %v9402_v1 }
 0x90b   : > { %4241 = vmatpush1.bf16.msra.mxu1 %v9400_v24 }
 0x90c   : > { %4242 = vmatprep.subr.bf16.mxu1 %v9405_v26 }
 0x90f   : > { %4243 = vmatpush1.bf16.msra.mxu1 %v9403_v27 }
 0x929   : > { %v4071_v23 = vpop.f32.mrf.mxu0 }
 0x92b   : > { %v8789_v25 = vpop.f32.mrf.mxu0 }
 0x92d   : > { %v4074_v28 = vpop.f32.mrf.mxu0 }
 0x92e   : > { %v4130_v29 = vpack.c.bf16 %v4074_v28, %v4071_v23 }
 0x92f   : > { %v8790_v30 = vpop.f32.mrf.mxu0 }
 0x930   : > { %4261 = vmatmul.mubr.bf16.vlgmr.msra.gmra.mxu1 %v4130_v29 }
 0x931   : > { %v4115_v31 = vpop.f32.mrf.mxu0  ;;  %4270 = vmatprep.mubr.bf16.mxu1 %v10396_v36  ;;  %v3723_v36 = vld [vmem:[#allocation4 + $0x30] sm:$0xff] }
 0x933   : > { %v8795_v32 = vpop.f32.mrf.mxu0 }
 0x935   : > { %v4118_v33 = vpop.f32.mrf.mxu0 }
 0x936   : > { %v4131_v34 = vpack.c.bf16 %v4118_v33, %v4115_v31 }
 0x937   : > { %v8796_v35 = vpop.f32.mrf.mxu0 }
 0x938   : > { %4271 = vmatmul.mubr.bf16.gmra.mxu1 %v4131_v34 }
 0x9b2   : > { %v3857_v15 = vpop.f32.mrf.mxu1 }
 0x9b3   : > { %v3876_v45 = vadd.f32 %v3857_v15, %v3717_v21 }
 0x9b4   : > { %v3859_v18 = vpop.f32.mrf.mxu1 }
 0x9b5   : > { %v3877_v48 = vadd.f32 %v3859_v18, %v3718_v42 }
 0x9b6   : > { %v3861_v11 = vpop.f32.mrf.mxu1 }
 0x9b7   : > { %v3878_v54 = vadd.f32 %v3861_v11, %v3719_v46 }
 0x9b8   : > { %v3863_v38 = vpop.f32.mrf.mxu1 }
 0x9b9   : > { %v3879_v50 = vadd.f32 %v3863_v38, %v3720_v52 }
 0x9ba   : > { %v3867_v39 = vpop.f32.mrf.mxu1 }
 0x9bb   : > { %v3880_v61 = vadd.f32 %v3867_v39, %v3721_v49 }
 0x9bc   : > { %v3869_v40 = vpop.f32.mrf.mxu1 }
 0x9bd   : > { %v3881_v60 = vadd.f32 %v3869_v40, %v3722_v58 }
 0x9be   : > { %v3871_v41 = vpop.f32.mrf.mxu1 }
 0x9bf   : > { %v3882_v2 = vadd.f32 %v3871_v41, %v3723_v36 }
 0x9c0   : > { %v3873_v44 = vpop.f32.mrf.mxu1 }
 0x9c1   : > { %v3883_v5 = vadd.f32 %v3873_v44, %v3724_v63 }
 0x9f0   : > { %v4262_v47 = vpop.f32.mrf.mxu1 }
 0x9f1   : > { %v4281_v51 = vadd.f32 %v4262_v47, %v3876_v45 }
 0x9f2   : > { %v4264_v53 = vpop.f32.mrf.mxu1 }
 0x9f3   : > { %4289 = vst [vmem:[#allocation4] sm:$0xff] %v4281_v51  ;;  %v4282_v55 = vadd.f32 %v4264_v53, %v3877_v48 }
 0x9f4   : > { %v4266_v56 = vpop.f32.mrf.mxu1 }
 0x9f5   : > { %4290 = vst [vmem:[#allocation4 + $0x18] sm:$0xff] %v4282_v55  ;;  %v4283_v57 = vadd.f32 %v4266_v56, %v3878_v54 }
 0x9f6   : > { %v4268_v59 = vpop.f32.mrf.mxu1 }
 0x9f7   : > { %4291 = vst [vmem:[#allocation4 + $0x10] sm:$0xff] %v4283_v57  ;;  %v4284_v62 = vadd.f32 %v4268_v59, %v3879_v50 }
 0x9f8   : > { %v4272_v37 = vpop.f32.mrf.mxu1 }
 0x9f9   : > { %4292 = vst [vmem:[#allocation4 + $0x20] sm:$0xff] %v4284_v62  ;;  %v4285_v43 = vadd.f32 %v4272_v37, %v3880_v61 }
 0x9fa   : > { %v4274_v0 = vpop.f32.mrf.mxu1 }
 0x9fb   : > { %4293 = vst [vmem:[#allocation4 + $0x28] sm:$0xff] %v4285_v43  ;;  %v4286_v3 = vadd.f32 %v4274_v0, %v3881_v60 }
 0x9fc   : > { %v4276_v4 = vpop.f32.mrf.mxu1 }
 0x9fd   : > { %4294 = vst [vmem:[#allocation4 + $0x8] sm:$0xff] %v4286_v3  ;;  %v4287_v6 = vadd.f32 %v4276_v4, %v3882_v2 }
 0x9fe   : > { %v4278_v7 = vpop.f32.mrf.mxu1 }
 0x9ff   : > { %4295 = vst [vmem:[#allocation4 + $0x30] sm:$0xff] %v4287_v6  ;;  %v4288_v8 = vadd.f32 %v4278_v7, %v3883_v5 }
 0xa01   : > { %4296 = vst [vmem:[#allocation4 + $0x38] sm:$0xff] %v4288_v8 }
 0xa02 PF: > { %s12773_s26 = sld [smem:[#allocation76_spill]] }
 0xa08   : > { %p4297_p1 = scmp.eq.s32.totalorder %s12773_s26, 1  ;;  %p8429_p5 = scmp.ne.s32.totalorder %s12773_s26, 1 }
 0xa0a   : > { %4300 = sbr.rel (%p8429_p5) target bundleno = 2904 (0xb58), region = 228 }
 0xa0f   : > { %v4301_v9 = vld [vmem:[#allocation2] sm:$0xff]  ;;  %v4302_v10 = vld [vmem:[#allocation2 + $0x8] sm:$0xff]  ;;  %v4327_v13 = vlaneseq  ;;  %v4310_v14 = vld [vmem:[#allocation4 + $0x18] sm:$0xff]  ;;  %v10397_v16 = vmov 0.0  }
 0xa10   : > { %v4309_v12 = vld [vmem:[#allocation4] sm:$0xff]  ;;  %4467 = vst [vmem:[#allocation4 + $0x18] sm:$0xff] %v10397_v16  ;;  %v4306_v22 = vld [vmem:[#allocation2 + $0x28] sm:$0xff]  ;;  %v4318_v24 = vadd.f32 %v4310_v14, %v4302_v10  ;;  %v4303_v23 = vld [vmem:[#allocation2 + $0x10] sm:$0xff] }
 0xa11   : > { %4466 = vst [vmem:[#allocation4] sm:$0xff] %v10397_v16  ;;  %v4325_v17 = vld [vmem:[%s1518_s3] sm:$0x3]  ;;  %v4328_v19 = vshrl.u32 %v4327_v13, 7  ;;  %v4317_v1 = vadd.f32 %v4309_v12, %v4301_v9  ;;  %v4313_v26 = vld [vmem:[#allocation4 + $0x28] sm:$0xff]  ;;  %v4304_v31 = vld [vmem:[#allocation2 + $0x18] sm:$0xff] }
 0xa12   : > { %v4305_v20 = vld [vmem:[#allocation2 + $0x20] sm:$0xff]  ;;  %v4314_v27 = vld [vmem:[#allocation4 + $0x8] sm:$0xff]  ;;  %4470 = vst [vmem:[#allocation4 + $0x28] sm:$0xff] %v10397_v16  ;;  %v4311_v32 = vld [vmem:[#allocation4 + $0x10] sm:$0xff] }
 0xa13   : > { %v11368_v25 = vsub.s32 0, %v4328_v19  ;;  %v11370_v28 = vsub.s32 1, %v4328_v19  ;;  %v4321_v29 = vadd.f32 %v4313_v26, %v4305_v20  ;;  %v4322_v30 = vadd.f32 %v4314_v27, %v4306_v22  ;;  %4471 = vst [vmem:[#allocation4 + $0x8] sm:$0xff] %v10397_v16  ;;  %v4312_v33 = vld [vmem:[#allocation4 + $0x20] sm:$0xff]  ;;  %4468 = vst [vmem:[#allocation4 + $0x10] sm:$0xff] %v10397_v16  ;;  %v4307_v15 = vld [vmem:[#allocation2 + $0x30] sm:$0xff] }
 0xa14   : > { %v4319_v34 = vadd.f32 %v4311_v32, %v4303_v23  ;;  %v4320_v35 = vadd.f32 %v4312_v33, %v4304_v31  ;;  %4469 = vst [vmem:[#allocation4 + $0x20] sm:$0xff] %v10397_v16  ;;  %v4308_v18 = vld [vmem:[#allocation2 + $0x38] sm:$0xff]  ;;  %v4315_v11 = vld [vmem:[#allocation4 + $0x30] sm:$0xff] }
 0xa15   : > { %v4330_v38 = vrot.slane %v4325_v17, %v11368_v25  ;;  %v4334_v39 = vrot.slane %v4325_v17, %v11370_v28  ;;  %v4316_v40 = vld [vmem:[#allocation4 + $0x38] sm:$0xff]  ;;  %4472 = vst [vmem:[#allocation4 + $0x30] sm:$0xff] %v10397_v16  ;;  %v4323_v41 = vadd.f32 %v4315_v11, %v4307_v15 }
 0xa16   : > { %v4324_v21 = vadd.f32 %v4316_v40, %v4308_v18  ;;  %4473 = vst [vmem:[#allocation4 + $0x38] sm:$0xff] %v10397_v16 }
 0xa17   : > { %v4337_v42 = vadd.f32 %v4330_v38, %v4317_v1  ;;  %v4338_v44 = vadd.f32 %v4334_v39, %v4318_v24  ;;  %v4341_v45 = vadd.f32 %v4330_v38, %v4321_v29  ;;  %v4342_v46 = vadd.f32 %v4334_v39, %v4322_v30 }
 0xa18   : > { %v4339_v47 = vadd.f32 %v4330_v38, %v4319_v34  ;;  %v4340_v48 = vadd.f32 %v4334_v39, %v4320_v35  ;;  %v4343_v51 = vadd.f32 %v4330_v38, %v4323_v41  ;;  %v4344_v52 = vadd.f32 %v4334_v39, %v4324_v21  ;;  %v4353_v34 = vld [vmem:[%s1522_s5] sm:$0x3] }
 0xa19   : > { %4346 = vst [vmem:[#allocation2 + $0x8] sm:$0xff] %v4338_v44  ;;  %v4355_v53 = vadd.f32 %v4338_v44, %v4337_v42  ;;  %4345 = vst [vmem:[#allocation2] sm:$0xff] %v4337_v42  ;;  %v4361_v54 = vadd.f32 %v4342_v46, %v4341_v45  ;;  %v4354_v35 = vld [vmem:[%s1526_s13] sm:$0x3]  ;;  %v4424_v15 = vrot.slane %v4353_v34, %v11368_v25 }
 0xa1a   : > { %4350 = vst [vmem:[#allocation2 + $0x28] sm:$0xff] %v4342_v46  ;;  %4349 = vst [vmem:[#allocation2 + $0x20] sm:$0xff] %v4341_v45  ;;  %v4358_v55 = vadd.f32 %v4340_v48, %v4339_v47  ;;  %v4364_v49 = vadd.f32 %v4344_v52, %v4343_v51  ;;  %v4428_v18 = vrot.slane %v4353_v34, %v11370_v28 }
 0xa1b   : > { %4347 = vst [vmem:[#allocation2 + $0x10] sm:$0xff] %v4339_v47  ;;  %4348 = vst [vmem:[#allocation2 + $0x18] sm:$0xff] %v4340_v48  ;;  %4356 = vadd.xlane.f32.xlu0 %v4355_v53  ;;  %4362 = vadd.xlane.f32.xlu1 %v4361_v54  ;;  %v4443_v38 = vrot.slane %v4354_v35, %v11368_v25  ;;  %v4447_v39 = vrot.slane %v4354_v35, %v11370_v28 }
 0xa1c   : > { %4351 = vst [vmem:[#allocation2 + $0x30] sm:$0xff] %v4343_v51  ;;  %4352 = vst [vmem:[#allocation2 + $0x38] sm:$0xff] %v4344_v52 }
 0xa1f   : > { %4359 = vadd.xlane.f32.xlu0 %v4358_v55  ;;  %4365 = vadd.xlane.f32.xlu1 %v4364_v49 }
 0xaa4   : > { %v4357_v56 = vpop.xlane.xlu0 %4356  ;;  %v4363_v50 = vpop.xlane.xlu1 %4362 }
 0xaa5   : > { %v4368_v57 = vmul.f32 0.00390625, %v4357_v56  ;;  %v4370_v58 = vmul.f32 0.00390625, %v4363_v50 }
 0xaa7   : > { %v4372_v59 = vsub.f32 %v4337_v42, %v4368_v57  ;;  %v4373_v61 = vsub.f32 %v4338_v44, %v4368_v57  ;;  %v4376_v62 = vsub.f32 %v4341_v45, %v4370_v58  ;;  %v4377_v36 = vsub.f32 %v4342_v46, %v4370_v58 }
 0xaa8   : > { %v4360_v37 = vpop.xlane.xlu0 %4359  ;;  %v4366_v60 = vpop.xlane.xlu1 %4365 }
 0xaa9   : > { %v4369_v43 = vmul.f32 0.00390625, %v4360_v37  ;;  %v4371_v63 = vmul.f32 0.00390625, %v4366_v60  ;;  %v4380_v0 = vmul.f32 %v4372_v59, %v4372_v59  ;;  %v4381_v2 = vmul.f32 %v4373_v61, %v4373_v61 }
 0xaaa   : > { %v4384_v3 = vmul.f32 %v4376_v62, %v4376_v62  ;;  %v4385_v4 = vmul.f32 %v4377_v36, %v4377_v36 }
 0xaab   : > { %v4374_v5 = vsub.f32 %v4339_v47, %v4369_v43  ;;  %v4375_v6 = vsub.f32 %v4340_v48, %v4369_v43  ;;  %v4378_v7 = vsub.f32 %v4343_v51, %v4371_v63  ;;  %v4379_v8 = vsub.f32 %v4344_v52, %v4371_v63 }
 0xaac   : > { %v4388_v9 = vadd.f32 %v4381_v2, %v4380_v0  ;;  %v4394_v16 = vadd.f32 %v4385_v4, %v4384_v3 }
 0xaad   : > { %v4382_v10 = vmul.f32 %v4374_v5, %v4374_v5  ;;  %v4383_v12 = vmul.f32 %v4375_v6, %v4375_v6  ;;  %v4386_v13 = vmul.f32 %v4378_v7, %v4378_v7  ;;  %v4387_v14 = vmul.f32 %v4379_v8, %v4379_v8 }
 0xaae   : > { %4389 = vadd.xlane.f32.xlu0 %v4388_v9 }
 0xaaf   : > { %v4391_v17 = vadd.f32 %v4383_v12, %v4382_v10  ;;  %v4397_v19 = vadd.f32 %v4387_v14, %v4386_v13 }
 0xab1   : > { %4392 = vadd.xlane.f32.xlu1 %v4391_v17 }
 0xab2   : > { %4395 = vadd.xlane.f32.xlu0 %v4394_v16 }
 0xab5   : > { %4398 = vadd.xlane.f32.xlu1 %v4397_v19 }
 0xb37   : > { %v4390_v20 = vpop.xlane.xlu0 %4389 }
 0xb38   : > { %v4400_v22 = vmul.f32 0.00390625, %v4390_v20 }
 0xb3a   : > { %v4404_v1 = vadd.f32 1e-05, %v4400_v22  ;;  %v4393_v24 = vpop.xlane.xlu1 %4392 }
 0xb3b   : > { %v4401_v26 = vmul.f32 0.00390625, %v4393_v24  ;;  %v4396_v27 = vpop.xlane.xlu0 %4395 }
 0xb3c   : > { %9438 = vrsqrt.f32 %v4404_v1  ;;  %v4402_v23 = vmul.f32 0.00390625, %v4396_v27 }
 0xb3d   : > { %v4405_v29 = vadd.f32 1e-05, %v4401_v26 }
 0xb3e   : > { %v4406_v30 = vadd.f32 1e-05, %v4402_v23  ;;  %v4399_v31 = vpop.xlane.xlu1 %4398 }
 0xb3f   : > { %9440 = vrsqrt.f32 %v4405_v29  ;;  %v4403_v32 = vmul.f32 0.00390625, %v4399_v31 }
 0xb40   : > { %9442 = vrsqrt.f32 %v4406_v30 }
 0xb41   : > { %v4407_v33 = vadd.f32 1e-05, %v4403_v32 }
 0xb43   : > { %9444 = vrsqrt.f32 %v4407_v33 }
 0xb49   : > { %v9439_v11 = vpop.eup %9438 }
 0xb4a   : > { %v4412_v40 = vmul.f32 %v9439_v11, %v4372_v59  ;;  %v4413_v41 = vmul.f32 %v9439_v11, %v4373_v61 }
 0xb4c   : > { %v9441_v21 = vpop.eup %9440  ;;  %v4431_v42 = vmul.f32 %v4424_v15, %v4412_v40  ;;  %v4432_v44 = vmul.f32 %v4428_v18, %v4413_v41 }
 0xb4d   : > { %v9443_v45 = vpop.eup %9442  ;;  %v4414_v46 = vmul.f32 %v9441_v21, %v4374_v5  ;;  %v4415_v47 = vmul.f32 %v9441_v21, %v4375_v6 }
 0xb4e   : > { %v4450_v48 = vadd.f32 %v4443_v38, %v4431_v42  ;;  %v4451_v51 = vadd.f32 %v4447_v39, %v4432_v44  ;;  %v4416_v52 = vmul.f32 %v9443_v45, %v4376_v62  ;;  %v4417_v53 = vmul.f32 %v9443_v45, %v4377_v36 }
 0xb4f   : > { %v4433_v54 = vmul.f32 %v4424_v15, %v4414_v46  ;;  %v4434_v55 = vmul.f32 %v4428_v18, %v4415_v47 }
 0xb50   : > { %v9445_v49 = vpop.eup %9444  ;;  %4458 = vst [vmem:[#allocation3 + $0x30] sm:$0xff] %v4450_v48  ;;  %4459 = vst [vmem:[#allocation3] sm:$0xff] %v4451_v51  ;;  %v4435_v25 = vmul.f32 %v4424_v15, %v4416_v52  ;;  %v4436_v56 = vmul.f32 %v4428_v18, %v4417_v53 }
 0xb51   : > { %v4452_v28 = vadd.f32 %v4443_v38, %v4433_v54  ;;  %v4453_v50 = vadd.f32 %v4447_v39, %v4434_v55  ;;  %v4418_v57 = vmul.f32 %v9445_v49, %v4378_v7  ;;  %v4419_v58 = vmul.f32 %v9445_v49, %v4379_v8 }
 0xb52   : > { %v4454_v59 = vadd.f32 %v4443_v38, %v4435_v25  ;;  %v4455_v61 = vadd.f32 %v4447_v39, %v4436_v56 }
 0xb53   : > { %4460 = vst [vmem:[#allocation3 + $0x18] sm:$0xff] %v4452_v28  ;;  %4461 = vst [vmem:[#allocation3 + $0x10] sm:$0xff] %v4453_v50  ;;  %v4437_v37 = vmul.f32 %v4424_v15, %v4418_v57  ;;  %v4438_v60 = vmul.f32 %v4428_v18, %v4419_v58 }
 0xb54   : > { %4462 = vst [vmem:[#allocation3 + $0x8] sm:$0xff] %v4454_v59  ;;  %4463 = vst [vmem:[#allocation3 + $0x20] sm:$0xff] %v4455_v61 }
 0xb55   : > { %v4456_v62 = vadd.f32 %v4443_v38, %v4437_v37  ;;  %v4457_v36 = vadd.f32 %v4447_v39, %v4438_v60 }
 0xb57   : > { %4464 = vst [vmem:[#allocation3 + $0x28] sm:$0xff] %v4456_v62  ;;  %4465 = vst [vmem:[#allocation3 + $0x38] sm:$0xff] %v4457_v36 }
 0xb58 PF: > { %s12777_s5 = sld [smem:[#allocation76_spill]] }
 0xb5e   : > { %p8430_p3 = scmp.lt.s32.totalorder %s12777_s5, 1 }
 0xb60   : > { %4477 = sbr.rel (%p8430_p3) target bundleno = 3623 (0xe27), region = 232 }
 0xb65   : > { %v4546_v43 = vld [vmem:[%s10960_s20 + $0x1c0] sm:$0xff]  ;;  %v4547_v0 = vld [vmem:[%s10960_s20 + $0x1c8] sm:$0xff] }
 0xb66   : > { %v4550_v63 = vld [vmem:[%s10960_s20 + $0x1e0] sm:$0xff]  ;;  %v4551_v3 = vld [vmem:[%s10960_s20 + $0x1e8] sm:$0xff] }
 0xb67   : > { %v8488_v2 = vcombine.high %v4546_v43, %v4550_v63  ;;  %v8487_v4 = vcombine.low %v4546_v43, %v4550_v63  ;;  %v4538_v5 = vld [vmem:[%s10960_s20 + $0x180] sm:$0xff]  ;;  %v8490_v7 = vcombine.high %v4547_v0, %v4551_v3  ;;  %v8489_v8 = vcombine.low %v4547_v0, %v4551_v3  ;;  %v4539_v10 = vld [vmem:[%s10960_s20 + $0x188] sm:$0xff] }
 0xb68   : > { %v4542_v6 = vld [vmem:[%s10960_s20 + $0x1a0] sm:$0xff]  ;;  %v4543_v12 = vld [vmem:[%s10960_s20 + $0x1a8] sm:$0xff] }
 0xb69   : > { %v8480_v9 = vcombine.high %v4538_v5, %v4542_v6  ;;  %v4530_v13 = vld [vmem:[%s10960_s20 + $0x140] sm:$0xff]  ;;  %5300 = vmatprep.subr.bf16.mxu0 %v8488_v2  ;;  %v8482_v14 = vcombine.high %v4539_v10, %v4543_v12  ;;  %v4531_v17 = vld [vmem:[%s10960_s20 + $0x148] sm:$0xff]  ;;  %5353 = vmatprep.subr.bf16.mxu1 %v8490_v7  ;;  %v8479_v20 = vcombine.low %v4538_v5, %v4542_v6 }
 0xb6a   : > { %v4534_v16 = vld [vmem:[%s10960_s20 + $0x160] sm:$0xff]  ;;  %v4535_v19 = vld [vmem:[%s10960_s20 + $0x168] sm:$0xff]  ;;  %5301 = vmatpush1.bf16.msra.mxu0 %v8487_v4  ;;  %5354 = vmatpush1.bf16.msra.mxu1 %v8489_v8  ;;  %v8481_v22 = vcombine.low %v4539_v10, %v4543_v12 }
 0xb6b   : > { %5302 = vmatprep.subr.bf16.mxu0 %v8480_v9  ;;  %v8472_v1 = vcombine.high %v4530_v13, %v4534_v16  ;;  %5355 = vmatprep.subr.bf16.mxu1 %v8482_v14  ;;  %v8474_v24 = vcombine.high %v4531_v17, %v4535_v19  ;;  %v4522_v26 = vld [vmem:[%s10960_s20 + $0x100] sm:$0xff]  ;;  %v4523_v23 = vld [vmem:[%s10960_s20 + $0x108] sm:$0xff]  ;;  %v8471_v30 = vcombine.low %v4530_v13, %v4534_v16 }
 0xb6c   : > { %v4526_v27 = vld [vmem:[%s10960_s20 + $0x120] sm:$0xff]  ;;  %v4527_v29 = vld [vmem:[%s10960_s20 + $0x128] sm:$0xff]  ;;  %v8473_v31 = vcombine.low %v4531_v17, %v4535_v19 }
 0xb6d   : > { %v8464_v32 = vcombine.high %v4522_v26, %v4526_v27  ;;  %v8466_v33 = vcombine.high %v4523_v23, %v4527_v29  ;;  %v4514_v34 = vld [vmem:[%s10960_s20 + $0xc0] sm:$0xff]  ;;  %v4515_v15 = vld [vmem:[%s10960_s20 + $0xc8] sm:$0xff]  ;;  %v8463_v11 = vcombine.low %v4522_v26, %v4526_v27  ;;  %v8465_v38 = vcombine.low %v4523_v23, %v4527_v29 }
 0xb6e   : > { %5303 = vmatpush1.bf16.msra.mxu0 %v8479_v20  ;;  %5356 = vmatpush1.bf16.msra.mxu1 %v8481_v22  ;;  %v4518_v35 = vld [vmem:[%s10960_s20 + $0xe0] sm:$0xff]  ;;  %v4519_v18 = vld [vmem:[%s10960_s20 + $0xe8] sm:$0xff] }
 0xb6f   : > { %5304 = vmatprep.subr.bf16.mxu0 %v8472_v1  ;;  %5357 = vmatprep.subr.bf16.mxu1 %v8474_v24  ;;  %v8456_v39 = vcombine.high %v4514_v34, %v4518_v35  ;;  %v8458_v40 = vcombine.high %v4515_v15, %v4519_v18  ;;  %v4506_v41 = vld [vmem:[%s10960_s20 + $0x80] sm:$0xff]  ;;  %v4507_v42 = vld [vmem:[%s10960_s20 + $0x88] sm:$0xff]  ;;  %v8455_v45 = vcombine.low %v4514_v34, %v4518_v35 }
 0xb70   : > { %v4510_v21 = vld [vmem:[%s10960_s20 + $0xa0] sm:$0xff]  ;;  %v4511_v44 = vld [vmem:[%s10960_s20 + $0xa8] sm:$0xff]  ;;  %v8457_v46 = vcombine.low %v4515_v15, %v4519_v18 }
 0xb71   : > { %v8448_v47 = vcombine.high %v4506_v41, %v4510_v21  ;;  %v8450_v48 = vcombine.high %v4507_v42, %v4511_v44  ;;  %v4498_v51 = vld [vmem:[%s10960_s20 + $0x40] sm:$0xff]  ;;  %v4499_v53 = vld [vmem:[%s10960_s20 + $0x48] sm:$0xff]  ;;  %v8447_v55 = vcombine.low %v4506_v41, %v4510_v21  ;;  %v8449_v49 = vcombine.low %v4507_v42, %v4511_v44 }
 0xb72   : > { %5305 = vmatpush1.bf16.msra.mxu0 %v8471_v30  ;;  %5358 = vmatpush1.bf16.msra.mxu1 %v8473_v31  ;;  %v4502_v52 = vld [vmem:[%s10960_s20 + $0x60] sm:$0xff]  ;;  %v4503_v54 = vld [vmem:[%s10960_s20 + $0x68] sm:$0xff] }
 0xb73   : > { %5306 = vmatprep.subr.bf16.mxu0 %v8464_v32  ;;  %5359 = vmatprep.subr.bf16.mxu1 %v8466_v33  ;;  %v8440_v25 = vcombine.high %v4498_v51, %v4502_v52  ;;  %v4479_v56 = vld [vmem:[#allocation3] sm:$0xff]  ;;  %v4481_v28 = vld [vmem:[#allocation3 + $0x10] sm:$0xff]  ;;  %v8442_v50 = vcombine.high %v4499_v53, %v4503_v54  ;;  %v8439_v60 = vcombine.low %v4498_v51, %v4502_v52 }
 0xb74   : > { %v4490_v57 = vld [vmem:[%s10960_s20] sm:$0xff]  ;;  %v11415_v59 = vpack.c.bf16 %v4481_v28, %v4479_v56  ;;  %v4491_v61 = vld [vmem:[%s10960_s20 + $0x8] sm:$0xff]  ;;  %v8441_v62 = vcombine.low %v4499_v53, %v4503_v54 }
 0xb75   : > { %v4494_v58 = vld [vmem:[%s10960_s20 + $0x20] sm:$0xff]  ;;  %v4495_v37 = vld [vmem:[%s10960_s20 + $0x28] sm:$0xff] }
 0xb76   : > { %5307 = vmatpush1.bf16.msra.mxu0 %v8463_v11  ;;  %5360 = vmatpush1.bf16.msra.mxu1 %v8465_v38  ;;  %v8432_v36 = vcombine.high %v4490_v57, %v4494_v58  ;;  %v8434_v43 = vcombine.high %v4491_v61, %v4495_v37  ;;  %v4610_v63 = vld [vmem:[%s10960_s20 + $0x3c0] sm:$0xff]  ;;  %v4611_v2 = vld [vmem:[%s10960_s20 + $0x3c8] sm:$0xff]  ;;  %v8431_v4 = vcombine.low %v4490_v57, %v4494_v58 }
 0xb77   : > { %5308 = vmatprep.subr.bf16.mxu0 %v8456_v39  ;;  %5361 = vmatprep.subr.bf16.mxu1 %v8458_v40  ;;  %v4614_v0 = vld [vmem:[%s10960_s20 + $0x3e0] sm:$0xff]  ;;  %v4615_v3 = vld [vmem:[%s10960_s20 + $0x3e8] sm:$0xff]  ;;  %v8433_v5 = vcombine.low %v4491_v61, %v4495_v37 }
 0xb78   : > { %5332 = vmatprep.mubr.bf16.mxu0 %v11415_v59  ;;  %5385 = vmatprep.mubr.bf16.mxu1 %v11415_v59  ;;  %v8552_v6 = vcombine.high %v4610_v63, %v4614_v0  ;;  %v8554_v7 = vcombine.high %v4611_v2, %v4615_v3  ;;  %v4602_v8 = vld [vmem:[%s10960_s20 + $0x380] sm:$0xff]  ;;  %v4603_v10 = vld [vmem:[%s10960_s20 + $0x388] sm:$0xff]  ;;  %v8551_v13 = vcombine.low %v4610_v63, %v4614_v0 }
 0xb79   : > { %v4606_v9 = vld [vmem:[%s10960_s20 + $0x3a0] sm:$0xff]  ;;  %v4607_v12 = vld [vmem:[%s10960_s20 + $0x3a8] sm:$0xff]  ;;  %v8553_v14 = vcombine.low %v4611_v2, %v4615_v3  ;;  %v4549_v2 = vld [vmem:[%s10960_s20 + $0x1d8] sm:$0xff] }
 0xb7a   : > { %5309 = vmatpush1.bf16.msra.mxu0 %v8455_v45  ;;  %5362 = vmatpush1.bf16.msra.mxu1 %v8457_v46  ;;  %v8544_v16 = vcombine.high %v4602_v8, %v4606_v9  ;;  %v8546_v17 = vcombine.high %v4603_v10, %v4607_v12  ;;  %v4594_v19 = vld [vmem:[%s10960_s20 + $0x340] sm:$0xff]  ;;  %v4595_v22 = vld [vmem:[%s10960_s20 + $0x348] sm:$0xff]  ;;  %v8543_v24 = vcombine.low %v4602_v8, %v4606_v9  ;;  %v4553_v3 = vld [vmem:[%s10960_s20 + $0x1f8] sm:$0xff] }
 0xb7b   : > { %5310 = vmatprep.subr.bf16.mxu0 %v8448_v47  ;;  %5363 = vmatprep.subr.bf16.mxu1 %v8450_v48  ;;  %v4598_v20 = vld [vmem:[%s10960_s20 + $0x360] sm:$0xff]  ;;  %v4599_v1 = vld [vmem:[%s10960_s20 + $0x368] sm:$0xff]  ;;  %v8545_v26 = vcombine.low %v4603_v10, %v4607_v12  ;;  %v4540_v8 = vld [vmem:[%s10960_s20 + $0x190] sm:$0xff] }
 0xb7c   : > { %v8536_v27 = vcombine.high %v4594_v19, %v4598_v20  ;;  %v8538_v23 = vcombine.high %v4595_v22, %v4599_v1  ;;  %v4586_v29 = vld [vmem:[%s10960_s20 + $0x300] sm:$0xff]  ;;  %v4587_v31 = vld [vmem:[%s10960_s20 + $0x308] sm:$0xff]  ;;  %v8535_v33 = vcombine.low %v4594_v19, %v4598_v20  ;;  %v8537_v34 = vcombine.low %v4595_v22, %v4599_v1  ;;  %v4544_v9 = vld [vmem:[%s10960_s20 + $0x1b0] sm:$0xff] }
 0xb7d   : > { %v4590_v30 = vld [vmem:[%s10960_s20 + $0x320] sm:$0xff]  ;;  %v4591_v32 = vld [vmem:[%s10960_s20 + $0x328] sm:$0xff]  ;;  %v8494_v19 = vcombine.high %v4549_v2, %v4553_v3  ;;  %v4532_v1 = vld [vmem:[%s10960_s20 + $0x150] sm:$0xff] }
 0xb7e   : > { %5311 = vmatpush1.bf16.msra.mxu0 %v8447_v55  ;;  %5364 = vmatpush1.bf16.msra.mxu1 %v8449_v49  ;;  %v8528_v35 = vcombine.high %v4586_v29, %v4590_v30  ;;  %v8530_v15 = vcombine.high %v4587_v31, %v4591_v32  ;;  %v4578_v18 = vld [vmem:[%s10960_s20 + $0x2c0] sm:$0xff]  ;;  %v4579_v38 = vld [vmem:[%s10960_s20 + $0x2c8] sm:$0xff]  ;;  %v8527_v40 = vcombine.low %v4586_v29, %v4590_v30  ;;  %v4537_v29 = vld [vmem:[%s10960_s20 + $0x178] sm:$0xff] }
 0xb7f   : > { %5312 = vmatprep.subr.bf16.mxu0 %v8440_v25  ;;  %5365 = vmatprep.subr.bf16.mxu1 %v8442_v50  ;;  %v4582_v11 = vld [vmem:[%s10960_s20 + $0x2e0] sm:$0xff]  ;;  %v4583_v39 = vld [vmem:[%s10960_s20 + $0x2e8] sm:$0xff]  ;;  %v8529_v41 = vcombine.low %v4587_v31, %v4591_v32  ;;  %v4482_v32 = vld [vmem:[#allocation3 + $0x8] sm:$0xff] }
 0xb80   : > { %v8520_v21 = vcombine.high %v4578_v18, %v4582_v11  ;;  %v8522_v42 = vcombine.high %v4579_v38, %v4583_v39  ;;  %v4570_v44 = vld [vmem:[%s10960_s20 + $0x280] sm:$0xff]  ;;  %v4571_v46 = vld [vmem:[%s10960_s20 + $0x288] sm:$0xff]  ;;  %v8519_v48 = vcombine.low %v4578_v18, %v4582_v11  ;;  %v8521_v53 = vcombine.low %v4579_v38, %v4583_v39  ;;  %v4525_v38 = vld [vmem:[%s10960_s20 + $0x118] sm:$0xff] }
 0xb81   : > { %v4574_v45 = vld [vmem:[%s10960_s20 + $0x2a0] sm:$0xff]  ;;  %v4575_v47 = vld [vmem:[%s10960_s20 + $0x2a8] sm:$0xff]  ;;  %v4529_v39 = vld [vmem:[%s10960_s20 + $0x138] sm:$0xff] }
 0xb82   : > { %5313 = vmatpush1.bf16.msra.mxu0 %v8439_v60  ;;  %5366 = vmatpush1.bf16.msra.mxu1 %v8441_v62  ;;  %v4562_v51 = vld [vmem:[%s10960_s20 + $0x240] sm:$0xff]  ;;  %v8512_v54 = vcombine.high %v4570_v44, %v4574_v45  ;;  %v4563_v55 = vld [vmem:[%s10960_s20 + $0x248] sm:$0xff]  ;;  %v8514_v25 = vcombine.high %v4571_v46, %v4575_v47  ;;  %v8511_v56 = vcombine.low %v4570_v44, %v4574_v45  ;;  %v4520_v44 = vld [vmem:[%s10960_s20 + $0xf0] sm:$0xff] }
 0xb83   : > { %5314 = vmatprep.subr.bf16.mxu0 %v8432_v36  ;;  %5367 = vmatprep.subr.bf16.mxu1 %v8434_v43  ;;  %v4566_v52 = vld [vmem:[%s10960_s20 + $0x260] sm:$0xff]  ;;  %v4567_v49 = vld [vmem:[%s10960_s20 + $0x268] sm:$0xff]  ;;  %v8513_v57 = vcombine.low %v4571_v46, %v4575_v47  ;;  %v4548_v36 = vld [vmem:[%s10960_s20 + $0x1d0] sm:$0xff] }
 0xb84   : > { %v4554_v28 = vld [vmem:[%s10960_s20 + $0x200] sm:$0xff]  ;;  %v8504_v58 = vcombine.high %v4562_v51, %v4566_v52  ;;  %v4555_v61 = vld [vmem:[%s10960_s20 + $0x208] sm:$0xff]  ;;  %v8506_v60 = vcombine.high %v4563_v55, %v4567_v49  ;;  %v8503_v62 = vcombine.low %v4562_v51, %v4566_v52  ;;  %v4552_v43 = vld [vmem:[%s10960_s20 + $0x1f0] sm:$0xff]  ;;  %v8505_v63 = vcombine.low %v4563_v55, %v4567_v49 }
 0xb85   : > { %v4558_v50 = vld [vmem:[%s10960_s20 + $0x220] sm:$0xff]  ;;  %v4559_v37 = vld [vmem:[%s10960_s20 + $0x228] sm:$0xff]  ;;  %v8492_v12 = vcombine.high %v4548_v36, %v4552_v43  ;;  %v8491_v22 = vcombine.low %v4548_v36, %v4552_v43  ;;  %v4517_v47 = vld [vmem:[%s10960_s20 + $0xd8] sm:$0xff]  ;;  %v8470_v51 = vcombine.high %v4525_v38, %v4529_v39  ;;  %v8469_v55 = vcombine.low %v4525_v38, %v4529_v39 }
 0xb86   : > { %5315 = vmatpush1.bf16.msra.mxu0 %v8431_v4  ;;  %5368 = vmatpush1.bf16.msra.mxu1 %v8433_v5  ;;  %v8496_v0 = vcombine.high %v4554_v28, %v4558_v50  ;;  %v8498_v4 = vcombine.high %v4555_v61, %v4559_v37  ;;  %v4478_v5 = vld [vmem:[#allocation3 + $0x30] sm:$0xff]  ;;  %v8497_v10 = vcombine.low %v4555_v61, %v4559_v37 }
 0xb87   : > { %5316 = vmatprep.subr.bf16.mxu0 %v8552_v6  ;;  %5369 = vmatprep.subr.bf16.mxu1 %v8554_v7  ;;  %v4480_v6 = vld [vmem:[#allocation3 + $0x18] sm:$0xff]  ;;  %v8495_v7 = vcombine.low %v4554_v28, %v4558_v50 }
 0xb88   : > { %v11461_v20 = vpack.c.bf16 %v4480_v6, %v4478_v5 }
 0xb8a   : > { %5317 = vmatpush2.bf16.msra.mxu0 %v8551_v13  ;;  %5370 = vmatpush2.bf16.msra.mxu1 %v8553_v14  ;;  %v4541_v13 = vld [vmem:[%s10960_s20 + $0x198] sm:$0xff] }
 0xb8b   : > { %5318 = vmatprep.subr.bf16.mxu0 %v8544_v16  ;;  %5371 = vmatprep.subr.bf16.mxu1 %v8546_v17  ;;  %v4545_v14 = vld [vmem:[%s10960_s20 + $0x1b8] sm:$0xff]  ;;  %v4483_v16 = vld [vmem:[#allocation3 + $0x20] sm:$0xff]  ;;  %v4485_v17 = vld [vmem:[#allocation3 + $0x38] sm:$0xff] }
 0xb8c   : > { %v8486_v30 = vcombine.high %v4541_v13, %v4545_v14  ;;  %v11467_v31 = vpack.c.bf16 %v4485_v17, %v4483_v16  ;;  %v8485_v18 = vcombine.low %v4541_v13, %v4545_v14  ;;  %v4613_v13 = vld [vmem:[%s10960_s20 + $0x3d8] sm:$0xff] }
 0xb8d   : > { %v4617_v14 = vld [vmem:[%s10960_s20 + $0x3f8] sm:$0xff] }
 0xb8e   : > { %5319 = vmatpush2.bf16.msra.mxu0 %v8543_v24  ;;  %5372 = vmatpush2.bf16.msra.mxu1 %v8545_v26  ;;  %v4536_v24 = vld [vmem:[%s10960_s20 + $0x170] sm:$0xff]  ;;  %v8493_v26 = vcombine.low %v4549_v2, %v4553_v3  ;;  %v4493_v3 = vld [vmem:[%s10960_s20 + $0x18] sm:$0xff] }
 0xb8f   : > { %5320 = vmatprep.subr.bf16.mxu0 %v8536_v27  ;;  %5373 = vmatprep.subr.bf16.mxu1 %v8538_v23  ;;  %v8484_v27 = vcombine.high %v4540_v8, %v4544_v9  ;;  %v4533_v23 = vld [vmem:[%s10960_s20 + $0x158] sm:$0xff]  ;;  %v8476_v11 = vcombine.high %v4532_v1, %v4536_v24 }
 0xb90   : > { %v8477_v45 = vcombine.low %v4533_v23, %v4537_v29 }
 0xb92   : > { %5321 = vmatpush2.bf16.msra.mxu0 %v8535_v33  ;;  %5374 = vmatpush2.bf16.msra.mxu1 %v8537_v34  ;;  %v4484_v33 = vld [vmem:[#allocation3 + $0x28] sm:$0xff]  ;;  %v8483_v34 = vcombine.low %v4540_v8, %v4544_v9 }
 0xb93   : > { %5322 = vmatprep.subr.bf16.mxu0 %v8528_v35  ;;  %5375 = vmatprep.subr.bf16.mxu1 %v8530_v15  ;;  %v4524_v35 = vld [vmem:[%s10960_s20 + $0x110] sm:$0xff] }
 0xb94   : > { %v4528_v15 = vld [vmem:[%s10960_s20 + $0x130] sm:$0xff] }
 0xb95   : > { %v8468_v46 = vcombine.high %v4524_v35, %v4528_v15  ;;  %v8467_v52 = vcombine.low %v4524_v35, %v4528_v15  ;;  %v4597_v35 = vld [vmem:[%s10960_s20 + $0x358] sm:$0xff] }
 0xb96   : > { %5323 = vmatpush2.bf16.msra.mxu0 %v8527_v40  ;;  %5376 = vmatpush2.bf16.msra.mxu1 %v8529_v41  ;;  %v8478_v40 = vcombine.high %v4533_v23, %v4537_v29  ;;  %v11477_v41 = vpack.c.bf16 %v4484_v33, %v4482_v32  ;;  %v8557_v29 = vcombine.low %v4613_v13, %v4617_v14  ;;  %v4596_v33 = vld [vmem:[%s10960_s20 + $0x350] sm:$0xff]  ;;  %v4601_v15 = vld [vmem:[%s10960_s20 + $0x378] sm:$0xff] }
 0xb97   : > { %5324 = vmatprep.subr.bf16.mxu0 %v8520_v21  ;;  %5377 = vmatprep.subr.bf16.mxu1 %v8522_v42  ;;  %v8475_v21 = vcombine.low %v4532_v1, %v4536_v24  ;;  %v4516_v42 = vld [vmem:[%s10960_s20 + $0xd0] sm:$0xff]  ;;  %v8542_v39 = vcombine.high %v4597_v35, %v4601_v15 }
 0xb98   : > { %v8460_v49 = vcombine.high %v4516_v42, %v4520_v44  ;;  %v8459_v50 = vcombine.low %v4516_v42, %v4520_v44  ;;  %v4604_v1 = vld [vmem:[%s10960_s20 + $0x390] sm:$0xff]  ;;  %v4589_v42 = vld [vmem:[%s10960_s20 + $0x318] sm:$0xff] }
 0xb99   : > { %v4608_v24 = vld [vmem:[%s10960_s20 + $0x3b0] sm:$0xff]  ;;  %v4593_v44 = vld [vmem:[%s10960_s20 + $0x338] sm:$0xff] }
 0xb9a   : > { %5325 = vmatpush2.bf16.msra.mxu0 %v8519_v48  ;;  %5378 = vmatpush2.bf16.msra.mxu1 %v8521_v53  ;;  %v4521_v48 = vld [vmem:[%s10960_s20 + $0xf8] sm:$0xff]  ;;  %v4508_v53 = vld [vmem:[%s10960_s20 + $0x90] sm:$0xff] }
 0xb9b   : > { %5326 = vmatprep.subr.bf16.mxu0 %v8512_v54  ;;  %5379 = vmatprep.subr.bf16.mxu1 %v8514_v25  ;;  %v4512_v54 = vld [vmem:[%s10960_s20 + $0xb0] sm:$0xff]  ;;  %v4509_v25 = vld [vmem:[%s10960_s20 + $0x98] sm:$0xff]  ;;  %v8462_v28 = vcombine.high %v4517_v47, %v4521_v48  ;;  %v8461_v61 = vcombine.low %v4517_v47, %v4521_v48  ;;  %v8534_v48 = vcombine.high %v4589_v42, %v4593_v44 }
 0xb9c   : > { %v8452_v37 = vcombine.high %v4508_v53, %v4512_v54  ;;  %v8451_v43 = vcombine.low %v4508_v53, %v4512_v54  ;;  %v4581_v53 = vld [vmem:[%s10960_s20 + $0x2d8] sm:$0xff] }
 0xb9d   : > { %v4585_v54 = vld [vmem:[%s10960_s20 + $0x2f8] sm:$0xff] }
 0xb9e   : > { %5327 = vmatpush2.bf16.msra.mxu0 %v8511_v56  ;;  %5380 = vmatpush2.bf16.msra.mxu1 %v8513_v57  ;;  %v4513_v56 = vld [vmem:[%s10960_s20 + $0xb8] sm:$0xff]  ;;  %v4500_v57 = vld [vmem:[%s10960_s20 + $0x50] sm:$0xff] }
 0xb9f   : > { %5328 = vmatprep.subr.bf16.mxu0 %v8504_v58  ;;  %5381 = vmatprep.subr.bf16.mxu1 %v8506_v60  ;;  %v4504_v58 = vld [vmem:[%s10960_s20 + $0x70] sm:$0xff]  ;;  %v4501_v60 = vld [vmem:[%s10960_s20 + $0x58] sm:$0xff]  ;;  %v8454_v36 = vcombine.high %v4509_v25, %v4513_v56 }
 0xba0   : > { %v8444_v2 = vcombine.high %v4500_v57, %v4504_v58  ;;  %v8443_v6 = vcombine.low %v4500_v57, %v4504_v58  ;;  %v4573_v57 = vld [vmem:[%s10960_s20 + $0x298] sm:$0xff] }
 0xba1   : > { %v4577_v58 = vld [vmem:[%s10960_s20 + $0x2b8] sm:$0xff] }
 0xba2   : > { %5329 = vmatpush2.bf16.msra.mxu0 %v8503_v62  ;;  %5382 = vmatpush2.bf16.msra.mxu1 %v8505_v63  ;;  %v4505_v62 = vld [vmem:[%s10960_s20 + $0x78] sm:$0xff]  ;;  %v4492_v63 = vld [vmem:[%s10960_s20 + $0x10] sm:$0xff] }
 0xba3   : > { %5330 = vmatprep.subr.bf16.mxu0 %v8496_v0  ;;  %5383 = vmatprep.subr.bf16.mxu1 %v8498_v4  ;;  %v4496_v0 = vld [vmem:[%s10960_s20 + $0x30] sm:$0xff]  ;;  %v4497_v4 = vld [vmem:[%s10960_s20 + $0x38] sm:$0xff]  ;;  %v8446_v5 = vcombine.high %v4501_v60, %v4505_v62 }
 0xba4   : > { %v8436_v8 = vcombine.high %v4492_v63, %v4496_v0  ;;  %v8438_v9 = vcombine.high %v4493_v3, %v4497_v4  ;;  %v8435_v16 = vcombine.low %v4492_v63, %v4496_v0  ;;  %v8437_v17 = vcombine.low %v4493_v3, %v4497_v4  ;;  %v4565_v63 = vld [vmem:[%s10960_s20 + $0x258] sm:$0xff] }
 0xba5   : > { %v4569_v0 = vld [vmem:[%s10960_s20 + $0x278] sm:$0xff] }
 0xba6   : > { %5331 = vmatpush2.bf16.msra.mxu0 %v8495_v7  ;;  %5384 = vmatpush2.bf16.msra.mxu1 %v8497_v10  ;;  %v8445_v7 = vcombine.low %v4501_v60, %v4505_v62  ;;  %v4612_v10 = vld [vmem:[%s10960_s20 + $0x3d0] sm:$0xff]  ;;  %v8518_v62 = vcombine.high %v4573_v57, %v4577_v58  ;;  %v8510_v4 = vcombine.high %v4565_v63, %v4569_v0 }
 0xba7   : > { %5406 = vmatprep.subr.bf16.mxu0 %v8492_v12  ;;  %5459 = vmatprep.subr.bf16.mxu1 %v8494_v19  ;;  %v4616_v12 = vld [vmem:[%s10960_s20 + $0x3f0] sm:$0xff] }
 0xba8   : > { %v8556_v19 = vcombine.high %v4612_v10, %v4616_v12  ;;  %v8555_v23 = vcombine.low %v4612_v10, %v4616_v12  ;;  %v8509_v10 = vcombine.low %v4565_v63, %v4569_v0  ;;  %v4620_v63 = vlaneseq  ;;  %v9520_v0 = vld [vmem:[%s10995_s2 + $0xb4] ss:$8 sps:$4 sm:$0xff]  }
 0xba9   : > { %5333 = vmatmul.mubr.bf16.vlgmr.msra.gmra.mxu0 %v11461_v20  ;;  %5386 = vmatmul.mubr.bf16.vlgmr.msra.gmra.mxu1 %v11461_v20 }
 0xbaa   : > { %5407 = vmatpush1.bf16.msra.mxu0 %v8491_v22  ;;  %5460 = vmatpush1.bf16.msra.mxu1 %v8493_v26  ;;  %v8558_v22 = vcombine.high %v4613_v13, %v4617_v14  ;;  %v4605_v26 = vld [vmem:[%s10960_s20 + $0x398] sm:$0xff] }
 0xbab   : > { %5408 = vmatprep.subr.bf16.mxu0 %v8484_v27  ;;  %5461 = vmatprep.subr.bf16.mxu1 %v8486_v30  ;;  %v4609_v27 = vld [vmem:[%s10960_s20 + $0x3b8] sm:$0xff]  ;;  %v8548_v30 = vcombine.high %v4604_v1, %v4608_v24 }
 0xbac   : > { %5342 = vmatprep.mubr.bf16.mxu0 %v11467_v31  ;;  %5395 = vmatprep.mubr.bf16.mxu1 %v11467_v31  ;;  %v8550_v32 = vcombine.high %v4605_v26, %v4609_v27 }
 0xbae   : > { %5409 = vmatpush1.bf16.msra.mxu0 %v8483_v34  ;;  %5462 = vmatpush1.bf16.msra.mxu1 %v8485_v18  ;;  %v4600_v34 = vld [vmem:[%s10960_s20 + $0x370] sm:$0xff]  ;;  %v8547_v18 = vcombine.low %v4604_v1, %v4608_v24  ;;  %v9454_v24 = vld [vmem:[%s10995_s2 + $0x64] ss:$8 sps:$4 sm:$0xff]  }
 0xbaf   : > { %5410 = vmatprep.subr.bf16.mxu0 %v8476_v11  ;;  %5463 = vmatprep.subr.bf16.mxu1 %v8478_v40  ;;  %v8549_v11 = vcombine.low %v4605_v26, %v4609_v27  ;;  %v8540_v38 = vcombine.high %v4596_v33, %v4600_v34  ;;  %v4588_v40 = vld [vmem:[%s10960_s20 + $0x310] sm:$0xff]  ;;  %v9457_v26 = vld [vmem:[%s10995_s2 + $0x164] ss:$8 sps:$4 sm:$0xff]   ;;  %v9452_v27 = vld [vmem:[%s10995_s2 + $0x60] ss:$8 sps:$4 sm:$0xff]  }
 0xbb0   : > { %v9449_v1 = vld [vmem:[%s10995_s2 + $0x170] ss:$8 sps:$4 sm:$0xff]  }
 0xbb1   : > { %5343 = vmatmul.mubr.bf16.gmra.mxu0 %v11477_v41  ;;  %5396 = vmatmul.mubr.bf16.gmra.mxu1 %v11477_v41 }
 0xbb2   : > { %5411 = vmatpush1.bf16.msra.mxu0 %v8475_v21  ;;  %5464 = vmatpush1.bf16.msra.mxu1 %v8477_v45  ;;  %v4592_v21 = vld [vmem:[%s10960_s20 + $0x330] sm:$0xff]  ;;  %v8539_v45 = vcombine.low %v4596_v33, %v4600_v34  ;;  %v9469_v33 = vld [vmem:[%s10995_s2 + $0x144] ss:$8 sps:$4 sm:$0xff]   ;;  %v9464_v34 = vld [vmem:[%s10995_s2 + $0x40] ss:$8 sps:$4 sm:$0xff]  }
 0xbb3   : > { %5412 = vmatprep.subr.bf16.mxu0 %v8468_v46  ;;  %5465 = vmatprep.subr.bf16.mxu1 %v8470_v51  ;;  %v8541_v46 = vcombine.low %v4597_v35, %v4601_v15  ;;  %v8532_v47 = vcombine.high %v4588_v40, %v4592_v21  ;;  %v4580_v51 = vld [vmem:[%s10960_s20 + $0x2d0] sm:$0xff] }
 0xbb4   : > { %5438 = vmatprep.mubr.bf16.mxu0 %v11415_v59  ;;  %5491 = vmatprep.mubr.bf16.mxu1 %v11415_v59  ;;  %v8453_v59 = vcombine.low %v4509_v25, %v4513_v56  ;;  %v8526_v56 = vcombine.high %v4581_v53, %v4585_v54  ;;  %v9472_v35 = vld [vmem:[%s10995_s2 + $0x34] ss:$8 sps:$4 sm:$0xff]  }
 0xbb5   : > { %v9475_v15 = vld [vmem:[%s10995_s2 + $0x134] ss:$8 sps:$4 sm:$0xff]  }
 0xbb6   : > { %5413 = vmatpush1.bf16.msra.mxu0 %v8467_v52  ;;  %5466 = vmatpush1.bf16.msra.mxu1 %v8469_v55  ;;  %v4584_v52 = vld [vmem:[%s10960_s20 + $0x2f0] sm:$0xff]  ;;  %v8531_v55 = vcombine.low %v4588_v40, %v4592_v21  ;;  %v9476_v40 = vld [vmem:[%s10995_s2 + $0x20] ss:$8 sps:$4 sm:$0xff]  }
 0xbb7   : > { %5414 = vmatprep.subr.bf16.mxu0 %v8460_v49  ;;  %5467 = vmatprep.subr.bf16.mxu1 %v8462_v28  ;;  %v8533_v49 = vcombine.low %v4589_v42, %v4593_v44  ;;  %v8524_v25 = vcombine.high %v4580_v51, %v4584_v52  ;;  %v4572_v28 = vld [vmem:[%s10960_s20 + $0x290] sm:$0xff]  ;;  %v9479_v21 = vld [vmem:[%s10995_s2 + $0x120] ss:$8 sps:$4 sm:$0xff]  }
 0xbb8   : > { %v9484_v42 = vld [vmem:[%s10995_s2 + $0x14] ss:$8 sps:$4 sm:$0xff]  }
 0xbb9   : > { %v9487_v44 = vld [vmem:[%s10995_s2 + $0x114] ss:$8 sps:$4 sm:$0xff]  }
 0xbba   : > { %5415 = vmatpush1.bf16.msra.mxu0 %v8459_v50  ;;  %5468 = vmatpush1.bf16.msra.mxu1 %v8461_v61  ;;  %v4576_v50 = vld [vmem:[%s10960_s20 + $0x2b0] sm:$0xff]  ;;  %v8523_v61 = vcombine.low %v4580_v51, %v4584_v52  ;;  %v9488_v51 = vld [vmem:[%s10995_s2] ss:$8 sps:$4 sm:$0xff]  }
 0xbbb   : > { %5416 = vmatprep.subr.bf16.mxu0 %v8452_v37  ;;  %5469 = vmatprep.subr.bf16.mxu1 %v8454_v36  ;;  %v8525_v37 = vcombine.low %v4581_v53, %v4585_v54  ;;  %v8516_v60 = vcombine.high %v4572_v28, %v4576_v50  ;;  %v4564_v36 = vld [vmem:[%s10960_s20 + $0x250] sm:$0xff]  ;;  %v9491_v52 = vld [vmem:[%s10995_s2 + $0x100] ss:$8 sps:$4 sm:$0xff]  }
 0xbbc   : > { %v9496_v53 = vld [vmem:[%s10995_s2 + $0xf4] ss:$8 sps:$4 sm:$0xff]  }
 0xbbd   : > { %v9499_v54 = vld [vmem:[%s10995_s2 + $0x1f4] ss:$8 sps:$4 sm:$0xff]  }
 0xbbe   : > { %5417 = vmatpush1.bf16.msra.mxu0 %v8451_v43  ;;  %5470 = vmatpush1.bf16.msra.mxu1 %v8453_v59  ;;  %v4568_v43 = vld [vmem:[%s10960_s20 + $0x270] sm:$0xff]  ;;  %v8515_v59 = vcombine.low %v4572_v28, %v4576_v50  ;;  %v9500_v28 = vld [vmem:[%s10995_s2 + $0xe0] ss:$8 sps:$4 sm:$0xff]  }
 0xbbf   : > { %5418 = vmatprep.subr.bf16.mxu0 %v8444_v2  ;;  %5471 = vmatprep.subr.bf16.mxu1 %v8446_v5  ;;  %v8517_v2 = vcombine.low %v4573_v57, %v4577_v58  ;;  %v8508_v3 = vcombine.high %v4564_v36, %v4568_v43  ;;  %v4556_v5 = vld [vmem:[%s10960_s20 + $0x210] sm:$0xff]  ;;  %v9503_v50 = vld [vmem:[%s10995_s2 + $0x1e0] ss:$8 sps:$4 sm:$0xff]  }
 0xbc0   : > { %v9508_v57 = vld [vmem:[%s10995_s2 + $0xd4] ss:$8 sps:$4 sm:$0xff]  }
 0xbc1   : > { %v9511_v58 = vld [vmem:[%s10995_s2 + $0x1d4] ss:$8 sps:$4 sm:$0xff]  }
 0xbc2   : > { %5419 = vmatpush1.bf16.msra.mxu0 %v8443_v6  ;;  %5472 = vmatpush1.bf16.msra.mxu1 %v8445_v7  ;;  %v4560_v6 = vld [vmem:[%s10960_s20 + $0x230] sm:$0xff]  ;;  %v4557_v7 = vld [vmem:[%s10960_s20 + $0x218] sm:$0xff] }
 0xbc3   : > { %5420 = vmatprep.subr.bf16.mxu0 %v8436_v8  ;;  %5473 = vmatprep.subr.bf16.mxu1 %v8438_v9  ;;  %v4561_v8 = vld [vmem:[%s10960_s20 + $0x238] sm:$0xff]  ;;  %v8507_v9 = vcombine.low %v4564_v36, %v4568_v43  ;;  %v8500_v12 = vcombine.high %v4556_v5, %v4560_v6  ;;  %v8499_v14 = vcombine.low %v4556_v5, %v4560_v6  ;;  %v9512_v36 = vld [vmem:[%s10995_s2 + $0xc0] ss:$8 sps:$4 sm:$0xff]   ;;  %v9526_v5 = vld [vmem:[%s10995_s2 + $0xa4] ss:$8 sps:$4 sm:$0xff]  }
 0xbc4   : > { %v8502_v13 = vcombine.high %v4557_v7, %v4561_v8  ;;  %v9515_v43 = vld [vmem:[%s10995_s2 + $0x1c0] ss:$8 sps:$4 sm:$0xff]   ;;  %v9529_v6 = vld [vmem:[%s10995_s2 + $0x1a4] ss:$8 sps:$4 sm:$0xff]  }
 0xbc6   : > { %5421 = vmatpush1.bf16.msra.mxu0 %v8435_v16  ;;  %5474 = vmatpush1.bf16.msra.mxu1 %v8437_v17  ;;  %v8501_v16 = vcombine.low %v4557_v7, %v4561_v8  ;;  %v9448_v17 = vld [vmem:[%s10995_s2 + $0x74] ss:$8 sps:$4 sm:$0xff]   ;;  %v9524_v7 = vld [vmem:[%s10995_s2 + $0xa0] ss:$8 sps:$4 sm:$0xff]  }
 0xbc7   : > { %5422 = vmatprep.subr.bf16.mxu0 %v8556_v19  ;;  %5475 = vmatprep.subr.bf16.mxu1 %v8558_v22  ;;  %v9451_v19 = vld [vmem:[%s10995_s2 + $0x174] ss:$8 sps:$4 sm:$0xff]   ;;  %v9446_v22 = vld [vmem:[%s10995_s2 + $0x70] ss:$8 sps:$4 sm:$0xff]   ;;  %v9527_v8 = vld [vmem:[%s10995_s2 + $0x1a0] ss:$8 sps:$4 sm:$0xff]  }
 0xbca   : > { %5423 = vmatpush2.bf16.msra.mxu0 %v8555_v23  ;;  %5476 = vmatpush2.bf16.msra.mxu1 %v8557_v29  ;;  %v9455_v23 = vld [vmem:[%s10995_s2 + $0x160] ss:$8 sps:$4 sm:$0xff]   ;;  %v9458_v29 = vld [vmem:[%s10995_s2 + $0x50] ss:$8 sps:$4 sm:$0xff]  }
 0xbcb   : > { %5424 = vmatprep.subr.bf16.mxu0 %v8548_v30  ;;  %5477 = vmatprep.subr.bf16.mxu1 %v8550_v32  ;;  %v9461_v30 = vld [vmem:[%s10995_s2 + $0x150] ss:$8 sps:$4 sm:$0xff]   ;;  %v9466_v32 = vld [vmem:[%s10995_s2 + $0x44] ss:$8 sps:$4 sm:$0xff]  }
 0xbce   : > { %5425 = vmatpush2.bf16.msra.mxu0 %v8547_v18  ;;  %5478 = vmatpush2.bf16.msra.mxu1 %v8549_v11  ;;  %v9470_v18 = vld [vmem:[%s10995_s2 + $0x30] ss:$8 sps:$4 sm:$0xff]  }
 0xbcf   : > { %5426 = vmatprep.subr.bf16.mxu0 %v8540_v38  ;;  %5479 = vmatprep.subr.bf16.mxu1 %v8542_v39  ;;  %v9473_v11 = vld [vmem:[%s10995_s2 + $0x130] ss:$8 sps:$4 sm:$0xff]   ;;  %v9478_v38 = vld [vmem:[%s10995_s2 + $0x24] ss:$8 sps:$4 sm:$0xff]  }
 0xbd0   : > { %v9481_v39 = vld [vmem:[%s10995_s2 + $0x124] ss:$8 sps:$4 sm:$0xff]  }
 0xbd2   : > { %5427 = vmatpush2.bf16.msra.mxu0 %v8539_v45  ;;  %5480 = vmatpush2.bf16.msra.mxu1 %v8541_v46  ;;  %v9482_v45 = vld [vmem:[%s10995_s2 + $0x10] ss:$8 sps:$4 sm:$0xff]  }
 0xbd3   : > { %5428 = vmatprep.subr.bf16.mxu0 %v8532_v47  ;;  %5481 = vmatprep.subr.bf16.mxu1 %v8534_v48  ;;  %v9485_v46 = vld [vmem:[%s10995_s2 + $0x110] ss:$8 sps:$4 sm:$0xff]   ;;  %v9490_v47 = vld [vmem:[%s10995_s2 + $0x4] ss:$8 sps:$4 sm:$0xff]  }
 0xbd4   : > { %v9493_v48 = vld [vmem:[%s10995_s2 + $0x104] ss:$8 sps:$4 sm:$0xff]  }
 0xbd6   : > { %5429 = vmatpush2.bf16.msra.mxu0 %v8531_v55  ;;  %5482 = vmatpush2.bf16.msra.mxu1 %v8533_v49  ;;  %v9494_v55 = vld [vmem:[%s10995_s2 + $0xf0] ss:$8 sps:$4 sm:$0xff]  }
 0xbd7   : > { %5430 = vmatprep.subr.bf16.mxu0 %v8524_v25  ;;  %5483 = vmatprep.subr.bf16.mxu1 %v8526_v56  ;;  %v9497_v49 = vld [vmem:[%s10995_s2 + $0x1f0] ss:$8 sps:$4 sm:$0xff]   ;;  %v9502_v25 = vld [vmem:[%s10995_s2 + $0xe4] ss:$8 sps:$4 sm:$0xff]  }
 0xbd8   : > { %v9505_v56 = vld [vmem:[%s10995_s2 + $0x1e4] ss:$8 sps:$4 sm:$0xff]  }
 0xbda   : > { %5431 = vmatpush2.bf16.msra.mxu0 %v8523_v61  ;;  %5484 = vmatpush2.bf16.msra.mxu1 %v8525_v37  ;;  %v9506_v61 = vld [vmem:[%s10995_s2 + $0xd0] ss:$8 sps:$4 sm:$0xff]  }
 0xbdb   : > { %5432 = vmatprep.subr.bf16.mxu0 %v8516_v60  ;;  %5485 = vmatprep.subr.bf16.mxu1 %v8518_v62  ;;  %v9509_v37 = vld [vmem:[%s10995_s2 + $0x1d0] ss:$8 sps:$4 sm:$0xff]   ;;  %v9514_v60 = vld [vmem:[%s10995_s2 + $0xc4] ss:$8 sps:$4 sm:$0xff]  }
 0xbdc   : > { %v9517_v62 = vld [vmem:[%s10995_s2 + $0x1c4] ss:$8 sps:$4 sm:$0xff]  }
 0xbde   : > { %5433 = vmatpush2.bf16.msra.mxu0 %v8515_v59  ;;  %5486 = vmatpush2.bf16.msra.mxu1 %v8517_v2  ;;  %v9523_v59 = vld [vmem:[%s10995_s2 + $0x1b4] ss:$8 sps:$4 sm:$0xff]   ;;  %v9518_v2 = vld [vmem:[%s10995_s2 + $0xb0] ss:$8 sps:$4 sm:$0xff]  }
 0xbdf   : > { %5434 = vmatprep.subr.bf16.mxu0 %v8508_v3  ;;  %5487 = vmatprep.subr.bf16.mxu1 %v8510_v4  ;;  %v9521_v3 = vld [vmem:[%s10995_s2 + $0x1b0] ss:$8 sps:$4 sm:$0xff]   ;;  %v11589_v4 = vshrl.u32 %v4620_v63, 7 }
 0xbe2   : > { %5435 = vmatpush2.bf16.msra.mxu0 %v8507_v9  ;;  %5488 = vmatpush2.bf16.msra.mxu1 %v8509_v10  ;;  %v4622_v9 = vsub.s32 0, %v11589_v4  ;;  %v9532_v10 = vld [vmem:[%s10995_s2 + $0x94] ss:$8 sps:$4 sm:$0xff]  }
 0xbe3   : > { %5436 = vmatprep.subr.bf16.mxu0 %v8500_v12  ;;  %5489 = vmatprep.subr.bf16.mxu1 %v8502_v13  ;;  %v9535_v12 = vld [vmem:[%s10995_s2 + $0x194] ss:$8 sps:$4 sm:$0xff]   ;;  %v11599_v13 = vld [vmem:[%s10992_s21] sm:$0xff] }
 0xbe6   : > { %5437 = vmatpush2.bf16.msra.mxu0 %v8499_v14  ;;  %5490 = vmatpush2.bf16.msra.mxu1 %v8501_v16  ;;  %v4630_v14 = vsub.s32 2, %v11589_v4  ;;  %v9530_v16 = vld [vmem:[%s10995_s2 + $0x90] ss:$8 sps:$4 sm:$0xff]  }
 0xbe7   : > { %7168 = vmatprep.subr.bf16.mxu0 %v9448_v17  ;;  %7221 = vmatprep.subr.bf16.mxu1 %v9451_v19  ;;  %v9533_v17 = vld [vmem:[%s10995_s2 + $0x190] ss:$8 sps:$4 sm:$0xff]   ;;  %v4626_v19 = vsub.s32 1, %v11589_v4 }
 0xbe9   : > { %5439 = vmatmul.mubr.bf16.vlgmr.msra.gmra.mxu0 %v11461_v20  ;;  %5492 = vmatmul.mubr.bf16.vlgmr.msra.gmra.mxu1 %v11461_v20  ;;  %v9460_v20 = vld [vmem:[%s10995_s2 + $0x54] ss:$8 sps:$4 sm:$0xff]  }
 0xbea   : > { %5448 = vmatprep.mubr.bf16.mxu0 %v11467_v31  ;;  %5501 = vmatprep.mubr.bf16.mxu1 %v11467_v31  ;;  %v9463_v31 = vld [vmem:[%s10995_s2 + $0x154] ss:$8 sps:$4 sm:$0xff]  }
 0xbeb   : > { %7169 = vmatpush1.bf16.msra.mxu0 %v9446_v22  ;;  %7222 = vmatpush1.bf16.msra.mxu1 %v9449_v1  ;;  %v4634_v22 = vsub.s32 3, %v11589_v4  ;;  %v11607_v1 = vrot.slane %v11599_v13, %v4622_v9 }
 0xbec   : > { %7170 = vmatprep.subr.bf16.mxu0 %v9454_v24  ;;  %7223 = vmatprep.subr.bf16.mxu1 %v9457_v26  ;;  %v9538_v24 = vld [vmem:[%s10995_s2 + $0x84] ss:$8 sps:$4 sm:$0xff]  }
 0xbed   : > { %v9541_v26 = vld [vmem:[%s10995_s2 + $0x184] ss:$8 sps:$4 sm:$0xff]  }
 0xbef   : > { %7224 = vmatpush1.bf16.msra.mxu1 %v9455_v23  ;;  %7171 = vmatpush1.bf16.msra.mxu0 %v9452_v27  ;;  %v11612_v27 = vrot.slane %v11599_v13, %v4630_v14  ;;  %v9536_v23 = vld [vmem:[%s10995_s2 + $0x80] ss:$8 sps:$4 sm:$0xff]  }
 0xbf0   : > { %7172 = vmatprep.subr.bf16.mxu0 %v9460_v20  ;;  %7225 = vmatprep.subr.bf16.mxu1 %v9463_v31  ;;  %v9539_v20 = vld [vmem:[%s10995_s2 + $0x180] ss:$8 sps:$4 sm:$0xff]   ;;  %v11617_v31 = vrot.slane %v11599_v13, %v4626_v19 }
 0xbf1   : > { %5449 = vmatmul.mubr.bf16.gmra.mxu0 %v11477_v41  ;;  %5502 = vmatmul.mubr.bf16.gmra.mxu1 %v11477_v41  ;;  %v9467_v41 = vld [vmem:[%s10995_s2 + $0x140] ss:$8 sps:$4 sm:$0xff]  }
 0xbf3   : > { %7173 = vmatpush1.bf16.msra.mxu0 %v9458_v29  ;;  %7226 = vmatpush1.bf16.msra.mxu1 %v9461_v30  ;;  %v11620_v30 = vrot.slane %v11599_v13, %v4634_v22 }
 0xbf4   : > { %7174 = vmatprep.subr.bf16.mxu0 %v9466_v32  ;;  %7227 = vmatprep.subr.bf16.mxu1 %v9469_v33 }
 0xbf7   : > { %7175 = vmatpush1.bf16.msra.mxu0 %v9464_v34  ;;  %7228 = vmatpush1.bf16.msra.mxu1 %v9467_v41  ;;  %v9544_v34 = vld [vmem:[%s10995_s2 + $0x274] ss:$8 sps:$4 sm:$0xff]  }
 0xbf8   : > { %7176 = vmatprep.subr.bf16.mxu0 %v9472_v35  ;;  %7229 = vmatprep.subr.bf16.mxu1 %v9475_v15  ;;  %v9547_v41 = vld [vmem:[%s10995_s2 + $0x374] ss:$8 sps:$4 sm:$0xff]  }
 0xbfb   : > { %7177 = vmatpush1.bf16.msra.mxu0 %v9470_v18  ;;  %7230 = vmatpush1.bf16.msra.mxu1 %v9473_v11 }
 0xbfc   : > { %7178 = vmatprep.subr.bf16.mxu0 %v9478_v38  ;;  %7231 = vmatprep.subr.bf16.mxu1 %v9481_v39 }
 0xbff   : > { %7179 = vmatpush1.bf16.msra.mxu0 %v9476_v40  ;;  %7232 = vmatpush1.bf16.msra.mxu1 %v9479_v21 }
 0xc00   : > { %7180 = vmatprep.subr.bf16.mxu0 %v9484_v42  ;;  %7233 = vmatprep.subr.bf16.mxu1 %v9487_v44 }
 0xc03   : > { %7181 = vmatpush1.bf16.msra.mxu0 %v9482_v45  ;;  %7234 = vmatpush1.bf16.msra.mxu1 %v9485_v46 }
 0xc04   : > { %7182 = vmatprep.subr.bf16.mxu0 %v9490_v47  ;;  %7235 = vmatprep.subr.bf16.mxu1 %v9493_v48 }
 0xc07   : > { %7183 = vmatpush1.bf16.msra.mxu0 %v9488_v51  ;;  %7236 = vmatpush1.bf16.msra.mxu1 %v9491_v52 }
 0xc08   : > { %7184 = vmatprep.subr.bf16.mxu0 %v9496_v53  ;;  %7237 = vmatprep.subr.bf16.mxu1 %v9499_v54 }
 0xc0b   : > { %7185 = vmatpush2.bf16.msra.mxu0 %v9494_v55  ;;  %7238 = vmatpush2.bf16.msra.mxu1 %v9497_v49 }
 0xc0c   : > { %7186 = vmatprep.subr.bf16.mxu0 %v9502_v25  ;;  %7239 = vmatprep.subr.bf16.mxu1 %v9505_v56 }
 0xc0f   : > { %7187 = vmatpush2.bf16.msra.mxu0 %v9500_v28  ;;  %7240 = vmatpush2.bf16.msra.mxu1 %v9503_v50 }
 0xc10   : > { %7188 = vmatprep.subr.bf16.mxu0 %v9508_v57  ;;  %7241 = vmatprep.subr.bf16.mxu1 %v9511_v58 }
 0xc13   : > { %7189 = vmatpush2.bf16.msra.mxu0 %v9506_v61  ;;  %7242 = vmatpush2.bf16.msra.mxu1 %v9509_v37 }
 0xc14   : > { %7190 = vmatprep.subr.bf16.mxu0 %v9514_v60  ;;  %7243 = vmatprep.subr.bf16.mxu1 %v9517_v62 }
 0xc17   : > { %7191 = vmatpush2.bf16.msra.mxu0 %v9512_v36  ;;  %7244 = vmatpush2.bf16.msra.mxu1 %v9515_v43 }
 0xc18   : > { %7192 = vmatprep.subr.bf16.mxu0 %v9520_v0  ;;  %7245 = vmatprep.subr.bf16.mxu1 %v9523_v59 }
 0xc1b   : > { %7193 = vmatpush2.bf16.msra.mxu0 %v9518_v2  ;;  %7246 = vmatpush2.bf16.msra.mxu1 %v9521_v3 }
 0xc1c   : > { %7194 = vmatprep.subr.bf16.mxu0 %v9526_v5  ;;  %7247 = vmatprep.subr.bf16.mxu1 %v9529_v6 }
 0xc1f   : > { %7195 = vmatpush2.bf16.msra.mxu0 %v9524_v7  ;;  %7248 = vmatpush2.bf16.msra.mxu1 %v9527_v8 }
 0xc20   : > { %7196 = vmatprep.subr.bf16.mxu0 %v9532_v10  ;;  %7249 = vmatprep.subr.bf16.mxu1 %v9535_v12 }
 0xc23   : > { %7197 = vmatpush2.bf16.msra.mxu0 %v9530_v16  ;;  %7250 = vmatpush2.bf16.msra.mxu1 %v9533_v17 }
 0xc24   : > { %7198 = vmatprep.subr.bf16.mxu0 %v9538_v24  ;;  %7251 = vmatprep.subr.bf16.mxu1 %v9541_v26 }
 0xc27   : > { %7199 = vmatpush2.bf16.msra.mxu0 %v9536_v23  ;;  %7252 = vmatpush2.bf16.msra.mxu1 %v9539_v20 }
 0xc28   : > { %7274 = vmatprep.subr.bf16.mxu0 %v9544_v34  ;;  %7327 = vmatprep.subr.bf16.mxu1 %v9547_v41 }
 0xc69   : > { %v5334_v29 = vpop.f32.mrf.mxu0  ;;  %v5387_v33 = vpop.f32.mrf.mxu1 }
 0xc6a   : > { %v11623_v32 = vadd.f32 %v5334_v29, %v11607_v1  ;;  %v11628_v35 = vadd.f32 %v5387_v33, %v11612_v27 }
 0xc6b   : > { %v5336_v15 = vpop.f32.mrf.mxu0  ;;  %v5389_v38 = vpop.f32.mrf.mxu1 }
 0xc6c   : > { %v11631_v18 = vmul.f32 0.70710677, %v11623_v32  ;;  %v11634_v11 = vadd.f32 %v5336_v15, %v11617_v31  ;;  %v11637_v39 = vmul.f32 0.70710677, %v11628_v35  ;;  %v11640_v40 = vadd.f32 %v5389_v38, %v11620_v30 }
 0xc6d   : > { %v5338_v48 = vpop.f32.mrf.mxu0  ;;  %v5391_v53 = vpop.f32.mrf.mxu1 }
 0xc6e   : > { %v11643_v21 = vand.u32 2147483647, %v11631_v18  ;;  %v11646_v42 = vmul.f32 0.70710677, %v11634_v11  ;;  %v11649_v44 = vand.u32 2147483647, %v11637_v39  ;;  %v11665_v58 = vadd.f32 %v5338_v48, %v11607_v1 }
 0xc6f   : > { %v11652_v45 = vmul.f32 0.70710677, %v11640_v40  ;;  %v5340_v28 = vpop.f32.mrf.mxu0  ;;  %v5393_v50 = vpop.f32.mrf.mxu1  ;;  %v11668_v61 = vadd.f32 %v5391_v53, %v11612_v27  ;;  %vm6216_vm4 = vcmp.ge.f32.partialorder %v11631_v18, 0.0  ;;  %vm6218_vm5 = vcmp.ge.f32.partialorder %v11637_v39, 0.0 }
 0xc70   : > { %v5608_v46 = vmul.f32 0.3275911, %v11643_v21  ;;  %v11656_v47 = vand.u32 2147483647, %v11646_v42  ;;  %v5610_v51 = vmul.f32 0.3275911, %v11649_v44  ;;  %v11671_v37 = vadd.f32 %v5340_v28, %v11617_v31 }
 0xc71   : > { %v11660_v52 = vand.u32 2147483647, %v11652_v45  ;;  %v11674_v60 = vmul.f32 0.70710677, %v11665_v58  ;;  %v11677_v62 = vadd.f32 %v5393_v50, %v11620_v30  ;;  %v11680_v36 = vmul.f32 0.70710677, %v11668_v61  ;;  %v5344_v9 = vpop.f32.mrf.mxu0  ;;  %v5397_v41 = vpop.f32.mrf.mxu1 }
 0xc72   : > { %v5640_v54 = vadd.f32 1.0, %v5608_v46  ;;  %v5609_v55 = vmul.f32 0.3275911, %v11656_v47  ;;  %v5642_v49 = vadd.f32 1.0, %v5610_v51  ;;  %v11683_v43 = vmul.f32 0.70710677, %v11671_v37 }
 0xc73   : > { %v5611_v25 = vmul.f32 0.3275911, %v11660_v52  ;;  %v5584_v63 = vand.u32 2147483647, %v11674_v60  ;;  %v5586_v0 = vand.u32 2147483647, %v11680_v36  ;;  %v11698_v17 = vadd.f32 %v5344_v9, %v11607_v1 }
 0xc74   : > { %9638 = vrcp.f32 %v5640_v54  ;;  %v5641_v56 = vadd.f32 1.0, %v5609_v55  ;;  %v5585_v59 = vand.u32 2147483647, %v11683_v43  ;;  %v11689_v3 = vmul.f32 0.70710677, %v11677_v62 }
 0xc75   : > { %9640 = vrcp.f32 %v5642_v49  ;;  %v5643_v57 = vadd.f32 1.0, %v5611_v25  ;;  %v5616_v2 = vmul.f32 0.3275911, %v5584_v63  ;;  %v5618_v5 = vmul.f32 0.3275911, %v5586_v0 }
 0xc76   : > { %9642 = vrcp.f32 %v5641_v56  ;;  %v5617_v6 = vmul.f32 0.3275911, %v5585_v59  ;;  %v11692_v8 = vand.u32 2147483647, %v11689_v3  ;;  %v6024_v24 = vsub.f32 0.0, %v11643_v21 }
 0xc77   : > { %9644 = vrcp.f32 %v5643_v57  ;;  %v5648_v7 = vadd.f32 1.0, %v5616_v2  ;;  %v5650_v10 = vadd.f32 1.0, %v5618_v5  ;;  %v6026_v20 = vsub.f32 0.0, %v11649_v44 }
 0xc78   : > { %v5649_v12 = vadd.f32 1.0, %v5617_v6  ;;  %v5619_v14 = vmul.f32 0.3275911, %v11692_v8  ;;  %v6025_v29 = vsub.f32 0.0, %v11656_v47  ;;  %v6027_v34 = vsub.f32 0.0, %v11660_v52 }
 0xc79   : > { %9646 = vrcp.f32 %v5648_v7  ;;  %v6032_v46 = vsub.f32 0.0, %v5584_v63  ;;  %v11711_v48 = vmul.f32 0.70710677, %v11698_v17  ;;  %v11714_v51 = vadd.f32 %v5397_v41, %v11612_v27 }
 0xc7a   : > { %9648 = vrcp.f32 %v5650_v10  ;;  %v5651_v26 = vadd.f32 1.0, %v5619_v14  ;;  %v6056_v54 = vmul.f32 %v6024_v24, %v11643_v21  ;;  %v6058_v56 = vmul.f32 %v6026_v20, %v11649_v44 }
 0xc7b   : > { %9650 = vrcp.f32 %v5649_v12  ;;  %v6057_v28 = vmul.f32 %v6025_v29, %v11656_v47  ;;  %v6034_v50 = vsub.f32 0.0, %v5586_v0  ;;  %v6059_v6 = vmul.f32 %v6027_v34, %v11660_v52 }
 0xc7c   : > { %9652 = vrcp.f32 %v5651_v26  ;;  %v6064_v7 = vmul.f32 %v6032_v46, %v5584_v63  ;;  %v6033_v21 = vsub.f32 0.0, %v5585_v59  ;;  %v11727_v9 = vand.u32 2147483647, %v11711_v48 }
 0xc7d   : > { %v11730_v10 = vmul.f32 0.70710677, %v11714_v51  ;;  %v6088_v47 = vmul.f32 1.442695, %v6056_v54  ;;  %v6066_v24 = vmul.f32 %v6034_v50, %v5586_v0  ;;  %v6092_v63 = vmul.f32 1.442695, %v6058_v56 }
 0xc7e   : > { %v6104_v34 = vmul.f32 1.442695, %v6064_v7  ;;  %v6065_v41 = vmul.f32 %v6033_v21, %v5585_v59  ;;  %v6035_v54 = vsub.f32 0.0, %v11692_v8  ;;  %vm6224_vm6 = vcmp.ge.f32.partialorder %v11674_v60, 0.0 }
 0xc7f   : > { %v11735_v26 = vand.u32 2147483647, %v11730_v10  ;;  %9654 = vpow2.f32 %v6088_v47  ;;  %vm6226_vm7 = vcmp.ge.f32.partialorder %v11680_v36, 0.0  ;;  %vm6217_vm8 = vcmp.ge.f32.partialorder %v11646_v42, 0.0 }
 0xc80   : > { %9656 = vpow2.f32 %v6092_v63  ;;  %vm6219_vm9 = vcmp.ge.f32.partialorder %v11652_v45, 0.0  ;;  %vm6225_vm10 = vcmp.ge.f32.partialorder %v11683_v43, 0.0  ;;  %vm6227_vm11 = vcmp.ge.f32.partialorder %v11689_v3, 0.0 }
 0xc81   : > { %v11695_v16 = vpop.eup %9638  ;;  %9658 = vpow2.f32 %v6104_v34  ;;  %vm6232_vm12 = vcmp.ge.f32.partialorder %v11711_v48, 0.0  ;;  %vm6234_vm13 = vcmp.ge.f32.partialorder %v11730_v10, 0.0  ;;  %v9584_v48 = vld [vmem:[%s10995_s2 + $0x200] ss:$8 sps:$4 sm:$0xff]  }
 0xc82   : > { %v11700_v19 = vpop.eup %9640  ;;  %v5736_v22 = vmul.f32 1.0614054, %v11695_v16 }
 0xc83   : > { %v5738_v23 = vmul.f32 1.0614054, %v11700_v19  ;;  %v11708_v15 = vpop.eup %9642 }
 0xc84   : > { %v5768_v33 = vadd.f32 -1.4531521, %v5736_v22  ;;  %v5737_v55 = vmul.f32 1.0614054, %v11708_v15  ;;  %v11719_v49 = vpop.eup %9644 }
 0xc85   : > { %v5770_v38 = vadd.f32 -1.4531521, %v5738_v23  ;;  %v5739_v5 = vmul.f32 1.0614054, %v11719_v49  ;;  %v6090_v23 = vmul.f32 1.442695, %v6057_v28 }
 0xc86   : > { %v5800_v53 = vmul.f32 %v11695_v16, %v5768_v33  ;;  %v5769_v2 = vadd.f32 -1.4531521, %v5737_v55  ;;  %v11739_v29 = vpop.eup %9646  ;;  %v6094_v33 = vmul.f32 1.442695, %v6059_v6  ;;  %v5626_v55 = vmul.f32 0.3275911, %v11735_v26 }
 0xc87   : > { %v5802_v25 = vmul.f32 %v11700_v19, %v5770_v38  ;;  %v5771_v14 = vadd.f32 -1.4531521, %v5739_v5  ;;  %v5624_v38 = vmul.f32 0.3275911, %v11727_v9  ;;  %v11742_v46 = vpop.eup %9648  ;;  %v6108_v28 = vmul.f32 1.442695, %v6066_v24 }
 0xc88   : > { %v5832_v57 = vadd.f32 1.4214138, %v5800_v53  ;;  %v5801_v22 = vmul.f32 %v11708_v15, %v5769_v2  ;;  %v5744_v53 = vmul.f32 1.0614054, %v11739_v29  ;;  %v5746_v56 = vmul.f32 1.0614054, %v11742_v46  ;;  %v11749_v2 = vpop.eup %9650 }
 0xc89   : > { %v5834_v12 = vadd.f32 1.4214138, %v5802_v25  ;;  %v5803_v20 = vmul.f32 %v11719_v49, %v5771_v14  ;;  %v6106_v6 = vmul.f32 1.442695, %v6065_v41  ;;  %v5656_v7 = vadd.f32 1.0, %v5624_v38 }
 0xc8a   : > { %v5864_v52 = vmul.f32 %v11695_v16, %v5832_v57  ;;  %v5833_v25 = vadd.f32 1.4214138, %v5801_v22  ;;  %v5776_v59 = vadd.f32 -1.4531521, %v5744_v53  ;;  %v5778_v5 = vadd.f32 -1.4531521, %v5746_v56  ;;  %v11753_v22 = vpop.eup %9652 }
 0xc8b   : > { %v5866_v0 = vmul.f32 %v11700_v19, %v5834_v12  ;;  %v5835_v57 = vadd.f32 1.4214138, %v5803_v20  ;;  %v6067_v14 = vmul.f32 %v6035_v54, %v11692_v8  ;;  %v5658_v44 = vadd.f32 1.0, %v5626_v55 }
 0xc8c   : > { %v5896_v50 = vadd.f32 -0.28449672, %v5864_v52  ;;  %v5808_v12 = vmul.f32 %v11739_v29, %v5776_v59  ;;  %v5865_v24 = vmul.f32 %v11708_v15, %v5833_v25  ;;  %v5810_v47 = vmul.f32 %v11742_v46, %v5778_v5 }
 0xc8d   : > { %v5898_v21 = vadd.f32 -0.28449672, %v5866_v0  ;;  %v5745_v52 = vmul.f32 1.0614054, %v11749_v2  ;;  %v5867_v20 = vmul.f32 %v11719_v49, %v5835_v57  ;;  %9660 = vpow2.f32 %v6108_v28 }
 0xc8e   : > { %v5928_v63 = vmul.f32 %v11695_v16, %v5896_v50  ;;  %v5840_v41 = vadd.f32 1.4214138, %v5808_v12  ;;  %v5842_v38 = vadd.f32 1.4214138, %v5810_v47  ;;  %v5747_v8 = vmul.f32 1.0614054, %v11753_v22 }
 0xc8f   : > { %v5777_v0 = vadd.f32 -1.4531521, %v5745_v52  ;;  %9662 = vrcp.f32 %v5656_v7  ;;  %v5930_v53 = vmul.f32 %v11700_v19, %v5898_v21  ;;  %v6110_v34 = vmul.f32 1.442695, %v6067_v14 }
 0xc90   : > { %v5872_v54 = vmul.f32 %v11739_v29, %v5840_v41  ;;  %9664 = vrcp.f32 %v5658_v44  ;;  %v5897_v55 = vadd.f32 -0.28449672, %v5865_v24  ;;  %v5874_v25 = vmul.f32 %v11742_v46, %v5842_v38 }
 0xc91   : > { %v5809_v56 = vmul.f32 %v11749_v2, %v5777_v0  ;;  %v5779_v50 = vadd.f32 -1.4531521, %v5747_v8  ;;  %v5960_v57 = vadd.f32 0.2548296, %v5928_v63  ;;  %v5899_v59 = vadd.f32 -0.28449672, %v5867_v20  ;;  %v5346_v0 = vpop.f32.mrf.mxu0 }
 0xc92   : > { %v5904_v28 = vadd.f32 -0.28449672, %v5872_v54  ;;  %9666 = vpow2.f32 %v6106_v6  ;;  %v5906_v5 = vadd.f32 -0.28449672, %v5874_v25  ;;  %v11767_v21 = vmul.f32 0.5, %v11623_v32  ;;  %v9655_v32 = vpop.eup %9654 }
 0xc93   : > { %9668 = vpow2.f32 %v6090_v23  ;;  %v5841_v12 = vadd.f32 1.4214138, %v5809_v56  ;;  %v5811_v7 = vmul.f32 %v11753_v22, %v5779_v50  ;;  %v4646_v14 = vsub.s32 6, %v11589_v4  ;;  %v9657_v54 = vpop.eup %9656 }
 0xc94   : > { %9670 = vpow2.f32 %v6094_v33  ;;  %v5936_v44 = vmul.f32 %v11739_v29, %v5904_v28  ;;  %v5962_v24 = vadd.f32 0.2548296, %v5930_v53  ;;  %v5929_v47 = vmul.f32 %v11708_v15, %v5897_v55  ;;  %v9659_v28 = vpop.eup %9658 }
 0xc95   : > { %v5938_v52 = vmul.f32 %v11742_v46, %v5906_v5  ;;  %v5873_v6 = vmul.f32 %v11749_v2, %v5841_v12  ;;  %v5992_v23 = vmul.f32 %v11695_v16, %v5960_v57  ;;  %v5931_v63 = vmul.f32 %v11719_v49, %v5899_v59 }
 0xc96   : > { %v5968_v20 = vadd.f32 0.2548296, %v5936_v44  ;;  %9672 = vpow2.f32 %v6110_v34  ;;  %v5843_v38 = vadd.f32 1.4214138, %v5811_v7  ;;  %v12778_v8 = vsub.s32 4, %v11589_v4 }
 0xc97   : > { %v5970_v41 = vadd.f32 0.2548296, %v5938_v52  ;;  %v5905_v33 = vadd.f32 -0.28449672, %v5873_v6  ;;  %v11782_v55 = vmul.f32 0.5, %v11628_v35  ;;  %v11785_v16 = vmul.f32 0.5, %v11634_v11 }
 0xc98   : > { %v11779_v53 = vrot.slane %v11599_v13, %v12778_v8  ;;  %v6040_v25 = vsub.f32 0.0, %v11727_v9  ;;  %v11789_v34 = vrot.slane %v11599_v13, %v4646_v14  ;;  %v5994_v56 = vmul.f32 %v11700_v19, %v5962_v24 }
 0xc99   : > { %v5961_v50 = vadd.f32 0.2548296, %v5929_v47  ;;  %v5937_v57 = vmul.f32 %v11749_v2, %v5905_v33  ;;  %v5875_v59 = vmul.f32 %v11753_v22, %v5843_v38  ;;  %v11794_v5 = vmul.f32 %v9655_v32, %v5992_v23 }
 0xc9a   : > { %v11797_v35 = vmul.f32 0.5, %v11640_v40  ;;  %v5963_v11 = vadd.f32 0.2548296, %v5931_v63  ;;  %v11800_v12 = vadd.f32 %v5346_v0, %v11617_v31  ;;  %v9661_v7 = vpop.eup %9660  ;;  %v11803_v44 = vmul.f32 0.5, %v11665_v58 }
 0xc9b   : > { %v6000_v19 = vmul.f32 %v11739_v29, %v5968_v20  ;;  %v6002_v14 = vmul.f32 %v11742_v46, %v5970_v41  ;;  %v5969_v24 = vadd.f32 0.2548296, %v5937_v57  ;;  %v11810_v52 = vmul.f32 0.5, %v11668_v61 }
 0xc9c   : > { %v11807_v47 = vpop.eup %9662  ;;  %v11813_v40 = vmul.f32 0.5, %v11671_v37  ;;  %v5907_v6 = vadd.f32 -0.28449672, %v5875_v59  ;;  %v6072_v23 = vmul.f32 %v6040_v25, %v11727_v9  ;;  %v11818_v58 = vmul.f32 %v9657_v54, %v5994_v56  ;;  %v5399_v56 = vpop.f32.mrf.mxu1 }
 0xc9d   : > { %v11816_v63 = vpop.eup %9664  ;;  %v5993_v29 = vmul.f32 %v11708_v15, %v5961_v50  ;;  %v6001_v46 = vmul.f32 %v11749_v2, %v5969_v24  ;;  %v6042_v20 = vsub.f32 0.0, %v11735_v26  ;;  %v6184_v32 = vsub.f32 1.0, %v11794_v5 }
 0xc9e   : > { %v5995_v61 = vmul.f32 %v11719_v49, %v5963_v11  ;;  %v5939_v37 = vmul.f32 %v11753_v22, %v5907_v6  ;;  %v11828_v9 = vmul.f32 0.70710677, %v11800_v12  ;;  %v6160_v33 = vmul.f32 %v9659_v28, %v6000_v19 }
 0xc9f   : > { %v9667_v41 = vpop.eup %9666  ;;  %v11830_v38 = vmul.f32 %v9661_v7, %v6002_v14  ;;  %v11833_v15 = vmul.f32 0.5, %v11677_v62  ;;  %v5752_v2 = vmul.f32 1.0614054, %v11807_v47  ;;  %v5754_v25 = vmul.f32 1.0614054, %v11816_v63 }
 0xca0   : > { %v9669_v0 = vpop.eup %9668  ;;  %v6161_v8 = vmul.f32 %v9667_v41, %v6001_v46  ;;  %v5971_v54 = vadd.f32 0.2548296, %v5939_v37  ;;  %v11838_v49 = vand.u32 2147483647, %v11828_v9  ;;  %v6186_v57 = vsub.f32 1.0, %v11818_v58 }
 0xca1   : > { %v9671_v50 = vpop.eup %9670  ;;  %v6153_v59 = vmul.f32 %v9669_v0, %v5993_v29  ;;  %v6120_v28 = vmul.f32 1.442695, %v6072_v23  ;;  %v6074_v62 = vmul.f32 %v6042_v20, %v11735_v26  ;;  %v6248_v5 = vsub.f32 0.0, %v6184_v32 }
 0xca2   : > { %v6155_v11 = vmul.f32 %v9671_v50, %v5995_v61  ;;  %v6003_v7 = vmul.f32 %v11753_v22, %v5971_v54  ;;  %v5625_v19 = vmul.f32 0.3275911, %v11838_v49  ;;  %v6192_v24 = vsub.f32 1.0, %v6160_v33  ;;  %v5401_v54 = vpop.f32.mrf.mxu1 }
 0xca3   : > { %v9673_v14 = vpop.eup %9672  ;;  %v6194_v6 = vsub.f32 1.0, %v11830_v38  ;;  %v5784_v58 = vadd.f32 -1.4531521, %v5752_v2  ;;  %v11849_v29 = vadd.f32 %v5399_v56, %v11620_v30  ;;  %v6193_v26 = vsub.f32 1.0, %v6161_v8  ;;  %v5348_v38 = vpop.f32.mrf.mxu0 }
 0xca4   : > { %v6163_v23 = vmul.f32 %v9673_v14, %v6003_v7  ;;  %v5786_v46 = vadd.f32 -1.4531521, %v5754_v25  ;;  %v5657_v20 = vadd.f32 1.0, %v5625_v19  ;;  %v6185_v61 = vsub.f32 1.0, %v6153_v59 }
 0xca5   : > { %v6124_v22 = vmul.f32 1.442695, %v6074_v62  ;;  %v6250_v37 = vsub.f32 0.0, %v6186_v57  ;;  %v6187_v41 = vsub.f32 1.0, %v6155_v11  ;;  %9674 = vpow2.f32 %v6120_v28 }
 0xca6   : > { %v6195_v33 = vsub.f32 1.0, %v6163_v23  ;;  %v6280_v2 = vsel %vm6216_vm4, %v6184_v32, %v6248_v5  ;;  %v6256_v0 = vsub.f32 0.0, %v6192_v24  ;;  %v5816_v8 = vmul.f32 %v11807_v47, %v5784_v58 }
 0xca7   : > { %9676 = vrcp.f32 %v5657_v20  ;;  %v6258_v25 = vsub.f32 0.0, %v6194_v6  ;;  %v6257_v56 = vsub.f32 0.0, %v6193_v26  ;;  %v5818_v50 = vmul.f32 %v11816_v63, %v5786_v46 }
 0xca8   : > { %v11860_v59 = vmul.f32 0.70710677, %v11849_v29  ;;  %v6249_v62 = vsub.f32 0.0, %v6185_v61  ;;  %v6259_v11 = vsub.f32 0.0, %v6195_v33  ;;  %9678 = vpow2.f32 %v6124_v22 }
 0xca9   : > { %v11863_v28 = vadd.f32 %v5348_v38, %v11607_v1  ;;  %v6282_v18 = vsel %vm6218_vm5, %v6186_v57, %v6250_v37  ;;  %v6251_v32 = vsub.f32 0.0, %v6187_v41  ;;  %v11871_v7 = vadd.f32 %v5401_v54, %v11612_v27 }
 0xcaa   : > { %v11868_v5 = vand.u32 2147483647, %v11860_v59  ;;  %v6312_v19 = vadd.f32 1.0, %v6280_v2  ;;  %v6288_v14 = vsel %vm6224_vm6, %v6192_v24, %v6256_v0  ;;  %v5848_v58 = vadd.f32 1.4214138, %v5816_v8 }
 0xcab   : > { %v11876_v23 = vmul.f32 0.70710677, %v11863_v28  ;;  %v6290_v1 = vsel %vm6226_vm7, %v6194_v6, %v6258_v25  ;;  %v6289_v39 = vsel %vm6225_vm10, %v6193_v26, %v6257_v56  ;;  %v5850_v57 = vadd.f32 1.4214138, %v5818_v50  ;;  %v5350_v26 = vpop.f32.mrf.mxu0 }
 0xcac   : > { %v5627_v46 = vmul.f32 0.3275911, %v11868_v5  ;;  %v6314_v20 = vadd.f32 1.0, %v6282_v18  ;;  %v6281_v27 = vsel %vm6217_vm8, %v6185_v61, %v6249_v62  ;;  %v6291_v60 = vsel %vm6227_vm11, %v6195_v33, %v6259_v11 }
 0xcad   : > { %v11888_v24 = vand.u32 2147483647, %v11876_v23  ;;  %v6283_v36 = vsel %vm6219_vm9, %v6187_v41, %v6251_v32  ;;  %v6320_v6 = vadd.f32 1.0, %v6288_v14  ;;  %v11893_v43 = vmul.f32 0.70710677, %v11871_v7  ;;  %v5403_v14 = vpop.f32.mrf.mxu1 }
 0xcae   : > { %v5659_v22 = vadd.f32 1.0, %v5627_v46  ;;  %v6322_v37 = vadd.f32 1.0, %v6290_v1  ;;  %v6321_v38 = vadd.f32 1.0, %v6289_v39  ;;  %v5880_v42 = vmul.f32 %v11807_v47, %v5848_v58 }
 0xcaf   : > { %v5632_v61 = vmul.f32 0.3275911, %v11888_v24  ;;  %v6323_v3 = vadd.f32 1.0, %v6291_v60  ;;  %v5882_v33 = vmul.f32 %v11816_v63, %v5850_v57  ;;  %v11899_v2 = vand.u32 2147483647, %v11893_v43 }
 0xcb0   : > { %9680 = vrcp.f32 %v5659_v22  ;;  %v6313_v45 = vadd.f32 1.0, %v6281_v27  ;;  %v6315_v41 = vadd.f32 1.0, %v6283_v36  ;;  %v11902_v8 = vadd.f32 %v5350_v26, %v11617_v31  ;;  %v9542_v36 = vld [vmem:[%s10995_s2 + $0x270] ss:$8 sps:$4 sm:$0xff]   ;;  %v5493_v22 = vpop.f32.mrf.mxu1 }
 0xcb1   : > { %v5664_v0 = vadd.f32 1.0, %v5632_v61  ;;  %v6344_v54 = vmul.f32 %v6312_v19, %v11767_v21  ;;  %v6352_v25 = vmul.f32 %v6320_v6, %v11803_v44  ;;  %v6041_v56 = vsub.f32 0.0, %v11838_v49  ;;  %v9545_v6 = vld [vmem:[%s10995_s2 + $0x370] ss:$8 sps:$4 sm:$0xff]  }
 0xcb2   : > { %v5634_v50 = vmul.f32 0.3275911, %v11899_v2  ;;  %v11908_v62 = vpop.eup %9674  ;;  %v6354_v11 = vmul.f32 %v6322_v37, %v11810_v52  ;;  %v6353_v18 = vmul.f32 %v6321_v38, %v11813_v40  ;;  %v5912_v32 = vadd.f32 -0.28449672, %v5880_v42  ;;  %v9550_v38 = vld [vmem:[%s10995_s2 + $0x264] ss:$8 sps:$4 sm:$0xff]  }
 0xcb3   : > { %9682 = vrcp.f32 %v5664_v0  ;;  %v6346_v31 = vmul.f32 %v6314_v20, %v11782_v55  ;;  %v6355_v21 = vmul.f32 %v6323_v3, %v11833_v15  ;;  %v5914_v44 = vadd.f32 -0.28449672, %v5882_v33  ;;  %v5440_v20 = vpop.f32.mrf.mxu0 }
 0xcb4   : > { %v11912_v58 = vpop.eup %9676  ;;  %v5666_v19 = vadd.f32 1.0, %v5634_v50  ;;  %v6345_v1 = vmul.f32 %v6313_v45, %v11785_v16  ;;  %v6347_v39 = vmul.f32 %v6315_v41, %v11797_v35  ;;  %v11920_v40 = vmul.f32 0.70710677, %v11902_v8  ;;  %v9548_v45 = vld [vmem:[%s10995_s2 + $0x260] ss:$8 sps:$4 sm:$0xff]  }
 0xcb5   : > { %v5753_v52 = vmul.f32 1.0614054, %v11912_v58  ;;  %v11922_v57 = vpop.eup %9678  ;;  %v6384_v46 = vpack.c.bf16 %v6352_v25, %v6344_v54  ;;  %v6073_v55 = vmul.f32 %v6041_v56, %v11838_v49  ;;  %v11926_v15 = vadd.f32 %v5403_v14, %v11620_v30  ;;  %v9553_v41 = vld [vmem:[%s10995_s2 + $0x364] ss:$8 sps:$4 sm:$0xff]   ;;  %v9551_v50 = vld [vmem:[%s10995_s2 + $0x360] ss:$8 sps:$4 sm:$0xff]  }
 0xcb6   : > { %9684 = vrcp.f32 %v5666_v19  ;;  %v6386_v27 = vpack.c.bf16 %v6354_v11, %v6346_v31  ;;  %v5944_v16 = vmul.f32 %v11807_v47, %v5912_v32  ;;  %v11930_v35 = vand.u32 2147483647, %v11920_v40  ;;  %v9556_v11 = vld [vmem:[%s10995_s2 + $0x254] ss:$8 sps:$4 sm:$0xff]  }
 0xcb7   : > { %v6385_v60 = vpack.c.bf16 %v6353_v18, %v6345_v1  ;;  %v5946_v26 = vmul.f32 %v11816_v63, %v5914_v44  ;;  %v5785_v49 = vadd.f32 -1.4531521, %v5753_v52  ;;  %v11936_v37 = vmul.f32 0.70710677, %v11926_v15 }
 0xcb8   : > { %v6387_v30 = vpack.c.bf16 %v6355_v21, %v6347_v39  ;;  %v6043_v42 = vsub.f32 0.0, %v11868_v5  ;;  %v6048_v61 = vsub.f32 0.0, %v11888_v24  ;;  %v5633_v3 = vmul.f32 0.3275911, %v11930_v35 }
 0xcb9   : > { %7200 = vmatprep.mubr.bf16.mxu0 %v6385_v60  ;;  %v11943_v33 = vadd.f32 %v5440_v20, %v11779_v53  ;;  %v11948_v0 = vmul.f32 0.5, %v11698_v17  ;;  %v6050_v54 = vsub.f32 0.0, %v11899_v2  ;;  %v11952_v25 = vand.u32 2147483647, %v11936_v37 }
 0xcba   : > { %7253 = vmatprep.mubr.bf16.mxu1 %v6387_v30  ;;  %7201 = vmatmul.mubr.bf16.vlgmr.msra.gmra.mxu0 %v6384_v46  ;;  %v11955_v56 = vadd.f32 %v5493_v22, %v11789_v34  ;;  %v5976_v18 = vadd.f32 0.2548296, %v5944_v16  ;;  %v11960_v32 = vmul.f32 0.5, %v11714_v51  ;;  %v6122_v14 = vmul.f32 1.442695, %v6073_v55 }
 0xcbb   : > { %v5665_v17 = vadd.f32 1.0, %v5633_v3  ;;  %7254 = vmatmul.mubr.bf16.vlgmr.msra.gmra.mxu1 %v6386_v27  ;;  %7275 = vmatpush1.bf16.msra.mxu0 %v9542_v36  ;;  %v5978_v31 = vadd.f32 0.2548296, %v5946_v26  ;;  %v5817_v21 = vmul.f32 %v11912_v58, %v5785_v49  ;;  %v5635_v44 = vmul.f32 0.3275911, %v11952_v25 }
 0xcbc   : > { %v11965_v19 = vmul.f32 0.70710677, %v11943_v33  ;;  %7328 = vmatpush1.bf16.msra.mxu1 %v9545_v6  ;;  %7276 = vmatprep.subr.bf16.mxu0 %v9550_v38  ;;  %v6075_v51 = vmul.f32 %v6043_v42, %v11868_v5  ;;  %v6080_v39 = vmul.f32 %v6048_v61, %v11888_v24  ;;  %v11972_v52 = vmul.f32 0.70710677, %v11955_v56  ;;  %v9554_v46 = vld [vmem:[%s10995_s2 + $0x250] ss:$8 sps:$4 sm:$0xff]  }
 0xcbd   : > { %v11967_v1 = vpop.eup %9680  ;;  %9686 = vrcp.f32 %v5665_v17  ;;  %7329 = vmatprep.subr.bf16.mxu1 %v9553_v41  ;;  %v9559_v55 = vld [vmem:[%s10995_s2 + $0x354] ss:$8 sps:$4 sm:$0xff]   ;;  %v6082_v27 = vmul.f32 %v6050_v54, %v11899_v2  ;;  %v5667_v16 = vadd.f32 1.0, %v5635_v44  ;;  %v9557_v5 = vld [vmem:[%s10995_s2 + $0x350] ss:$8 sps:$4 sm:$0xff]   ;;  %v11983_v24 = vmul.f32 0.5, %v11800_v12 }
 0xcbe   : > { %v5755_v20 = vmul.f32 1.0614054, %v11967_v1  ;;  %v11979_v60 = vand.u32 2147483647, %v11965_v19  ;;  %9688 = vpow2.f32 %v6122_v14  ;;  %v11986_v36 = vmul.f32 0.5, %v11849_v29 }
 0xcbf   : > { %v11989_v6 = vand.u32 2147483647, %v11972_v52  ;;  %7277 = vmatpush1.bf16.msra.mxu0 %v9548_v45  ;;  %v9562_v22 = vld [vmem:[%s10995_s2 + $0x244] ss:$8 sps:$4 sm:$0xff]   ;;  %v6008_v26 = vmul.f32 %v11807_v47, %v5976_v18  ;;  %v5849_v49 = vadd.f32 1.4214138, %v5817_v21  ;;  %9690 = vrcp.f32 %v5667_v16 }
 0xcc0   : > { %v11992_v2 = vpop.eup %9682  ;;  %v5787_v30 = vadd.f32 -1.4531521, %v5755_v20  ;;  %7330 = vmatpush1.bf16.msra.mxu1 %v9551_v50  ;;  %7278 = vmatprep.subr.bf16.mxu0 %v9556_v11  ;;  %v9565_v12 = vld [vmem:[%s10995_s2 + $0x344] ss:$8 sps:$4 sm:$0xff]   ;;  %v6010_v29 = vmul.f32 %v11816_v63, %v5978_v31  ;;  %v6126_v38 = vmul.f32 1.442695, %v6075_v51 }
 0xcc1   : > { %v5760_v42 = vmul.f32 1.0614054, %v11992_v2  ;;  %v6049_v61 = vsub.f32 0.0, %v11930_v35  ;;  %7331 = vmatprep.subr.bf16.mxu1 %v9559_v55  ;;  %v9560_v3 = vld [vmem:[%s10995_s2 + $0x240] ss:$8 sps:$4 sm:$0xff]   ;;  %v12007_v11 = vmul.f32 0.5, %v11863_v28  ;;  %v5881_v21 = vmul.f32 %v11912_v58, %v5849_v49 }
 0xcc2   : > { %v5819_v45 = vmul.f32 %v11967_v1, %v5787_v30  ;;  %v6136_v47 = vmul.f32 1.442695, %v6080_v39  ;;  %v6140_v41 = vmul.f32 1.442695, %v6082_v27  ;;  %v5612_v54 = vmul.f32 0.3275911, %v11979_v60 }
 0xcc3   : > { %v9563_v18 = vld [vmem:[%s10995_s2 + $0x340] ss:$8 sps:$4 sm:$0xff]   ;;  %v9568_v14 = vld [vmem:[%s10995_s2 + $0x234] ss:$8 sps:$4 sm:$0xff]   ;;  %v12004_v50 = vpop.eup %9684  ;;  %v5792_v63 = vadd.f32 -1.4531521, %v5760_v42  ;;  %7279 = vmatpush1.bf16.msra.mxu0 %v9554_v46  ;;  %v12015_v55 = vmul.f32 %v11908_v62, %v6008_v26  ;;  %v12018_v28 = vmul.f32 %v11922_v57, %v6010_v29  ;;  %v6081_v46 = vmul.f32 %v6049_v61, %v11930_v35 }
 0xcc4   : > { %v5614_v17 = vmul.f32 0.3275911, %v11989_v6  ;;  %v4642_v31 = vsub.s32 5, %v11589_v4  ;;  %v5851_v44 = vadd.f32 1.4214138, %v5819_v45  ;;  %v6051_v39 = vsub.f32 0.0, %v11952_v25  ;;  %7332 = vmatpush1.bf16.msra.mxu1 %v9557_v5  ;;  %7280 = vmatprep.subr.bf16.mxu0 %v9562_v22  ;;  %v5442_v5 = vpop.f32.mrf.mxu0 }
 0xcc5   : > { %v5762_v51 = vmul.f32 1.0614054, %v12004_v50  ;;  %v5824_v20 = vmul.f32 %v11992_v2, %v5792_v63  ;;  %7333 = vmatprep.subr.bf16.mxu1 %v9565_v12  ;;  %v9571_v27 = vld [vmem:[%s10995_s2 + $0x334] ss:$8 sps:$4 sm:$0xff]   ;;  %9692 = vpow2.f32 %v6126_v38  ;;  %v5644_v30 = vadd.f32 1.0, %v5612_v54 }
 0xcc6   : > { %v5883_v16 = vmul.f32 %v11967_v1, %v5851_v44  ;;  %9694 = vpow2.f32 %v6136_v47  ;;  %v5646_v57 = vadd.f32 1.0, %v5614_v17  ;;  %v12026_v22 = vrot.slane %v11599_v13, %v4642_v31  ;;  %v9566_v35 = vld [vmem:[%s10995_s2 + $0x230] ss:$8 sps:$4 sm:$0xff]   ;;  %v9574_v42 = vld [vmem:[%s10995_s2 + $0x224] ss:$8 sps:$4 sm:$0xff]  }
 0xcc7   : > { %v5794_v49 = vadd.f32 -1.4531521, %v5762_v51  ;;  %v5856_v62 = vadd.f32 1.4214138, %v5824_v20  ;;  %7281 = vmatpush1.bf16.msra.mxu0 %v9560_v3  ;;  %v5913_v26 = vadd.f32 -0.28449672, %v5881_v21  ;;  %9696 = vpow2.f32 %v6140_v41 }
 0xcc8   : > { %v6083_v29 = vmul.f32 %v6051_v39, %v11952_v25  ;;  %7334 = vmatpush1.bf16.msra.mxu1 %v9563_v18  ;;  %7282 = vmatprep.subr.bf16.mxu0 %v9568_v14  ;;  %v9569_v38 = vld [vmem:[%s10995_s2 + $0x330] ss:$8 sps:$4 sm:$0xff]   ;;  %v5915_v61 = vadd.f32 -0.28449672, %v5883_v16  ;;  %v6138_v45 = vmul.f32 1.442695, %v6081_v46  ;;  %v12036_v3 = vadd.f32 %v5442_v5, %v12026_v22 }
 0xcc9   : > { %v5826_v12 = vmul.f32 %v12004_v50, %v5794_v49  ;;  %v5888_v13 = vmul.f32 %v11992_v2, %v5856_v62  ;;  %7335 = vmatprep.subr.bf16.mxu1 %v9571_v27  ;;  %v9577_v47 = vld [vmem:[%s10995_s2 + $0x324] ss:$8 sps:$4 sm:$0xff]   ;;  %v6200_v41 = vsub.f32 1.0, %v12015_v55  ;;  %v6202_v25 = vsub.f32 1.0, %v12018_v28  ;;  %v9572_v17 = vld [vmem:[%s10995_s2 + $0x220] ss:$8 sps:$4 sm:$0xff]  }
 0xcca   : > { %v12039_v54 = vpop.eup %9686  ;;  %9698 = vrcp.f32 %v5644_v30  ;;  %v5945_v21 = vmul.f32 %v11912_v58, %v5913_v26  ;;  %v6142_v51 = vmul.f32 1.442695, %v6083_v29  ;;  %v9575_v39 = vld [vmem:[%s10995_s2 + $0x320] ss:$8 sps:$4 sm:$0xff]   ;;  %v9580_v55 = vld [vmem:[%s10995_s2 + $0x214] ss:$8 sps:$4 sm:$0xff]   ;;  %v5947_v20 = vmul.f32 %v11967_v1, %v5915_v61 }
 0xccb   : > { %v5858_v18 = vadd.f32 1.4214138, %v5826_v12  ;;  %v5920_v14 = vadd.f32 -0.28449672, %v5888_v13  ;;  %v5761_v63 = vmul.f32 1.0614054, %v12039_v54  ;;  %9700 = vrcp.f32 %v5646_v57  ;;  %7283 = vmatpush1.bf16.msra.mxu0 %v9566_v35  ;;  %v12045_v31 = vpop.eup %9688 }
 0xccc   : > { %7336 = vmatpush1.bf16.msra.mxu1 %v9569_v38  ;;  %7284 = vmatprep.subr.bf16.mxu0 %v9574_v42  ;;  %v12051_v28 = vpop.eup %9690  ;;  %9702 = vpow2.f32 %v6138_v45  ;;  %v12055_v27 = vmul.f32 0.70710677, %v12036_v3  ;;  %v9583_v16 = vld [vmem:[%s10995_s2 + $0x314] ss:$8 sps:$4 sm:$0xff]   ;;  %v6264_v49 = vsub.f32 0.0, %v6200_v41  ;;  %v6266_v30 = vsub.f32 0.0, %v6202_v25 }
 0xccd   : > { %v5890_v44 = vmul.f32 %v12004_v50, %v5858_v18  ;;  %v5793_v46 = vadd.f32 -1.4531521, %v5761_v63  ;;  %7337 = vmatprep.subr.bf16.mxu1 %v9577_v47  ;;  %v5763_v62 = vmul.f32 1.0614054, %v12051_v28  ;;  %v5952_v57 = vmul.f32 %v11992_v2, %v5920_v14  ;;  %v9578_v26 = vld [vmem:[%s10995_s2 + $0x210] ss:$8 sps:$4 sm:$0xff]  }
 0xcce   : > { %v9581_v12 = vld [vmem:[%s10995_s2 + $0x310] ss:$8 sps:$4 sm:$0xff]   ;;  %v9586_v29 = vld [vmem:[%s10995_s2 + $0x204] ss:$8 sps:$4 sm:$0xff]   ;;  %v5977_v38 = vadd.f32 0.2548296, %v5945_v21  ;;  %9704 = vpow2.f32 %v6142_v51  ;;  %v6296_v14 = vsel %vm6232_vm12, %v6200_v41, %v6264_v49  ;;  %v6298_v51 = vsel %vm6234_vm13, %v6202_v25, %v6266_v30 }
 0xccf   : > { %v5922_v5 = vadd.f32 -0.28449672, %v5890_v44  ;;  %v5825_v35 = vmul.f32 %v12039_v54, %v5793_v46  ;;  %7285 = vmatpush1.bf16.msra.mxu0 %v9572_v17  ;;  %v5795_v61 = vadd.f32 -1.4531521, %v5763_v62  ;;  %v9589_v13 = vld [vmem:[%s10995_s2 + $0x304] ss:$8 sps:$4 sm:$0xff]  }
 0xcd0   : > { %7338 = vmatpush1.bf16.msra.mxu1 %v9575_v39  ;;  %7286 = vmatprep.subr.bf16.mxu0 %v9580_v55  ;;  %v5979_v45 = vadd.f32 0.2548296, %v5947_v20  ;;  %v12067_v18 = vand.u32 2147483647, %v12055_v27  ;;  %v12072_v63 = vmul.f32 0.5, %v11871_v7  ;;  %v4650_v21 = vsub.s32 7, %v11589_v4 }
 0xcd1   : > { %v5954_v42 = vmul.f32 %v12004_v50, %v5922_v5  ;;  %v5857_v47 = vadd.f32 1.4214138, %v5825_v35  ;;  %7339 = vmatprep.subr.bf16.mxu1 %v9583_v16  ;;  %v5827_v17 = vmul.f32 %v12051_v28, %v5795_v61  ;;  %v5984_v39 = vadd.f32 0.2548296, %v5952_v57  ;;  %v9587_v7 = vld [vmem:[%s10995_s2 + $0x300] ss:$8 sps:$4 sm:$0xff]   ;;  %v5495_v61 = vpop.f32.mrf.mxu1 }
 0xcd2   : > { %v9693_v44 = vpop.eup %9692  ;;  %v9592_v16 = vld [vmem:[%s10995_s2 + $0x2f4] ss:$8 sps:$4 sm:$0xff]   ;;  %v6009_v4 = vmul.f32 %v11912_v58, %v5977_v38  ;;  %v6011_v10 = vmul.f32 %v11967_v1, %v5979_v45  ;;  %v5613_v30 = vmul.f32 0.3275911, %v12067_v18  ;;  %v12086_v62 = vadd.f32 1.0, %v6296_v14 }
 0xcd3   : > { %v5986_v55 = vadd.f32 0.2548296, %v5954_v42  ;;  %v5889_v20 = vmul.f32 %v12039_v54, %v5857_v47  ;;  %7287 = vmatpush1.bf16.msra.mxu0 %v9578_v26  ;;  %v9695_v41 = vpop.eup %9694  ;;  %v5859_v46 = vadd.f32 1.4214138, %v5827_v17  ;;  %v9595_v5 = vld [vmem:[%s10995_s2 + $0x3f4] ss:$8 sps:$4 sm:$0xff]   ;;  %v6016_v58 = vmul.f32 %v11992_v2, %v5984_v39 }
 0xcd4   : > { %7340 = vmatpush1.bf16.msra.mxu1 %v9581_v12  ;;  %7288 = vmatprep.subr.bf16.mxu0 %v9586_v29  ;;  %v9697_v49 = vpop.eup %9696  ;;  %v12088_v57 = vadd.f32 1.0, %v6298_v51  ;;  %v9766_v26 = vld [vmem:[%s10992_s21] sm:$0xff]  ;;  %v12099_v38 = vmul.f32 0.5, %v11902_v8  ;;  %v12110_v8 = vmul.f32 %v12045_v31, %v6009_v4  ;;  %v12112_v51 = vmul.f32 %v9693_v44, %v6011_v10 }
 0xcd5   : > { %v5921_v25 = vadd.f32 -0.28449672, %v5889_v20  ;;  %7341 = vmatprep.subr.bf16.mxu1 %v9589_v13  ;;  %v5891_v35 = vmul.f32 %v12051_v28, %v5859_v46  ;;  %v12092_v12 = vrot.slane %v9766_v26, %v4650_v21  ;;  %v6018_v1 = vmul.f32 %v12004_v50, %v5986_v55  ;;  %v5444_v13 = vpop.f32.mrf.mxu0  ;;  %v9590_v45 = vld [vmem:[%s10995_s2 + $0x2f0] ss:$8 sps:$4 sm:$0xff]   ;;  %v9598_v50 = vld [vmem:[%s10995_s2 + $0x2e4] ss:$8 sps:$4 sm:$0xff]  }
 0xcd6   : > { %v9593_v47 = vld [vmem:[%s10995_s2 + $0x3f0] ss:$8 sps:$4 sm:$0xff]   ;;  %v5645_v55 = vadd.f32 1.0, %v5613_v30  ;;  %v9601_v20 = vld [vmem:[%s10995_s2 + $0x3e4] ss:$8 sps:$4 sm:$0xff]   ;;  %vm6241_vm14 = vcmp.ge.f32.partialorder %v11920_v40, 0.0  ;;  %v12122_v31 = vadd.f32 %v5444_v13, %v11779_v53  ;;  %v12126_v44 = vmul.f32 %v9695_v41, %v6016_v58 }
 0xcd7   : > { %v12094_v29 = vpop.eup %9698  ;;  %v5953_v42 = vmul.f32 %v12039_v54, %v5921_v25  ;;  %7289 = vmatpush1.bf16.msra.mxu0 %v9584_v48  ;;  %v5923_v17 = vadd.f32 -0.28449672, %v5891_v35  ;;  %vm6233_vm15 = vcmp.ge.f32.partialorder %v11828_v9, 0.0  ;;  %vm6235_vm0 = vcmp.ge.f32.partialorder %v11860_v59, 0.0  ;;  %v9596_v30 = vld [vmem:[%s10995_s2 + $0x2e0] ss:$8 sps:$4 sm:$0xff]  }
 0xcd8   : > { %v12104_v14 = vpop.eup %9700  ;;  %7342 = vmatpush1.bf16.msra.mxu1 %v9587_v7  ;;  %7290 = vmatprep.subr.bf16.mxu0 %v9592_v16  ;;  %v5740_v25 = vmul.f32 1.0614054, %v12094_v29  ;;  %v12119_v7 = vadd.f32 %v5495_v61, %v12092_v12  ;;  %v12128_v16 = vmul.f32 %v9697_v49, %v6018_v1  ;;  %vm6243_vm1 = vcmp.ge.f32.partialorder %v11936_v37, 0.0  ;;  %v9599_v41 = vld [vmem:[%s10995_s2 + $0x3e0] ss:$8 sps:$4 sm:$0xff]  }
 0xcd9   : > { %v5985_v39 = vadd.f32 0.2548296, %v5953_v42  ;;  %7343 = vmatprep.subr.bf16.mxu1 %v9595_v5  ;;  %v9703_v48 = vpop.eup %9702  ;;  %v5955_v46 = vmul.f32 %v12051_v28, %v5923_v17  ;;  %v5742_v10 = vmul.f32 1.0614054, %v12104_v14  ;;  %vm6240_vm2 = vcmp.ge.f32.partialorder %v11876_v23, 0.0 }
 0xcda   : > { %12779 = vst [vmem:[#allocation87_spill] sm:$0xff] %v12119_v7  ;;  %vm6242_vm3 = vcmp.ge.f32.partialorder %v11893_v43, 0.0  ;;  %v9604_v49 = vld [vmem:[%s10995_s2 + $0x2d4] ss:$8 sps:$4 sm:$0xff]   ;;  %v6203_v26 = vsub.f32 1.0, %v12112_v51  ;;  %9706 = vrcp.f32 %v5645_v55  ;;  %v6208_v17 = vsub.f32 1.0, %v12126_v44  ;;  %v5497_v44 = vpop.f32.mrf.mxu1 }
 0xcdb   : > { %v6017_v4 = vmul.f32 %v12039_v54, %v5985_v39  ;;  %7291 = vmatpush2.bf16.msra.mxu0 %v9590_v45  ;;  %v5987_v5 = vadd.f32 0.2548296, %v5955_v46  ;;  %v9705_v35 = vpop.eup %9704  ;;  %v6201_v54 = vsub.f32 1.0, %v12110_v8  ;;  %v9602_v1 = vld [vmem:[%s10995_s2 + $0x2d0] ss:$8 sps:$4 sm:$0xff]   ;;  %v12166_v21 = vadd.f32 %v5497_v44, %v11789_v34 }
 0xcdc   : > { %7344 = vmatpush2.bf16.msra.mxu1 %v9593_v47  ;;  %7292 = vmatprep.subr.bf16.mxu0 %v9598_v50  ;;  %v9607_v42 = vld [vmem:[%s10995_s2 + $0x3d4] ss:$8 sps:$4 sm:$0xff]   ;;  %v5772_v13 = vadd.f32 -1.4531521, %v5740_v25  ;;  %v12144_v45 = vmul.f32 0.70710677, %v12119_v7 }
 0xcdd   : > { %v6177_v58 = vmul.f32 %v9703_v48, %v6017_v4  ;;  %7345 = vmatprep.subr.bf16.mxu1 %v9601_v20  ;;  %v6019_v61 = vmul.f32 %v12051_v28, %v5987_v5  ;;  %v12147_v47 = vmul.f32 0.70710677, %v12122_v31  ;;  %v6210_v50 = vsub.f32 1.0, %v12128_v16  ;;  %v9605_v28 = vld [vmem:[%s10995_s2 + $0x3d0] ss:$8 sps:$4 sm:$0xff]  }
 0xcde   : > { %12780 = vst [vmem:[#allocation88_spill] sm:$0xff] %v12144_v45  ;;  %v5774_v51 = vadd.f32 -1.4531521, %v5742_v10  ;;  %v12152_v55 = vand.u32 2147483647, %v12144_v45  ;;  %v6265_v48 = vsub.f32 0.0, %v6201_v54 }
 0xcdf   : > { %12781 = vst [vmem:[#allocation89_spill] sm:$0xff] %v12147_v47  ;;  %v6209_v8 = vsub.f32 1.0, %v6177_v58  ;;  %7293 = vmatpush2.bf16.msra.mxu0 %v9596_v30  ;;  %v6179_v39 = vmul.f32 %v9705_v35, %v6019_v61  ;;  %v9610_v20 = vld [vmem:[%s10995_s2 + $0x2c4] ss:$8 sps:$4 sm:$0xff]   ;;  %v12157_v25 = vand.u32 2147483647, %v12147_v47  ;;  %v5804_v30 = vmul.f32 %v12094_v29, %v5772_v13 }
 0xce0   : > { %7346 = vmatpush2.bf16.msra.mxu1 %v9599_v41  ;;  %7294 = vmatprep.subr.bf16.mxu0 %v9604_v49  ;;  %v9613_v16 = vld [vmem:[%s10995_s2 + $0x3c4] ss:$8 sps:$4 sm:$0xff]   ;;  %v6267_v4 = vsub.f32 0.0, %v6203_v26  ;;  %v5615_v5 = vmul.f32 0.3275911, %v12152_v55  ;;  %v6272_v41 = vsub.f32 0.0, %v6208_v17  ;;  %v5806_v35 = vmul.f32 %v12104_v14, %v5774_v51 }
 0xce1   : > { %v6273_v46 = vsub.f32 0.0, %v6209_v8  ;;  %7347 = vmatprep.subr.bf16.mxu1 %v9607_v42  ;;  %v6211_v10 = vsub.f32 1.0, %v6179_v39  ;;  %v6274_v49 = vsub.f32 0.0, %v6210_v50  ;;  %v5620_v58 = vmul.f32 0.3275911, %v12157_v25 }
 0xce2   : > { %v9608_v61 = vld [vmem:[%s10995_s2 + $0x2c0] ss:$8 sps:$4 sm:$0xff]   ;;  %v5647_v42 = vadd.f32 1.0, %v5615_v5  ;;  %v9616_v39 = vld [vmem:[%s10995_s2 + $0x2b4] ss:$8 sps:$4 sm:$0xff]   ;;  %v12782_v51 = vsub.f32 0.0, %v11979_v60 }
 0xce3   : > { %7295 = vmatpush2.bf16.msra.mxu0 %v9602_v1  ;;  %v6275_v2 = vsub.f32 0.0, %v6211_v10  ;;  %v9611_v13 = vld [vmem:[%s10995_s2 + $0x3c0] ss:$8 sps:$4 sm:$0xff]   ;;  %v6305_v47 = vsel %vm6241_vm14, %v6209_v8, %v6273_v46  ;;  %v12783_v1 = vsub.f32 0.0, %v11989_v6  ;;  %v5652_v7 = vadd.f32 1.0, %v5620_v58 }
 0xce4   : > { %7348 = vmatpush2.bf16.msra.mxu1 %v9605_v28  ;;  %7296 = vmatprep.subr.bf16.mxu0 %v9610_v20  ;;  %v6060_v45 = vmul.f32 %v12782_v51, %v11979_v60  ;;  %v9619_v44 = vld [vmem:[%s10995_s2 + $0x3b4] ss:$8 sps:$4 sm:$0xff]   ;;  %v6297_v28 = vsel %vm6233_vm15, %v6201_v54, %v6265_v48  ;;  %v6299_v20 = vsel %vm6235_vm0, %v6203_v26, %v6267_v4  ;;  %9708 = vrcp.f32 %v5647_v42  ;;  %v9614_v8 = vld [vmem:[%s10995_s2 + $0x2b0] ss:$8 sps:$4 sm:$0xff]   ;;  %v9622_v26 = vld [vmem:[%s10995_s2 + $0x2a4] ss:$8 sps:$4 sm:$0xff]  }
 0xce5   : > { %v6062_v5 = vmul.f32 %v12783_v1, %v11989_v6  ;;  %7349 = vmatprep.subr.bf16.mxu1 %v9613_v16  ;;  %v6307_v40 = vsel %vm6243_vm1, %v6211_v10, %v6275_v2  ;;  %v6304_v60 = vsel %vm6240_vm2, %v6208_v17, %v6272_v41  ;;  %v6306_v6 = vsel %vm6242_vm3, %v6210_v50, %v6274_v49  ;;  %v9617_v9 = vld [vmem:[%s10995_s2 + $0x3b0] ss:$8 sps:$4 sm:$0xff]   ;;  %v5446_v2 = vpop.f32.mrf.mxu0  ;;  %v9625_v50 = vld [vmem:[%s10995_s2 + $0x3a4] ss:$8 sps:$4 sm:$0xff]   ;;  %v9628_v51 = vld [vmem:[%s10995_s2 + $0x294] ss:$8 sps:$4 sm:$0xff]  }
 0xce6   : > { %v5836_v46 = vadd.f32 1.4214138, %v5804_v30  ;;  %v5838_v16 = vadd.f32 1.4214138, %v5806_v35  ;;  %v6337_v54 = vadd.f32 1.0, %v6305_v47  ;;  %v6339_v59 = vadd.f32 1.0, %v6307_v40 }
 0xce7   : > { %7297 = vmatpush2.bf16.msra.mxu0 %v9608_v61  ;;  %9710 = vrcp.f32 %v5652_v7  ;;  %v12192_v37 = vmul.f32 0.70710677, %v12166_v21  ;;  %v6329_v23 = vadd.f32 1.0, %v6297_v28  ;;  %v5539_v43 = vmul.f32 0.5, %v11926_v15  ;;  %v12197_v48 = vpop.eup %9706  ;;  %v9626_v40 = vld [vmem:[%s10995_s2 + $0x290] ss:$8 sps:$4 sm:$0xff]  }
 0xce8   : > { %7350 = vmatpush2.bf16.msra.mxu1 %v9611_v13  ;;  %7298 = vmatprep.subr.bf16.mxu0 %v9616_v39  ;;  %v6096_v17 = vmul.f32 1.442695, %v6060_v45  ;;  %v6331_v4 = vadd.f32 1.0, %v6299_v20  ;;  %v6336_v47 = vadd.f32 1.0, %v6304_v60  ;;  %v6338_v7 = vadd.f32 1.0, %v6306_v6  ;;  %v5499_v13 = vpop.f32.mrf.mxu1 }
 0xce9   : > { %7351 = vmatprep.subr.bf16.mxu1 %v9619_v44  ;;  %v12200_v10 = vand.u32 2147483647, %v12192_v37  ;;  %v5868_v30 = vmul.f32 %v12094_v29, %v5836_v46  ;;  %v5870_v41 = vmul.f32 %v12104_v14, %v5838_v16  ;;  %v6100_v49 = vmul.f32 1.442695, %v6062_v5  ;;  %v9620_v45 = vld [vmem:[%s10995_s2 + $0x2a0] ss:$8 sps:$4 sm:$0xff]  }
 0xcea   : > { %v12205_v15 = vadd.f32 %v5446_v2, %v12026_v22  ;;  %v6362_v35 = vmul.f32 %v12088_v57, %v11960_v32  ;;  %v6369_v58 = vmul.f32 %v6337_v54, %v12099_v38  ;;  %v6371_v61 = vmul.f32 %v6339_v59, %v5539_v43  ;;  %v9623_v39 = vld [vmem:[%s10995_s2 + $0x3a0] ss:$8 sps:$4 sm:$0xff]   ;;  %v9631_v32 = vld [vmem:[%s10995_s2 + $0x394] ss:$8 sps:$4 sm:$0xff]   ;;  %v9634_v54 = vld [vmem:[%s10995_s2 + $0x284] ss:$8 sps:$4 sm:$0xff]  }
 0xceb   : > { %7299 = vmatpush2.bf16.msra.mxu0 %v9614_v8  ;;  %v5622_v42 = vmul.f32 0.3275911, %v12200_v10  ;;  %v6361_v1 = vmul.f32 %v6329_v23, %v11983_v24  ;;  %9712 = vpow2.f32 %v6096_v17  ;;  %v5741_v5 = vmul.f32 1.0614054, %v12197_v48  ;;  %v9637_v2 = vld [vmem:[%s10995_s2 + $0x384] ss:$8 sps:$4 sm:$0xff]  }
 0xcec   : > { %7352 = vmatpush2.bf16.msra.mxu1 %v9617_v9  ;;  %7300 = vmatprep.subr.bf16.mxu0 %v9622_v26  ;;  %v12217_v44 = vmul.f32 0.70710677, %v12205_v15  ;;  %v6363_v57 = vmul.f32 %v6331_v4, %v11986_v36  ;;  %v6368_v38 = vmul.f32 %v6336_v47, %v12007_v11  ;;  %v6370_v28 = vmul.f32 %v6338_v7, %v12072_v63  ;;  %v9629_v63 = vld [vmem:[%s10995_s2 + $0x390] ss:$8 sps:$4 sm:$0xff]   ;;  %v9632_v4 = vld [vmem:[%s10995_s2 + $0x280] ss:$8 sps:$4 sm:$0xff]  }
 0xced   : > { %7353 = vmatprep.subr.bf16.mxu1 %v9625_v50  ;;  %v5654_v20 = vadd.f32 1.0, %v5622_v42  ;;  %v5900_v8 = vadd.f32 -0.28449672, %v5868_v30  ;;  %v5902_v24 = vadd.f32 -0.28449672, %v5870_v41  ;;  %v12228_v6 = vadd.f32 %v5499_v13, %v12092_v12 }
 0xcee   : > { %v12225_v60 = vand.u32 2147483647, %v12217_v44  ;;  %v6360_v36 = vmul.f32 %v12086_v62, %v11948_v0  ;;  %v6393_v11 = vpack.c.bf16 %v6369_v58, %v6361_v1  ;;  %v6395_v46 = vpack.c.bf16 %v6371_v61, %v6363_v57  ;;  %v5450_v61 = vpop.f32.mrf.mxu0 }
 0xcef   : > { %7301 = vmatpush2.bf16.msra.mxu0 %v9620_v45  ;;  %9714 = vrcp.f32 %v5654_v20  ;;  %v5773_v16 = vadd.f32 -1.4531521, %v5741_v5  ;;  %v12236_v59 = vmul.f32 0.70710677, %v12228_v6  ;;  %v6394_v62 = vpack.c.bf16 %v6370_v28, %v6362_v35 }
 0xcf0   : > { %7354 = vmatpush2.bf16.msra.mxu1 %v9623_v39  ;;  %7302 = vmatprep.subr.bf16.mxu0 %v9628_v51  ;;  %9716 = vpow2.f32 %v6100_v49  ;;  %v5621_v9 = vmul.f32 0.3275911, %v12225_v60  ;;  %v6392_v0 = vpack.c.bf16 %v6368_v38, %v6360_v36  ;;  %v5932_v23 = vmul.f32 %v12094_v29, %v5900_v8  ;;  %v9635_v49 = vld [vmem:[%s10995_s2 + $0x380] ss:$8 sps:$4 sm:$0xff]  }
 0xcf1   : > { %7355 = vmatprep.subr.bf16.mxu1 %v9631_v32  ;;  %7210 = vmatprep.mubr.bf16.mxu0 %v6393_v11  ;;  %v12239_v26 = vpop.eup %9708  ;;  %v5934_v43 = vmul.f32 %v12104_v14, %v5902_v24  ;;  %v6029_v17 = vsub.f32 0.0, %v12067_v18  ;;  %v12247_v7 = vand.u32 2147483647, %v12236_v59  ;;  %v5805_v41 = vmul.f32 %v12197_v48, %v5773_v16 }
 0xcf2   : > { %7263 = vmatprep.mubr.bf16.mxu1 %v6395_v46  ;;  %v5653_v50 = vadd.f32 1.0, %v5621_v9  ;;  %v5743_v47 = vmul.f32 1.0614054, %v12239_v26  ;;  %7211 = vmatmul.mubr.bf16.gmra.mxu0 %v6392_v0  ;;  %v5964_v42 = vadd.f32 0.2548296, %v5932_v23  ;;  %v6031_v51 = vsub.f32 0.0, %v12152_v55 }
 0xcf3   : > { %7303 = vmatpush2.bf16.msra.mxu0 %v9626_v40  ;;  %7264 = vmatmul.mubr.bf16.gmra.mxu1 %v6394_v62  ;;  %v5623_v58 = vmul.f32 0.3275911, %v12247_v7  ;;  %v5966_v13 = vadd.f32 0.2548296, %v5934_v43  ;;  %v6061_v39 = vmul.f32 %v6029_v17, %v12067_v18  ;;  %v5837_v32 = vadd.f32 1.4214138, %v5805_v41  ;;  %v5452_v40 = vpop.f32.mrf.mxu0 }
 0xcf4   : > { %v12249_v30 = vpop.eup %9710  ;;  %9718 = vrcp.f32 %v5653_v50  ;;  %7356 = vmatpush2.bf16.msra.mxu1 %v9629_v63  ;;  %7304 = vmatprep.subr.bf16.mxu0 %v9634_v54  ;;  %v5775_v45 = vadd.f32 -1.4531521, %v5743_v47  ;;  %v6037_v20 = vsub.f32 0.0, %v12225_v60  ;;  %v5996_v8 = vmul.f32 %v12094_v29, %v5964_v42  ;;  %v5503_v63 = vpop.f32.mrf.mxu1 }
 0xcf5   : > { %v5748_v35 = vmul.f32 1.0614054, %v12249_v30  ;;  %7357 = vmatprep.subr.bf16.mxu1 %v9637_v2  ;;  %v5655_v5 = vadd.f32 1.0, %v5623_v58  ;;  %v5998_v18 = vmul.f32 %v12104_v14, %v5966_v13  ;;  %v6098_v24 = vmul.f32 1.442695, %v6061_v39 }
 0xcf6   : > { %v5807_v38 = vmul.f32 %v12239_v26, %v5775_v45  ;;  %v12263_v36 = vadd.f32 %v5450_v61, %v11779_v53  ;;  %v6063_v11 = vmul.f32 %v6031_v51, %v12152_v55  ;;  %v6036_v46 = vsub.f32 0.0, %v12157_v25 }
 0xcf7   : > { %7305 = vmatpush2.bf16.msra.mxu0 %v9632_v4  ;;  %v5780_v1 = vadd.f32 -1.4531521, %v5748_v35  ;;  %9720 = vrcp.f32 %v5655_v5  ;;  %v5869_v9 = vmul.f32 %v12197_v48, %v5837_v32  ;;  %v6038_v54 = vsub.f32 0.0, %v12200_v10 }
 0xcf8   : > { %7358 = vmatpush2.bf16.msra.mxu1 %v9635_v49  ;;  %v9713_v57 = vpop.eup %9712  ;;  %v12272_v0 = vadd.f32 %v5452_v40, %v12026_v22  ;;  %v5839_v14 = vadd.f32 1.4214138, %v5807_v38  ;;  %v6069_v23 = vmul.f32 %v6037_v20, %v12225_v60  ;;  %9722 = vpow2.f32 %v6098_v24  ;;  %v5505_v49 = vpop.f32.mrf.mxu1 }
 0xcf9   : > { %v5812_v28 = vmul.f32 %v12249_v30, %v5780_v1  ;;  %v12276_v55 = vmul.f32 %v9713_v57, %v5996_v8  ;;  %v12281_v17 = vmul.f32 0.70710677, %v12263_v36  ;;  %v6102_v50 = vmul.f32 1.442695, %v6063_v11 }
 0xcfa   : > { %v6068_v4 = vmul.f32 %v6036_v46, %v12157_v25  ;;  %v6039_v41 = vsub.f32 0.0, %v12247_v7  ;;  %v5901_v45 = vadd.f32 -0.28449672, %v5869_v9  ;;  %v6070_v35 = vmul.f32 %v6038_v54, %v12200_v10 }
 0xcfb   : > { %v5844_v62 = vadd.f32 1.4214138, %v5812_v28  ;;  %v12287_v60 = vadd.f32 %v5503_v63, %v11789_v34  ;;  %v12290_v58 = vmul.f32 0.70710677, %v12272_v0  ;;  %v5871_v42 = vmul.f32 %v12239_v26, %v5839_v14 }
 0xcfc   : > { %v12267_v16 = vpop.eup %9714  ;;  %v6114_v39 = vmul.f32 1.442695, %v6069_v23  ;;  %v12299_v1 = vand.u32 2147483647, %v12281_v17  ;;  %v12305_v5 = vadd.f32 %v5505_v49, %v12092_v12  ;;  %9724 = vpow2.f32 %v6102_v50 }
 0xcfd   : > { %v9717_v29 = vpop.eup %9716  ;;  %v5750_v2 = vmul.f32 1.0614054, %v12267_v16  ;;  %v5876_v13 = vmul.f32 %v12249_v30, %v5844_v62  ;;  %v12302_v10 = vand.u32 2147483647, %v12290_v58  ;;  %v6112_v32 = vmul.f32 1.442695, %v6068_v4 }
 0xcfe   : > { %v12278_v43 = vmul.f32 %v9717_v29, %v5998_v18  ;;  %v6071_v38 = vmul.f32 %v6039_v41, %v12247_v7  ;;  %v5933_v28 = vmul.f32 %v12197_v48, %v5901_v45  ;;  %v6116_v20 = vmul.f32 1.442695, %v6070_v35 }
 0xcff   : > { %v5782_v47 = vadd.f32 -1.4531521, %v5750_v2  ;;  %v12310_v8 = vmul.f32 0.70710677, %v12287_v60  ;;  %v5903_v18 = vadd.f32 -0.28449672, %v5871_v42  ;;  %9726 = vpow2.f32 %v6114_v39 }
 0xd00   : > { %v5908_v24 = vadd.f32 -0.28449672, %v5876_v13  ;;  %v5629_v46 = vmul.f32 0.3275911, %v12302_v10  ;;  %v5628_v7 = vmul.f32 0.3275911, %v12299_v1  ;;  %9728 = vpow2.f32 %v6112_v32 }
 0xd01   : > { %v12292_v61 = vpop.eup %9718  ;;  %v5814_v25 = vmul.f32 %v12267_v16, %v5782_v47  ;;  %v12319_v54 = vmul.f32 0.70710677, %v12305_v5  ;;  %v6118_v62 = vmul.f32 1.442695, %v6071_v38  ;;  %9730 = vpow2.f32 %v6116_v20 }
 0xd02   : > { %v5749_v51 = vmul.f32 1.0614054, %v12292_v61  ;;  %v12323_v23 = vand.u32 2147483647, %v12310_v8  ;;  %v5935_v4 = vmul.f32 %v12239_v26, %v5903_v18  ;;  %v5940_v47 = vmul.f32 %v12249_v30, %v5908_v24 }
 0xd03   : > { %v5846_v57 = vadd.f32 1.4214138, %v5814_v25  ;;  %v12326_v50 = vand.u32 2147483647, %v12319_v54  ;;  %v5661_v49 = vadd.f32 1.0, %v5629_v46  ;;  %v5660_v42 = vadd.f32 1.0, %v5628_v7 }
 0xd04   : > { %v5781_v40 = vadd.f32 -1.4531521, %v5749_v51  ;;  %v12314_v63 = vpop.eup %9720  ;;  %v5965_v45 = vadd.f32 0.2548296, %v5933_v28  ;;  %9732 = vpow2.f32 %v6118_v62  ;;  %v6188_v32 = vsub.f32 1.0, %v12276_v55 }
 0xd05   : > { %v5878_v11 = vmul.f32 %v12267_v16, %v5846_v57  ;;  %v5751_v14 = vmul.f32 1.0614054, %v12314_v63  ;;  %v9723_v13 = vpop.eup %9722  ;;  %v5631_v51 = vmul.f32 0.3275911, %v12326_v50  ;;  %v6190_v57 = vsub.f32 1.0, %v12278_v43 }
 0xd06   : > { %v5813_v9 = vmul.f32 %v12292_v61, %v5781_v40  ;;  %v5630_v20 = vmul.f32 0.3275911, %v12323_v23  ;;  %v5967_v40 = vadd.f32 0.2548296, %v5935_v4  ;;  %v5972_v28 = vadd.f32 0.2548296, %v5940_v47 }
 0xd07   : > { %v5910_v29 = vadd.f32 -0.28449672, %v5878_v11  ;;  %v5783_v41 = vadd.f32 -1.4531521, %v5751_v14  ;;  %9734 = vrcp.f32 %v5661_v49  ;;  %v5997_v24 = vmul.f32 %v12197_v48, %v5965_v45 }
 0xd08   : > { %v5845_v2 = vadd.f32 1.4214138, %v5813_v9  ;;  %9736 = vrcp.f32 %v5660_v42  ;;  %v5663_v7 = vadd.f32 1.0, %v5631_v51  ;;  %v6252_v55 = vsub.f32 0.0, %v6188_v32 }
 0xd09   : > { %v5942_v25 = vmul.f32 %v12267_v16, %v5910_v29  ;;  %v5815_v39 = vmul.f32 %v12314_v63, %v5783_v41  ;;  %v9725_v29 = vpop.eup %9724  ;;  %v6254_v14 = vsub.f32 0.0, %v6190_v57  ;;  %v5662_v62 = vadd.f32 1.0, %v5630_v20 }
 0xd0a   : > { %v5877_v35 = vmul.f32 %v12292_v61, %v5845_v2  ;;  %v5454_v2 = vpop.f32.mrf.mxu0  ;;  %v5516_v4 = vmul.f32 0.5, %v11943_v33  ;;  %v5999_v47 = vmul.f32 %v12239_v26, %v5967_v40  ;;  %v6004_v41 = vmul.f32 %v12249_v30, %v5972_v28 }
 0xd0b   : > { %v5847_v18 = vadd.f32 1.4214138, %v5815_v39  ;;  %v5974_v46 = vadd.f32 0.2548296, %v5942_v25  ;;  %vm6220_vm4 = vcmp.ge.f32.partialorder %v11965_v19, 0.0  ;;  %vm6222_vm5 = vcmp.ge.f32.partialorder %v11972_v52, 0.0 }
 0xd0c   : > { %v5909_v38 = vadd.f32 -0.28449672, %v5877_v35  ;;  %v6157_v49 = vmul.f32 %v9723_v13, %v5997_v24  ;;  %v9727_v35 = vpop.eup %9726  ;;  %9738 = vrcp.f32 %v5663_v7  ;;  %v12349_v33 = vadd.f32 %v5454_v2, %v11779_v53 }
 0xd0d   : > { %v5879_v9 = vmul.f32 %v12314_v63, %v5847_v18  ;;  %v6006_v42 = vmul.f32 %v12267_v16, %v5974_v46  ;;  %v9729_v26 = vpop.eup %9728  ;;  %v6284_v39 = vsel %vm6220_vm4, %v6188_v32, %v6252_v55  ;;  %v6286_v30 = vsel %vm6222_vm5, %v6190_v57, %v6254_v14  ;;  %v12784_v46 = vld [vmem:[#allocation87_spill] sm:$0xff] }
 0xd0e   : > { %v5941_v11 = vmul.f32 %v12292_v61, %v5909_v38  ;;  %9740 = vrcp.f32 %v5662_v62  ;;  %v9731_v19 = vpop.eup %9730  ;;  %v6159_v38 = vmul.f32 %v9725_v29, %v5999_v47  ;;  %v6164_v52 = vmul.f32 %v9729_v26, %v6004_v41  ;;  %v12786_v62 = vld [vmem:[#allocation89_spill] sm:$0xff] }
 0xd0f   : > { %v5911_v48 = vadd.f32 -0.28449672, %v5879_v9  ;;  %v5518_v16 = vmul.f32 0.5, %v11955_v56  ;;  %v12356_v20 = vmul.f32 0.5, %v12036_v3  ;;  %v6189_v40 = vsub.f32 1.0, %v6157_v49  ;;  %v5507_v9 = vpop.f32.mrf.mxu1 }
 0xd10   : > { %v5973_v43 = vadd.f32 0.2548296, %v5941_v11  ;;  %v12359_v53 = vmul.f32 0.5, %v12122_v31  ;;  %vm6221_vm6 = vcmp.ge.f32.partialorder %v12055_v27, 0.0  ;;  %v6166_v32 = vmul.f32 %v9731_v19, %v6006_v42 }
 0xd11   : > { %v5943_v25 = vmul.f32 %v12314_v63, %v5911_v48  ;;  %v9733_v18 = vpop.eup %9732  ;;  %v6316_v24 = vadd.f32 1.0, %v6284_v39  ;;  %v6318_v11 = vadd.f32 1.0, %v6286_v30  ;;  %v12367_v56 = vmul.f32 0.5, %v12784_v46 }
 0xd12   : > { %v6005_v45 = vmul.f32 %v12292_v61, %v5973_v43  ;;  %v12352_v61 = vmul.f32 0.70710677, %v12349_v33  ;;  %v6191_v7 = vsub.f32 1.0, %v6159_v38  ;;  %v6196_v29 = vsub.f32 1.0, %v6164_v52 }
 0xd13   : > { %v5975_v13 = vadd.f32 0.2548296, %v5943_v25  ;;  %v6253_v43 = vsub.f32 0.0, %v6189_v40  ;;  %vm6228_vm8 = vcmp.ge.f32.partialorder %v12786_v62, 0.0  ;;  %v12375_v2 = vmul.f32 0.5, %v12166_v21 }
 0xd14   : > { %v6165_v51 = vmul.f32 %v9727_v35, %v6005_v45  ;;  %v12364_v28 = vand.u32 2147483647, %v12352_v61  ;;  %v12370_v14 = vpop.eup %9734  ;;  %v6198_v41 = vsub.f32 1.0, %v6166_v32  ;;  %v12380_v45 = vadd.f32 %v5507_v9, %v11789_v34 }
 0xd15   : > { %v6007_v57 = vmul.f32 %v12314_v63, %v5975_v13  ;;  %v12785_v63 = vld [vmem:[#allocation88_spill] sm:$0xff]  ;;  %v12377_v47 = vpop.eup %9736  ;;  %v12382_v35 = vmul.f32 %v6316_v24, %v5516_v4  ;;  %vm6230_vm9 = vcmp.ge.f32.partialorder %v12192_v37, 0.0  ;;  %v5525_v42 = vmul.f32 0.5, %v12205_v15 }
 0xd16   : > { %v6197_v3 = vsub.f32 1.0, %v6165_v51  ;;  %v5636_v55 = vmul.f32 0.3275911, %v12364_v28  ;;  %vm6223_vm7 = vcmp.ge.f32.partialorder %v12785_v63, 0.0  ;;  %v12386_v26 = vmul.f32 %v6318_v11, %v5518_v16  ;;  %v5456_v51 = vpop.f32.mrf.mxu0 }
 0xd17   : > { %v6167_v31 = vmul.f32 %v9733_v18, %v6007_v57  ;;  %v6255_v39 = vsub.f32 0.0, %v6191_v7  ;;  %v6260_v21 = vsub.f32 0.0, %v6196_v29  ;;  %v5757_v30 = vmul.f32 1.0614054, %v12370_v14 }
 0xd18   : > { %v5668_v49 = vadd.f32 1.0, %v5636_v55  ;;  %v6261_v25 = vsub.f32 0.0, %v6197_v3  ;;  %v5756_v38 = vmul.f32 1.0614054, %v12377_v47  ;;  %v6044_v34 = vsub.f32 0.0, %v12299_v1 }
 0xd19   : > { %v6199_v48 = vsub.f32 1.0, %v6167_v31  ;;  %v6285_v4 = vsel %vm6221_vm6, %v6189_v40, %v6253_v43  ;;  %v6262_v52 = vsub.f32 0.0, %v6198_v41  ;;  %vm6229_vm10 = vcmp.ge.f32.partialorder %v12217_v44, 0.0  ;;  %v12397_v13 = vpop.eup %9738  ;;  %v5509_v31 = vpop.f32.mrf.mxu1 }
 0xd1a   : > { %9742 = vrcp.f32 %v5668_v49  ;;  %v12395_v15 = vmul.f32 0.70710677, %v12380_v45  ;;  %v6293_v16 = vsel %vm6229_vm10, %v6197_v3, %v6261_v25  ;;  %v5527_v32 = vmul.f32 0.5, %v12228_v6 }
 0xd1b   : > { %v6263_v19 = vsub.f32 0.0, %v6199_v48  ;;  %vm6231_vm11 = vcmp.ge.f32.partialorder %v12236_v59, 0.0  ;;  %v12402_v57 = vadd.f32 %v5456_v51, %v12026_v22  ;;  %v12404_v18 = vpop.eup %9740  ;;  %v6287_v27 = vsel %vm6223_vm7, %v6191_v7, %v6255_v39 }
 0xd1c   : > { %v6292_v44 = vsel %vm6228_vm8, %v6196_v29, %v6260_v21  ;;  %v5789_v40 = vadd.f32 -1.4531521, %v5757_v30  ;;  %v12411_v24 = vand.u32 2147483647, %v12395_v15  ;;  %v6317_v11 = vadd.f32 1.0, %v6285_v4 }
 0xd1d   : > { %v6295_v46 = vsel %vm6231_vm11, %v6199_v48, %v6263_v19  ;;  %v5788_v6 = vadd.f32 -1.4531521, %v5756_v38  ;;  %v6076_v59 = vmul.f32 %v6044_v34, %v12299_v1  ;;  %v6294_v22 = vsel %vm6230_vm9, %v6198_v41, %v6262_v52 }
 0xd1e   : > { %v6325_v3 = vadd.f32 1.0, %v6293_v16  ;;  %v5759_v9 = vmul.f32 1.0614054, %v12397_v13  ;;  %v5638_v7 = vmul.f32 0.3275911, %v12411_v24  ;;  %v6319_v55 = vadd.f32 1.0, %v6287_v27 }
 0xd1f   : > { %v6324_v29 = vadd.f32 1.0, %v6292_v44  ;;  %v6045_v43 = vsub.f32 0.0, %v12302_v10  ;;  %v12420_v63 = vmul.f32 0.70710677, %v12402_v57  ;;  %v6327_v62 = vadd.f32 1.0, %v6295_v46 }
 0xd20   : > { %v5758_v48 = vmul.f32 1.0614054, %v12404_v18  ;;  %v5821_v1 = vmul.f32 %v12370_v14, %v5789_v40  ;;  %v5670_v37 = vadd.f32 1.0, %v5638_v7  ;;  %v6326_v41 = vadd.f32 1.0, %v6294_v22 }
 0xd21   : > { %v5820_v49 = vmul.f32 %v12377_v47, %v5788_v6  ;;  %v12426_v25 = vand.u32 2147483647, %v12420_v63  ;;  %v12429_v39 = vadd.f32 %v5509_v31, %v12092_v12  ;;  %v6357_v21 = vmul.f32 %v6325_v3, %v5525_v42 }
 0xd22   : > { %v5791_v30 = vadd.f32 -1.4531521, %v5759_v9  ;;  %v6052_v51 = vsub.f32 0.0, %v12364_v28  ;;  %9744 = vrcp.f32 %v5670_v37  ;;  %v6349_v19 = vmul.f32 %v6317_v11, %v12356_v20 }
 0xd23   : > { %v6356_v38 = vmul.f32 %v6324_v29, %v12359_v53  ;;  %v6128_v34 = vmul.f32 1.442695, %v6076_v59  ;;  %v5637_v4 = vmul.f32 0.3275911, %v12426_v25  ;;  %v6359_v52 = vmul.f32 %v6327_v62, %v5527_v32 }
 0xd24   : > { %v5790_v16 = vadd.f32 -1.4531521, %v5758_v48  ;;  %v5853_v27 = vadd.f32 1.4214138, %v5821_v1  ;;  %v6077_v44 = vmul.f32 %v6045_v43, %v12302_v10  ;;  %v6351_v12 = vmul.f32 %v6319_v55, %v12367_v56 }
 0xd25   : > { %v6358_v42 = vmul.f32 %v6326_v41, %v12375_v2  ;;  %v5669_v40 = vadd.f32 1.0, %v5637_v4  ;;  %v12439_v46 = vmul.f32 0.70710677, %v12429_v39  ;;  %v5852_v20 = vadd.f32 1.4214138, %v5820_v49 }
 0xd26   : > { %v5823_v53 = vmul.f32 %v12397_v13, %v5791_v30  ;;  %v6084_v11 = vmul.f32 %v6052_v51, %v12364_v28  ;;  %v6389_v32 = vpack.c.bf16 %v6357_v21, %v6349_v19  ;;  %v6388_v59 = vpack.c.bf16 %v6356_v38, %v12382_v35 }
 0xd27   : > { %v12441_v6 = vpop.eup %9742  ;;  %9746 = vrcp.f32 %v5669_v40  ;;  %v5607_v56 = vand.u32 2147483647, %v12439_v46  ;;  %v5822_v2 = vmul.f32 %v12404_v18, %v5790_v16  ;;  %v5885_v22 = vmul.f32 %v12370_v14, %v5853_v27 }
 0xd28   : > { %v5764_v10 = vmul.f32 1.0614054, %v12441_v6  ;;  %v6054_v3 = vsub.f32 0.0, %v12411_v24  ;;  %7306 = vmatprep.mubr.bf16.mxu0 %v6389_v32  ;;  %v6391_v9 = vpack.c.bf16 %v6359_v52, %v6351_v12  ;;  %v6390_v7 = vpack.c.bf16 %v6358_v42, %v12386_v26 }
 0xd29   : > { %v6047_v28 = vsub.f32 0.0, %v12326_v50  ;;  %v5639_v55 = vmul.f32 0.3275911, %v5607_v56  ;;  %7307 = vmatmul.mubr.bf16.vlgmr.msra.gmra.mxu0 %v6388_v59  ;;  %v5884_v35 = vmul.f32 %v12377_v47, %v5852_v20  ;;  %v6046_v29 = vsub.f32 0.0, %v12323_v23 }
 0xd2a   : > { %v5796_v31 = vadd.f32 -1.4531521, %v5764_v10  ;;  %v5855_v43 = vadd.f32 1.4214138, %v5823_v53  ;;  %v6144_v62 = vmul.f32 1.442695, %v6084_v11  ;;  %7359 = vmatprep.mubr.bf16.mxu1 %v6391_v9  ;;  %9748 = vpow2.f32 %v6128_v34 }
 0xd2b   : > { %v6130_v48 = vmul.f32 1.442695, %v6077_v44  ;;  %v5671_v37 = vadd.f32 1.0, %v5639_v55  ;;  %7360 = vmatmul.mubr.bf16.vlgmr.msra.gmra.mxu1 %v6390_v7  ;;  %v5854_v41 = vadd.f32 1.4214138, %v5822_v2  ;;  %v6086_v49 = vmul.f32 %v6054_v3, %v12411_v24 }
 0xd2c   : > { %v5828_v1 = vmul.f32 %v12441_v6, %v5796_v31  ;;  %v5917_v26 = vadd.f32 -0.28449672, %v5885_v22  ;;  %v6079_v21 = vmul.f32 %v6047_v28, %v12326_v50  ;;  %v6053_v51 = vsub.f32 0.0, %v12426_v25 }
 0xd2d   : > { %9750 = vrcp.f32 %v5671_v37  ;;  %v5916_v19 = vadd.f32 -0.28449672, %v5884_v35  ;;  %v6078_v38 = vmul.f32 %v6046_v29, %v12323_v23  ;;  %v5887_v4 = vmul.f32 %v12397_v13, %v5855_v43 }
 0xd2e   : > { %v5860_v30 = vadd.f32 1.4214138, %v5828_v1  ;;  %9752 = vpow2.f32 %v6144_v62  ;;  %v5886_v16 = vmul.f32 %v12404_v18, %v5854_v41  ;;  %v5949_v24 = vmul.f32 %v12370_v14, %v5917_v26 }
 0xd2f   : > { %v9745_v52 = vpop.eup %9744  ;;  %9754 = vpow2.f32 %v6130_v48  ;;  %v6148_v50 = vmul.f32 1.442695, %v6086_v49  ;;  %v6134_v44 = vmul.f32 1.442695, %v6079_v21  ;;  %v6085_v42 = vmul.f32 %v6053_v51, %v12426_v25 }
 0xd30   : > { %v5892_v34 = vmul.f32 %v12441_v6, %v5860_v30  ;;  %v5766_v27 = vmul.f32 1.0614054, %v9745_v52  ;;  %v5948_v40 = vmul.f32 %v12377_v47, %v5916_v19  ;;  %v6132_v23 = vmul.f32 1.442695, %v6078_v38 }
 0xd31   : > { %v5919_v20 = vadd.f32 -0.28449672, %v5887_v4  ;;  %v6055_v32 = vsub.f32 0.0, %v5607_v56  ;;  %v5918_v10 = vadd.f32 -0.28449672, %v5886_v16  ;;  %9756 = vpow2.f32 %v6148_v50 }
 0xd32   : > { %v5924_v12 = vadd.f32 -0.28449672, %v5892_v34  ;;  %v5798_v53 = vadd.f32 -1.4531521, %v5766_v27  ;;  %v5981_v2 = vadd.f32 0.2548296, %v5949_v24  ;;  %9758 = vpow2.f32 %v6134_v44 }
 0xd33   : > { %v6146_v7 = vmul.f32 1.442695, %v6085_v42  ;;  %v5980_v28 = vadd.f32 0.2548296, %v5948_v40  ;;  %9760 = vpow2.f32 %v6132_v23  ;;  %v5951_v25 = vmul.f32 %v12397_v13, %v5919_v20 }
 0xd34   : > { %v5956_v11 = vmul.f32 %v12441_v6, %v5924_v12  ;;  %v9747_v59 = vpop.eup %9746  ;;  %v5830_v22 = vmul.f32 %v9745_v52, %v5798_v53  ;;  %v6087_v35 = vmul.f32 %v6055_v32, %v5607_v56  ;;  %v5950_v29 = vmul.f32 %v12404_v18, %v5918_v10 }
 0xd35   : > { %v5765_v9 = vmul.f32 1.0614054, %v9747_v59  ;;  %v6013_v1 = vmul.f32 %v12370_v14, %v5981_v2  ;;  %9762 = vpow2.f32 %v6146_v7  ;;  %v6012_v26 = vmul.f32 %v12377_v47, %v5980_v28 }
 0xd36   : > { %v5988_v3 = vadd.f32 0.2548296, %v5956_v11  ;;  %v5862_v31 = vadd.f32 1.4214138, %v5830_v22  ;;  %v5983_v49 = vadd.f32 0.2548296, %v5951_v25 }
 0xd37   : > { %v5797_v55 = vadd.f32 -1.4531521, %v5765_v9  ;;  %v9749_v48 = vpop.eup %9748  ;;  %v6150_v38 = vmul.f32 1.442695, %v6087_v35  ;;  %v5982_v4 = vadd.f32 0.2548296, %v5950_v29 }
 0xd38   : > { %v6020_v43 = vmul.f32 %v12441_v6, %v5988_v3  ;;  %v5894_v62 = vmul.f32 %v9745_v52, %v5862_v31  ;;  %v6172_v50 = vmul.f32 %v9749_v48, %v6012_v26  ;;  %v6015_v44 = vmul.f32 %v12397_v13, %v5983_v49 }
 0xd39   : > { %v5829_v37 = vmul.f32 %v9747_v59, %v5797_v55  ;;  %9764 = vpow2.f32 %v6150_v38  ;;  %v6014_v47 = vmul.f32 %v12404_v18, %v5982_v4  ;;  %vm6244_vm12 = vcmp.ge.f32.partialorder %v12352_v61, 0.0 }
 0xd3a   : > { %v9751_v41 = vpop.eup %9750  ;;  %v5926_v21 = vadd.f32 -0.28449672, %v5894_v62  ;;  %v6204_v2 = vsub.f32 1.0, %v6172_v50  ;;  %vm6237_vm13 = vcmp.ge.f32.partialorder %v12290_v58, 0.0  ;;  %vm6236_vm14 = vcmp.ge.f32.partialorder %v12281_v17, 0.0 }
 0xd3b   : > { %v9753_v30 = vpop.eup %9752  ;;  %v5861_v51 = vadd.f32 1.4214138, %v5829_v37  ;;  %v5767_v19 = vmul.f32 1.0614054, %v9751_v41  ;;  %v5540_v58 = vmul.f32 0.5, %v12349_v33  ;;  %vm6245_vm15 = vcmp.ge.f32.partialorder %v12420_v63, 0.0 }
 0xd3c   : > { %v9755_v56 = vpop.eup %9754  ;;  %v6180_v34 = vmul.f32 %v9753_v30, %v6020_v43  ;;  %v5958_v16 = vmul.f32 %v9745_v52, %v5926_v21  ;;  %v6268_v18 = vsub.f32 0.0, %v6204_v2  ;;  %vm6246_vm0 = vcmp.ge.f32.partialorder %v12395_v15, 0.0 }
 0xd3d   : > { %v6173_v6 = vmul.f32 %v9755_v56, %v6013_v1  ;;  %v5893_v24 = vmul.f32 %v9747_v59, %v5861_v51  ;;  %v5799_v27 = vadd.f32 -1.4531521, %v5767_v19  ;;  %v5533_v51 = vmul.f32 0.5, %v12272_v0 }
 0xd3e   : > { %v5990_v14 = vadd.f32 0.2548296, %v5958_v16  ;;  %v6212_v40 = vsub.f32 1.0, %v6180_v34  ;;  %v9757_v20 = vpop.eup %9756  ;;  %v6300_v30 = vsel %vm6236_vm14, %v6204_v2, %v6268_v18  ;;  %vm6239_vm1 = vcmp.ge.f32.partialorder %v12319_v54, 0.0 }
 0xd3f   : > { %v5925_v12 = vadd.f32 -0.28449672, %v5893_v24  ;;  %v5831_v42 = vmul.f32 %v9751_v41, %v5799_v27  ;;  %v6205_v53 = vsub.f32 1.0, %v6173_v6  ;;  %v9759_v10 = vpop.eup %9758  ;;  %v6332_v17 = vadd.f32 1.0, %v6300_v30 }
 0xd40   : > { %v6022_v23 = vmul.f32 %v9745_v52, %v5990_v14  ;;  %v9761_v3 = vpop.eup %9760  ;;  %v6175_v9 = vmul.f32 %v9759_v10, %v6015_v44  ;;  %v6276_v13 = vsub.f32 0.0, %v6212_v40  ;;  %v5541_v27 = vmul.f32 0.5, %v12402_v57 }
 0xd41   : > { %v5957_v11 = vmul.f32 %v9747_v59, %v5925_v12  ;;  %v5863_v32 = vadd.f32 1.4214138, %v5831_v42  ;;  %v6174_v25 = vmul.f32 %v9761_v3, %v6014_v47  ;;  %v6269_v31 = vsub.f32 0.0, %v6205_v53 }
 0xd42   : > { %v6182_v22 = vmul.f32 %v9757_v20, %v6022_v23  ;;  %v9763_v29 = vpop.eup %9762  ;;  %v6207_v52 = vsub.f32 1.0, %v6175_v9  ;;  %v6308_v37 = vsel %vm6244_vm12, %v6212_v40, %v6276_v13  ;;  %vm6238_vm2 = vcmp.ge.f32.partialorder %v12310_v8, 0.0 }
 0xd43   : > { %v5989_v7 = vadd.f32 0.2548296, %v5957_v11  ;;  %v5895_v28 = vmul.f32 %v9751_v41, %v5863_v32  ;;  %v6206_v1 = vsub.f32 1.0, %v6174_v25  ;;  %v6301_v26 = vsel %vm6237_vm13, %v6205_v53, %v6269_v31 }
 0xd44   : > { %v6214_v43 = vsub.f32 1.0, %v6182_v22  ;;  %v6271_v38 = vsub.f32 0.0, %v6207_v52  ;;  %v6340_v56 = vadd.f32 1.0, %v6308_v37  ;;  %v6333_v6 = vadd.f32 1.0, %v6301_v26 }
 0xd45   : > { %v6021_v55 = vmul.f32 %v9747_v59, %v5989_v7  ;;  %v5927_v35 = vadd.f32 -0.28449672, %v5895_v28  ;;  %v5532_v59 = vmul.f32 0.5, %v12263_v36  ;;  %v6270_v16 = vsub.f32 0.0, %v6206_v1 }
 0xd46   : > { %v6278_v19 = vsub.f32 0.0, %v6214_v43  ;;  %v9765_v34 = vpop.eup %9764  ;;  %v6372_v14 = vmul.f32 %v6340_v56, %v5540_v58  ;;  %v6365_v33 = vmul.f32 %v6333_v6, %v5533_v51  ;;  %vm6247_vm3 = vcmp.ge.f32.partialorder %v12439_v46, 0.0  ;;  %v6377_v56 = vld [vmem:[#allocation4 + $0x18] sm:$0xff] }
 0xd47   : > { %v6181_v62 = vmul.f32 %v9763_v29, %v6021_v55  ;;  %v5959_v48 = vmul.f32 %v9751_v41, %v5927_v35  ;;  %v6302_v12 = vsel %vm6238_vm2, %v6206_v1, %v6270_v16  ;;  %v6364_v63 = vmul.f32 %v6332_v17, %v5532_v59  ;;  %v6378_v17 = vld [vmem:[#allocation4 + $0x10] sm:$0xff] }
 0xd48   : > { %v6310_v0 = vsel %vm6246_vm0, %v6214_v43, %v6278_v19  ;;  %v6334_v54 = vadd.f32 1.0, %v6302_v12  ;;  %v5542_v20 = vmul.f32 0.5, %v12380_v45  ;;  %v5535_v8 = vmul.f32 0.5, %v12305_v5 }
 0xd49   : > { %v6213_v49 = vsub.f32 1.0, %v6181_v62  ;;  %v5991_v21 = vadd.f32 0.2548296, %v5959_v48  ;;  %v6342_v47 = vadd.f32 1.0, %v6310_v0  ;;  %v6396_v53 = vpack.c.bf16 %v6372_v14, %v6364_v63 }
 0xd4a   : > { %v5543_v11 = vmul.f32 0.5, %v12429_v39  ;;  %v5534_v10 = vmul.f32 0.5, %v12287_v60 }
 0xd4b   : > { %v6277_v61 = vsub.f32 0.0, %v6213_v49  ;;  %v6023_v4 = vmul.f32 %v9751_v41, %v5991_v21  ;;  %v6303_v41 = vsel %vm6239_vm1, %v6207_v52, %v6271_v38  ;;  %v6374_v2 = vmul.f32 %v6342_v47, %v5542_v20  ;;  %v6376_v21 = vld [vmem:[#allocation4] sm:$0xff] }
 0xd4c   : > { %v6335_v15 = vadd.f32 1.0, %v6303_v41  ;;  %v6366_v9 = vmul.f32 %v6334_v54, %v5534_v10  ;;  %v6379_v41 = vld [vmem:[#allocation4 + $0x20] sm:$0xff] }
 0xd4d   : > { %v6309_v24 = vsel %vm6245_vm15, %v6213_v49, %v6277_v61  ;;  %v6183_v36 = vmul.f32 %v9765_v34, %v6023_v4 }
 0xd4e   : > { %v6341_v50 = vadd.f32 1.0, %v6309_v24  ;;  %v6367_v22 = vmul.f32 %v6335_v15, %v5535_v8  ;;  %v6398_v7 = vpack.c.bf16 %v6374_v2, %v6366_v9  ;;  %v6381_v2 = vld [vmem:[#allocation4 + $0x8] sm:$0xff] }
 0xd4f   : > { %v6215_v44 = vsub.f32 1.0, %v6183_v36 }
 0xd50   : > { %v6373_v42 = vmul.f32 %v6341_v50, %v5541_v27 }
 0xd51   : > { %v6279_v40 = vsub.f32 0.0, %v6215_v44 }
 0xd52   : > { %v6397_v23 = vpack.c.bf16 %v6373_v42, %v6365_v33 }
 0xd53   : > { %v6311_v57 = vsel %vm6247_vm3, %v6215_v44, %v6279_v40 }
 0xd54   : > { %v6343_v32 = vadd.f32 1.0, %v6311_v57  ;;  %7316 = vmatprep.mubr.bf16.mxu0 %v6397_v23  ;;  %v6380_v57 = vld [vmem:[#allocation4 + $0x28] sm:$0xff] }
 0xd55   : > { %7317 = vmatmul.mubr.bf16.gmra.mxu0 %v6396_v53 }
 0xd56   : > { %v6375_v3 = vmul.f32 %v6343_v32, %v5543_v11 }
 0xd58   : > { %v6399_v46 = vpack.c.bf16 %v6375_v3, %v6367_v22 }
 0xd5a   : > { %7369 = vmatprep.mubr.bf16.mxu1 %v6399_v46 }
 0xd5b   : > { %7370 = vmatmul.mubr.bf16.gmra.mxu1 %v6398_v7  ;;  %v6382_v7 = vld [vmem:[#allocation4 + $0x30] sm:$0xff] }
 0xd7a   : > { %v7202_v45 = vpop.f32.mrf.mxu0 }
 0xd7b   : > { %v7255_v28 = vpop.f32.mrf.mxu1 }
 0xd7c   : > { %v7204_v25 = vpop.f32.mrf.mxu0  ;;  %v7256_v48 = vadd.f32 %v7255_v28, %v7202_v45 }
 0xd7d   : > { %v7257_v13 = vpop.f32.mrf.mxu1 }
 0xd7e   : > { %v7206_v5 = vpop.f32.mrf.mxu0  ;;  %v7258_v26 = vadd.f32 %v7257_v13, %v7204_v25  ;;  %v6383_v13 = vld [vmem:[#allocation4 + $0x38] sm:$0xff] }
 0xd7f   : > { %v7259_v31 = vpop.f32.mrf.mxu1 }
 0xd80   : > { %v7208_v39 = vpop.f32.mrf.mxu0  ;;  %v7260_v51 = vadd.f32 %v7259_v31, %v7206_v5 }
 0xd81   : > { %v7261_v55 = vpop.f32.mrf.mxu1 }
 0xd82   : > { %v7262_v34 = vadd.f32 %v7261_v55, %v7208_v39 }
 0xdb2   : > { %v7212_v35 = vpop.f32.mrf.mxu0 }
 0xdb3   : > { %v7265_v29 = vpop.f32.mrf.mxu1 }
 0xdb4   : > { %v7214_v60 = vpop.f32.mrf.mxu0  ;;  %v7266_v63 = vadd.f32 %v7265_v29, %v7212_v35 }
 0xdb5   : > { %v7267_v18 = vpop.f32.mrf.mxu1 }
 0xdb6   : > { %v7216_v43 = vpop.f32.mrf.mxu0  ;;  %v7268_v40 = vadd.f32 %v7267_v18, %v7214_v60 }
 0xdb7   : > { %v7269_v52 = vpop.f32.mrf.mxu1 }
 0xdb8   : > { %v7218_v62 = vpop.f32.mrf.mxu0  ;;  %v7270_v54 = vadd.f32 %v7269_v52, %v7216_v43 }
 0xdb9   : > { %v7271_v1 = vpop.f32.mrf.mxu1 }
 0xdba   : > { %v7272_v11 = vadd.f32 %v7271_v1, %v7218_v62 }
 0xde9   : > { %v7308_v37 = vpop.f32.mrf.mxu0 }
 0xdea   : > { %v7309_v49 = vadd.f32 %v7308_v37, %v7256_v48 }
 0xdeb   : > { %v7361_v59 = vpop.f32.mrf.mxu1  ;;  %v7310_v30 = vpop.f32.mrf.mxu0 }
 0xdec   : > { %v7362_v19 = vadd.f32 %v7361_v59, %v7309_v49  ;;  %v7311_v38 = vadd.f32 %v7310_v30, %v7258_v26 }
 0xded   : > { %v7363_v61 = vpop.f32.mrf.mxu1  ;;  %v7312_v4 = vpop.f32.mrf.mxu0 }
 0xdee   : > { %v7380_v16 = vadd.f32 %v7362_v19, %v6376_v21  ;;  %v7364_v6 = vadd.f32 %v7363_v61, %v7311_v38  ;;  %v7313_v58 = vadd.f32 %v7312_v4, %v7260_v51 }
 0xdef   : > { %v7365_v24 = vpop.f32.mrf.mxu1  ;;  %v7314_v36 = vpop.f32.mrf.mxu0 }
 0xdf0   : > { %7388 = vst [vmem:[#allocation4] sm:$0xff] %v7380_v16  ;;  %v7381_v0 = vadd.f32 %v7364_v6, %v6377_v56  ;;  %v7366_v27 = vadd.f32 %v7365_v24, %v7313_v58  ;;  %v7315_v50 = vadd.f32 %v7314_v36, %v7262_v34 }
 0xdf1   : > { %v7367_v14 = vpop.f32.mrf.mxu1 }
 0xdf2   : > { %7389 = vst [vmem:[#allocation4 + $0x18] sm:$0xff] %v7381_v0  ;;  %v7382_v44 = vadd.f32 %v7366_v27, %v6378_v17  ;;  %v7368_v12 = vadd.f32 %v7367_v14, %v7315_v50 }
 0xdf4   : > { %7390 = vst [vmem:[#allocation4 + $0x10] sm:$0xff] %v7382_v44  ;;  %v7383_v33 = vadd.f32 %v7368_v12, %v6379_v41 }
 0xdf6   : > { %7391 = vst [vmem:[#allocation4 + $0x20] sm:$0xff] %v7383_v33 }
 0xe15   : > { %v7318_v42 = vpop.f32.mrf.mxu0 }
 0xe16   : > { %v7319_v15 = vadd.f32 %v7318_v42, %v7266_v63 }
 0xe17   : > { %v7320_v47 = vpop.f32.mrf.mxu0 }
 0xe18   : > { %v7321_v20 = vadd.f32 %v7320_v47, %v7268_v40 }
 0xe19   : > { %v7322_v23 = vpop.f32.mrf.mxu0 }
 0xe1a   : > { %v7323_v10 = vadd.f32 %v7322_v23, %v7270_v54 }
 0xe1b   : > { %v7371_v53 = vpop.f32.mrf.mxu1  ;;  %v7324_v8 = vpop.f32.mrf.mxu0 }
 0xe1c   : > { %v7372_v32 = vadd.f32 %v7371_v53, %v7319_v15  ;;  %v7325_v46 = vadd.f32 %v7324_v8, %v7272_v11 }
 0xe1d   : > { %v7373_v22 = vpop.f32.mrf.mxu1 }
 0xe1e   : > { %v7384_v3 = vadd.f32 %v7372_v32, %v6380_v57  ;;  %v7374_v9 = vadd.f32 %v7373_v22, %v7321_v20 }
 0xe1f   : > { %v7375_v45 = vpop.f32.mrf.mxu1 }
 0xe20   : > { %7392 = vst [vmem:[#allocation4 + $0x28] sm:$0xff] %v7384_v3  ;;  %v7385_v28 = vadd.f32 %v7374_v9, %v6381_v2  ;;  %v7376_v25 = vadd.f32 %v7375_v45, %v7323_v10 }
 0xe21   : > { %v7377_v5 = vpop.f32.mrf.mxu1 }
 0xe22   : > { %7393 = vst [vmem:[#allocation4 + $0x8] sm:$0xff] %v7385_v28  ;;  %v7386_v31 = vadd.f32 %v7376_v25, %v6382_v7  ;;  %v7378_v39 = vadd.f32 %v7377_v5, %v7325_v46 }
 0xe24   : > { %7394 = vst [vmem:[#allocation4 + $0x30] sm:$0xff] %v7386_v31  ;;  %v7387_v55 = vadd.f32 %v7378_v39, %v6383_v13 }
 0xe26   : > { %7395 = vst [vmem:[#allocation4 + $0x38] sm:$0xff] %v7387_v55 }
 0xe27 PF: > { %7398 = sbr.rel (%p8429_p5) target bundleno = 3642 (0xe3a), region = 236 }
 0xe2c   : > { %v7399_v35 = vld [vmem:[#allocation2] sm:$0xff]  ;;  %v7425_v60 = vlaneseq  ;;  %v7400_v43 = vld [vmem:[#allocation2 + $0x8] sm:$0xff]  ;;  %v7408_v52 = vld [vmem:[#allocation4 + $0x18] sm:$0xff] }
 0xe2d   : > { %v7407_v29 = vld [vmem:[#allocation4] sm:$0xff]  ;;  %v7401_v62 = vld [vmem:[#allocation2 + $0x10] sm:$0xff]  ;;  %v7402_v37 = vld [vmem:[#allocation2 + $0x18] sm:$0xff]  ;;  %v7416_v21 = vadd.f32 %v7408_v52, %v7400_v43 }
 0xe2e   : > { %v7423_v18 = vld [vmem:[%s1553_s27] sm:$0x3]  ;;  %v7426_v48 = vshrl.u32 %v7425_v60, 7  ;;  %v7409_v1 = vld [vmem:[#allocation4 + $0x10] sm:$0xff]  ;;  %v7415_v49 = vadd.f32 %v7407_v29, %v7399_v35  ;;  %v7411_v30 = vld [vmem:[#allocation4 + $0x28] sm:$0xff] }
 0xe2f   : > { %v7410_v26 = vld [vmem:[#allocation4 + $0x20] sm:$0xff]  ;;  %v7404_v51 = vld [vmem:[#allocation2 + $0x28] sm:$0xff]  ;;  %v7417_v56 = vadd.f32 %v7409_v1, %v7401_v62  ;;  %v7405_v34 = vld [vmem:[#allocation2 + $0x30] sm:$0xff] }
 0xe30   : > { %v7403_v59 = vld [vmem:[#allocation2 + $0x20] sm:$0xff]  ;;  %v7427_v19 = vsub.s32 0, %v7426_v48  ;;  %v7431_v38 = vsub.s32 1, %v7426_v48  ;;  %v7418_v61 = vadd.f32 %v7410_v26, %v7402_v37  ;;  %v7412_v4 = vld [vmem:[#allocation4 + $0x8] sm:$0xff]  ;;  %v7413_v16 = vld [vmem:[#allocation4 + $0x30] sm:$0xff] }
 0xe31   : > { %v7419_v6 = vadd.f32 %v7411_v30, %v7403_v59  ;;  %v7420_v58 = vadd.f32 %v7412_v4, %v7404_v51  ;;  %v7421_v17 = vadd.f32 %v7413_v16, %v7405_v34  ;;  %v7406_v24 = vld [vmem:[#allocation2 + $0x38] sm:$0xff] }
 0xe32   : > { %v7414_v36 = vld [vmem:[#allocation4 + $0x38] sm:$0xff]  ;;  %v7428_v0 = vrot.slane %v7423_v18, %v7427_v19  ;;  %v7432_v27 = vrot.slane %v7423_v18, %v7431_v38 }
 0xe33   : > { %v7422_v50 = vadd.f32 %v7414_v36, %v7406_v24 }
 0xe34   : > { %v7435_v41 = vadd.f32 %v7428_v0, %v7415_v49  ;;  %v7436_v14 = vadd.f32 %v7432_v27, %v7416_v21  ;;  %v7437_v44 = vadd.f32 %v7428_v0, %v7417_v56  ;;  %v7438_v12 = vadd.f32 %v7432_v27, %v7418_v61 }
 0xe35   : > { %v7439_v33 = vadd.f32 %v7428_v0, %v7419_v6  ;;  %v7440_v42 = vadd.f32 %v7432_v27, %v7420_v58  ;;  %v7441_v63 = vadd.f32 %v7428_v0, %v7421_v17  ;;  %v7442_v47 = vadd.f32 %v7432_v27, %v7422_v50 }
 0xe36   : > { %7443 = vst [vmem:[#allocation2] sm:$0xff] %v7435_v41  ;;  %7444 = vst [vmem:[#allocation2 + $0x8] sm:$0xff] %v7436_v14 }
 0xe37   : > { %7445 = vst [vmem:[#allocation2 + $0x10] sm:$0xff] %v7437_v44  ;;  %7446 = vst [vmem:[#allocation2 + $0x18] sm:$0xff] %v7438_v12 }
 0xe38   : > { %7447 = vst [vmem:[#allocation2 + $0x20] sm:$0xff] %v7439_v33  ;;  %7448 = vst [vmem:[#allocation2 + $0x28] sm:$0xff] %v7440_v42 }
 0xe39   : > { %7449 = vst [vmem:[#allocation2 + $0x30] sm:$0xff] %v7441_v63  ;;  %7450 = vst [vmem:[#allocation2 + $0x38] sm:$0xff] %v7442_v47 }
 0xe3a PF: > { %s12789_s27 = sld [smem:[#allocation77_spill]] }
 0xe40   : > { %p7451_p11 = scmp.eq.s32.totalorder %s12789_s27, 1 }
 0xe42   : > { %p7452_p13 = pnand %p7451_p11, %p4297_p1 }
 0xe43   : > { %s12791_s24 = sld [smem:[#allocation70_spill]] (!%p7452_p13) }
 0xe44   : > { %7455 = sbr.rel (%p7452_p13) target bundleno = 4190 (0x105e), region = 240  ;;  %s12792_s16 = sld [smem:[#allocation68_spill]] (!%p7452_p13) }
 0xe45   : > { %s12793_s11 = sld [smem:[#allocation69_spill]] (!%p7452_p13) }
 0xe46   : > { %s12794_s15 = sld [smem:[#allocation71_spill]] (!%p7452_p13) }
 0xe49   : > { %v7458_v40 = vld [vmem:[#allocation2 + $0x30] sm:$0xff]  ;;  %v7459_v15 = vld [vmem:[#allocation2 + $0x38] sm:$0xff]  ;;  %vm7478_vm4 = vcmask 1040384   ;;  %vm7472_vm5 = vcmask 1047559   ;;  %v9771_v21 = vld [vmem:[%s12791_s24 + $0x68] sm:$0xff]   ;;  %v7536_v27 = vlaneseq  ;;  %vm7618_vm6 = vcmask 1041409  }
 0xe4a   : > { %v7456_v23 = vld [vmem:[#allocation2 + $0x10] sm:$0xff]  ;;  %v7466_v54 = vrot.slane %v7458_v40, 7  ;;  %v7467_v20 = vrot.slane %v7459_v15, 7  ;;  %v7457_v57 = vld [vmem:[#allocation2 + $0x18] sm:$0xff]  ;;  %v9772_v59 = vld [vmem:[%s12791_s24 + $0x28] sm:$0xff]   ;;  %vm7763_vm7 = vcmask 254976  }
 0xe4b   : > { %v7473_v53 = vsel %vm7472_vm5, %v7456_v23, 0.0  ;;  %v7474_v8 = vsel %vm7472_vm5, %v7457_v57, 0.0  ;;  %v9767_v1 = vld [vmem:[%s12791_s24 + $0x78] sm:$0xff]   ;;  %v9769_v26 = vld [vmem:[%s12791_s24 + $0x70] sm:$0xff]   ;;  %v9773_v30 = vld [vmem:[%s12791_s24 + $0x60] sm:$0xff]   ;;  %v7537_v41 = vshrl.u32 %v7536_v27, 7 }
 0xe4c   : > { %v7479_v11 = vsel %vm7478_vm4, %v7466_v54, 0.0  ;;  %v7480_v32 = vsel %vm7478_vm4, %v7467_v20, 0.0  ;;  %v7475_v2 = vadd.f32 %v7474_v8, %v7473_v53  ;;  %v9768_v37 = vld [vmem:[%s12791_s24 + $0x38] sm:$0xff]   ;;  %8727 = vmatprep.subr.bf16.mxu0 %v9767_v1  ;;  %v9770_v49 = vld [vmem:[%s12791_s24 + $0x30] sm:$0xff]   ;;  %v9774_v51 = vld [vmem:[%s12791_s24 + $0x20] sm:$0xff]  }
 0xe4d   : > { %v7481_v10 = vadd.f32 %v7480_v32, %v7479_v11  ;;  %8728 = vmatpush3.bf16.msra.mxu0 %v9768_v37  ;;  %v9775_v19 = vld [vmem:[%s12791_s24 + $0x58] sm:$0xff]   ;;  %v9777_v56 = vld [vmem:[%s12791_s24 + $0x50] sm:$0xff]   ;;  %v9779_v4 = vld [vmem:[%s12791_s24 + $0x48] sm:$0xff]   ;;  %v7538_v14 = vsub.s32 0, %v7537_v41  ;;  %v7542_v44 = vsub.s32 1, %v7537_v41 }
 0xe4e   : > { %8729 = vmatprep.subr.bf16.mxu0 %v9769_v26  ;;  %v9776_v38 = vld [vmem:[%s12791_s24 + $0x18] sm:$0xff]   ;;  %v9778_v61 = vld [vmem:[%s12791_s24 + $0x10] sm:$0xff]   ;;  %v9780_v34 = vld [vmem:[%s12791_s24 + $0x8] sm:$0xff]  }
 0xe4f   : > { %7482 = vadd.xlane.f32.xlu0 %v7481_v10  ;;  %v9781_v16 = vld [vmem:[%s12791_s24 + $0x40] sm:$0xff]  }
 0xe50   : > { %v9782_v6 = vld [vmem:[%s12791_s24] sm:$0xff]  }
 0xe51   : > { %8730 = vmatpush3.bf16.msra.mxu0 %v9770_v49  ;;  %v7460_v12 = vld [vmem:[%s12792_s16] sm:$0x3] }
 0xe52   : > { %8731 = vmatprep.subr.bf16.mxu0 %v9771_v21  ;;  %v7461_v42 = vld [vmem:[%s12793_s11] sm:$0x3]  ;;  %v7539_v63 = vrot.slane %v7460_v12, %v7538_v14 }
 0xe53   : > { %7476 = vadd.xlane.f32.xlu0 %v7475_v2  ;;  %v7554_v54 = vrot.slane %v7461_v42, %v7538_v14  ;;  %v7558_v20 = vrot.slane %v7461_v42, %v7542_v44  ;;  %v8688_v1 = vld [vmem:[%s12794_s15] ss:$0 sm:$0xff] }
 0xe55   : > { %8732 = vmatpush3.bf16.msra.mxu0 %v9772_v59 }
 0xe56   : > { %8733 = vmatprep.subr.bf16.mxu0 %v9773_v30 }
 0xe59   : > { %8734 = vmatpush3.bf16.msra.mxu0 %v9774_v51 }
 0xe5a   : > { %8735 = vmatprep.subr.bf16.mxu0 %v9775_v19 }
 0xe5d   : > { %8736 = vmatpush3.bf16.msra.mxu0 %v9776_v38 }
 0xe5e   : > { %8737 = vmatprep.subr.bf16.mxu0 %v9777_v56 }
 0xe61   : > { %8738 = vmatpush3.bf16.msra.mxu0 %v9778_v61 }
 0xe62   : > { %8739 = vmatprep.subr.bf16.mxu0 %v9779_v4 }
 0xe65   : > { %8740 = vmatpush3.bf16.msra.mxu0 %v9780_v34 }
 0xe66   : > { %8741 = vmatprep.subr.bf16.mxu0 %v9781_v16 }
 0xe69   : > { %8742 = vmatpush3.bf16.msra.mxu0 %v9782_v6 }
 0xed8   : > { %v7483_v22 = vpop.xlane.xlu0 %7482 }
 0xed9   : > { %v7486_v3 = vmul.f32 0.00390625, %v7483_v22 }
 0xedb   : > { %v7489_v9 = vrot.slane %v7486_v3, 1 }
 0xedc   : > { %v7477_v46 = vpop.xlane.xlu0 %7476 }
 0xedd   : > { %v12502_v7 = vsub.f32 %v7458_v40, %v7489_v9  ;;  %v12504_v45 = vsub.f32 %v7459_v15, %v7489_v9  ;;  %v7485_v28 = vmul.f32 0.00390625, %v7477_v46  ;;  %v7543_v40 = vrot.slane %v7460_v12, %v7542_v44 }
 0xedf   : > { %v12506_v25 = vsub.f32 %v7456_v23, %v7485_v28  ;;  %v12508_v13 = vsub.f32 %v7457_v57, %v7485_v28  ;;  %v7498_v5 = vmul.f32 %v12502_v7, %v12502_v7  ;;  %v7499_v31 = vmul.f32 %v12504_v45, %v12504_v45 }
 0xee1   : > { %v7496_v39 = vmul.f32 %v12506_v25, %v12506_v25  ;;  %v7497_v55 = vmul.f32 %v12508_v13, %v12508_v13  ;;  %v7504_v35 = vrot.slane %v7498_v5, 7  ;;  %v7505_v29 = vrot.slane %v7499_v31, 7 }
 0xee3   : > { %v7515_v60 = vsel %vm7478_vm4, %v7504_v35, 0.0  ;;  %v7516_v18 = vsel %vm7478_vm4, %v7505_v29, 0.0  ;;  %v7510_v43 = vsel %vm7472_vm5, %v7496_v39, 0.0  ;;  %v7511_v52 = vsel %vm7472_vm5, %v7497_v55, 0.0 }
 0xee4   : > { %v7517_v62 = vadd.f32 %v7516_v18, %v7515_v60  ;;  %v7512_v48 = vadd.f32 %v7511_v52, %v7510_v43 }
 0xee6   : > { %7518 = vadd.xlane.f32.xlu1 %v7517_v62 }
 0xeea   : > { %7513 = vadd.xlane.f32.xlu1 %v7512_v48 }
 0xf6f   : > { %v7519_v58 = vpop.xlane.xlu1 %7518 }
 0xf70   : > { %v7521_v17 = vmul.f32 0.00390625, %v7519_v58 }
 0xf72   : > { %v7523_v24 = vadd.f32 1e-05, %v7521_v17 }
 0xf73   : > { %v7514_v36 = vpop.xlane.xlu1 %7513 }
 0xf74   : > { %9783 = vrsqrt.f32 %v7523_v24  ;;  %v7520_v0 = vmul.f32 0.00390625, %v7514_v36 }
 0xf76   : > { %v7522_v50 = vadd.f32 1e-05, %v7520_v0 }
 0xf78   : > { %9785 = vrsqrt.f32 %v7522_v50 }
 0xf81   : > { %v9784_v33 = vpop.eup %9783 }
 0xf82   : > { %v7528_v47 = vrot.slane %v9784_v33, 1 }
 0xf84   : > { %v7533_v15 = vmul.f32 %v7528_v47, %v12502_v7  ;;  %v7534_v23 = vmul.f32 %v7528_v47, %v12504_v45 }
 0xf85   : > { %v9786_v57 = vpop.eup %9785 }
 0xf86   : > { %v7548_v53 = vmul.f32 %v7539_v63, %v7533_v15  ;;  %v7532_v8 = vmul.f32 %v9786_v57, %v12508_v13  ;;  %v7549_v11 = vmul.f32 %v7543_v40, %v7534_v23  ;;  %v7531_v32 = vmul.f32 %v9786_v57, %v12506_v25 }
 0xf88   : > { %v7547_v10 = vmul.f32 %v7543_v40, %v7532_v8  ;;  %v7564_v2 = vadd.f32 %v7558_v20, %v7549_v11  ;;  %v7546_v22 = vmul.f32 %v7539_v63, %v7531_v32  ;;  %v7563_v3 = vadd.f32 %v7554_v54, %v7548_v53 }
 0xf8a   : > { %v7562_v9 = vadd.f32 %v7558_v20, %v7547_v10  ;;  %v7568_v46 = vpack.c.bf16 %v7564_v2, %v7564_v2  ;;  %v7561_v28 = vadd.f32 %v7554_v54, %v7546_v22  ;;  %v7567_v5 = vpack.c.bf16 %v7563_v3, %v7563_v3 }
 0xf8c   : > { %v7566_v7 = vpack.c.bf16 %v7562_v9, %v7562_v9  ;;  %v7615_v31 = vunpack.c.l.b16 %v7568_v46  ;;  %v7565_v45 = vpack.c.bf16 %v7561_v28, %v7561_v28  ;;  %v7614_v39 = vunpack.c.l.b16 %v7567_v5 }
 0xf8e   : > { %v7613_v55 = vunpack.c.l.b16 %v7566_v7  ;;  %v7612_v35 = vunpack.c.l.b16 %v7565_v45  ;;  %v7621_v29 = vrot.slane %v7615_v31, 6  ;;  %v7617_v25 = vrot.slane %v7614_v39, 6 }
 0xf90   : > { %v7620_v13 = vrot.slane %v7613_v55, 7  ;;  %v7616_v60 = vrot.slane %v7612_v35, 7 }
 0xf92   : > { %v7622_v18 = vsel %vm7618_vm6, %v7621_v29, %v7620_v13  ;;  %v7619_v43 = vsel %vm7618_vm6, %v7617_v25, %v7616_v60 }
 0xf93   : > { %v7624_v52 = vpack.c.b16 %v7622_v18, %v7622_v18  ;;  %v7623_v62 = vpack.c.b16 %v7619_v43, %v7619_v43 }
 0xf95   : > { %7755 = vmatprep.mubr.bf16.mxu0 %v7624_v52 }
 0xf96   : > { %7756 = vmatmul.mubr.bf16.vlgmr.msra.gmra.mxu0 %v7623_v62 }
0x1056   : > { %v8743_v48 = vpop.f32.mrf.mxu0 }
0x1058   : > { %v8744_v37 = vpop.f32.mrf.mxu0 }
0x1059   : > { %v8745_v26 = vadd.f32 %v8744_v37, %v8743_v48 }
0x105a   : > { %v8746_v49 = vpop.f32.mrf.mxu0 }
0x105b   : > { %v7758_v21 = vadd.f32 %v8745_v26, %v8688_v1 }
0x105c   : > { %v8747_v59 = vpop.f32.mrf.mxu0 }
0x105d   : > { %7764 = vst.msk [vmem:[#allocation29] sm:$0x3] %vm7763_vm7, %v7758_v21 }
0x105e PF: > { %p8927_p6 = scmp.eq.s32.totalorder %s10630_s4, 3  ;;  %s10398_s21 = smov [#allocation29]  }
0x105f   : > { %s7772_s2 = sshll.u32 %s10398_s21, 4  ;;  %s7773_s2 = int_to_ptr.vmem [resolvable:$true] %s7772_s2 }
0x1060   : > { %s10185_s0 = scalar_lea.vmem %s7773_s2, 32  ;;  %p10192_p8 = scmp.lt.s32.totalorder %s7773_s2, %s7773_s2 }
0x1061   : > { %p10186_p9 = scmp.ne.s32.totalorder %s7773_s2, %s10185_s0  ;;  %p10193_p4 = scmp.lt.s32.totalorder %s10185_s0, %s10185_s0 }
0x1063   : > { %p10187_p12 = pnand %p10186_p9, %p8927_p6  ;;  %p10194_p10 = por %p10193_p4, %p10192_p8 }
0x1065   : > { %p10188_p2 = pneg %p10187_p12 }
0x1067   : > { %p10195_p0 = pnand %p10194_p10, %p10188_p2 }
0x1069   : > { %10198 = shalt.err (!%p10195_p0)
}
0x106a   : > { %s12795_s23 = sld [smem:[#allocation72_spill]] }
0x1070   : > { %8854 = dma.vmem_to_hbm [thread:$0]  (%p8927_p6), %s7773_s2, 32, %s12795_s23, [#allocation7]  }
0x1071   : > { %10286 = dma.done.wait (%p8927_p6), [#allocation7], 32  }
0x1072   : > { %10288 = vsyncadd (%p8927_p6), [#allocation7], 4294967264 }
0x1073 PF: > { %s12796_s7 = sld [smem:[#allocation80_spill]] }
0x1074   : > { %s12797_s19 = sld [smem:[#allocation73_spill]] }
0x1075   : > { %s12798_s11 = sld [smem:[#allocation86_spill]] }
0x1076   : > { %s12799_s15 = sld [smem:[#allocation74_spill]] }
0x1077   : > { %s12800_s0 = sld [smem:[#allocation75_spill]] }
0x1078   : > { %s12801_s16 = sld [smem:[#allocation84_spill]] }
0x1079   : > { %s90_s28 = sadd.s32 1, %s12796_s7   ;;  %s12802_s18 = sld [smem:[#allocation78_spill]] }
0x107a   : > { %p87_p7 = scmp.ge.s32.totalorder %s90_s28, 6   ;;  %s12803_s22 = sld [smem:[#allocation79_spill]] }
0x107b   : > { %s12804_s23 = sld [smem:[#allocation82_spill]]  ;;  %s12806_s7 = smov %s10299_s10 }
0x107c   : > { %s12805_s26 = sld [smem:[#allocation83_spill]]  ;;  %s12807_s10 = smov %s12797_s19 }
0x107d   :  { %89 = sbr.rel (!%p87_p7) target bundleno = 89 (0x59), region = 362 }
0x1082   :  { %7785 = vsyncpa [#allocation6], 1 }
0x1083   :  { %7787 = vsyncpa [#allocation6 + $0x1], 1 }
0x1084   :  { %7788 = vsyncpa [#allocation9], 1 }
0x1085   :  { %7789 = vsyncpa [#allocation12], 1 }
0x1086   :  { %7790 = vsyncpa [#allocation15], 1 }
0x1087   :  { %7791 = vsyncpa [#allocation18], 1 }
0x1088   :  { %7792 = vsyncpa [#allocation21], 1 }
0x1089   :  { %7793 = vsyncpa [#allocation24], 1 }
0x108a   :  { %7795 = vsyncpa [#allocation24 + $0x1], 1 }
0x108b   :  { %7796 = vsyncpa [#allocation27], 1 }
0x108c   :  { %7798 = vsyncpa [#allocation27 + $0x1], 1 }
0x108d   :  { %7799 = vsyncpa [#allocation7], 1 }
0x108e   :  { %7801 = vsyncpa [#allocation7 + $0x1], 1 }

</bundles_post_ra>
